<compile_context>
chip_gen: v5e
topology: v5e:2x2
jax: 0.10.0
libtpu: 0.0.40
codegen_flags: <defaults>
</compile_context>

<pallas_src>
import jax
import jax.numpy as jnp
from jax.experimental import pallas as pl
from jax.experimental.pallas import tpu as pltpu


def _round_up(x, m):
    return ((x + m - 1) // m) * m


# ------------------------------ fused kernel --------------------------------

def _make_fused_kernel(Bt, H, W, Cin, C1, C2, FC, Gp, H1, H2, roff, boff):
    """Per-grid-step kernel: a block of Bt images, everything VMEM resident."""
    Hp, Wp = H // 2, W // 2      # spatial after pool1
    Hq, Wq = Hp // 2, Wp // 2    # spatial after pool2
    taps = [(ky, kx) for ky in range(3) for kx in range(3)]
    f32, bf16 = jnp.float32, jnp.bfloat16
    r1c, r1g, r2, r3 = roff                  # row offsets in the MLP slab
    bo1, bo2, bo3, bo4, bo5, bo6 = boff      # lane offsets in the bias slab

    def kernel(x_ref, g_ref, wc1_ref, wc2_ref, wfc_ref, wmlp_ref, bias_ref,
               o_ref, col1_ref, pad2_ref, col2_ref, col3_ref,
               tmp1_ref, tmp2_ref):
        # ---- conv1: input block is already padded NHWC bf16; build im2col
        #      (9 lane bands) and do ONE K=9*Cin matmul + bias + ReLU --------
        for t, (ky, kx) in enumerate(taps):
            col1_ref[:, t * Cin:(t + 1) * Cin] = (
                x_ref[:, ky:ky + H, kx:kx + W, :].reshape(Bt * H * W, Cin))
        y = jnp.dot(col1_ref[...], wc1_ref[...], preferred_element_type=f32)
        y = jnp.maximum(y + bias_ref[:, bo1:bo1 + C1], 0.0)     # (Bt*H*W, C1)

        # ---- pool1 (2x2 max): h-pairs via major-dim max, w-pairs via two
        #      sublane-strided reads of a small VMEM stage -------------------
        tmp1_ref[...] = jnp.max(y.reshape(Bt * Hp, 2, W, C1), axis=1)
        p1 = jnp.maximum(tmp1_ref[:, pl.ds(0, Wp, stride=2), :],
                         tmp1_ref[:, pl.ds(1, Wp, stride=2), :])  # (Bt*Hp,Wp,C1)

        # ---- conv2 input: zero-padded bf16 buffer.  Re-zeroed every step
        #      (cheap; a program_id==0-only init would leave the second
        #      TensorCore's scratch border uninitialized under megacore). ----
        pad2_ref[...] = jnp.zeros((Bt, Hp + 2, Wp + 2, C1), bf16)
        pad2_ref[:, 1:Hp + 1, 1:Wp + 1, :] = (
            p1.reshape(Bt, Hp, Wp, C1).astype(bf16))

        # ---- conv2: im2col + ONE K=9*C1 matmul + bias + ReLU ---------------
        for t, (ky, kx) in enumerate(taps):
            col2_ref[:, t * C1:(t + 1) * C1] = (
                pad2_ref[:, ky:ky + Hp, kx:kx + Wp, :].reshape(Bt * Hp * Wp, C1))
        y = jnp.dot(col2_ref[...], wc2_ref[...], preferred_element_type=f32)
        y = jnp.maximum(y + bias_ref[:, bo2:bo2 + C2], 0.0)     # (Bt*Hp*Wp, C2)

        # ---- pool2 ----------------------------------------------------------
        tmp2_ref[...] = jnp.max(y.reshape(Bt * Hq, 2, Wp, C2), axis=1)
        p2 = jnp.maximum(tmp2_ref[:, pl.ds(0, Wq, stride=2), :],
                         tmp2_ref[:, pl.ds(1, Wq, stride=2), :])  # (Bt*Hq,Wq,C2)

        # ---- cnn_to_fc: flatten the pooled map into (Bt, Hq*Wq*C2) via lane-
        #      band writes (wfc rows pre-permuted to (h,w,c) order) and run
        #      ONE K=Hq*Wq*C2 matmul instead of Hq*Wq tiny ones. --------------
        p2_4d = p2.reshape(Bt, Hq, Wq, C2).astype(bf16)
        for i in range(Hq):
            for j in range(Wq):
                r = (i * Wq + j) * C2
                col3_ref[:, r:r + C2] = p2_4d[:, i, j, :]
        fc = (jnp.dot(col3_ref[...], wfc_ref[...], preferred_element_type=f32)
              + bias_ref[:, bo3:bo3 + FC])
        cnn_feat = jnp.maximum(fc, 0.0).astype(bf16)            # (Bt, FC)

        # ---- MLP head: concat([cnn_feat, global]) realized as split matmuls;
        #      globals zero-padded to Gp (matching zero rows in the slab) -----
        g = g_ref[:, 0, :]                                      # (Bt, Gp) bf16
        w1c = wmlp_ref[r1c:r1c + FC, 0:H1]
        w1g = wmlp_ref[r1g:r1g + Gp, 0:H1]
        w2 = wmlp_ref[r2:r2 + H1, 0:H2]
        w3 = wmlp_ref[r3:r3 + H2, 0:1]

        h = (jnp.dot(cnn_feat, w1c, preferred_element_type=f32)
             + jnp.dot(g, w1g, preferred_element_type=f32)
             + bias_ref[:, bo4:bo4 + H1])
        h = jnp.maximum(h, 0.0).astype(bf16)
        h = jnp.maximum(jnp.dot(h, w2, preferred_element_type=f32)
                        + bias_ref[:, bo5:bo5 + H2], 0.0).astype(bf16)
        z = jnp.dot(h, w3, preferred_element_type=f32) + bias_ref[:, bo6:bo6 + 1]

        # stable softplus + 1e-6, all in f32
        sp = jnp.maximum(z, 0.0) + jnp.log(1.0 + jnp.exp(-jnp.abs(z)))
        o_ref[0] = sp + 1e-6

    return kernel


# ------------------------------ parameter init ------------------------------

def init_params(key, patch_side, cin, num_global,
                c1=16, c2=32, fc_out=32, h1=64, h2=32):
    """Deterministic PyTorch-style init, repacked into kernel-friendly slabs."""
    if patch_side % 4:
        raise ValueError("patch_side must be divisible by 4 (two 2x2 max-pools)")
    if num_global < 1:
        # TODO(synk): the global_features.numel() == 0 branch (no concat) of the
        # reference module is not implemented.
        raise ValueError("num_global_features must be >= 1")
    ks = jax.random.split(key, 12)

    def u(k, shape, fan_in):
        bound = float(fan_in) ** -0.5
        return jax.random.uniform(k, shape, jnp.float32, -bound, bound)

    conv1_w = u(ks[0], (c1, cin, 3, 3), cin * 9)
    conv1_b = u(ks[1], (c1,), cin * 9)
    conv2_w = u(ks[2], (c2, c1, 3, 3), c1 * 9)
    conv2_b = u(ks[3], (c2,), c1 * 9)
    side4 = patch_side // 4
    flat = c2 * side4 * side4                     # == self.cnn_flat_size
    fcw = u(ks[4], (fc_out, flat), flat)
    fcb = u(ks[5], (fc_out,), flat)
    f1w = u(ks[6], (h1, fc_out + num_global), fc_out + num_global)
    f1b = u(ks[7], (h1,), fc_out + num_global)
    f2w = u(ks[8], (h2, h1), h1)
    f2b = u(ks[9], (h2,), h1)
    f3w = u(ks[10], (1, h2), h2)
    f3b = u(ks[11], (1,), h2)

    # conv weights -> stacked per-tap matrices: rows in (ky, kx, cin) order
    wc1 = jnp.transpose(conv1_w, (2, 3, 1, 0)).reshape(9 * cin, c1)
    wc2 = jnp.transpose(conv2_w, (2, 3, 1, 0)).reshape(9 * c1, c2)

    # cnn_to_fc weight rows permuted from PyTorch's (c, h, w) flatten order to
    # the kernel's (h, w, c) order (bit-identical math, zero runtime cost)
    wfc = (fcw.T.reshape(c2, side4 * side4, fc_out)
           .transpose(1, 0, 2).reshape(flat, fc_out))

    # MLP weight slab: every row segment starts on a 16-row (bf16 sublane tile)
    # boundary so the in-kernel slices are free views
    gp = _round_up(num_global, 16)
    r1c = 0
    r1g = _round_up(fc_out, 16)
    r2 = r1g + gp
    r3 = r2 + _round_up(h1, 16)
    nrow = r3 + _round_up(h2, 16)
    ncol = max(h1, h2, 1)
    wmlp = jnp.zeros((nrow, ncol), jnp.float32)
    wmlp = wmlp.at[r1c:r1c + fc_out, :h1].set(f1w.T[:fc_out])
    wmlp = wmlp.at[r1g:r1g + num_global, :h1].set(f1w.T[fc_out:])
    wmlp = wmlp.at[r2:r2 + h1, :h2].set(f2w.T)
    wmlp = wmlp.at[r3:r3 + h2, :1].set(f3w.T)

    # bias slab (f32): every segment starts on a 128-lane tile boundary
    segs = [conv1_b, conv2_b, fcb, f1b, f2b, f3b]
    boff, off = [], 0
    for s in segs:
        boff.append(off)
        off += _round_up(int(s.shape[0]), 128)
    bias = jnp.zeros((1, off), jnp.float32)
    for o, s in zip(boff, segs):
        bias = bias.at[0, o:o + s.shape[0]].set(s)

    return dict(
        wc1=wc1.astype(jnp.bfloat16),
        wc2=wc2.astype(jnp.bfloat16),
        wfc=wfc.astype(jnp.bfloat16),
        wmlp=wmlp.astype(jnp.bfloat16),
        bias=bias,
        dims=dict(side=patch_side, cin=cin, c1=c1, c2=c2, fc=fc_out,
                  g=num_global, gp=gp, h1=h1, h2=h2,
                  roff=(r1c, r1g, r2, r3), boff=tuple(boff)),
        # original PyTorch-layout weights, kept only for the f32 reference check
        raw=dict(conv1_w=conv1_w, conv1_b=conv1_b, conv2_w=conv2_w,
                 conv2_b=conv2_b, fcw=fcw, fcb=fcb, f1w=f1w, f1b=f1b,
                 f2w=f2w, f2b=f2b, f3w=f3w, f3b=f3b),
    )


# --------------------------------- forward ----------------------------------

def heuristic_network_cnn_forward(params, local_map_patch, global_features,
                                  block_batch=8):
    """local_map_patch: [B, C, H, W] (NCHW, like PyTorch); global: [B, G] or [1, G]."""
    d = params["dims"]
    B, Cin, H, W = map(int, local_map_patch.shape)
    if (H, W) != (d["side"], d["side"]) or Cin != d["cin"]:
        raise ValueError("input patch shape does not match the initialized network")
    C1, C2, FC, G, Gp = d["c1"], d["c2"], d["fc"], d["g"], d["gp"]
    H1, H2 = d["h1"], d["h2"]
    Hp, Wp, Hq, Wq = H // 2, W // 2, H // 4, W // 4

    # --- batch blocking: Bt images per grid step (amortizes per-step pipeline
    #     overhead and gives all matmuls a useful M); keep >= 2 grid steps
    #     whenever B >= 2 so both v7x TensorCores get work. -------------------
    if B <= 1:
        Bt = 1
    else:
        Bt = max(1, min(block_batch, (B + 1) // 2))
    nblk = -(-B // Bt)
    B_pad = nblk * Bt

    # NCHW -> NHWC, bf16 downcast and conv1's zero padding done once here: the
    # kernel's input block is already the padded bf16 image (no pad1 scratch,
    # no in-kernel zeroing or casts, and half the input DMA bytes).
    x = jnp.transpose(local_map_patch, (0, 2, 3, 1)).astype(jnp.bfloat16)
    x = jnp.pad(x, ((0, B_pad - B), (1, 1), (1, 1), (0, 0)))

    # global-feature broadcast semantics of the reference module
    # TODO(synk): the `global_features_batch.numel() == 0` branch (no concat)
    # is not implemented; this wrapper assumes num_global_features > 0.
    g = global_features
    if g.shape[0] == 1 and B > 1:
        g = jnp.tile(g, (B, 1))
    elif g.shape[0] != B:
        raise ValueError("Batch size mismatch between CNN and global features")
    g = jnp.pad(g.astype(jnp.bfloat16), ((0, B_pad - B), (0, Gp - G)))
    g = g.reshape(B_pad, 1, Gp)

    kernel = _make_fused_kernel(Bt, H, W, Cin, C1, C2, FC, Gp, H1, H2,
                                d["roff"], d["boff"])

    grid_spec = pltpu.PrefetchScalarGridSpec(
        num_scalar_prefetch=0,
        grid=(nblk,),
        in_specs=[
            pl.BlockSpec((Bt, H + 2, W + 2, Cin), lambda b: (b, 0, 0, 0)),
            pl.BlockSpec((Bt, 1, Gp), lambda b: (b, 0, 0)),
            pl.BlockSpec(params["wc1"].shape, lambda b: (0, 0)),
            pl.BlockSpec(params["wc2"].shape, lambda b: (0, 0)),
            pl.BlockSpec(params["wfc"].shape, lambda b: (0, 0)),
            pl.BlockSpec(params["wmlp"].shape, lambda b: (0, 0)),
            pl.BlockSpec(params["bias"].shape, lambda b: (0, 0)),
        ],
        out_specs=pl.BlockSpec((1, Bt, 1), lambda b: (b, 0, 0)),
        scratch_shapes=[
            pltpu.VMEM((Bt * H * W, 9 * Cin), jnp.bfloat16),     # conv1 im2col
            pltpu.VMEM((Bt, Hp + 2, Wp + 2, C1), jnp.bfloat16),  # conv2 padded in
            pltpu.VMEM((Bt * Hp * Wp, 9 * C1), jnp.bfloat16),    # conv2 im2col
            pltpu.VMEM((Bt, Hq * Wq * C2), jnp.bfloat16),        # cnn_to_fc flat
            pltpu.VMEM((Bt * Hp, W, C1), jnp.float32),           # pool1 h-stage
            pltpu.VMEM((Bt * Hq, Wp, C2), jnp.float32),          # pool2 h-stage
        ],
    )

    out = pl.pallas_call(
        kernel,
        out_shape=jax.ShapeDtypeStruct((nblk, Bt, 1), jnp.float32),
        grid_spec=grid_spec,
        compiler_params=pltpu.CompilerParams(
            dimension_semantics=("parallel",),
            vmem_limit_bytes=32 * 1024 * 1024),
    )(x, g, params["wc1"], params["wc2"], params["wfc"], params["wmlp"],
      params["bias"])
    return out.reshape(B_pad, 1)[:B]


# ------------------------- pure-JAX f32 reference ----------------------------

def reference_forward(raw, local_map_patch, global_features):
    dn = ("NCHW", "OIHW", "NCHW")
    x = local_map_patch.astype(jnp.float32)
    y = jax.lax.conv_general_dilated(x, raw["conv1_w"], (1, 1),
                                     ((1, 1), (1, 1)), dimension_numbers=dn)
    y = jax.nn.relu(y + raw["conv1_b"][None, :, None, None])
    y = jax.lax.reduce_window(y, -jnp.inf, jax.lax.max,
                              (1, 1, 2, 2), (1, 1, 2, 2), "VALID")
    y = jax.lax.conv_general_dilated(y, raw["conv2_w"], (1, 1),
                                     ((1, 1), (1, 1)), dimension_numbers=dn)
    y = jax.nn.relu(y + raw["conv2_b"][None, :, None, None])
    y = jax.lax.reduce_window(y, -jnp.inf, jax.lax.max,
                              (1, 1, 2, 2), (1, 1, 2, 2), "VALID")
    B = x.shape[0]
    flat = y.reshape(B, -1)
    cnn = jax.nn.relu(flat @ raw["fcw"].T + raw["fcb"])
    g = global_features
    if g.shape[0] == 1 and B > 1:
        g = jnp.tile(g, (B, 1))
    comb = jnp.concatenate([cnn, g], axis=1)
    h = jax.nn.relu(comb @ raw["f1w"].T + raw["f1b"])
    h = jax.nn.relu(h @ raw["f2w"].T + raw["f2b"])
    z = h @ raw["f3w"].T + raw["f3b"]
    return jax.nn.softplus(z) + 1e-6


# ----------------------------------- main ------------------------------------

if __name__ == "__main__":
    C, H, G = 4, 16, 3          # input channels, patch side, num_global_features
    params = init_params(jax.random.PRNGKey(42), H, C, G)

    # primary small-shape run (B=2)
    B = 2
    kx, kg = jax.random.split(jax.random.PRNGKey(0))
    local_map = jax.random.normal(kx, (B, C, H, H), dtype=jnp.float32)
    gfeat = jax.random.normal(kg, (B, G), dtype=jnp.float32)

    out = jax.block_until_ready(
        heuristic_network_cnn_forward(params, local_map, gfeat))
    assert out.shape == (B, 1), out.shape
    assert bool(jnp.all(out > 0.0)), "softplus + 1e-6 output must be positive"
    ref = jax.block_until_ready(reference_forward(params["raw"], local_map, gfeat))
    assert bool(jnp.allclose(out, ref, atol=2e-2, rtol=2e-2)), (out, ref)

    # second check: batch-blocked path (Bt > 1) with a ragged batch
    B2 = 9
    kx2, kg2 = jax.random.split(jax.random.PRNGKey(1))
    local_map2 = jax.random.normal(kx2, (B2, C, H, H), dtype=jnp.float32)
    gfeat2 = jax.random.normal(kg2, (B2, G), dtype=jnp.float32)
    out2 = jax.block_until_ready(
        heuristic_network_cnn_forward(params, local_map2, gfeat2))
    ref2 = jax.block_until_ready(reference_forward(params["raw"], local_map2, gfeat2))
    assert out2.shape == (B2, 1), out2.shape
    assert bool(jnp.allclose(out2, ref2, atol=2e-2, rtol=2e-2)), (out2, ref2)

    print("KERNEL_OK")
</pallas_src>

<mosaic_0001>
module attributes {stable_mosaic.version = 11 : i64} {
  func.func @kernel(%arg0: i32, %arg1: memref<1x18x18x4xbf16, #tpu.memory_space<vmem>>, %arg2: memref<1x1x16xbf16, #tpu.memory_space<vmem>>, %arg3: memref<36x16xbf16, #tpu.memory_space<vmem>>, %arg4: memref<144x32xbf16, #tpu.memory_space<vmem>>, %arg5: memref<512x32xbf16, #tpu.memory_space<vmem>>, %arg6: memref<144x64xbf16, #tpu.memory_space<vmem>>, %arg7: memref<1x768xf32, #tpu.memory_space<vmem>>, %arg8: memref<1x1x1xf32, #tpu.memory_space<vmem>>, %arg9: memref<256x36xbf16, #tpu.memory_space<vmem>>, %arg10: memref<1x10x10x16xbf16, #tpu.memory_space<vmem>>, %arg11: memref<64x144xbf16, #tpu.memory_space<vmem>>, %arg12: memref<1x512xbf16, #tpu.memory_space<vmem>>, %arg13: memref<8x16x16xf32, #tpu.memory_space<vmem>>, %arg14: memref<4x8x32xf32, #tpu.memory_space<vmem>>) attributes {dimension_semantics = [#tpu.dimension_semantics<parallel>], iteration_bounds = array<i64: 2>, scalar_prefetch = 0 : i64, scratch_operands = 6 : i64, tpu.core_type = #tpu.core_type<tc>, window_params = [{transform_indices = @transform_0, window_bounds = array<i64: 1, 18, 18, 4>}, {transform_indices = @transform_1, window_bounds = array<i64: 1, 1, 16>}, {pipeline_mode = #tpu.pipeline_mode<synchronous>, transform_indices = @transform_2, window_bounds = array<i64: 36, 16>}, {pipeline_mode = #tpu.pipeline_mode<synchronous>, transform_indices = @transform_3, window_bounds = array<i64: 144, 32>}, {pipeline_mode = #tpu.pipeline_mode<synchronous>, transform_indices = @transform_4, window_bounds = array<i64: 512, 32>}, {pipeline_mode = #tpu.pipeline_mode<synchronous>, transform_indices = @transform_5, window_bounds = array<i64: 144, 64>}, {pipeline_mode = #tpu.pipeline_mode<synchronous>, transform_indices = @transform_6, window_bounds = array<i64: 1, 768>}, {transform_indices = @transform_7, window_bounds = array<i64: 1, 1, 1>}]} {
    %c0 = arith.constant 0 : index
    %c0_0 = arith.constant 0 : index
    %c0_1 = arith.constant 0 : index
    %c0_2 = arith.constant 0 : index
    %0 = vector.load %arg1[%c0, %c0_0, %c0_1, %c0_2] : memref<1x18x18x4xbf16, #tpu.memory_space<vmem>>, vector<1x16x16x4xbf16>
    %1 = vector.shape_cast %0 : vector<1x16x16x4xbf16> to vector<256x4xbf16>
    %c0_3 = arith.constant 0 : index
    %c0_4 = arith.constant 0 : index
    %2 = vector.load %arg9[%c0_3, %c0_4] : memref<256x36xbf16, #tpu.memory_space<vmem>>, vector<256x4xbf16>
    tpu.vector_store %arg9[%c0_3, %c0_4], %1 {strides = array<i32>} : memref<256x36xbf16, #tpu.memory_space<vmem>>, vector<256x4xbf16>,
    %c0_5 = arith.constant 0 : index
    %c0_6 = arith.constant 0 : index
    %c1 = arith.constant 1 : index
    %c0_7 = arith.constant 0 : index
    %3 = vector.load %arg1[%c0_5, %c0_6, %c1, %c0_7] : memref<1x18x18x4xbf16, #tpu.memory_space<vmem>>, vector<1x16x16x4xbf16>
    %4 = vector.shape_cast %3 : vector<1x16x16x4xbf16> to vector<256x4xbf16>
    %c0_8 = arith.constant 0 : index
    %c4 = arith.constant 4 : index
    %5 = vector.load %arg9[%c0_8, %c4] : memref<256x36xbf16, #tpu.memory_space<vmem>>, vector<256x4xbf16>
    tpu.vector_store %arg9[%c0_8, %c4], %4 {strides = array<i32>} : memref<256x36xbf16, #tpu.memory_space<vmem>>, vector<256x4xbf16>,
    %c0_9 = arith.constant 0 : index
    %c0_10 = arith.constant 0 : index
    %c2 = arith.constant 2 : index
    %c0_11 = arith.constant 0 : index
    %6 = vector.load %arg1[%c0_9, %c0_10, %c2, %c0_11] : memref<1x18x18x4xbf16, #tpu.memory_space<vmem>>, vector<1x16x16x4xbf16>
    %7 = vector.shape_cast %6 : vector<1x16x16x4xbf16> to vector<256x4xbf16>
    %c0_12 = arith.constant 0 : index
    %c8 = arith.constant 8 : index
    %8 = vector.load %arg9[%c0_12, %c8] : memref<256x36xbf16, #tpu.memory_space<vmem>>, vector<256x4xbf16>
    tpu.vector_store %arg9[%c0_12, %c8], %7 {strides = array<i32>} : memref<256x36xbf16, #tpu.memory_space<vmem>>, vector<256x4xbf16>,
    %c0_13 = arith.constant 0 : index
    %c1_14 = arith.constant 1 : index
    %c0_15 = arith.constant 0 : index
    %c0_16 = arith.constant 0 : index
    %9 = vector.load %arg1[%c0_13, %c1_14, %c0_15, %c0_16] : memref<1x18x18x4xbf16, #tpu.memory_space<vmem>>, vector<1x16x16x4xbf16>
    %10 = vector.shape_cast %9 : vector<1x16x16x4xbf16> to vector<256x4xbf16>
    %c0_17 = arith.constant 0 : index
    %c12 = arith.constant 12 : index
    %11 = vector.load %arg9[%c0_17, %c12] : memref<256x36xbf16, #tpu.memory_space<vmem>>, vector<256x4xbf16>
    tpu.vector_store %arg9[%c0_17, %c12], %10 {strides = array<i32>} : memref<256x36xbf16, #tpu.memory_space<vmem>>, vector<256x4xbf16>,
    %c0_18 = arith.constant 0 : index
    %c1_19 = arith.constant 1 : index
    %c1_20 = arith.constant 1 : index
    %c0_21 = arith.constant 0 : index
    %12 = vector.load %arg1[%c0_18, %c1_19, %c1_20, %c0_21] : memref<1x18x18x4xbf16, #tpu.memory_space<vmem>>, vector<1x16x16x4xbf16>
    %13 = vector.shape_cast %12 : vector<1x16x16x4xbf16> to vector<256x4xbf16>
    %c0_22 = arith.constant 0 : index
    %c16 = arith.constant 16 : index
    %14 = vector.load %arg9[%c0_22, %c16] : memref<256x36xbf16, #tpu.memory_space<vmem>>, vector<256x4xbf16>
    tpu.vector_store %arg9[%c0_22, %c16], %13 {strides = array<i32>} : memref<256x36xbf16, #tpu.memory_space<vmem>>, vector<256x4xbf16>,
    %c0_23 = arith.constant 0 : index
    %c1_24 = arith.constant 1 : index
    %c2_25 = arith.constant 2 : index
    %c0_26 = arith.constant 0 : index
    %15 = vector.load %arg1[%c0_23, %c1_24, %c2_25, %c0_26] : memref<1x18x18x4xbf16, #tpu.memory_space<vmem>>, vector<1x16x16x4xbf16>
    %16 = vector.shape_cast %15 : vector<1x16x16x4xbf16> to vector<256x4xbf16>
    %c0_27 = arith.constant 0 : index
    %c20 = arith.constant 20 : index
    %17 = vector.load %arg9[%c0_27, %c20] : memref<256x36xbf16, #tpu.memory_space<vmem>>, vector<256x4xbf16>
    tpu.vector_store %arg9[%c0_27, %c20], %16 {strides = array<i32>} : memref<256x36xbf16, #tpu.memory_space<vmem>>, vector<256x4xbf16>,
    %c0_28 = arith.constant 0 : index
    %c2_29 = arith.constant 2 : index
    %c0_30 = arith.constant 0 : index
    %c0_31 = arith.constant 0 : index
    %18 = vector.load %arg1[%c0_28, %c2_29, %c0_30, %c0_31] : memref<1x18x18x4xbf16, #tpu.memory_space<vmem>>, vector<1x16x16x4xbf16>
    %19 = vector.shape_cast %18 : vector<1x16x16x4xbf16> to vector<256x4xbf16>
    %c0_32 = arith.constant 0 : index
    %c24 = arith.constant 24 : index
    %20 = vector.load %arg9[%c0_32, %c24] : memref<256x36xbf16, #tpu.memory_space<vmem>>, vector<256x4xbf16>
    tpu.vector_store %arg9[%c0_32, %c24], %19 {strides = array<i32>} : memref<256x36xbf16, #tpu.memory_space<vmem>>, vector<256x4xbf16>,
    %c0_33 = arith.constant 0 : index
    %c2_34 = arith.constant 2 : index
    %c1_35 = arith.constant 1 : index
    %c0_36 = arith.constant 0 : index
    %21 = vector.load %arg1[%c0_33, %c2_34, %c1_35, %c0_36] : memref<1x18x18x4xbf16, #tpu.memory_space<vmem>>, vector<1x16x16x4xbf16>
    %22 = vector.shape_cast %21 : vector<1x16x16x4xbf16> to vector<256x4xbf16>
    %c0_37 = arith.constant 0 : index
    %c28 = arith.constant 28 : index
    %23 = vector.load %arg9[%c0_37, %c28] : memref<256x36xbf16, #tpu.memory_space<vmem>>, vector<256x4xbf16>
    tpu.vector_store %arg9[%c0_37, %c28], %22 {strides = array<i32>} : memref<256x36xbf16, #tpu.memory_space<vmem>>, vector<256x4xbf16>,
    %c0_38 = arith.constant 0 : index
    %c2_39 = arith.constant 2 : index
    %c2_40 = arith.constant 2 : index
    %c0_41 = arith.constant 0 : index
    %24 = vector.load %arg1[%c0_38, %c2_39, %c2_40, %c0_41] : memref<1x18x18x4xbf16, #tpu.memory_space<vmem>>, vector<1x16x16x4xbf16>
    %25 = vector.shape_cast %24 : vector<1x16x16x4xbf16> to vector<256x4xbf16>
    %c0_42 = arith.constant 0 : index
    %c32 = arith.constant 32 : index
    %26 = vector.load %arg9[%c0_42, %c32] : memref<256x36xbf16, #tpu.memory_space<vmem>>, vector<256x4xbf16>
    tpu.vector_store %arg9[%c0_42, %c32], %25 {strides = array<i32>} : memref<256x36xbf16, #tpu.memory_space<vmem>>, vector<256x4xbf16>,
    %c0_43 = arith.constant 0 : index
    %c0_44 = arith.constant 0 : index
    %27 = vector.load %arg9[%c0_43, %c0_44] : memref<256x36xbf16, #tpu.memory_space<vmem>>, vector<256x36xbf16>
    %c0_45 = arith.constant 0 : index
    %c0_46 = arith.constant 0 : index
    %28 = vector.load %arg3[%c0_45, %c0_46] : memref<36x16xbf16, #tpu.memory_space<vmem>>, vector<36x16xbf16>
    %cst = arith.constant dense<0.000000e+00> : vector<256x16xf32>
    %29 = tpu.matmul %27, %28, %cst {dimension_numbers = #tpu.dot_dimension_numbers<[1], [0], [0], [1], [0, 0, 1, 1], [], []>} : vector<256x36xbf16>, vector<36x16xbf16>, vector<256x16xf32> -> vector<256x16xf32>
    %c0_47 = arith.constant 0 : index
    %c0_48 = arith.constant 0 : index
    %30 = vector.load %arg7[%c0_47, %c0_48] : memref<1x768xf32, #tpu.memory_space<vmem>>, vector<1x16xf32>
    %31 = vector.broadcast %30 : vector<1x16xf32> to vector<256x16xf32>
    %32 = arith.addf %29, %31 : vector<256x16xf32>
    %cst_49 = arith.constant 0.000000e+00 : f32
    %33 = vector.broadcast %cst_49 : f32 to vector<256x16xf32>
    %34 = arith.maximumf %32, %33 : vector<256x16xf32>
    %35 = vector.shape_cast %34 : vector<256x16xf32> to vector<8x2x16x16xf32>
    %cst_50 = arith.constant dense<0xFF800000> : vector<8x16x16xf32>
    %36 = vector.multi_reduction <maximumf>, %35, %cst_50 [1] : vector<8x2x16x16xf32> to vector<8x16x16xf32>
    %c0_51 = arith.constant 0 : index
    %c0_52 = arith.constant 0 : index
    %c0_53 = arith.constant 0 : index
    %37 = vector.load %arg13[%c0_51, %c0_52, %c0_53] : memref<8x16x16xf32, #tpu.memory_space<vmem>>, vector<8x16x16xf32>
    tpu.vector_store %arg13[%c0_51, %c0_52, %c0_53], %36 {strides = array<i32>} : memref<8x16x16xf32, #tpu.memory_space<vmem>>, vector<8x16x16xf32>,
    %c0_54 = arith.constant 0 : index
    %c0_55 = arith.constant 0 : index
    %c0_56 = arith.constant 0 : index
    %38 = tpu.strided_load %arg13[%c0_54, %c0_55, %c0_56] {strides = array<i32: 1, 2, 1>} : memref<8x16x16xf32, #tpu.memory_space<vmem>>, vector<8x8x16xf32>
    %c0_57 = arith.constant 0 : index
    %c1_58 = arith.constant 1 : index
    %c0_59 = arith.constant 0 : index
    %39 = tpu.strided_load %arg13[%c0_57, %c1_58, %c0_59] {strides = array<i32: 1, 2, 1>} : memref<8x16x16xf32, #tpu.memory_space<vmem>>, vector<8x8x16xf32>
    %40 = arith.maximumf %38, %39 : vector<8x8x16xf32>
    %cst_60 = arith.constant 0.000000e+00 : bf16
    %41 = vector.broadcast %cst_60 : bf16 to vector<1x10x10x16xbf16>
    %c0_61 = arith.constant 0 : index
    %c0_62 = arith.constant 0 : index
    %c0_63 = arith.constant 0 : index
    %c0_64 = arith.constant 0 : index
    %42 = vector.load %arg10[%c0_61, %c0_62, %c0_63, %c0_64] : memref<1x10x10x16xbf16, #tpu.memory_space<vmem>>, vector<1x10x10x16xbf16>
    tpu.vector_store %arg10[%c0_61, %c0_62, %c0_63, %c0_64], %41 {strides = array<i32>} : memref<1x10x10x16xbf16, #tpu.memory_space<vmem>>, vector<1x10x10x16xbf16>,
    %43 = vector.shape_cast %40 : vector<8x8x16xf32> to vector<1x8x8x16xf32>
    %44 = arith.truncf %43 : vector<1x8x8x16xf32> to vector<1x8x8x16xbf16>
    %c0_65 = arith.constant 0 : index
    %c1_66 = arith.constant 1 : index
    %c1_67 = arith.constant 1 : index
    %c0_68 = arith.constant 0 : index
    %45 = vector.load %arg10[%c0_65, %c1_66, %c1_67, %c0_68] : memref<1x10x10x16xbf16, #tpu.memory_space<vmem>>, vector<1x8x8x16xbf16>
    tpu.vector_store %arg10[%c0_65, %c1_66, %c1_67, %c0_68], %44 {strides = array<i32>} : memref<1x10x10x16xbf16, #tpu.memory_space<vmem>>, vector<1x8x8x16xbf16>,
    %c0_69 = arith.constant 0 : index
    %c0_70 = arith.constant 0 : index
    %c0_71 = arith.constant 0 : index
    %c0_72 = arith.constant 0 : index
    %46 = vector.load %arg10[%c0_69, %c0_70, %c0_71, %c0_72] : memref<1x10x10x16xbf16, #tpu.memory_space<vmem>>, vector<1x8x8x16xbf16>
    %47 = vector.shape_cast %46 : vector<1x8x8x16xbf16> to vector<64x16xbf16>
    %c0_73 = arith.constant 0 : index
    %c0_74 = arith.constant 0 : index
    %48 = vector.load %arg11[%c0_73, %c0_74] : memref<64x144xbf16, #tpu.memory_space<vmem>>, vector<64x16xbf16>
    tpu.vector_store %arg11[%c0_73, %c0_74], %47 {strides = array<i32>} : memref<64x144xbf16, #tpu.memory_space<vmem>>, vector<64x16xbf16>,
    %c0_75 = arith.constant 0 : index
    %c0_76 = arith.constant 0 : index
    %c1_77 = arith.constant 1 : index
    %c0_78 = arith.constant 0 : index
    %49 = vector.load %arg10[%c0_75, %c0_76, %c1_77, %c0_78] : memref<1x10x10x16xbf16, #tpu.memory_space<vmem>>, vector<1x8x8x16xbf16>
    %50 = vector.shape_cast %49 : vector<1x8x8x16xbf16> to vector<64x16xbf16>
    %c0_79 = arith.constant 0 : index
    %c16_80 = arith.constant 16 : index
    %51 = vector.load %arg11[%c0_79, %c16_80] : memref<64x144xbf16, #tpu.memory_space<vmem>>, vector<64x16xbf16>
    tpu.vector_store %arg11[%c0_79, %c16_80], %50 {strides = array<i32>} : memref<64x144xbf16, #tpu.memory_space<vmem>>, vector<64x16xbf16>,
    %c0_81 = arith.constant 0 : index
    %c0_82 = arith.constant 0 : index
    %c2_83 = arith.constant 2 : index
    %c0_84 = arith.constant 0 : index
    %52 = vector.load %arg10[%c0_81, %c0_82, %c2_83, %c0_84] : memref<1x10x10x16xbf16, #tpu.memory_space<vmem>>, vector<1x8x8x16xbf16>
    %53 = vector.shape_cast %52 : vector<1x8x8x16xbf16> to vector<64x16xbf16>
    %c0_85 = arith.constant 0 : index
    %c32_86 = arith.constant 32 : index
    %54 = vector.load %arg11[%c0_85, %c32_86] : memref<64x144xbf16, #tpu.memory_space<vmem>>, vector<64x16xbf16>
    tpu.vector_store %arg11[%c0_85, %c32_86], %53 {strides = array<i32>} : memref<64x144xbf16, #tpu.memory_space<vmem>>, vector<64x16xbf16>,
    %c0_87 = arith.constant 0 : index
    %c1_88 = arith.constant 1 : index
    %c0_89 = arith.constant 0 : index
    %c0_90 = arith.constant 0 : index
    %55 = vector.load %arg10[%c0_87, %c1_88, %c0_89, %c0_90] : memref<1x10x10x16xbf16, #tpu.memory_space<vmem>>, vector<1x8x8x16xbf16>
    %56 = vector.shape_cast %55 : vector<1x8x8x16xbf16> to vector<64x16xbf16>
    %c0_91 = arith.constant 0 : index
    %c48 = arith.constant 48 : index
    %57 = vector.load %arg11[%c0_91, %c48] : memref<64x144xbf16, #tpu.memory_space<vmem>>, vector<64x16xbf16>
    tpu.vector_store %arg11[%c0_91, %c48], %56 {strides = array<i32>} : memref<64x144xbf16, #tpu.memory_space<vmem>>, vector<64x16xbf16>,
    %c0_92 = arith.constant 0 : index
    %c1_93 = arith.constant 1 : index
    %c1_94 = arith.constant 1 : index
    %c0_95 = arith.constant 0 : index
    %58 = vector.load %arg10[%c0_92, %c1_93, %c1_94, %c0_95] : memref<1x10x10x16xbf16, #tpu.memory_space<vmem>>, vector<1x8x8x16xbf16>
    %59 = vector.shape_cast %58 : vector<1x8x8x16xbf16> to vector<64x16xbf16>
    %c0_96 = arith.constant 0 : index
    %c64 = arith.constant 64 : index
    %60 = vector.load %arg11[%c0_96, %c64] : memref<64x144xbf16, #tpu.memory_space<vmem>>, vector<64x16xbf16>
    tpu.vector_store %arg11[%c0_96, %c64], %59 {strides = array<i32>} : memref<64x144xbf16, #tpu.memory_space<vmem>>, vector<64x16xbf16>,
    %c0_97 = arith.constant 0 : index
    %c1_98 = arith.constant 1 : index
    %c2_99 = arith.constant 2 : index
    %c0_100 = arith.constant 0 : index
    %61 = vector.load %arg10[%c0_97, %c1_98, %c2_99, %c0_100] : memref<1x10x10x16xbf16, #tpu.memory_space<vmem>>, vector<1x8x8x16xbf16>
    %62 = vector.shape_cast %61 : vector<1x8x8x16xbf16> to vector<64x16xbf16>
    %c0_101 = arith.constant 0 : index
    %c80 = arith.constant 80 : index
    %63 = vector.load %arg11[%c0_101, %c80] : memref<64x144xbf16, #tpu.memory_space<vmem>>, vector<64x16xbf16>
    tpu.vector_store %arg11[%c0_101, %c80], %62 {strides = array<i32>} : memref<64x144xbf16, #tpu.memory_space<vmem>>, vector<64x16xbf16>,
    %c0_102 = arith.constant 0 : index
    %c2_103 = arith.constant 2 : index
    %c0_104 = arith.constant 0 : index
    %c0_105 = arith.constant 0 : index
    %64 = vector.load %arg10[%c0_102, %c2_103, %c0_104, %c0_105] : memref<1x10x10x16xbf16, #tpu.memory_space<vmem>>, vector<1x8x8x16xbf16>
    %65 = vector.shape_cast %64 : vector<1x8x8x16xbf16> to vector<64x16xbf16>
    %c0_106 = arith.constant 0 : index
    %c96 = arith.constant 96 : index
    %66 = vector.load %arg11[%c0_106, %c96] : memref<64x144xbf16, #tpu.memory_space<vmem>>, vector<64x16xbf16>
    tpu.vector_store %arg11[%c0_106, %c96], %65 {strides = array<i32>} : memref<64x144xbf16, #tpu.memory_space<vmem>>, vector<64x16xbf16>,
    %c0_107 = arith.constant 0 : index
    %c2_108 = arith.constant 2 : index
    %c1_109 = arith.constant 1 : index
    %c0_110 = arith.constant 0 : index
    %67 = vector.load %arg10[%c0_107, %c2_108, %c1_109, %c0_110] : memref<1x10x10x16xbf16, #tpu.memory_space<vmem>>, vector<1x8x8x16xbf16>
    %68 = vector.shape_cast %67 : vector<1x8x8x16xbf16> to vector<64x16xbf16>
    %c0_111 = arith.constant 0 : index
    %c112 = arith.constant 112 : index
    %69 = vector.load %arg11[%c0_111, %c112] : memref<64x144xbf16, #tpu.memory_space<vmem>>, vector<64x16xbf16>
    tpu.vector_store %arg11[%c0_111, %c112], %68 {strides = array<i32>} : memref<64x144xbf16, #tpu.memory_space<vmem>>, vector<64x16xbf16>,
    %c0_112 = arith.constant 0 : index
    %c2_113 = arith.constant 2 : index
    %c2_114 = arith.constant 2 : index
    %c0_115 = arith.constant 0 : index
    %70 = vector.load %arg10[%c0_112, %c2_113, %c2_114, %c0_115] : memref<1x10x10x16xbf16, #tpu.memory_space<vmem>>, vector<1x8x8x16xbf16>
    %71 = vector.shape_cast %70 : vector<1x8x8x16xbf16> to vector<64x16xbf16>
    %c0_116 = arith.constant 0 : index
    %c128 = arith.constant 128 : index
    %72 = vector.load %arg11[%c0_116, %c128] : memref<64x144xbf16, #tpu.memory_space<vmem>>, vector<64x16xbf16>
    tpu.vector_store %arg11[%c0_116, %c128], %71 {strides = array<i32>} : memref<64x144xbf16, #tpu.memory_space<vmem>>, vector<64x16xbf16>,
    %c0_117 = arith.constant 0 : index
    %c0_118 = arith.constant 0 : index
    %73 = vector.load %arg11[%c0_117, %c0_118] : memref<64x144xbf16, #tpu.memory_space<vmem>>, vector<64x144xbf16>
    %c0_119 = arith.constant 0 : index
    %c0_120 = arith.constant 0 : index
    %74 = vector.load %arg4[%c0_119, %c0_120] : memref<144x32xbf16, #tpu.memory_space<vmem>>, vector<144x32xbf16>
    %cst_121 = arith.constant dense<0.000000e+00> : vector<64x32xf32>
    %75 = tpu.matmul %73, %74, %cst_121 {dimension_numbers = #tpu.dot_dimension_numbers<[1], [0], [0], [1], [0, 0, 1, 1], [], []>} : vector<64x144xbf16>, vector<144x32xbf16>, vector<64x32xf32> -> vector<64x32xf32>
    %c0_122 = arith.constant 0 : index
    %c128_123 = arith.constant 128 : index
    %76 = vector.load %arg7[%c0_122, %c128_123] : memref<1x768xf32, #tpu.memory_space<vmem>>, vector<1x32xf32>
    %77 = vector.broadcast %76 : vector<1x32xf32> to vector<64x32xf32>
    %78 = arith.addf %75, %77 : vector<64x32xf32>
    %cst_124 = arith.constant 0.000000e+00 : f32
    %79 = vector.broadcast %cst_124 : f32 to vector<64x32xf32>
    %80 = arith.maximumf %78, %79 : vector<64x32xf32>
    %81 = vector.shape_cast %80 : vector<64x32xf32> to vector<4x2x8x32xf32>
    %cst_125 = arith.constant dense<0xFF800000> : vector<4x8x32xf32>
    %82 = vector.multi_reduction <maximumf>, %81, %cst_125 [1] : vector<4x2x8x32xf32> to vector<4x8x32xf32>
    %c0_126 = arith.constant 0 : index
    %c0_127 = arith.constant 0 : index
    %c0_128 = arith.constant 0 : index
    %83 = vector.load %arg14[%c0_126, %c0_127, %c0_128] : memref<4x8x32xf32, #tpu.memory_space<vmem>>, vector<4x8x32xf32>
    tpu.vector_store %arg14[%c0_126, %c0_127, %c0_128], %82 {strides = array<i32>} : memref<4x8x32xf32, #tpu.memory_space<vmem>>, vector<4x8x32xf32>,
    %c0_129 = arith.constant 0 : index
    %c0_130 = arith.constant 0 : index
    %c0_131 = arith.constant 0 : index
    %84 = tpu.strided_load %arg14[%c0_129, %c0_130, %c0_131] {strides = array<i32: 1, 2, 1>} : memref<4x8x32xf32, #tpu.memory_space<vmem>>, vector<4x4x32xf32>
    %c0_132 = arith.constant 0 : index
    %c1_133 = arith.constant 1 : index
    %c0_134 = arith.constant 0 : index
    %85 = tpu.strided_load %arg14[%c0_132, %c1_133, %c0_134] {strides = array<i32: 1, 2, 1>} : memref<4x8x32xf32, #tpu.memory_space<vmem>>, vector<4x4x32xf32>
    %86 = arith.maximumf %84, %85 : vector<4x4x32xf32>
    %87 = vector.shape_cast %86 : vector<4x4x32xf32> to vector<1x4x4x32xf32>
    %88 = arith.truncf %87 : vector<1x4x4x32xf32> to vector<1x4x4x32xbf16>
    %89 = vector.extract_strided_slice %88 {offsets = [0, 0, 0, 0], sizes = [1, 1, 1, 32], strides = [1, 1, 1, 1]} : vector<1x4x4x32xbf16> to vector<1x1x1x32xbf16>
    %90 = vector.shape_cast %89 : vector<1x1x1x32xbf16> to vector<1x32xbf16>
    %c0_135 = arith.constant 0 : index
    %c0_136 = arith.constant 0 : index
    %91 = vector.load %arg12[%c0_135, %c0_136] : memref<1x512xbf16, #tpu.memory_space<vmem>>, vector<1x32xbf16>
    tpu.vector_store %arg12[%c0_135, %c0_136], %90 {strides = array<i32>} : memref<1x512xbf16, #tpu.memory_space<vmem>>, vector<1x32xbf16>,
    %92 = vector.extract_strided_slice %88 {offsets = [0, 0, 1, 0], sizes = [1, 1, 1, 32], strides = [1, 1, 1, 1]} : vector<1x4x4x32xbf16> to vector<1x1x1x32xbf16>
    %93 = vector.shape_cast %92 : vector<1x1x1x32xbf16> to vector<1x32xbf16>
    %c0_137 = arith.constant 0 : index
    %c32_138 = arith.constant 32 : index
    %94 = vector.load %arg12[%c0_137, %c32_138] : memref<1x512xbf16, #tpu.memory_space<vmem>>, vector<1x32xbf16>
    tpu.vector_store %arg12[%c0_137, %c32_138], %93 {strides = array<i32>} : memref<1x512xbf16, #tpu.memory_space<vmem>>, vector<1x32xbf16>,
    %95 = vector.extract_strided_slice %88 {offsets = [0, 0, 2, 0], sizes = [1, 1, 1, 32], strides = [1, 1, 1, 1]} : vector<1x4x4x32xbf16> to vector<1x1x1x32xbf16>
    %96 = vector.shape_cast %95 : vector<1x1x1x32xbf16> to vector<1x32xbf16>
    %c0_139 = arith.constant 0 : index
    %c64_140 = arith.constant 64 : index
    %97 = vector.load %arg12[%c0_139, %c64_140] : memref<1x512xbf16, #tpu.memory_space<vmem>>, vector<1x32xbf16>
    tpu.vector_store %arg12[%c0_139, %c64_140], %96 {strides = array<i32>} : memref<1x512xbf16, #tpu.memory_space<vmem>>, vector<1x32xbf16>,
    %98 = vector.extract_strided_slice %88 {offsets = [0, 0, 3, 0], sizes = [1, 1, 1, 32], strides = [1, 1, 1, 1]} : vector<1x4x4x32xbf16> to vector<1x1x1x32xbf16>
    %99 = vector.shape_cast %98 : vector<1x1x1x32xbf16> to vector<1x32xbf16>
    %c0_141 = arith.constant 0 : index
    %c96_142 = arith.constant 96 : index
    %100 = vector.load %arg12[%c0_141, %c96_142] : memref<1x512xbf16, #tpu.memory_space<vmem>>, vector<1x32xbf16>
    tpu.vector_store %arg12[%c0_141, %c96_142], %99 {strides = array<i32>} : memref<1x512xbf16, #tpu.memory_space<vmem>>, vector<1x32xbf16>,
    %101 = vector.extract_strided_slice %88 {offsets = [0, 1, 0, 0], sizes = [1, 1, 1, 32], strides = [1, 1, 1, 1]} : vector<1x4x4x32xbf16> to vector<1x1x1x32xbf16>
    %102 = vector.shape_cast %101 : vector<1x1x1x32xbf16> to vector<1x32xbf16>
    %c0_143 = arith.constant 0 : index
    %c128_144 = arith.constant 128 : index
    %103 = vector.load %arg12[%c0_143, %c128_144] : memref<1x512xbf16, #tpu.memory_space<vmem>>, vector<1x32xbf16>
    tpu.vector_store %arg12[%c0_143, %c128_144], %102 {strides = array<i32>} : memref<1x512xbf16, #tpu.memory_space<vmem>>, vector<1x32xbf16>,
    %104 = vector.extract_strided_slice %88 {offsets = [0, 1, 1, 0], sizes = [1, 1, 1, 32], strides = [1, 1, 1, 1]} : vector<1x4x4x32xbf16> to vector<1x1x1x32xbf16>
    %105 = vector.shape_cast %104 : vector<1x1x1x32xbf16> to vector<1x32xbf16>
    %c0_145 = arith.constant 0 : index
    %c160 = arith.constant 160 : index
    %106 = vector.load %arg12[%c0_145, %c160] : memref<1x512xbf16, #tpu.memory_space<vmem>>, vector<1x32xbf16>
    tpu.vector_store %arg12[%c0_145, %c160], %105 {strides = array<i32>} : memref<1x512xbf16, #tpu.memory_space<vmem>>, vector<1x32xbf16>,
    %107 = vector.extract_strided_slice %88 {offsets = [0, 1, 2, 0], sizes = [1, 1, 1, 32], strides = [1, 1, 1, 1]} : vector<1x4x4x32xbf16> to vector<1x1x1x32xbf16>
    %108 = vector.shape_cast %107 : vector<1x1x1x32xbf16> to vector<1x32xbf16>
    %c0_146 = arith.constant 0 : index
    %c192 = arith.constant 192 : index
    %109 = vector.load %arg12[%c0_146, %c192] : memref<1x512xbf16, #tpu.memory_space<vmem>>, vector<1x32xbf16>
    tpu.vector_store %arg12[%c0_146, %c192], %108 {strides = array<i32>} : memref<1x512xbf16, #tpu.memory_space<vmem>>, vector<1x32xbf16>,
    %110 = vector.extract_strided_slice %88 {offsets = [0, 1, 3, 0], sizes = [1, 1, 1, 32], strides = [1, 1, 1, 1]} : vector<1x4x4x32xbf16> to vector<1x1x1x32xbf16>
    %111 = vector.shape_cast %110 : vector<1x1x1x32xbf16> to vector<1x32xbf16>
    %c0_147 = arith.constant 0 : index
    %c224 = arith.constant 224 : index
    %112 = vector.load %arg12[%c0_147, %c224] : memref<1x512xbf16, #tpu.memory_space<vmem>>, vector<1x32xbf16>
    tpu.vector_store %arg12[%c0_147, %c224], %111 {strides = array<i32>} : memref<1x512xbf16, #tpu.memory_space<vmem>>, vector<1x32xbf16>,
    %113 = vector.extract_strided_slice %88 {offsets = [0, 2, 0, 0], sizes = [1, 1, 1, 32], strides = [1, 1, 1, 1]} : vector<1x4x4x32xbf16> to vector<1x1x1x32xbf16>
    %114 = vector.shape_cast %113 : vector<1x1x1x32xbf16> to vector<1x32xbf16>
    %c0_148 = arith.constant 0 : index
    %c256 = arith.constant 256 : index
    %115 = vector.load %arg12[%c0_148, %c256] : memref<1x512xbf16, #tpu.memory_space<vmem>>, vector<1x32xbf16>
    tpu.vector_store %arg12[%c0_148, %c256], %114 {strides = array<i32>} : memref<1x512xbf16, #tpu.memory_space<vmem>>, vector<1x32xbf16>,
    %116 = vector.extract_strided_slice %88 {offsets = [0, 2, 1, 0], sizes = [1, 1, 1, 32], strides = [1, 1, 1, 1]} : vector<1x4x4x32xbf16> to vector<1x1x1x32xbf16>
    %117 = vector.shape_cast %116 : vector<1x1x1x32xbf16> to vector<1x32xbf16>
    %c0_149 = arith.constant 0 : index
    %c288 = arith.constant 288 : index
    %118 = vector.load %arg12[%c0_149, %c288] : memref<1x512xbf16, #tpu.memory_space<vmem>>, vector<1x32xbf16>
    tpu.vector_store %arg12[%c0_149, %c288], %117 {strides = array<i32>} : memref<1x512xbf16, #tpu.memory_space<vmem>>, vector<1x32xbf16>,
    %119 = vector.extract_strided_slice %88 {offsets = [0, 2, 2, 0], sizes = [1, 1, 1, 32], strides = [1, 1, 1, 1]} : vector<1x4x4x32xbf16> to vector<1x1x1x32xbf16>
    %120 = vector.shape_cast %119 : vector<1x1x1x32xbf16> to vector<1x32xbf16>
    %c0_150 = arith.constant 0 : index
    %c320 = arith.constant 320 : index
    %121 = vector.load %arg12[%c0_150, %c320] : memref<1x512xbf16, #tpu.memory_space<vmem>>, vector<1x32xbf16>
    tpu.vector_store %arg12[%c0_150, %c320], %120 {strides = array<i32>} : memref<1x512xbf16, #tpu.memory_space<vmem>>, vector<1x32xbf16>,
    %122 = vector.extract_strided_slice %88 {offsets = [0, 2, 3, 0], sizes = [1, 1, 1, 32], strides = [1, 1, 1, 1]} : vector<1x4x4x32xbf16> to vector<1x1x1x32xbf16>
    %123 = vector.shape_cast %122 : vector<1x1x1x32xbf16> to vector<1x32xbf16>
    %c0_151 = arith.constant 0 : index
    %c352 = arith.constant 352 : index
    %124 = vector.load %arg12[%c0_151, %c352] : memref<1x512xbf16, #tpu.memory_space<vmem>>, vector<1x32xbf16>
    tpu.vector_store %arg12[%c0_151, %c352], %123 {strides = array<i32>} : memref<1x512xbf16, #tpu.memory_space<vmem>>, vector<1x32xbf16>,
    %125 = vector.extract_strided_slice %88 {offsets = [0, 3, 0, 0], sizes = [1, 1, 1, 32], strides = [1, 1, 1, 1]} : vector<1x4x4x32xbf16> to vector<1x1x1x32xbf16>
    %126 = vector.shape_cast %125 : vector<1x1x1x32xbf16> to vector<1x32xbf16>
    %c0_152 = arith.constant 0 : index
    %c384 = arith.constant 384 : index
    %127 = vector.load %arg12[%c0_152, %c384] : memref<1x512xbf16, #tpu.memory_space<vmem>>, vector<1x32xbf16>
    tpu.vector_store %arg12[%c0_152, %c384], %126 {strides = array<i32>} : memref<1x512xbf16, #tpu.memory_space<vmem>>, vector<1x32xbf16>,
    %128 = vector.extract_strided_slice %88 {offsets = [0, 3, 1, 0], sizes = [1, 1, 1, 32], strides = [1, 1, 1, 1]} : vector<1x4x4x32xbf16> to vector<1x1x1x32xbf16>
    %129 = vector.shape_cast %128 : vector<1x1x1x32xbf16> to vector<1x32xbf16>
    %c0_153 = arith.constant 0 : index
    %c416 = arith.constant 416 : index
    %130 = vector.load %arg12[%c0_153, %c416] : memref<1x512xbf16, #tpu.memory_space<vmem>>, vector<1x32xbf16>
    tpu.vector_store %arg12[%c0_153, %c416], %129 {strides = array<i32>} : memref<1x512xbf16, #tpu.memory_space<vmem>>, vector<1x32xbf16>,
    %131 = vector.extract_strided_slice %88 {offsets = [0, 3, 2, 0], sizes = [1, 1, 1, 32], strides = [1, 1, 1, 1]} : vector<1x4x4x32xbf16> to vector<1x1x1x32xbf16>
    %132 = vector.shape_cast %131 : vector<1x1x1x32xbf16> to vector<1x32xbf16>
    %c0_154 = arith.constant 0 : index
    %c448 = arith.constant 448 : index
    %133 = vector.load %arg12[%c0_154, %c448] : memref<1x512xbf16, #tpu.memory_space<vmem>>, vector<1x32xbf16>
    tpu.vector_store %arg12[%c0_154, %c448], %132 {strides = array<i32>} : memref<1x512xbf16, #tpu.memory_space<vmem>>, vector<1x32xbf16>,
    %134 = vector.extract_strided_slice %88 {offsets = [0, 3, 3, 0], sizes = [1, 1, 1, 32], strides = [1, 1, 1, 1]} : vector<1x4x4x32xbf16> to vector<1x1x1x32xbf16>
    %135 = vector.shape_cast %134 : vector<1x1x1x32xbf16> to vector<1x32xbf16>
    %c0_155 = arith.constant 0 : index
    %c480 = arith.constant 480 : index
    %136 = vector.load %arg12[%c0_155, %c480] : memref<1x512xbf16, #tpu.memory_space<vmem>>, vector<1x32xbf16>
    tpu.vector_store %arg12[%c0_155, %c480], %135 {strides = array<i32>} : memref<1x512xbf16, #tpu.memory_space<vmem>>, vector<1x32xbf16>,
    %c0_156 = arith.constant 0 : index
    %c0_157 = arith.constant 0 : index
    %137 = vector.load %arg12[%c0_156, %c0_157] : memref<1x512xbf16, #tpu.memory_space<vmem>>, vector<1x512xbf16>
    %c0_158 = arith.constant 0 : index
    %c0_159 = arith.constant 0 : index
    %138 = vector.load %arg5[%c0_158, %c0_159] : memref<512x32xbf16, #tpu.memory_space<vmem>>, vector<512x32xbf16>
    %cst_160 = arith.constant dense<0.000000e+00> : vector<1x32xf32>
    %139 = tpu.matmul %137, %138, %cst_160 {dimension_numbers = #tpu.dot_dimension_numbers<[1], [0], [0], [1], [0, 0, 1, 1], [], []>} : vector<1x512xbf16>, vector<512x32xbf16>, vector<1x32xf32> -> vector<1x32xf32>
    %c0_161 = arith.constant 0 : index
    %c256_162 = arith.constant 256 : index
    %140 = vector.load %arg7[%c0_161, %c256_162] : memref<1x768xf32, #tpu.memory_space<vmem>>, vector<1x32xf32>
    %141 = arith.addf %139, %140 : vector<1x32xf32>
    %cst_163 = arith.constant 0.000000e+00 : f32
    %142 = vector.broadcast %cst_163 : f32 to vector<1x32xf32>
    %143 = arith.maximumf %141, %142 : vector<1x32xf32>
    %144 = arith.truncf %143 : vector<1x32xf32> to vector<1x32xbf16>
    %c0_164 = arith.constant 0 : index
    %c0_165 = arith.constant 0 : index
    %c0_166 = arith.constant 0 : index
    %145 = vector.load %arg2[%c0_164, %c0_165, %c0_166] : memref<1x1x16xbf16, #tpu.memory_space<vmem>>, vector<1x1x16xbf16>
    %146 = vector.shape_cast %145 : vector<1x1x16xbf16> to vector<1x16xbf16>
    %c0_167 = arith.constant 0 : index
    %c0_168 = arith.constant 0 : index
    %147 = vector.load %arg6[%c0_167, %c0_168] : memref<144x64xbf16, #tpu.memory_space<vmem>>, vector<32x64xbf16>
    %c32_169 = arith.constant 32 : index
    %c0_170 = arith.constant 0 : index
    %148 = vector.load %arg6[%c32_169, %c0_170] : memref<144x64xbf16, #tpu.memory_space<vmem>>, vector<16x64xbf16>
    %c48_171 = arith.constant 48 : index
    %c0_172 = arith.constant 0 : index
    %149 = vector.load %arg6[%c48_171, %c0_172] : memref<144x64xbf16, #tpu.memory_space<vmem>>, vector<64x32xbf16>
    %c112_173 = arith.constant 112 : index
    %c0_174 = arith.constant 0 : index
    %150 = vector.load %arg6[%c112_173, %c0_174] : memref<144x64xbf16, #tpu.memory_space<vmem>>, vector<32x1xbf16>
    %cst_175 = arith.constant dense<0.000000e+00> : vector<1x64xf32>
    %151 = tpu.matmul %144, %147, %cst_175 {dimension_numbers = #tpu.dot_dimension_numbers<[1], [0], [0], [1], [0, 0, 1, 1], [], []>} : vector<1x32xbf16>, vector<32x64xbf16>, vector<1x64xf32> -> vector<1x64xf32>
    %cst_176 = arith.constant dense<0.000000e+00> : vector<1x64xf32>
    %152 = tpu.matmul %146, %148, %cst_176 {dimension_numbers = #tpu.dot_dimension_numbers<[1], [0], [0], [1], [0, 0, 1, 1], [], []>} : vector<1x16xbf16>, vector<16x64xbf16>, vector<1x64xf32> -> vector<1x64xf32>
    %153 = arith.addf %151, %152 : vector<1x64xf32>
    %c0_177 = arith.constant 0 : index
    %c384_178 = arith.constant 384 : index
    %154 = vector.load %arg7[%c0_177, %c384_178] : memref<1x768xf32, #tpu.memory_space<vmem>>, vector<1x64xf32>
    %155 = arith.addf %153, %154 : vector<1x64xf32>
    %cst_179 = arith.constant 0.000000e+00 : f32
    %156 = vector.broadcast %cst_179 : f32 to vector<1x64xf32>
    %157 = arith.maximumf %155, %156 : vector<1x64xf32>
    %158 = arith.truncf %157 : vector<1x64xf32> to vector<1x64xbf16>
    %cst_180 = arith.constant dense<0.000000e+00> : vector<1x32xf32>
    %159 = tpu.matmul %158, %149, %cst_180 {dimension_numbers = #tpu.dot_dimension_numbers<[1], [0], [0], [1], [0, 0, 1, 1], [], []>} : vector<1x64xbf16>, vector<64x32xbf16>, vector<1x32xf32> -> vector<1x32xf32>
    %c0_181 = arith.constant 0 : index
    %c512 = arith.constant 512 : index
    %160 = vector.load %arg7[%c0_181, %c512] : memref<1x768xf32, #tpu.memory_space<vmem>>, vector<1x32xf32>
    %161 = arith.addf %159, %160 : vector<1x32xf32>
    %cst_182 = arith.constant 0.000000e+00 : f32
    %162 = vector.broadcast %cst_182 : f32 to vector<1x32xf32>
    %163 = arith.maximumf %161, %162 : vector<1x32xf32>
    %164 = arith.truncf %163 : vector<1x32xf32> to vector<1x32xbf16>
    %cst_183 = arith.constant dense<0.000000e+00> : vector<1x1xf32>
    %165 = tpu.matmul %164, %150, %cst_183 {dimension_numbers = #tpu.dot_dimension_numbers<[1], [0], [0], [1], [0, 0, 1, 1], [], []>} : vector<1x32xbf16>, vector<32x1xbf16>, vector<1x1xf32> -> vector<1x1xf32>
    %c0_184 = arith.constant 0 : index
    %c640 = arith.constant 640 : index
    %166 = vector.load %arg7[%c0_184, %c640] : memref<1x768xf32, #tpu.memory_space<vmem>>, vector<1x1xf32>
    %167 = arith.addf %165, %166 : vector<1x1xf32>
    %cst_185 = arith.constant 0.000000e+00 : f32
    %168 = vector.broadcast %cst_185 : f32 to vector<1x1xf32>
    %169 = arith.maximumf %167, %168 : vector<1x1xf32>
    %170 = math.absf %167 : vector<1x1xf32>
    %cst_186 = arith.constant 0.000000e+00 : f32
    %171 = vector.broadcast %cst_186 : f32 to vector<1x1xf32>
    %172 = arith.subf %171, %170 : vector<1x1xf32>
    %173 = math.exp %172 : vector<1x1xf32>
    %cst_187 = arith.constant 1.000000e+00 : f32
    %174 = vector.broadcast %cst_187 : f32 to vector<1x1xf32>
    %175 = arith.addf %174, %173 : vector<1x1xf32>
    %176 = math.log %175 : vector<1x1xf32>
    %177 = arith.addf %169, %176 : vector<1x1xf32>
    %cst_188 = arith.constant 9.99999997E-7 : f32
    %178 = vector.broadcast %cst_188 : f32 to vector<1x1xf32>
    %179 = arith.addf %177, %178 : vector<1x1xf32>
    %c0_189 = arith.constant 0 : index
    %c0_190 = arith.constant 0 : index
    %c0_191 = arith.constant 0 : index
    %180 = vector.load %arg8[%c0_189, %c0_190, %c0_191] : memref<1x1x1xf32, #tpu.memory_space<vmem>>, vector<1x1x1xf32>
    %181 = vector.shape_cast %180 : vector<1x1x1xf32> to vector<1x1xf32>
    %182 = vector.shape_cast %179 : vector<1x1xf32> to vector<1x1x1xf32>
    tpu.vector_store %arg8[%c0_189, %c0_190, %c0_191], %182 {strides = array<i32>} : memref<1x1x1xf32, #tpu.memory_space<vmem>>, vector<1x1x1xf32>,
    return
  }
  func.func @transform_0(%arg0: i32) -> (i32, i32, i32, i32) {
    %c0_i32 = arith.constant 0 : i32
    %c0_i32_0 = arith.constant 0 : i32
    %c0_i32_1 = arith.constant 0 : i32
    %c0_i32_2 = arith.constant 0 : i32
    return %arg0, %c0_i32, %c0_i32_0, %c0_i32_1 : i32, i32, i32, i32
  }
  func.func @transform_1(%arg0: i32) -> (i32, i32, i32) {
    %c0_i32 = arith.constant 0 : i32
    %c0_i32_0 = arith.constant 0 : i32
    %c0_i32_1 = arith.constant 0 : i32
    return %arg0, %c0_i32, %c0_i32_0 : i32, i32, i32
  }
  func.func @transform_2(%arg0: i32) -> (i32, i32) {
    %c0_i32 = arith.constant 0 : i32
    %c0_i32_0 = arith.constant 0 : i32
    %c0_i32_1 = arith.constant 0 : i32
    return %c0_i32, %c0_i32_0 : i32, i32
  }
  func.func @transform_3(%arg0: i32) -> (i32, i32) {
    %c0_i32 = arith.constant 0 : i32
    %c0_i32_0 = arith.constant 0 : i32
    %c0_i32_1 = arith.constant 0 : i32
    return %c0_i32, %c0_i32_0 : i32, i32
  }
  func.func @transform_4(%arg0: i32) -> (i32, i32) {
    %c0_i32 = arith.constant 0 : i32
    %c0_i32_0 = arith.constant 0 : i32
    %c0_i32_1 = arith.constant 0 : i32
    return %c0_i32, %c0_i32_0 : i32, i32
  }
  func.func @transform_5(%arg0: i32) -> (i32, i32) {
    %c0_i32 = arith.constant 0 : i32
    %c0_i32_0 = arith.constant 0 : i32
    %c0_i32_1 = arith.constant 0 : i32
    return %c0_i32, %c0_i32_0 : i32, i32
  }
  func.func @transform_6(%arg0: i32) -> (i32, i32) {
    %c0_i32 = arith.constant 0 : i32
    %c0_i32_0 = arith.constant 0 : i32
    %c0_i32_1 = arith.constant 0 : i32
    return %c0_i32, %c0_i32_0 : i32, i32
  }
  func.func @transform_7(%arg0: i32) -> (i32, i32, i32) {
    %c0_i32 = arith.constant 0 : i32
    %c0_i32_0 = arith.constant 0 : i32
    %c0_i32_1 = arith.constant 0 : i32
    return %arg0, %c0_i32, %c0_i32_0 : i32, i32, i32
  }
}

</mosaic_0001>

<bundles_post_ra>
// kernel: tpu_custom_call.1
= control target key start
LH: loop header
LB: loop body
LE: loop exit
PB: predicated region body
PF: predicated region fallthrough
CT: control target
= control target key end

     0   :  { %s6689_s24 = smov 0   ;;  %s9183_s0 = inlined_call_operand.vmem [shape: bf16[2,18,18,4], index: 0, kind: input, shape index: {}]   ;;  %s9184_s1 = inlined_call_operand.vmem [shape: bf16[2,1,16], index: 1, kind: input, shape index: {}]   ;;  %s9185_s2 = inlined_call_operand.vmem [shape: bf16[36,16], index: 2, kind: input, shape index: {}]   ;;  %s9186_s3 = inlined_call_operand.vmem [shape: bf16[144,32], index: 3, kind: input, shape index: {}]   ;;  %s9187_s4 = inlined_call_operand.vmem [shape: bf16[512,32], index: 4, kind: input, shape index: {}]   ;;  %s9188_s5 = inlined_call_operand.vmem [shape: bf16[144,64], index: 5, kind: input, shape index: {}]   ;;  %s9189_s6 = inlined_call_operand.vmem [shape: f32[1,768], index: 6, kind: input, shape index: {}]   ;;  %s9190_s7 = inlined_call_operand.vmem [shape: f32[2,1,1], index: 7, kind: output, shape index: {}]  }
   0x1 LB: > { %s5841_s25 = sadd.s32 4294967295, %s6633_s24   ;;  %p5845_p0 = scmp.ge.s32.totalorder %s6633_s24, 1  ;;  %s6633_s24 = sphi %s6689_s24, %s17_s24  }
   0x2   : > { %p245_p1 = scmp.lt.s32.totalorder %s6633_s24, 3 }
   0x4   : > { %p246_p2 = pnand %p5845_p0, %p245_p1 }
   0x5   : > { %p278_p3 = scmp.lt.s32.totalorder (!%p246_p2), %s5841_s25, 1  ;;  %s6635_s30 = smov (!%p246_p2), 12  }
   0x6   : > { %249 = sbr.rel (%p246_p2) target bundleno = 2054 (0x806), region = 48  ;;  %s6636_s8 = smov (!%p246_p2), 8  }
   0x7   : > { %s6637_s9 = smov (!%p246_p2), 4   ;;  %s6638_s10 = smov (!%p246_p2), 20  }
   0x8   : > { %s6639_s11 = smov (!%p246_p2), 16   ;;  %s6640_s12 = smov (!%p246_p2), 24  }
   0x9   : > { %s6641_s13 = smov (!%p246_p2), 32   ;;  %s6642_s14 = smov (!%p246_p2), 28  }
   0xa   : > { %s6648_s15 = smov (!%p246_p2), 112  }
   0xb   : > { %s9295_s25 = smov (!%p278_p3, %s5841_s25), 1  ;;  %vm1015_vm0 = vcmask 1042432   ;;  %vm1016_vm1 = vcmask 1046532   ;;  %vm403_vm3 = vsmask.f32 3328  ;;  %vm322_vm6 = vcmask 27648  }
   0xc   : > { %s6595_s26 = smul.u32 216, %s9295_s25  ;;  %vm6705_vm2 = vmor %vm1015_vm0, %vm1016_vm1  ;;  %vm404_vm4 = vsmask.f32 7440  ;;  %vm886_vm7 = vcmask 60448   ;;  %vm1226_vm8 = vcmask 93248   ;;  %vm1420_vm9 = vcmask 126048   ;;  %s285_s21 = scalar_lea.vmem %s9184_s1, %s9295_s25 }
   0xd   : > { %vm6726_vm5 = vmor %vm403_vm3, %vm404_vm4  ;;  %vm3628_vm10 = vcmask 1041408   ;;  %vm1981_vm11 = vcmask 158848   ;;  %vm2318_vm12 = vcmask 191648   ;;  %vm9194_vm13 = vcmask 224448   ;;  %s288_s27 = scalar_lea.vmem %s9190_s7, %s9295_s25 }
   0xe   : > { %s6703_s29 = scalar_lea.vmem %s9183_s0, %s6595_s26  ;;  %vm3073_vm14 = vcmask 257248   ;;  %vm9192_vm15 = vcmask 290048   ;;  %vm3579_vm0 = vcmask 293888   ;;  %vm3857_vm1 = vcmask 125952  }
   0xf   : > { %v5863_v1 = vld [vmem:[%s6703_s29 + $0xc] sm:$0xf]  ;;  %v919_v2 = vld [vmem:[%s6703_s29] sm:$0xe]  ;;  %v920_v3 = vld [vmem:[%s6703_s29 + $0x4] sm:$0xf] }
  0x10   : > { %1324 = vrot.lane.b32.xlu2 %v5863_v1, %s6635_s30  ;;  %v5847_v4 = vrot.slane %v919_v2, 9  ;;  %v1020_v5 = vrot.slane %v920_v3, 5  ;;  %v355_v6 = vld [vmem:[%s6703_s29] sm:$0xf]  ;;  %v356_v7 = vld [vmem:[%s6703_s29 + $0x4] sm:$0xf] }
  0x11   : > { %v407_v8 = vshrl.u32 %v355_v6, 16  ;;  %v410_v9 = vshll.u32 %v355_v6, 16  ;;  %v921_v10 = vld [vmem:[%s6703_s29 + $0x8] sm:$0x1]  ;;  %v416_v12 = vshll.u32 %v356_v7, 16  ;;  %v420_v13 = vshrl.u32 %v356_v7, 16 }
  0x12   : > { %v1021_v11 = vsel %vm6705_vm2, %v5847_v4, %v1020_v5  ;;  %v1022_v14 = vrot.slane %v1020_v5, 4  ;;  %v5864_v15 = vld [vmem:[%s6703_s29 + $0x10] sm:$0xf]  ;;  %v1023_v18 = vrot.slane %v921_v10, 5  ;;  %v5943_v20 = vld [vmem:[%s6703_s29 + $0xc] sm:$0xe] }
  0x13   : > { %1130 = vrot.lane.b32.xlu1 %v1021_v11, %s6636_s8  ;;  %v409_v16 = vrot.slane %v407_v8, 4  ;;  %v412_v17 = vrot.slane %v410_v9, 5  ;;  %v422_v19 = vrot.slane %v420_v13, 4  ;;  %v357_v21 = vld [vmem:[%s6703_s29 + $0x8] sm:$0x1]  ;;  %v418_v23 = vrot.slane %v416_v12, 5 }
  0x14   : > { %v5896_v24 = vld [vmem:[%s6703_s29 + $0x10] sm:$0xf]  ;;  %v5897_v25 = vld [vmem:[%s6703_s29 + $0x14] sm:$0x1]  ;;  %v1024_v27 = vsel %vm6705_vm2, %v1022_v14, %v1023_v18  ;;  %v5895_v31 = vld [vmem:[%s6703_s29 + $0xc] sm:$0xf] }
  0x15   : > { %v413_v22 = vor.u32 %v412_v17, %v409_v16  ;;  %v6733_v28 = vld [vmem:[%s6703_s29 + $0x10] sm:$0xf]  ;;  %v1511_v29 = vshll.u32 %v5896_v24, 16  ;;  %v1515_v30 = vshrl.u32 %v5896_v24, 16  ;;  %v423_v33 = vor.u32 %v422_v19, %v418_v23  ;;  %v6040_v51 = vld [vmem:[%s6703_s29 + $0x1c] sm:$0xf] }
  0x16   : > { %v426_v34 = vshll.u32 %v357_v21, 16  ;;  %v1502_v35 = vshrl.u32 %v5895_v31, 16  ;;  %v1521_v38 = vshll.u32 %v5897_v25, 16  ;;  %v1505_v39 = vshll.u32 %v5895_v31, 16  ;;  %v359_v57 = vld [vmem:[%s6703_s29 + $0x10] sm:$0xf] }
  0x17   : > { %v414_v32 = vrot.slane %v413_v22, 4  ;;  %v1513_v36 = vrot.slane %v1511_v29, 5  ;;  %v1517_v37 = vrot.slane %v1515_v30, 4  ;;  %v5991_v41 = vrot.slane %v5943_v20, 9  ;;  %v6008_v59 = vld [vmem:[%s6703_s29 + $0x1c] sm:$0xf] }
  0x18   : > { %1326 = vrot.lane.b32.xlu2 %v5864_v15, %s6635_s30  ;;  %v2112_v42 = vrot.slane %v6733_v28, 5  ;;  %v424_v44 = vrot.slane %v423_v33, 4  ;;  %v428_v45 = vrot.slane %v426_v34, 5  ;;  %v1504_v46 = vrot.slane %v1502_v35, 4  ;;  %v6039_v62 = vld [vmem:[%s6703_s29 + $0x18] sm:$0xf] }
  0x19   : > { %v419_v40 = vsel %vm6726_vm5, %v414_v32, %v418_v23  ;;  %v1518_v43 = vor.u32 %v1517_v37, %v1513_v36  ;;  %v1507_v47 = vrot.slane %v1505_v39, 5  ;;  %v1523_v49 = vrot.slane %v1521_v38, 5  ;;  %v6041_v63 = vld [vmem:[%s6703_s29 + $0x20] sm:$0x1]  ;;  %v358_v3 = vld [vmem:[%s6703_s29 + $0xc] sm:$0xf] }
  0x1a   : > { %790 = vrot.lane.b32.xlu0 %v419_v40, %s6637_s9  ;;  %v2113_v50 = vsel %vm6705_vm2, %v5991_v41, %v2112_v42  ;;  %v429_v52 = vsel %vm6726_vm5, %v424_v44, %v428_v45  ;;  %v2603_v55 = vshll.u32 %v6040_v51, 16  ;;  %v2607_v56 = vshrl.u32 %v6040_v51, 16  ;;  %v6087_v4 = vld [vmem:[%s6703_s29 + $0x18] sm:$0xe]  ;;  %v6088_v5 = vld [vmem:[%s6703_s29 + $0x1c] sm:$0xf] }
  0x1b   : > { %1132 = vrot.lane.b32.xlu1 %v1024_v27, %s6636_s8  ;;  %v1519_v48 = vrot.slane %v1518_v43, 4  ;;  %v1508_v53 = vor.u32 %v1507_v47, %v1504_v46  ;;  %v440_v1 = vshll.u32 %v359_v57, 16  ;;  %v444_v2 = vshrl.u32 %v359_v57, 16  ;;  %v6007_v7 = vld [vmem:[%s6703_s29 + $0x18] sm:$0xf] }
  0x1c   : > { %v6754_v60 = vrot.slane %v2603_v55, 5  ;;  %v2609_v61 = vrot.slane %v2607_v56, 4  ;;  %v2594_v8 = vshrl.u32 %v6039_v62, 16  ;;  %v2597_v9 = vshll.u32 %v6039_v62, 16  ;;  %v5945_v10 = vld [vmem:[%s6703_s29 + $0x14] sm:$0x1] }
  0x1d   : > { %v1524_v54 = vsel %vm6726_vm5, %v1519_v48, %v1523_v49  ;;  %v1509_v58 = vrot.slane %v1508_v53, 4  ;;  %v2613_v12 = vshll.u32 %v6041_v63, 16  ;;  %v431_v13 = vshrl.u32 %v358_v3, 16  ;;  %v360_v19 = vld [vmem:[%s6703_s29 + $0x14] sm:$0x1] }
  0x1e   : > { %v2610_v11 = vor.u32 %v2609_v61, %v6754_v60  ;;  %v434_v14 = vshll.u32 %v358_v3, 16  ;;  %v6135_v15 = vrot.slane %v6087_v4, 9  ;;  %v3204_v16 = vrot.slane %v6088_v5, 5  ;;  %v5899_v38 = vld [vmem:[%s6703_s29 + $0x1c] sm:$0xf] }
  0x1f   : > { %v1514_v6 = vsel %vm6726_vm5, %v1509_v58, %v1513_v36  ;;  %v442_v17 = vrot.slane %v440_v1, 5  ;;  %v446_v18 = vrot.slane %v444_v2, 4  ;;  %v2114_v20 = vrot.slane %v2112_v42, 4  ;;  %v923_v42 = vld [vmem:[%s6703_s29 + $0x10] sm:$0xf] }
  0x20   : > { %2222 = vrot.lane.b32.xlu2 %v2113_v50, %s6638_s10  ;;  %v2115_v21 = vrot.slane %v5945_v10, 5  ;;  %v2596_v22 = vrot.slane %v2594_v8, 4  ;;  %v2599_v23 = vrot.slane %v2597_v9, 5  ;;  %v2611_v24 = vrot.slane %v2610_v11, 4  ;;  %v5898_v45 = vld [vmem:[%s6703_s29 + $0x18] sm:$0xf] }
  0x21   : > { %v2615_v25 = vrot.slane %v2613_v12, 5  ;;  %v433_v27 = vrot.slane %v431_v13, 4  ;;  %v436_v28 = vrot.slane %v434_v14, 5  ;;  %v3205_v29 = vsel %vm6705_vm2, %v6135_v15, %v3204_v16  ;;  %v6089_v48 = vld [vmem:[%s6703_s29 + $0x20] sm:$0x1] }
  0x22   : > { %792 = vrot.lane.b32.xlu0 %v429_v52, %s6637_s9  ;;  %v447_v30 = vor.u32 %v446_v18, %v442_v17  ;;  %v450_v31 = vshll.u32 %v360_v19, 16  ;;  %v2116_v32 = vsel %vm6705_vm2, %v2114_v20, %v2115_v21  ;;  %v2600_v33 = vor.u32 %v2599_v23, %v2596_v22  ;;  %v924_v52 = vld [vmem:[%s6703_s29 + $0x14] sm:$0x1]  ;;  %v5900_v55 = vld [vmem:[%s6703_s29 + $0x20] sm:$0x1] }
  0x23   : > { %1887 = vrot.lane.b32.xlu1 %v1524_v54, %s6639_s11  ;;  %v2616_v34 = vsel %vm6726_vm5, %v2611_v24, %v2615_v25  ;;  %v437_v35 = vor.u32 %v436_v28, %v433_v27  ;;  %v1535_v43 = vshll.u32 %v5899_v38, 16  ;;  %v1539_v44 = vshrl.u32 %v5899_v38, 16  ;;  %v5865_v62 = vld [vmem:[%s6703_s29 + $0x18] sm:$0xf]  ;;  %v922_v4 = vld [vmem:[%s6703_s29 + $0xc] sm:$0xe] }
  0x24   : > { %v448_v36 = vrot.slane %v447_v30, 4  ;;  %v452_v37 = vrot.slane %v450_v31, 5  ;;  %v2601_v39 = vrot.slane %v2600_v33, 4  ;;  %v1027_v49 = vrot.slane %v923_v42, 5  ;;  %v6043_v8 = vld [vmem:[%s6703_s29 + $0x28] sm:$0xf] }
  0x25   : > { %v438_v40 = vrot.slane %v437_v35, 4  ;;  %v1526_v50 = vshrl.u32 %v5898_v45, 16  ;;  %v1529_v51 = vshll.u32 %v5898_v45, 16  ;;  %v1537_v53 = vrot.slane %v1535_v43, 5  ;;  %v5947_v12 = vld [vmem:[%s6703_s29 + $0x1c] sm:$0xf] }
  0x26   : > { %v453_v41 = vsel %vm6726_vm5, %v448_v36, %v452_v37  ;;  %v2606_v46 = vsel %vm6726_vm5, %v2601_v39, %v6754_v60  ;;  %v1541_v54 = vrot.slane %v1539_v44, 4  ;;  %v3206_v56 = vrot.slane %v3204_v16, 4  ;;  %v6042_v15 = vld [vmem:[%s6703_s29 + $0x24] sm:$0xf]  ;;  %v5948_v21 = vld [vmem:[%s6703_s29 + $0x20] sm:$0x1] }
  0x27   : > { %v443_v47 = vsel %vm6726_vm5, %v438_v40, %v442_v17  ;;  %v3207_v57 = vrot.slane %v6089_v48, 5  ;;  %v1029_v58 = vrot.slane %v1027_v49, 4  ;;  %v1528_v60 = vrot.slane %v1526_v50, 4  ;;  %v6044_v24 = vld [vmem:[%s6703_s29 + $0x2c] sm:$0x1] }
  0x28   : > { %2418 = vrot.lane.b32.xlu2 %v6008_v59, %s6640_s12  ;;  %v1030_v59 = vrot.slane %v924_v52, 5  ;;  %v1531_v61 = vrot.slane %v1529_v51, 5  ;;  %v1542_v63 = vor.u32 %v1541_v54, %v1537_v53  ;;  %v1545_v1 = vshll.u32 %v5900_v55, 16  ;;  %v361_v25 = vld [vmem:[%s6703_s29 + $0x18] sm:$0xf] }
  0x29   : > { %v3208_v2 = vsel %vm6705_vm2, %v3206_v56, %v3207_v57  ;;  %v5848_v9 = vrot.slane %v922_v4, 9  ;;  %v2627_v13 = vshll.u32 %v6043_v8, 16  ;;  %v2631_v14 = vshrl.u32 %v6043_v8, 16  ;;  %v6009_v31 = vld [vmem:[%s6703_s29 + $0x24] sm:$0xf] }
  0x2a   : > { %1885 = vrot.lane.b32.xlu0 %v1514_v6, %s6639_s11  ;;  %v1031_v3 = vsel %vm6705_vm2, %v1029_v58, %v1030_v59  ;;  %v1532_v5 = vor.u32 %v1531_v61, %v1528_v60  ;;  %v1543_v6 = vrot.slane %v1542_v63, 4  ;;  %v2119_v18 = vrot.slane %v5947_v12, 5  ;;  %v5866_v36 = vld [vmem:[%s6703_s29 + $0x1c] sm:$0xf]  ;;  %v5946_v38 = vld [vmem:[%s6703_s29 + $0x18] sm:$0xe] }
  0x2b   : > { %2416 = vrot.lane.b32.xlu1 %v6007_v7, %s6640_s12  ;;  %v1547_v7 = vrot.slane %v1545_v1, 5  ;;  %v1028_v16 = vsel %vm6705_vm2, %v5848_v9, %v1027_v49  ;;  %v2618_v19 = vshrl.u32 %v6042_v15, 16  ;;  %v2621_v20 = vshll.u32 %v6042_v15, 16  ;;  %v362_v44 = vld [vmem:[%s6703_s29 + $0x1c] sm:$0xf] }
  0x2c   : > { %v1533_v10 = vrot.slane %v1532_v5, 4  ;;  %v2629_v22 = vrot.slane %v2627_v13, 5  ;;  %v2633_v23 = vrot.slane %v2631_v14, 4  ;;  %v2121_v27 = vrot.slane %v2119_v18, 4  ;;  %v6091_v50 = vld [vmem:[%s6703_s29 + $0x28] sm:$0xf] }
  0x2d   : > { %v1548_v11 = vsel %vm6726_vm5, %v1543_v6, %v1547_v7  ;;  %v2122_v28 = vrot.slane %v5948_v21, 5  ;;  %v2623_v30 = vrot.slane %v2621_v20, 5  ;;  %v2637_v33 = vshll.u32 %v6044_v24, 16  ;;  %v6092_v56 = vld [vmem:[%s6703_s29 + $0x2c] sm:$0x1] }
  0x2e   : > { %v1538_v17 = vsel %vm6726_vm5, %v1533_v10, %v1537_v53  ;;  %v458_v35 = vshll.u32 %v361_v25, 16  ;;  %v5992_v45 = vrot.slane %v5946_v38, 9  ;;  %v464_v49 = vshll.u32 %v362_v44, 16  ;;  %v926_v57 = vld [vmem:[%s6703_s29 + $0x1c] sm:$0xf] }
  0x2f   : > { %v2123_v37 = vsel %vm6705_vm2, %v2121_v27, %v2122_v28  ;;  %v3211_v53 = vrot.slane %v6091_v50, 5  ;;  %v5901_v58 = vld [vmem:[%s6703_s29 + $0x24] sm:$0xf]  ;;  %v3214_v60 = vrot.slane %v6092_v56, 5  ;;  %v6010_v4 = vld [vmem:[%s6703_s29 + $0x28] sm:$0xf] }
  0x30   : > { %3314 = vrot.lane.b32.xlu2 %v3205_v29, %s6641_s13  ;;  %v2620_v29 = vrot.slane %v2618_v19, 4  ;;  %v460_v43 = vrot.slane %v458_v35, 5  ;;  %v2120_v51 = vsel %vm6705_vm2, %v5992_v45, %v2119_v18  ;;  %v466_v55 = vrot.slane %v464_v49, 5  ;;  %v6090_v6 = vld [vmem:[%s6703_s29 + $0x24] sm:$0xe] }
  0x31   : > { %v3213_v59 = vrot.slane %v3211_v53, 4  ;;  %v1550_v63 = vshrl.u32 %v5901_v58, 16  ;;  %v1553_v1 = vshll.u32 %v5901_v58, 16  ;;  %v925_v9 = vld [vmem:[%s6703_s29 + $0x18] sm:$0xe]  ;;  %v6136_v13 = vrot.slane %v6090_v6, 9 }
  0x32   : > { %2224 = vrot.lane.b32.xlu0 %v2116_v32, %s6638_s10  ;;  %v2634_v32 = vor.u32 %v2633_v23, %v2629_v22  ;;  %v2624_v39 = vor.u32 %v2623_v30, %v2620_v29  ;;  %v5902_v12 = vld [vmem:[%s6703_s29 + $0x28] sm:$0xf]  ;;  %v5849_v15 = vrot.slane %v925_v9, 9  ;;  %v6045_v29 = vld [vmem:[%s6703_s29 + $0x30] sm:$0xf]  ;;  %vm3859_vm3 = vcmask 122880  }
  0x33   : > { %2979 = vrot.lane.b32.xlu1 %v2616_v34, %s6642_s14  ;;  %v455_v34 = vshrl.u32 %v361_v25, 16  ;;  %v3215_v5 = vsel %vm6705_vm2, %v3213_v59, %v3214_v60  ;;  %v1552_v10 = vrot.slane %v1550_v63, 4  ;;  %v1559_v19 = vshll.u32 %v5902_v12, 16  ;;  %v5950_v28 = vld [vmem:[%s6703_s29 + $0x28] sm:$0xf] }
  0x34   : > { %v2635_v40 = vrot.slane %v2634_v32, 4  ;;  %v3212_v20 = vsel %vm6705_vm2, %v6136_v13, %v3211_v53  ;;  %v290_v32 = vld [vmem:[%s6703_s29] sm:$0xf]  ;;  %v2642_v35 = vshrl.u32 %v6045_v29, 16  ;;  %v1563_v38 = vshrl.u32 %v5902_v12, 16 }
  0x35   : > { %v457_v42 = vrot.slane %v455_v34, 4  ;;  %v1561_v25 = vrot.slane %v1559_v19, 5  ;;  %323 = vst.msk [vmem:[#allocation2] sm:$0xf] %vm322_vm6, %v290_v32  ;;  %v2126_v34 = vrot.slane %v5950_v28, 5  ;;  %vm9191_vm4 = vcmask 130048  }
  0x36   : > { %v1565_v49 = vrot.slane %v1563_v38, 4  ;;  %v291_v50 = vld [vmem:[%s6703_s29 + $0x4] sm:$0xf]  ;;  %v6094_v63 = vld [vmem:[%s6703_s29 + $0x34] sm:$0xf] }
  0x37   : > { %v461_v48 = vor.u32 %v460_v43, %v457_v42  ;;  %v5949_v43 = vld [vmem:[%s6703_s29 + $0x24] sm:$0xe]  ;;  %324 = vst.msk [vmem:[#allocation2 + $0x4] sm:$0xf] %vm322_vm6, %v291_v50  ;;  %v6095_v6 = vld [vmem:[%s6703_s29 + $0x38] sm:$0x1] }
  0x38   : > { %796 = vrot.lane.b32.xlu2 %v453_v41, %s6637_s9  ;;  %v2639_v41 = vrot.slane %v2637_v33, 5  ;;  %v5867_v56 = vld [vmem:[%s6703_s29 + $0x24] sm:$0xf]  ;;  %v6012_v9 = vld [vmem:[%s6703_s29 + $0x34] sm:$0xf] }
  0x39   : > { %v462_v54 = vrot.slane %v461_v48, 4  ;;  %v293_v48 = vld [vmem:[%s6703_s29 + $0x10] sm:$0xf]  ;;  %v6920_v28 = vld [vmem:[%s6703_s29 + $0x28] sm:$0xf] }
  0x3a   : > { %2977 = vrot.lane.b32.xlu0 %v2606_v46, %s6642_s14  ;;  %v2625_v46 = vrot.slane %v2624_v39, 4  ;;  %326 = vst.msk [vmem:[#allocation2 + $0xc] sm:$0xf] %vm322_vm6, %v293_v48  ;;  %v1041_v38 = vrot.slane %v6920_v28, 5  ;;  %v5905_v50 = vld [vmem:[%s6703_s29 + $0x34] sm:$0xf] }
  0x3b   : > { %794 = vrot.lane.b32.xlu1 %v443_v47, %s6637_s9  ;;  %v2640_v47 = vsel %vm6726_vm5, %v2635_v40, %v2639_v41  ;;  %v467_v61 = vsel %vm6726_vm5, %v462_v54, %v466_v55  ;;  %v5868_v40 = vld [vmem:[%s6703_s29 + $0x28] sm:$0xf]  ;;  %v2128_v41 = vrot.slane %v2126_v34, 4 }
  0x3c   : > { %v2630_v52 = vsel %vm6726_vm5, %v2625_v46, %v2629_v22 }
  0x40   : > { %1328 = vrot.lane.b32.xlu2 %v5865_v62, %s6635_s30  ;;  %v1034_v62 = vrot.slane %v926_v57, 5  ;;  %v1566_v57 = vor.u32 %v1565_v49, %v1561_v25 }
  0x42   : > { %3316 = vrot.lane.b32.xlu0 %v3208_v2, %s6641_s13  ;;  %v927_v2 = vld [vmem:[%s6703_s29 + $0x20] sm:$0x1]  ;;  %v1036_v7 = vrot.slane %v1034_v62, 4  ;;  %v1035_v23 = vsel %vm6705_vm2, %v5849_v15, %v1034_v62 }
  0x43   : > { %1136 = vrot.lane.b32.xlu1 %v1031_v3, %s6636_s8  ;;  %v468_v3 = vshrl.u32 %v362_v44, 16  ;;  %v1037_v8 = vrot.slane %v927_v2, 5  ;;  %v2644_v44 = vrot.slane %v2642_v35, 4 }
  0x45   : > { %v470_v14 = vrot.slane %v468_v3, 4 }
  0x47   : > { %v471_v21 = vor.u32 %v470_v14, %v466_v55  ;;  %v3221_v14 = vrot.slane %v6095_v6, 5  ;;  %v5906_v6 = vld [vmem:[%s6703_s29 + $0x38] sm:$0x1] }
  0x48   : > { %1891 = vrot.lane.b32.xlu2 %v1548_v11, %s6639_s11  ;;  %v1555_v11 = vrot.slane %v1553_v1, 5  ;;  %v1567_v1 = vrot.slane %v1566_v57, 4  ;;  %v3479_v57 = vld [vmem:[%s9185_s2 + $0x10] sm:$0x3] }
  0x49   : > { %v472_v30 = vrot.slane %v471_v21, 4  ;;  %v364_v21 = vld [vmem:[%s6703_s29 + $0x24] sm:$0xf] }
  0x4a   : > { %1134 = vrot.lane.b32.xlu0 %v1028_v16, %s6636_s8  ;;  %v363_v16 = vld [vmem:[%s6703_s29 + $0x20] sm:$0x1]  ;;  %v1556_v18 = vor.u32 %v1555_v11, %v1552_v10  ;;  %v6093_v10 = vld [vmem:[%s6703_s29 + $0x30] sm:$0xe]  ;;  %v479_v32 = vshrl.u32 %v364_v21, 16 }
  0x4b   : > { %1889 = vrot.lane.b32.xlu1 %v1538_v17, %s6639_s11  ;;  %v1038_v17 = vsel %vm6705_vm2, %v1036_v7, %v1037_v8  ;;  %v474_v22 = vshll.u32 %v363_v16, 16  ;;  %v6137_v16 = vrot.slane %v6093_v10, 9 }
  0x4c   : > { %v1557_v24 = vrot.slane %v1556_v18, 4  ;;  %v6047_v18 = vld [vmem:[%s6703_s29 + $0x38] sm:$0x1] }
  0x4e   : > { %v1562_v33 = vsel %vm6726_vm5, %v1557_v24, %v1561_v25  ;;  %v366_v24 = vld [vmem:[%s6703_s29 + $0x2c] sm:$0x1]  ;;  %v928_v25 = vld [vmem:[%s6703_s29 + $0x24] sm:$0xe] }
  0x50   : > { %2420 = vrot.lane.b32.xlu2 %v6009_v31, %s6640_s12  ;;  %v476_v31 = vrot.slane %v474_v22, 5 }
  0x52   : > { %1330 = vrot.lane.b32.xlu0 %v5866_v36, %s6635_s30  ;;  %v2645_v36 = vshll.u32 %v6045_v29, 16  ;;  %v477_v39 = vsel %vm6726_vm5, %v472_v30, %v476_v31  ;;  %v6011_v29 = vld [vmem:[%s6703_s29 + $0x30] sm:$0xf]  ;;  %v2661_v31 = vshll.u32 %v6047_v18, 16 }
  0x53   : > { %2228 = vrot.lane.b32.xlu1 %v2123_v37, %s6638_s10  ;;  %v5951_v37 = vld [vmem:[%s6703_s29 + $0x2c] sm:$0x1] }
  0x54   : > { %v2129_v42 = vrot.slane %v5951_v37, 5  ;;  %v2647_v45 = vrot.slane %v2645_v36, 5  ;;  %v498_v36 = vshll.u32 %v366_v24, 16  ;;  %v5850_v37 = vrot.slane %v928_v25, 9 }
  0x56   : > { %v2130_v53 = vsel %vm6705_vm2, %v2128_v41, %v2129_v42  ;;  %v2648_v54 = vor.u32 %v2647_v45, %v2644_v44  ;;  %v2663_v41 = vrot.slane %v2661_v31, 5  ;;  %v481_v42 = vrot.slane %v479_v32, 4 }
  0x57   : > { %v1042_v49 = vsel %vm6705_vm2, %v5850_v37, %v1041_v38 }
  0x58   : > { %2983 = vrot.lane.b32.xlu2 %v2640_v47, %s6642_s14  ;;  %v6046_v47 = vld [vmem:[%s6703_s29 + $0x34] sm:$0xf]  ;;  %v2649_v60 = vrot.slane %v2648_v54, 4 }
  0x59   : > { %v2651_v55 = vshll.u32 %v6046_v47, 16  ;;  %v2655_v7 = vshrl.u32 %v6046_v47, 16  ;;  %v500_v47 = vrot.slane %v498_v36, 5 }
  0x5a   : > { %2226 = vrot.lane.b32.xlu0 %v2120_v51, %s6638_s10  ;;  %v5993_v51 = vrot.slane %v5949_v43, 9 }
  0x5b   : > { %2981 = vrot.lane.b32.xlu1 %v2630_v52, %s6642_s14  ;;  %v5903_v52 = vld [vmem:[%s6703_s29 + $0x2c] sm:$0x1] }
  0x5c   : > { %v1569_v58 = vshll.u32 %v5903_v52, 16  ;;  %v2127_v59 = vsel %vm6705_vm2, %v5993_v51, %v2126_v34  ;;  %v292_v51 = vld [vmem:[%s6703_s29 + $0xc] sm:$0xf] }
  0x5d   : > { %325 = vst.msk [vmem:[#allocation2 + $0x8] sm:$0xf] %vm322_vm6, %v292_v51 }
  0x5e   : > { %v1571_v2 = vrot.slane %v1569_v58, 5  ;;  %v3573_v58 = vunpack.c.l.b16 %v3479_v57 }
  0x60   : > { %798 = vrot.lane.b32.xlu2 %v467_v61, %s6637_s9  ;;  %v2653_v61 = vrot.slane %v2651_v55, 5  ;;  %v1572_v8 = vsel %vm6726_vm5, %v1567_v1, %v1571_v2  ;;  %v1583_v55 = vshll.u32 %v5905_v50, 16  ;;  %v5952_v1 = vld [vmem:[%s6703_s29 + $0x30] sm:$0xe] }
  0x61   : > { %v5994_v18 = vrot.slane %v5952_v1, 9 }
  0x62   : > { %2422 = vrot.lane.b32.xlu0 %v6010_v4, %s6640_s12  ;;  %v2654_v3 = vsel %vm6726_vm5, %v2649_v60, %v2653_v61  ;;  %v3218_v4 = vrot.slane %v6094_v63, 5  ;;  %v6956_v2 = vrot.slane %v1583_v55, 5 }
  0x63   : > { %3320 = vrot.lane.b32.xlu1 %v3215_v5, %s6641_s13  ;;  %v365_v5 = vld [vmem:[%s6703_s29 + $0x28] sm:$0xf] }
  0x64   : > { %v488_v11 = vshll.u32 %v365_v5, 16  ;;  %v492_v12 = vshrl.u32 %v365_v5, 16  ;;  %v3220_v13 = vrot.slane %v3218_v4, 4  ;;  %v3219_v34 = vsel %vm6705_vm2, %v6137_v16, %v3218_v4  ;;  %v5904_v4 = vld [vmem:[%s6703_s29 + $0x30] sm:$0xf] }
  0x66   : > { %v6912_v19 = vrot.slane %v488_v11, 5  ;;  %v5869_v11 = vld [vmem:[%s6703_s29 + $0x30] sm:$0xf] }
  0x68   : > { %1140 = vrot.lane.b32.xlu2 %v1038_v17, %s6636_s8  ;;  %v2657_v17 = vrot.slane %v2655_v7, 4 }
  0x6a   : > { %3318 = vrot.lane.b32.xlu0 %v3212_v20, %s6641_s13  ;;  %v6862_v27 = vpop.permute.xlu2 %1324  ;;  %v494_v20 = vrot.slane %v492_v12, 4  ;;  %v2658_v30 = vor.u32 %v2657_v17, %v2653_v61  ;;  %v3576_v61 = vpack.c.b16 %v3573_v58, %v3573_v58  ;;  %v1574_v12 = vshrl.u32 %v5904_v4, 16 }
  0x6b   : > { %1138 = vrot.lane.b32.xlu1 %v1035_v23, %s6636_s8  ;;  %v3222_v23 = vsel %vm6705_vm2, %v3220_v13, %v3221_v14  ;;  %v1577_v13 = vshll.u32 %v5904_v4, 16  ;;  %v930_v14 = vld [vmem:[%s6703_s29 + $0x2c] sm:$0x1]  ;;  %v1593_v17 = vshll.u32 %v5906_v6, 16 }
  0x6c   : > { %v495_v35 = vor.u32 %v494_v20, %v6912_v19  ;;  %v3630_v7 = vsel %vm3628_vm10, %v3576_v61, 0  ;;  %v1576_v24 = vrot.slane %v1574_v12, 4  ;;  %vm3969_vm10 = vsmask.f32 7938 }
  0x6d   : > { %3637 = vmatpush.bf16.msra.mxu0 %v3630_v7  ;;  %6589 = vmatpush.bf16.msra.mxu1 %v3630_v7  ;;  %v1579_v25 = vrot.slane %v1577_v13, 5  ;;  %v1595_v31 = vrot.slane %v1593_v17, 5 }
  0x6e   : > { %v496_v45 = vrot.slane %v495_v35, 4  ;;  %6590 = vmatpush.bf16.msra.mxu3 %v3630_v7 }
  0x6f   : > { %v1580_v35 = vor.u32 %v1579_v25, %v1576_v24 }
  0x70   : > { %1893 = vrot.lane.b32.xlu2 %v1562_v33, %s6639_s11  ;;  %v482_v33 = vshll.u32 %v364_v21, 16  ;;  %v501_v54 = vsel %vm6726_vm5, %v496_v45, %v500_v47  ;;  %v6529_v21 = vld [vmem:[%s9185_s2] sm:$0xff] }
  0x72   : > { %800 = vrot.lane.b32.xlu0 %v477_v39, %s6637_s9  ;;  %v6878_v46 = vpop.permute.xlu2 %1326  ;;  %v484_v43 = vrot.slane %v482_v33, 5  ;;  %v6049_v33 = vld [vmem:[%s6703_s29 + $0x40] sm:$0xf] }
  0x73   : > { %1334 = vrot.lane.b32.xlu1 %v5868_v40, %s6635_s30  ;;  %v2659_v40 = vrot.slane %v2658_v30, 4  ;;  %v2675_v37 = vshll.u32 %v6049_v33, 16 }
  0x75   : > { %v2664_v52 = vsel %vm6726_vm5, %v2659_v40, %v2663_v41  ;;  %v368_v40 = vld [vmem:[%s6703_s29 + $0x34] sm:$0xf]  ;;  %v6014_v41 = vld [vmem:[%s6703_s29 + $0x40] sm:$0xf]  ;;  %v7011_v45 = vrot.slane %v2675_v37, 5 }
  0x76   : > { %v516_v51 = vshrl.u32 %v368_v40, 16  ;;  %v5907_v37 = vld [vmem:[%s6703_s29 + $0x3c] sm:$0xf] }
  0x78   : > { %2232 = vrot.lane.b32.xlu2 %v2130_v53, %s6638_s10  ;;  %v485_v53 = vor.u32 %v484_v43, %v481_v42  ;;  %v1581_v42 = vrot.slane %v1580_v35, 4  ;;  %v518_v4 = vrot.slane %v516_v51, 4  ;;  %v5909_v51 = vld [vmem:[%s6703_s29 + $0x44] sm:$0x1] }
  0x7a   : > { %1332 = vrot.lane.b32.xlu0 %v5867_v56, %s6635_s30  ;;  %v6894_v62 = vpop.permute.xlu2 %2222  ;;  %v1587_v56 = vshrl.u32 %v5905_v50, 16  ;;  %v486_v60 = vrot.slane %v485_v53, 4  ;;  %v512_v50 = vshll.u32 %v368_v40, 16  ;;  %v6096_v53 = vld [vmem:[%s6703_s29 + $0x3c] sm:$0xe]  ;;  %v1586_v55 = vsel %vm6726_vm5, %v1581_v42, %v6956_v2 }
  0x7b   : > { %2230 = vrot.lane.b32.xlu1 %v2127_v59, %s6638_s10  ;;  %v5870_v59 = vld [vmem:[%s6703_s29 + $0x34] sm:$0xf] }
  0x7c   : > { %v491_v10 = vsel %vm6726_vm5, %v486_v60, %v6912_v19  ;;  %v294_v19 = vld [vmem:[%s6703_s29 + $0x18] sm:$0xf] }
  0x7d   : > { %327 = vst.msk [vmem:[#allocation2 + $0x10] sm:$0xf] %vm322_vm6, %v294_v19 }
  0x80   : > { %2985 = vrot.lane.b32.xlu2 %v2654_v3, %s6642_s14  ;;  %v1589_v3 = vrot.slane %v1587_v56, 4  ;;  %v6013_v56 = vld [vmem:[%s6703_s29 + $0x3c] sm:$0xf] }
  0x82   : > { %1895 = vrot.lane.b32.xlu0 %v1572_v8, %s6639_s11  ;;  %v6908_v15 = vpop.permute.xlu2 %2418  ;;  %v6963_v8 = vld [vmem:[%s6703_s29 + $0x34] sm:$0xf]  ;;  %v1590_v16 = vor.u32 %v1589_v3, %v6956_v2  ;;  %v514_v3 = vrot.slane %v512_v50, 5 }
  0x83   : > { %2426 = vrot.lane.b32.xlu1 %v6012_v9, %s6640_s12  ;;  %v6530_v9 = vld [vmem:[%s9185_s2 + $0x8] sm:$0xff] }
  0x84   : > { %3638 = vmatpush.bf16.msra.mxu0 %v6530_v9  ;;  %6591 = vmatpush.bf16.msra.mxu1 %v6530_v9  ;;  %v1591_v30 = vrot.slane %v1590_v16, 4  ;;  %v519_v19 = vor.u32 %v518_v4, %v514_v3 }
  0x85   : > { %v1131_v22 = vpop.permute.xlu1 %1130  ;;  %6592 = vmatpush.bf16.msra.mxu3 %v6530_v9 }
  0x86   : > { %v1596_v36 = vsel %vm6726_vm5, %v1591_v30, %v1595_v31  ;;  %v520_v24 = vrot.slane %v519_v19, 4 }
  0x88   : > { %3324 = vrot.lane.b32.xlu2 %v3222_v23, %s6641_s13  ;;  %v1044_v23 = vrot.slane %v930_v14, 5  ;;  %3639 = vmatpush.bf16.msra.mxu0 %v6529_v21 }
  0x89   : > { %6593 = vmatpush.bf16.msra.mxu1 %v6529_v21  ;;  %6594 = vmatpush.bf16.msra.mxu3 %v6529_v21 }
  0x8a   : > { %2424 = vrot.lane.b32.xlu0 %v6011_v29, %s6640_s12  ;;  %v6929_v39 = vpop.permute.xlu2 %3314 }
  0x8b   : > { %3322 = vrot.lane.b32.xlu1 %v3219_v34, %s6641_s13 }
  0x8c   : > { %v791_v44 = vpop.permute.xlu0 %790 }
  0x8d   : > { %887 = vst.msk [vmem:[#allocation2] sm:$0xf] %vm886_vm7, %v791_v44  ;;  %v1133_v48 = vpop.permute.xlu1 %1132  ;;  %v6050_v44 = vld [vmem:[%s6703_s29 + $0x44] sm:$0x1] }
  0x8e   : > { %1227 = vst.msk [vmem:[#allocation2] sm:$0xf] %vm1226_vm8, %v1131_v22  ;;  %v1043_v22 = vrot.slane %v1041_v38, 4  ;;  %v2679_v38 = vshrl.u32 %v6049_v33, 16  ;;  %v2685_v60 = vshll.u32 %v6050_v44, 16  ;;  %v1601_v44 = vshll.u32 %v5907_v37, 16 }
  0x8f   : > { %1421 = vst.msk [vmem:[#allocation2] sm:$0xf] %vm1420_vm9, %v6862_v27 }
  0x90   : > { %1142 = vrot.lane.b32.xlu2 %v1042_v49, %s6636_s8  ;;  %v1045_v34 = vsel %vm6705_vm2, %v1043_v22, %v1044_v23  ;;  %v2681_v47 = vrot.slane %v2679_v38, 4  ;;  %v2687_v13 = vrot.slane %v2685_v60, 5 }
  0x92   : > { %2987 = vrot.lane.b32.xlu0 %v2664_v52, %s6642_s14  ;;  %v797_v27 = vpop.permute.xlu2 %796  ;;  %v367_v52 = vld [vmem:[%s6703_s29 + $0x30] sm:$0xf] }
  0x93   : > { %890 = vst.msk [vmem:[#allocation2 + $0xc] sm:$0xf] %vm886_vm7, %v797_v27  ;;  %804 = vrot.lane.b32.xlu1 %v501_v54, %s6637_s9  ;;  %v7020_v54 = vld [vmem:[%s6703_s29 + $0x40] sm:$0xf]  ;;  %v5954_v27 = vld [vmem:[%s6703_s29 + $0x38] sm:$0x1] }
  0x94   : > { %v793_v63 = vpop.permute.xlu0 %792  ;;  %v506_v61 = vshll.u32 %v367_v52, 16  ;;  %v3225_v1 = vrot.slane %v7020_v54, 5  ;;  %v2136_v7 = vrot.slane %v5954_v27, 5 }
  0x95   : > { %888 = vst.msk [vmem:[#allocation2 + $0x4] sm:$0xf] %vm886_vm7, %v793_v63  ;;  %v1888_v5 = vpop.permute.xlu1 %1887  ;;  %v6138_v63 = vrot.slane %v6096_v53, 9 }
  0x96   : > { %1228 = vst.msk [vmem:[#allocation2 + $0x4] sm:$0xf] %vm1226_vm8, %v1133_v48  ;;  %v6048_v48 = vld [vmem:[%s6703_s29 + $0x3c] sm:$0xf]  ;;  %v508_v16 = vrot.slane %v506_v61, 5 }
  0x97   : > { %1422 = vst.msk [vmem:[#allocation2 + $0x4] sm:$0xf] %vm1420_vm9, %v6878_v46  ;;  %v2133_v46 = vrot.slane %v6963_v8, 5  ;;  %v2666_v57 = vshrl.u32 %v6048_v48, 16  ;;  %v2669_v58 = vshll.u32 %v6048_v48, 16 }
  0x98   : > { %1983 = vst.msk [vmem:[#allocation2 + $0x4] sm:$0xf] %vm1981_vm11, %v1888_v5  ;;  %1338 = vrot.lane.b32.xlu2 %v5870_v59, %s6635_s30  ;;  %v2682_v59 = vor.u32 %v2681_v47, %v7011_v45  ;;  %v369_v5 = vld [vmem:[%s6703_s29 + $0x38] sm:$0x1] }
  0x99   : > { %v2134_v28 = vsel %vm6705_vm2, %v5994_v18, %v2133_v46  ;;  %v2135_v6 = vrot.slane %v2133_v46, 4  ;;  %v2668_v9 = vrot.slane %v2666_v57, 4  ;;  %v3226_v18 = vsel %vm6705_vm2, %v6138_v63, %v3225_v1  ;;  %v933_v47 = vld [vmem:[%s6703_s29 + $0x38] sm:$0x1] }
  0x9a   : > { %802 = vrot.lane.b32.xlu0 %v491_v10, %s6637_s9  ;;  %v6980_v20 = vpop.permute.xlu2 %1328  ;;  %v2671_v10 = vrot.slane %v2669_v58, 5  ;;  %v2683_v12 = vrot.slane %v2682_v59, 4  ;;  %v522_v21 = vshll.u32 %v369_v5, 16  ;;  %v1603_v58 = vrot.slane %v1601_v44, 5  ;;  %v5871_v59 = vld [vmem:[%s6703_s29 + $0x3c] sm:$0xf] }
  0x9b   : > { %1336 = vrot.lane.b32.xlu1 %v5869_v11, %s6635_s30  ;;  %v2137_v8 = vsel %vm6705_vm2, %v2135_v6, %v2136_v7  ;;  %v6052_v6 = vld [vmem:[%s6703_s29 + $0x4c] sm:$0xf]  ;;  %v5955_v44 = vld [vmem:[%s6703_s29 + $0x3c] sm:$0xe] }
  0x9c   : > { %v1886_v29 = vpop.permute.xlu0 %1885  ;;  %v2672_v46 = vor.u32 %v2671_v10, %v2668_v9  ;;  %v2688_v22 = vsel %vm6726_vm5, %v2683_v12, %v2687_v13  ;;  %v524_v25 = vrot.slane %v522_v21, 5  ;;  %v295_v9 = vld [vmem:[%s6703_s29 + $0x1c] sm:$0xf]  ;;  %v7094_v12 = vld [vmem:[%s6703_s29 + $0x40] sm:$0xf] }
  0x9d   : > { %1982 = vst.msk [vmem:[#allocation2] sm:$0xf] %vm1981_vm11, %v1886_v29  ;;  %v2417_v32 = vpop.permute.xlu1 %2416 }
  0x9e   : > { %2319 = vst.msk [vmem:[#allocation2] sm:$0xf] %vm2318_vm12, %v6894_v62  ;;  %v2673_v30 = vrot.slane %v2672_v46, 4 }
  0x9f   : > { %2513 = vst.msk [vmem:[#allocation2] sm:$0xf] %vm9194_vm13, %v2417_v32 }
  0xa0   : > { %2234 = vrot.lane.b32.xlu2 %v2134_v28, %s6638_s10  ;;  %v7055_v28 = vld [vmem:[%s6703_s29 + $0x34] sm:$0xf]  ;;  %v2678_v38 = vsel %vm6726_vm5, %v2673_v30, %v7011_v45  ;;  %v3227_v45 = vrot.slane %v3225_v1, 4  ;;  %v931_v1 = vld [vmem:[%s6703_s29 + $0x30] sm:$0xe] }
  0xa1   : > { %v1048_v42 = vrot.slane %v7055_v28, 5  ;;  %v5851_v7 = vrot.slane %v931_v1, 9  ;;  %328 = vst.msk [vmem:[#allocation2 + $0x14] sm:$0xf] %vm322_vm6, %v295_v9  ;;  %v370_v30 = vld [vmem:[%s6703_s29 + $0x3c] sm:$0xf] }
  0xa2   : > { %1144 = vrot.lane.b32.xlu0 %v1045_v34, %s6636_s8  ;;  %v7005_v62 = vpop.permute.xlu2 %1891  ;;  %v525_v34 = vsel %vm6726_vm5, %v520_v24, %v524_v25  ;;  %v6101_v1 = vld [vmem:[%s6703_s29 + $0x50] sm:$0x1] }
  0xa3   : > { %1899 = vrot.lane.b32.xlu1 %v1596_v36, %s6639_s11  ;;  %v1049_v19 = vsel %vm6705_vm2, %v5851_v7, %v1048_v42  ;;  %v3235_v7 = vrot.slane %v6101_v1, 5 }
  0xa4   : > { %v2225_v43 = vpop.permute.xlu0 %2224 }
  0xa5   : > { %2320 = vst.msk [vmem:[#allocation2 + $0x4] sm:$0xf] %vm2318_vm12, %v2225_v43  ;;  %v2980_v49 = vpop.permute.xlu1 %2979  ;;  %v1598_v43 = vshrl.u32 %v5907_v37, 16 }
  0xa6   : > { %2514 = vst.msk [vmem:[#allocation2 + $0x4] sm:$0xf] %vm9194_vm13, %v6908_v15  ;;  %v503_v15 = vshrl.u32 %v367_v52, 16 }
  0xa7   : > { %3075 = vst.msk [vmem:[#allocation2 + $0x4] sm:$0xf] %vm3073_vm14, %v2980_v49  ;;  %v1600_v57 = vrot.slane %v1598_v43, 4 }
  0xa8   : > { %2430 = vrot.lane.b32.xlu2 %v6014_v41, %s6640_s12  ;;  %v505_v14 = vrot.slane %v503_v15, 4  ;;  %v6098_v41 = vld [vmem:[%s6703_s29 + $0x44] sm:$0x1]  ;;  %v1617_v15 = vshll.u32 %v5909_v51, 16 }
  0xa9   : > { %v3228_v52 = vrot.slane %v6098_v41, 5  ;;  %v530_v41 = vshll.u32 %v370_v30, 16 }
  0xaa   : > { %1897 = vrot.lane.b32.xlu0 %v1586_v55, %s6639_s11  ;;  %v7032_v2 = vpop.permute.xlu2 %2420  ;;  %v509_v23 = vor.u32 %v508_v16, %v505_v14  ;;  %v1050_v55 = vrot.slane %v1048_v42, 4  ;;  %v1619_v5 = vrot.slane %v1617_v15, 5  ;;  %v2699_v16 = vshll.u32 %v6052_v6, 16  ;;  %v5872_v42 = vld [vmem:[%s6703_s29 + $0x40] sm:$0xf] }
  0xab   : > { %2428 = vrot.lane.b32.xlu1 %v6013_v56, %s6640_s12  ;;  %v1051_v56 = vrot.slane %v933_v47, 5  ;;  %v3229_v61 = vsel %vm6705_vm2, %v3227_v45, %v3228_v52  ;;  %v532_v51 = vrot.slane %v530_v41, 5  ;;  %v5995_v52 = vrot.slane %v5955_v44, 9 }
  0xac   : > { %v2978_v11 = vpop.permute.xlu0 %2977  ;;  %v510_v32 = vrot.slane %v509_v23, 4  ;;  %v5957_v23 = vld [vmem:[%s6703_s29 + $0x44] sm:$0x1]  ;;  %v2701_v24 = vrot.slane %v2699_v16, 5 }
  0xad   : > { %3074 = vst.msk [vmem:[#allocation2] sm:$0xf] %vm3073_vm14, %v2978_v11  ;;  %v795_v17 = vpop.permute.xlu1 %794  ;;  %v1052_v63 = vsel %vm6705_vm2, %v1050_v55, %v1051_v56 }
  0xae   : > { %3411 = vst.msk [vmem:[#allocation2] sm:$0xf] %vm9192_vm15, %v6929_v39  ;;  %v5908_v39 = vld [vmem:[%s6703_s29 + $0x40] sm:$0xf]  ;;  %v515_v40 = vsel %vm6726_vm5, %v510_v32, %v514_v3  ;;  %v1604_v3 = vor.u32 %v1603_v58, %v1600_v57  ;;  %v6015_v32 = vld [vmem:[%s6703_s29 + $0x48] sm:$0xf] }
  0xaf   : > { %889 = vst.msk [vmem:[#allocation2 + $0x8] sm:$0xf] %vm886_vm7, %v795_v17  ;;  %v1607_v35 = vshll.u32 %v5908_v39, 16  ;;  %v1611_v36 = vshrl.u32 %v5908_v39, 16  ;;  %v2703_v17 = vshrl.u32 %v6052_v6, 16 }
  0xb0   : > { %3326 = vrot.lane.b32.xlu2 %v3226_v18, %s6641_s13  ;;  %v1605_v11 = vrot.slane %v1604_v3, 4  ;;  %v6051_v18 = vld [vmem:[%s6703_s29 + $0x48] sm:$0xf]  ;;  %v6053_v39 = vld [vmem:[%s6703_s29 + $0x50] sm:$0x1] }
  0xb1   : > { %v1609_v48 = vrot.slane %v1607_v35, 5  ;;  %v1613_v49 = vrot.slane %v1611_v36, 4  ;;  %v2690_v46 = vshrl.u32 %v6051_v18, 16  ;;  %v2705_v25 = vrot.slane %v2703_v17, 4  ;;  %v6016_v17 = vld [vmem:[%s6703_s29 + $0x4c] sm:$0xf] }
  0xb2   : > { %2236 = vrot.lane.b32.xlu0 %v2137_v8, %s6638_s10  ;;  %v7050_v29 = vpop.permute.xlu2 %2983  ;;  %v2140_v8 = vrot.slane %v7094_v12, 5 }
  0xb3   : > { %2991 = vrot.lane.b32.xlu1 %v2688_v22, %s6642_s14  ;;  %v1614_v60 = vor.u32 %v1613_v49, %v1609_v48  ;;  %v1610_v21 = vsel %vm6726_vm5, %v1605_v11, %v1609_v48  ;;  %v2693_v22 = vshll.u32 %v6051_v18, 16  ;;  %v2706_v37 = vor.u32 %v2705_v25, %v2701_v24  ;;  %v5911_v25 = vld [vmem:[%s6703_s29 + $0x4c] sm:$0xf] }
  0xb4   : > { %v3317_v31 = vpop.permute.xlu0 %3316  ;;  %v2142_v28 = vrot.slane %v2140_v8, 4 }
  0xb5   : > { %3412 = vst.msk [vmem:[#allocation2 + $0x4] sm:$0xf] %vm9192_vm15, %v3317_v31  ;;  %v1137_v33 = vpop.permute.xlu1 %1136  ;;  %v1615_v4 = vrot.slane %v1614_v60, 4  ;;  %v2695_v35 = vrot.slane %v2693_v22, 5  ;;  %v2707_v48 = vrot.slane %v2706_v37, 4  ;;  %v1631_v37 = vshll.u32 %v5911_v25, 16 }
  0xb6   : > { %1230 = vst.msk [vmem:[#allocation2 + $0xc] sm:$0xf] %vm1226_vm8, %v1137_v33  ;;  %v2143_v33 = vrot.slane %v5957_v23, 5 }
  0xb7   : > { %v1620_v14 = vsel %vm6726_vm5, %v1615_v4, %v1619_v5  ;;  %v5910_v4 = vld [vmem:[%s6703_s29 + $0x48] sm:$0xf] }
  0xb8   : > { %808 = vrot.lane.b32.xlu2 %v525_v34, %s6637_s9  ;;  %v2692_v34 = vrot.slane %v2690_v46, 4  ;;  %v2144_v43 = vsel %vm6705_vm2, %v2142_v28, %v2143_v33  ;;  %v1622_v12 = vshrl.u32 %v5910_v4, 16  ;;  %v934_v46 = vld [vmem:[%s6703_s29 + $0x3c] sm:$0xe]  ;;  %v372_v33 = vld [vmem:[%s6703_s29 + $0x44] sm:$0x1] }
  0xb9   : > { %v5852_v28 = vrot.slane %v934_v46, 9  ;;  %v6103_v46 = vld [vmem:[%s6703_s29 + $0x58] sm:$0xf] }
  0xba   : > { %2989 = vrot.lane.b32.xlu0 %v2678_v38, %s6642_s14  ;;  %v799_v50 = vpop.permute.xlu2 %798  ;;  %v2709_v38 = vshll.u32 %v6053_v39, 16  ;;  %v2696_v47 = vor.u32 %v2695_v35, %v2692_v34  ;;  %v1624_v22 = vrot.slane %v1622_v12, 4 }
  0xbb   : > { %891 = vst.msk [vmem:[#allocation2 + $0x10] sm:$0xf] %vm886_vm7, %v799_v50  ;;  %806 = vrot.lane.b32.xlu1 %v515_v40, %s6637_s9  ;;  %v527_v40 = vshrl.u32 %v370_v30, 16 }
  0xbc   : > { %v1135_v53 = vpop.permute.xlu0 %1134  ;;  %v6513_v54 = vld [vmem:[#allocation2] sm:$0xff]  ;;  %v2711_v49 = vrot.slane %v2709_v38, 5 }
  0xbd   : > { %1229 = vst.msk [vmem:[#allocation2 + $0x8] sm:$0xf] %vm1226_vm8, %v1135_v53  ;;  %v1890_v27 = vpop.permute.xlu1 %1889  ;;  %6223 = vmatmul.msk.bf16.vlgmr.msra.gmra.mxu0 %vm3579_vm0, %v6513_v54  ;;  %v529_v50 = vrot.slane %v527_v40, 4  ;;  %v2697_v54 = vrot.slane %v2696_v47, 4  ;;  %v297_v38 = vld [vmem:[%s6703_s29 + $0x28] sm:$0xf] }
  0xbe   : > { %1423 = vst.msk [vmem:[#allocation2 + $0x8] sm:$0xf] %vm1420_vm9, %v6980_v20  ;;  %v2712_v56 = vsel %vm6726_vm5, %v2707_v48, %v2711_v49  ;;  %v5959_v48 = vld [vmem:[%s6703_s29 + $0x4c] sm:$0xf]  ;;  %v6054_v49 = vld [vmem:[%s6703_s29 + $0x54] sm:$0xf] }
  0xbf   : > { %1984 = vst.msk [vmem:[#allocation2 + $0x8] sm:$0xf] %vm1981_vm11, %v1890_v27  ;;  %v533_v57 = vor.u32 %v532_v51, %v529_v50  ;;  %v6100_v27 = vld [vmem:[%s6703_s29 + $0x4c] sm:$0xf]  ;;  %v2702_v60 = vsel %vm6726_vm5, %v2697_v54, %v2701_v24 }
  0xc0   : > { %1340 = vrot.lane.b32.xlu2 %v5871_v59, %s6635_s30  ;;  %v2141_v59 = vsel %vm6705_vm2, %v5995_v52, %v2140_v8  ;;  %v3232_v15 = vrot.slane %v6100_v27, 5  ;;  %330 = vst.msk [vmem:[#allocation2 + $0x1c] sm:$0xf] %vm322_vm6, %v297_v38  ;;  %v1635_v27 = vshrl.u32 %v5911_v25, 16  ;;  %v6018_v38 = vld [vmem:[%s6703_s29 + $0x58] sm:$0xf] }
  0xc2   : > { %3328 = vrot.lane.b32.xlu0 %v3229_v61, %s6641_s13  ;;  %v7088_v20 = vpop.permute.xlu2 %1140  ;;  %v534_v61 = vrot.slane %v533_v57, 4  ;;  %v3234_v6 = vrot.slane %v3232_v15, 4  ;;  %v2717_v57 = vshll.u32 %v6054_v49, 16 }
  0xc3   : > { %1148 = vrot.lane.b32.xlu1 %v1052_v63, %s6636_s8 }
  0xc4   : > { %v1331_v10 = vpop.permute.xlu0 %1330  ;;  %v3236_v18 = vsel %vm6705_vm2, %v3234_v6, %v3235_v7  ;;  %v1637_v6 = vrot.slane %v1635_v27, 4 }
  0xc5   : > { %1424 = vst.msk [vmem:[#allocation2 + $0xc] sm:$0xf] %vm1420_vm9, %v1331_v10  ;;  %v2229_v13 = vpop.permute.xlu1 %2228 }
  0xc6   : > { %1985 = vst.msk [vmem:[#allocation2 + $0xc] sm:$0xf] %vm1981_vm11, %v7005_v62 }
  0xc7   : > { %2322 = vst.msk [vmem:[#allocation2 + $0xc] sm:$0xf] %vm2318_vm12, %v2229_v13  ;;  %v1625_v13 = vshll.u32 %v5910_v4, 16 }
  0xc8   : > { %1903 = vrot.lane.b32.xlu2 %v1620_v14, %s6639_s11  ;;  %v936_v14 = vld [vmem:[%s6703_s29 + $0x44] sm:$0x1] }
  0xc9   : > { %v1058_v8 = vrot.slane %v936_v14, 5  ;;  %v1627_v23 = vrot.slane %v1625_v13, 5 }
  0xca   : > { %1146 = vrot.lane.b32.xlu0 %v1049_v19, %s6636_s8  ;;  %v7112_v62 = vpop.permute.xlu2 %1893  ;;  %v6099_v19 = vld [vmem:[%s6703_s29 + $0x48] sm:$0xe] }
  0xcb   : > { %1901 = vrot.lane.b32.xlu1 %v1610_v21, %s6639_s11  ;;  %v6139_v39 = vrot.slane %v6099_v19, 9 }
  0xcc   : > { %v2227_v31 = vpop.permute.xlu0 %2226 }
  0xcd   : > { %2321 = vst.msk [vmem:[#allocation2 + $0x8] sm:$0xf] %vm2318_vm12, %v2227_v31  ;;  %v2982_v36 = vpop.permute.xlu1 %2981  ;;  %v3233_v40 = vsel %vm6705_vm2, %v6139_v39, %v3232_v15 }
  0xce   : > { %2515 = vst.msk [vmem:[#allocation2 + $0x8] sm:$0xf] %vm9194_vm13, %v7032_v2  ;;  %v371_v2 = vld [vmem:[%s6703_s29 + $0x40] sm:$0xf] }
  0xcf   : > { %3076 = vst.msk [vmem:[#allocation2 + $0x8] sm:$0xf] %vm3073_vm14, %v2982_v36  ;;  %v536_v58 = vshll.u32 %v371_v2, 16  ;;  %v540_v16 = vshrl.u32 %v371_v2, 16  ;;  %v1628_v36 = vor.u32 %v1627_v23, %v1624_v22  ;;  %v296_v2 = vld [vmem:[%s6703_s29 + $0x24] sm:$0xf] }
  0xd0   : > { %2432 = vrot.lane.b32.xlu2 %v6015_v32, %s6640_s12  ;;  %329 = vst.msk [vmem:[#allocation2 + $0x18] sm:$0xf] %vm322_vm6, %v296_v2 }
  0xd1   : > { %v538_v63 = vrot.slane %v536_v58, 5  ;;  %v542_v30 = vrot.slane %v540_v16, 4  ;;  %v1629_v44 = vrot.slane %v1628_v36, 4  ;;  %v5960_v58 = vld [vmem:[%s6703_s29 + $0x50] sm:$0x1] }
  0xd2   : > { %1342 = vrot.lane.b32.xlu0 %v5872_v42, %s6635_s30  ;;  %v7128_v45 = vpop.permute.xlu2 %2232  ;;  %v546_v42 = vshll.u32 %v372_v33, 16  ;;  %v5873_v16 = vld [vmem:[%s6703_s29 + $0x48] sm:$0xf] }
  0xd3   : > { %2240 = vrot.lane.b32.xlu1 %v2144_v43, %s6638_s10  ;;  %v539_v10 = vsel %vm6726_vm5, %v534_v61, %v538_v63  ;;  %v543_v41 = vor.u32 %v542_v30, %v538_v63  ;;  %v2150_v61 = vrot.slane %v5960_v58, 5  ;;  %v5958_v63 = vld [vmem:[%s6703_s29 + $0x48] sm:$0xe]  ;;  %v3239_v30 = vrot.slane %v6103_v46, 5  ;;  %v939_v46 = vld [vmem:[%s6703_s29 + $0x50] sm:$0x1] }
  0xd4   : > { %v2423_v53 = vpop.permute.xlu0 %2422  ;;  %v548_v51 = vrot.slane %v546_v42, 5 }
  0xd5   : > { %2516 = vst.msk [vmem:[#allocation2 + $0xc] sm:$0xf] %vm9194_vm13, %v2423_v53  ;;  %v3321_v55 = vpop.permute.xlu1 %3320  ;;  %v544_v50 = vrot.slane %v543_v41, 4 }
  0xd6   : > { %3077 = vst.msk [vmem:[#allocation2 + $0xc] sm:$0xf] %vm3073_vm14, %v7050_v29  ;;  %v935_v29 = vld [vmem:[%s6703_s29 + $0x40] sm:$0xf] }
  0xd7   : > { %3414 = vst.msk [vmem:[#allocation2 + $0xc] sm:$0xf] %vm9192_vm15, %v3321_v55  ;;  %v1055_v11 = vrot.slane %v935_v29, 5  ;;  %v2147_v55 = vrot.slane %v5959_v48, 5  ;;  %v2719_v29 = vrot.slane %v2717_v57, 5 }
  0xd8   : > { %2995 = vrot.lane.b32.xlu2 %v2712_v56, %s6642_s14  ;;  %v2714_v56 = vshrl.u32 %v6054_v49, 16  ;;  %v7246_v49 = vld [vmem:[%s6703_s29 + $0x70] sm:$0xf] }
  0xd9   : > { %v1057_v21 = vrot.slane %v1055_v11, 4  ;;  %v1056_v43 = vsel %vm6705_vm2, %v5852_v28, %v1055_v11  ;;  %v2149_v15 = vrot.slane %v2147_v55, 4  ;;  %v632_v27 = vshll.u32 %v7246_v49, 16 }
  0xda   : > { %2238 = vrot.lane.b32.xlu0 %v2141_v59, %s6638_s10  ;;  %v7146_v3 = vpop.permute.xlu2 %2985  ;;  %v549_v59 = vsel %vm6726_vm5, %v544_v50, %v548_v51  ;;  %v2716_v1 = vrot.slane %v2714_v56, 4 }
  0xdb   : > { %2993 = vrot.lane.b32.xlu1 %v2702_v60, %s6642_s14  ;;  %v1059_v35 = vsel %vm6705_vm2, %v1057_v21, %v1058_v8  ;;  %v5874_v60 = vld [vmem:[%s6703_s29 + $0x4c] sm:$0xf]  ;;  %v2151_v12 = vsel %vm6705_vm2, %v2149_v15, %v2150_v61 }
  0xdc   : > { %v3319_v5 = vpop.permute.xlu0 %3318  ;;  %v2720_v13 = vor.u32 %v2719_v29, %v2716_v1 }
  0xdd   : > { %3413 = vst.msk [vmem:[#allocation2 + $0x8] sm:$0xf] %vm9192_vm15, %v3319_v5  ;;  %v1139_v9 = vpop.permute.xlu1 %1138  ;;  %v299_v5 = vld [vmem:[%s6703_s29 + $0x34] sm:$0xf] }
  0xde   : > { %1231 = vst.msk [vmem:[#allocation2 + $0x10] sm:$0xf] %vm1226_vm8, %v1139_v9  ;;  %v5996_v9 = vrot.slane %v5958_v63, 9  ;;  %v2721_v21 = vrot.slane %v2720_v13, 4 }
  0xdf   : > { %332 = vst.msk [vmem:[#allocation2 + $0x24] sm:$0xf] %vm322_vm6, %v299_v5 }
  0xe0   : > { %810 = vrot.lane.b32.xlu2 %v539_v10, %s6637_s9  ;;  %v5912_v10 = vld [vmem:[%s6703_s29 + $0x50] sm:$0x1]  ;;  %v2148_v19 = vsel %vm6705_vm2, %v5996_v9, %v2147_v55  ;;  %v373_v55 = vld [vmem:[%s6703_s29 + $0x48] sm:$0xf]  ;;  %v938_v9 = vld [vmem:[%s6703_s29 + $0x4c] sm:$0xf] }
  0xe1   : > { %v551_v63 = vshrl.u32 %v373_v55, 16  ;;  %v554_v1 = vshll.u32 %v373_v55, 16 }
  0xe2   : > { %2434 = vrot.lane.b32.xlu0 %v6016_v17, %s6640_s12  ;;  %v7163_v24 = vpop.permute.xlu2 %3324 }
  0xe3   : > { %3332 = vrot.lane.b32.xlu1 %v3236_v18, %s6641_s13  ;;  %v1641_v18 = vshll.u32 %v5912_v10, 16  ;;  %v556_v13 = vrot.slane %v554_v1, 5 }
  0xe4   : > { %v801_v31 = vpop.permute.xlu0 %800  ;;  %v6514_v32 = vld [vmem:[#allocation2 + $0x8] sm:$0xff] }
  0xe5   : > { %892 = vst.msk [vmem:[#allocation2 + $0x14] sm:$0xf] %vm886_vm7, %v801_v31  ;;  %v1335_v34 = vpop.permute.xlu1 %1334  ;;  %6224 = vmatmul.msk.bf16.gmra.mxu0 %vm3579_vm0, %v6514_v32  ;;  %v1643_v25 = vrot.slane %v1641_v18, 5 }
  0xe6   : > { %1232 = vst.msk [vmem:[#allocation2 + $0x14] sm:$0xf] %vm1226_vm8, %v7088_v20  ;;  %v1633_v20 = vrot.slane %v1631_v37, 5 }
  0xe7   : > { %1426 = vst.msk [vmem:[#allocation2 + $0x14] sm:$0xf] %vm1420_vm9, %v1335_v34  ;;  %v374_v34 = vld [vmem:[%s6703_s29 + $0x4c] sm:$0xf] }
  0xe8   : > { %1152 = vrot.lane.b32.xlu2 %v1059_v35, %s6636_s8  ;;  %v1634_v54 = vsel %vm6726_vm5, %v1629_v44, %v1633_v20  ;;  %v1638_v17 = vor.u32 %v1637_v6, %v1633_v20  ;;  %v6104_v35 = vld [vmem:[%s6703_s29 + $0x5c] sm:$0x1]  ;;  %v560_v41 = vshll.u32 %v374_v34, 16  ;;  %v564_v42 = vshrl.u32 %v374_v34, 16 }
  0xe9   : > { %v3242_v44 = vrot.slane %v6104_v35, 5 }
  0xea   : > { %3330 = vrot.lane.b32.xlu0 %v3233_v40, %s6641_s13  ;;  %v7183_v47 = vpop.permute.xlu2 %1142  ;;  %v1639_v23 = vrot.slane %v1638_v17, 4  ;;  %v6102_v40 = vld [vmem:[%s6703_s29 + $0x54] sm:$0xe] }
  0xeb   : > { %1150 = vrot.lane.b32.xlu1 %v1056_v43, %s6636_s8  ;;  %v3241_v43 = vrot.slane %v3239_v30, 4  ;;  %v6140_v50 = vrot.slane %v6102_v40, 9 }
  0xec   : > { %v1333_v52 = vpop.permute.xlu0 %1332  ;;  %v1644_v37 = vsel %vm6726_vm5, %v1639_v23, %v1643_v25  ;;  %v636_v23 = vshrl.u32 %v7246_v49, 16  ;;  %v948_v49 = vld [vmem:[%s6703_s29 + $0x74] sm:$0x1] }
  0xed   : > { %1425 = vst.msk [vmem:[#allocation2 + $0x10] sm:$0xf] %vm1420_vm9, %v1333_v52  ;;  %v2231_v53 = vpop.permute.xlu1 %2230  ;;  %v6056_v52 = vld [vmem:[%s6703_s29 + $0x5c] sm:$0x1]  ;;  %v3243_v57 = vsel %vm6705_vm2, %v3241_v43, %v3242_v44  ;;  %v3240_v29 = vsel %vm6705_vm2, %v6140_v50, %v3239_v30  ;;  %v5922_v50 = vld [vmem:[%s6703_s29 + $0x78] sm:$0xf] }
  0xee   : > { %1986 = vst.msk [vmem:[#allocation2 + $0x10] sm:$0xf] %vm1981_vm11, %v7112_v62  ;;  %v6055_v62 = vld [vmem:[%s6703_s29 + $0x58] sm:$0xf]  ;;  %v2733_v61 = vshll.u32 %v6056_v52, 16  ;;  %v638_v34 = vrot.slane %v636_v23, 4 }
  0xef   : > { %2323 = vst.msk [vmem:[#allocation2 + $0x10] sm:$0xf] %vm2318_vm12, %v2231_v53  ;;  %v2723_v14 = vshll.u32 %v6055_v62, 16  ;;  %v2727_v36 = vshrl.u32 %v6055_v62, 16  ;;  %v7250_v53 = vrot.slane %v560_v41, 5 }
  0xf0   : > { %1905 = vrot.lane.b32.xlu2 %v1634_v54, %s6639_s11  ;;  %v566_v54 = vrot.slane %v564_v42, 4  ;;  %v947_v41 = vld [vmem:[%s6703_s29 + $0x70] sm:$0xf] }
  0xf1   : > { %v7220_v8 = vrot.slane %v2723_v14, 5  ;;  %v2729_v51 = vrot.slane %v2727_v36, 4 }
  0xf2   : > { %812 = vrot.lane.b32.xlu0 %v549_v59, %s6637_s9  ;;  %v7203_v4 = vpop.permute.xlu2 %1338  ;;  %v375_v59 = vld [vmem:[%s6703_s29 + $0x50] sm:$0x1]  ;;  %v567_v62 = vor.u32 %v566_v54, %v7250_v53  ;;  %v5875_v54 = vld [vmem:[%s6703_s29 + $0x54] sm:$0xf] }
  0xf3   : > { %1346 = vrot.lane.b32.xlu1 %v5874_v60, %s6635_s30  ;;  %v2726_v32 = vsel %vm6726_vm5, %v2721_v21, %v7220_v8  ;;  %v6017_v60 = vld [vmem:[%s6703_s29 + $0x54] sm:$0xf]  ;;  %v2730_v15 = vor.u32 %v2729_v51, %v7220_v8  ;;  %v570_v5 = vshll.u32 %v375_v59, 16  ;;  %v1062_v8 = vrot.slane %v938_v9, 5  ;;  %v300_v51 = vld [vmem:[%s6703_s29 + $0x3c] sm:$0xf] }
  0xf4   : > { %v1896_v7 = vpop.permute.xlu0 %1895  ;;  %333 = vst.msk [vmem:[#allocation2 + $0x28] sm:$0xf] %vm322_vm6, %v300_v51  ;;  %v5914_v59 = vld [vmem:[%s6703_s29 + $0x58] sm:$0xf]  ;;  %v5882_v9 = vld [vmem:[%s6703_s29 + $0x7c] sm:$0xf] }
  0xf5   : > { %1987 = vst.msk [vmem:[#allocation2 + $0x14] sm:$0xf] %vm1981_vm11, %v1896_v7  ;;  %v2427_v11 = vpop.permute.xlu1 %2426  ;;  %v634_v7 = vrot.slane %v632_v27, 5  ;;  %v2731_v10 = vrot.slane %v2730_v15, 4  ;;  %v572_v17 = vrot.slane %v570_v5, 5  ;;  %v1721_v27 = vshll.u32 %v5922_v50, 16 }
  0xf6   : > { %2324 = vst.msk [vmem:[#allocation2 + $0x14] sm:$0xf] %vm2318_vm12, %v7128_v45  ;;  %v382_v45 = vld [vmem:[%s6703_s29 + $0x6c] sm:$0xf]  ;;  %v1659_v1 = vshrl.u32 %v5914_v59, 16 }
  0xf7   : > { %2518 = vst.msk [vmem:[#allocation2 + $0x14] sm:$0xf] %vm9194_vm13, %v2427_v11  ;;  %v623_v28 = vshrl.u32 %v382_v45, 16  ;;  %v626_v33 = vshll.u32 %v382_v45, 16  ;;  %v2735_v11 = vrot.slane %v2733_v61, 5  ;;  %v639_v43 = vor.u32 %v638_v34, %v634_v7 }
  0xf8   : > { %2244 = vrot.lane.b32.xlu2 %v2151_v12, %s6638_s10  ;;  %v553_v12 = vrot.slane %v551_v63, 4  ;;  %v298_v45 = vld [vmem:[%s6703_s29 + $0x30] sm:$0xf]  ;;  %v946_v61 = vld [vmem:[%s6703_s29 + $0x6c] sm:$0xe]  ;;  %v1655_v63 = vshll.u32 %v5914_v59, 16 }
  0xf9   : > { %v625_v20 = vrot.slane %v623_v28, 4  ;;  %v2736_v25 = vsel %vm6726_vm5, %v2731_v10, %v2735_v11  ;;  %331 = vst.msk [vmem:[#allocation2 + $0x20] sm:$0xf] %vm322_vm6, %v298_v45  ;;  %v5923_v5 = vld [vmem:[%s6703_s29 + $0x7c] sm:$0xf]  ;;  %v1661_v11 = vrot.slane %v1659_v1, 4 }
  0xfa   : > { %1344 = vrot.lane.b32.xlu0 %v5873_v16, %s6635_s30  ;;  %v7224_v22 = vpop.permute.xlu2 %2234  ;;  %v568_v16 = vrot.slane %v567_v62, 4  ;;  %v1723_v62 = vrot.slane %v1721_v27, 5  ;;  %v7332_v10 = vrot.slane %v1655_v63, 5  ;;  %v5924_v51 = vld [vmem:[%s6703_s29 + $0x80] sm:$0x1] }
  0xfb   : > { %2242 = vrot.lane.b32.xlu1 %v2148_v19, %s6638_s10  ;;  %v5972_v27 = vld [vmem:[%s6703_s29 + $0x80] sm:$0x1] }
  0xfc   : > { %v2425_v39 = vpop.permute.xlu0 %2424  ;;  %v573_v30 = vsel %vm6726_vm5, %v568_v16, %v572_v17  ;;  %v1727_v16 = vshll.u32 %v5923_v5, 16  ;;  %v5915_v17 = vld [vmem:[%s6703_s29 + $0x5c] sm:$0x1] }
  0xfd   : > { %2517 = vst.msk [vmem:[#allocation2 + $0x10] sm:$0xf] %vm9194_vm13, %v2425_v39  ;;  %v3323_v31 = vpop.permute.xlu1 %3322  ;;  %v557_v39 = vor.u32 %v556_v13, %v553_v12  ;;  %v5913_v12 = vld [vmem:[%s6703_s29 + $0x54] sm:$0xf]  ;;  %v1665_v45 = vshll.u32 %v5915_v17, 16 }
  0xfe   : > { %3078 = vst.msk [vmem:[#allocation2 + $0x10] sm:$0xf] %vm3073_vm14, %v7146_v3  ;;  %v628_v3 = vrot.slane %v626_v33, 5 }
  0xff   : > { %3415 = vst.msk [vmem:[#allocation2 + $0x10] sm:$0xf] %vm9192_vm15, %v3323_v31  ;;  %v1065_v31 = vrot.slane %v939_v46, 5  ;;  %v558_v33 = vrot.slane %v557_v39, 4  ;;  %v1662_v46 = vor.u32 %v1661_v11, %v7332_v10 }
 0x100   : > { %2997 = vrot.lane.b32.xlu2 %v2726_v32, %s6642_s14  ;;  %v629_v58 = vor.u32 %v628_v3, %v625_v20  ;;  %v937_v32 = vld [vmem:[%s6703_s29 + $0x48] sm:$0xe]  ;;  %v1083_v3 = vrot.slane %v947_v41, 5 }
 0x101   : > { %v5853_v36 = vrot.slane %v937_v32, 9  ;;  %v563_v42 = vsel %vm6726_vm5, %v558_v33, %v7250_v53  ;;  %v1663_v32 = vrot.slane %v1662_v46, 4  ;;  %v301_v46 = vld [vmem:[%s6703_s29 + $0x40] sm:$0xf] }
 0x102   : > { %1907 = vrot.lane.b32.xlu0 %v1644_v37, %s6639_s11  ;;  %v7243_v48 = vpop.permute.xlu2 %2430  ;;  %v630_v6 = vrot.slane %v629_v58, 4  ;;  %v384_v37 = vld [vmem:[%s6703_s29 + $0x74] sm:$0x1]  ;;  %v1085_v55 = vrot.slane %v1083_v3, 4  ;;  %v1718_v58 = vshrl.u32 %v5922_v50, 16 }
 0x103   : > { %2438 = vrot.lane.b32.xlu1 %v6018_v38, %s6640_s12  ;;  %v642_v44 = vshll.u32 %v384_v37, 16  ;;  %v1063_v20 = vsel %vm6705_vm2, %v5853_v36, %v1062_v8  ;;  %v5963_v36 = vld [vmem:[%s6703_s29 + $0x5c] sm:$0x1]  ;;  %v1731_v37 = vshrl.u32 %v5923_v5, 16  ;;  %v2178_v5 = vrot.slane %v5972_v27, 5 }
 0x104   : > { %v2988_v2 = vpop.permute.xlu0 %2987  ;;  %v635_v21 = vsel %vm6726_vm5, %v630_v6, %v634_v7  ;;  %v5856_v6 = vrot.slane %v946_v61, 9  ;;  %334 = vst.msk [vmem:[#allocation2 + $0x2c] sm:$0xf] %vm322_vm6, %v301_v46 }
 0x105   : > { %3079 = vst.msk [vmem:[#allocation2 + $0x14] sm:$0xf] %vm3073_vm14, %v2988_v2  ;;  %v805_v56 = vpop.permute.xlu1 %804  ;;  %v640_v2 = vrot.slane %v639_v43, 4  ;;  %v644_v52 = vrot.slane %v642_v44, 5  ;;  %v2157_v43 = vrot.slane %v5963_v36, 5 }
 0x106   : > { %3416 = vst.msk [vmem:[#allocation2 + $0x14] sm:$0xf] %vm9192_vm15, %v7163_v24  ;;  %v5961_v44 = vld [vmem:[%s6703_s29 + $0x54] sm:$0xe] }
 0x107   : > { %894 = vst.msk [vmem:[#allocation2 + $0x1c] sm:$0xf] %vm886_vm7, %v805_v56  ;;  %v1086_v56 = vrot.slane %v948_v49, 5  ;;  %v5997_v50 = vrot.slane %v5961_v44, 9 }
 0x108   : > { %3336 = vrot.lane.b32.xlu2 %v3243_v57, %s6641_s13 }
 0x109   : > { %v1087_v15 = vsel %vm6705_vm2, %v1085_v55, %v1086_v56  ;;  %v1737_v56 = vshll.u32 %v5924_v51, 16 }
 0x10a   : > { %2436 = vrot.lane.b32.xlu0 %v6017_v60, %s6640_s12  ;;  %v7268_v24 = vpop.permute.xlu2 %3326  ;;  %v645_v60 = vsel %vm6726_vm5, %v640_v2, %v644_v52 }
 0x10b   : > { %3334 = vrot.lane.b32.xlu1 %v3240_v29, %s6641_s13  ;;  %v1720_v29 = vrot.slane %v1718_v58, 4  ;;  %v1739_v61 = vrot.slane %v1737_v56, 5 }
 0x10c   : > { %v803_v14 = vpop.permute.xlu0 %802 }
 0x10d   : > { %893 = vst.msk [vmem:[#allocation2 + $0x18] sm:$0xf] %vm886_vm7, %v803_v14  ;;  %v1337_v18 = vpop.permute.xlu1 %1336  ;;  %v6515_v19 = vld [vmem:[#allocation2 + $0x10] sm:$0xff]  ;;  %v1724_v14 = vor.u32 %v1723_v62, %v1720_v29  ;;  %v6019_v29 = vld [vmem:[%s6703_s29 + $0x60] sm:$0xf] }
 0x10e   : > { %1233 = vst.msk [vmem:[#allocation2 + $0x18] sm:$0xf] %vm1226_vm8, %v7183_v47  ;;  %6225 = vmatmul.msk.bf16.gmra.mxu0 %vm3579_vm0, %v6515_v19  ;;  %v1064_v47 = vrot.slane %v1062_v8, 4  ;;  %v1646_v19 = vshrl.u32 %v5913_v12, 16  ;;  %v5881_v8 = vld [vmem:[%s6703_s29 + $0x78] sm:$0xf] }
 0x10f   : > { %1427 = vst.msk [vmem:[#allocation2 + $0x18] sm:$0xf] %vm1420_vm9, %v1337_v18  ;;  %v1084_v18 = vsel %vm6705_vm2, %v5856_v6, %v1083_v3  ;;  %v1725_v23 = vrot.slane %v1724_v14, 4  ;;  %v1733_v3 = vrot.slane %v1731_v37, 4 }
 0x110   : > { %826 = vrot.lane.b32.xlu2 %v635_v21, %s6637_s9  ;;  %v1066_v40 = vsel %vm6705_vm2, %v1064_v47, %v1065_v31  ;;  %v1649_v21 = vshll.u32 %v5913_v12, 16 }
 0x112   : > { %2999 = vrot.lane.b32.xlu0 %v2736_v25, %s6642_s14  ;;  %v809_v28 = vpop.permute.xlu2 %808  ;;  %v1729_v25 = vrot.slane %v1727_v16, 5  ;;  %v1651_v47 = vrot.slane %v1649_v21, 5  ;;  %v6026_v21 = vld [vmem:[%s6703_s29 + $0x88] sm:$0xf] }
 0x113   : > { %896 = vst.msk [vmem:[#allocation2 + $0x24] sm:$0xf] %vm886_vm7, %v809_v28  ;;  %816 = vrot.lane.b32.xlu1 %v573_v30, %s6637_s9  ;;  %v1648_v30 = vrot.slane %v1646_v19, 4  ;;  %v1667_v28 = vrot.slane %v1665_v45, 5  ;;  %v7400_v19 = vld [vmem:[%s6703_s29 + $0x88] sm:$0xf] }
 0x114   : > { %v1145_v35 = vpop.permute.xlu0 %1144  ;;  %v1730_v34 = vsel %vm6726_vm5, %v1725_v23, %v1729_v25  ;;  %v1734_v55 = vor.u32 %v1733_v3, %v1729_v25  ;;  %v2823_v56 = vshrl.u32 %v7400_v19, 16 }
 0x115   : > { %1234 = vst.msk [vmem:[#allocation2 + $0x1c] sm:$0xf] %vm1226_vm8, %v1145_v35  ;;  %v1900_v38 = vpop.permute.xlu1 %1899  ;;  %v1668_v41 = vsel %vm6726_vm5, %v1663_v32, %v1667_v28  ;;  %v6059_v32 = vld [vmem:[%s6703_s29 + $0x68] sm:$0x1] }
 0x116   : > { %1428 = vst.msk [vmem:[#allocation2 + $0x1c] sm:$0xf] %vm1420_vm9, %v7203_v4  ;;  %v2757_v37 = vshll.u32 %v6059_v32, 16 }
 0x117   : > { %1989 = vst.msk [vmem:[#allocation2 + $0x1c] sm:$0xf] %vm1981_vm11, %v1900_v38  ;;  %v5876_v38 = vld [vmem:[%s6703_s29 + $0x58] sm:$0xf] }
 0x118   : > { %1156 = vrot.lane.b32.xlu2 %v1066_v40, %s6636_s8  ;;  %v1652_v40 = vor.u32 %v1651_v47, %v1648_v30 }
 0x11a   : > { %814 = vrot.lane.b32.xlu0 %v563_v42, %s6637_s9  ;;  %v7308_v4 = vpop.permute.xlu2 %1340 }
 0x11b   : > { %1154 = vrot.lane.b32.xlu1 %v1063_v20, %s6636_s8 }
 0x11c   : > { %v1898_v53 = vpop.permute.xlu0 %1897 }
 0x11d   : > { %1988 = vst.msk [vmem:[#allocation2 + $0x18] sm:$0xf] %vm1981_vm11, %v1898_v53  ;;  %v2429_v57 = vpop.permute.xlu1 %2428  ;;  %v5971_v53 = vld [vmem:[%s6703_s29 + $0x7c] sm:$0xf] }
 0x11e   : > { %2325 = vst.msk [vmem:[#allocation2 + $0x18] sm:$0xf] %vm2318_vm12, %v7224_v22  ;;  %v2175_v58 = vrot.slane %v5971_v53, 5  ;;  %v6107_v53 = vld [vmem:[%s6703_s29 + $0x68] sm:$0x1] }
 0x11f   : > { %2519 = vst.msk [vmem:[#allocation2 + $0x18] sm:$0xf] %vm9194_vm13, %v2429_v57 }
 0x120   : > { %1348 = vrot.lane.b32.xlu2 %v5875_v54, %s6635_s30  ;;  %v2177_v62 = vrot.slane %v2175_v58, 4 }
 0x122   : > { %828 = vrot.lane.b32.xlu0 %v645_v60, %s6637_s9  ;;  %v7327_v22 = vpop.permute.xlu2 %1903  ;;  %v6066_v60 = vld [vmem:[%s6703_s29 + $0x84] sm:$0xf]  ;;  %v2179_v12 = vsel %vm6705_vm2, %v2177_v62, %v2178_v5  ;;  %v386_v62 = vld [vmem:[%s6703_s29 + $0x7c] sm:$0xf] }
 0x123   : > { %1168 = vrot.lane.b32.xlu1 %v1087_v15, %s6636_s8  ;;  %v1735_v15 = vrot.slane %v1734_v55, 4 }
 0x124   : > { %v2237_v7 = vpop.permute.xlu0 %2236 }
 0x125   : > { %2326 = vst.msk [vmem:[#allocation2 + $0x1c] sm:$0xf] %vm2318_vm12, %v2237_v7  ;;  %v2992_v13 = vpop.permute.xlu1 %2991  ;;  %v2810_v7 = vshrl.u32 %v6066_v60, 16  ;;  %v1740_v11 = vsel %vm6726_vm5, %v1735_v15, %v1739_v61  ;;  %v6105_v61 = vld [vmem:[%s6703_s29 + $0x60] sm:$0xe] }
 0x126   : > { %2520 = vst.msk [vmem:[#allocation2 + $0x1c] sm:$0xf] %vm9194_vm13, %v7243_v48  ;;  %v5962_v48 = vld [vmem:[%s6703_s29 + $0x58] sm:$0xf] }
 0x127   : > { %3081 = vst.msk [vmem:[#allocation2 + $0x1c] sm:$0xf] %vm3073_vm14, %v2992_v13  ;;  %v2154_v35 = vrot.slane %v5962_v48, 5  ;;  %v5970_v13 = vld [vmem:[%s6703_s29 + $0x78] sm:$0xe]  ;;  %v2812_v17 = vrot.slane %v2810_v7, 4 }
 0x128   : > { %1362 = vrot.lane.b32.xlu2 %v5882_v9, %s6635_s30  ;;  %v2813_v9 = vshll.u32 %v6066_v60, 16  ;;  %v6057_v48 = vld [vmem:[%s6703_s29 + $0x60] sm:$0xf]  ;;  %v3249_v60 = vrot.slane %v6107_v53, 5 }
 0x129   : > { %v2156_v42 = vrot.slane %v2154_v35, 4  ;;  %v2155_v57 = vsel %vm6705_vm2, %v5997_v50, %v2154_v35  ;;  %v6025_v35 = vld [vmem:[%s6703_s29 + $0x84] sm:$0xf]  ;;  %v2759_v50 = vrot.slane %v2757_v37, 5 }
 0x12a   : > { %1166 = vrot.lane.b32.xlu0 %v1084_v18, %s6636_s8  ;;  %v7346_v39 = vpop.permute.xlu2 %2432  ;;  %v2815_v18 = vrot.slane %v2813_v9, 5  ;;  %v6141_v9 = vrot.slane %v6105_v61, 9 }
 0x12b   : > { %1360 = vrot.lane.b32.xlu1 %v5881_v8, %s6635_s30  ;;  %v2158_v52 = vsel %vm6705_vm2, %v2156_v42, %v2157_v43  ;;  %v6000_v8 = vrot.slane %v5970_v13, 9  ;;  %v376_v42 = vld [vmem:[%s6703_s29 + $0x54] sm:$0xf] }
 0x12c   : > { %v2990_v31 = vpop.permute.xlu0 %2989  ;;  %v2816_v47 = vor.u32 %v2815_v18, %v2812_v17  ;;  %v578_v55 = vshll.u32 %v376_v42, 16  ;;  %v656_v17 = vshll.u32 %v386_v62, 16  ;;  %v660_v18 = vshrl.u32 %v386_v62, 16 }
 0x12d   : > { %3080 = vst.msk [vmem:[#allocation2 + $0x18] sm:$0xf] %vm3073_vm14, %v2990_v31  ;;  %v807_v33 = vpop.permute.xlu1 %806  ;;  %v2819_v31 = vshll.u32 %v7400_v19, 16  ;;  %v2176_v28 = vsel %vm6705_vm2, %v6000_v8, %v2175_v58  ;;  %v385_v19 = vld [vmem:[%s6703_s29 + $0x78] sm:$0xf] }
 0x12e   : > { %3417 = vst.msk [vmem:[#allocation2 + $0x18] sm:$0xf] %vm9192_vm15, %v7268_v24  ;;  %v1653_v24 = vrot.slane %v1652_v40, 4  ;;  %v7475_v32 = vrot.slane %v656_v17, 5 }
 0x12f   : > { %895 = vst.msk [vmem:[#allocation2 + $0x20] sm:$0xf] %vm886_vm7, %v807_v33  ;;  %v2738_v33 = vshrl.u32 %v6057_v48, 16  ;;  %v7420_v40 = vrot.slane %v2819_v31, 5  ;;  %v6116_v31 = vld [vmem:[%s6703_s29 + $0x8c] sm:$0x1] }
 0x130   : > { %1921 = vrot.lane.b32.xlu2 %v1730_v34, %s6639_s11  ;;  %v1658_v54 = vsel %vm6726_vm5, %v1653_v24, %v7332_v10  ;;  %v6058_v10 = vld [vmem:[%s6703_s29 + $0x64] sm:$0xf]  ;;  %v2741_v34 = vshll.u32 %v6057_v48, 16  ;;  %v308_v24 = vld [vmem:[%s6703_s29 + $0x6c] sm:$0xf]  ;;  %v647_v48 = vshrl.u32 %v385_v19, 16 }
 0x131   : > { %v2747_v14 = vshll.u32 %v6058_v10, 16  ;;  %v2751_v16 = vshrl.u32 %v6058_v10, 16  ;;  %v2740_v43 = vrot.slane %v2738_v33, 4  ;;  %341 = vst.msk [vmem:[#allocation2 + $0x48] sm:$0xf] %vm322_vm6, %v308_v24 }
 0x132   : > { %1350 = vrot.lane.b32.xlu0 %v5876_v38, %s6635_s30  ;;  %v7363_v20 = vpop.permute.xlu2 %2995  ;;  %v2817_v38 = vrot.slane %v2816_v47, 4  ;;  %v2743_v44 = vrot.slane %v2741_v34, 5  ;;  %v387_v33 = vld [vmem:[%s6703_s29 + $0x80] sm:$0x1] }
 0x133   : > { %1911 = vrot.lane.b32.xlu1 %v1668_v41, %s6639_s11  ;;  %v7405_v23 = vrot.slane %v2747_v14, 5  ;;  %v2753_v25 = vrot.slane %v2751_v16, 4  ;;  %v6106_v41 = vld [vmem:[%s6703_s29 + $0x64] sm:$0xf]  ;;  %v7484_v34 = vld [vmem:[%s9189_s6] ss:$0 sm:$0xff] }
 0x134   : > { %v3329_v49 = vpop.permute.xlu0 %3328  ;;  %v3246_v51 = vrot.slane %v6106_v41, 5  ;;  %v2744_v58 = vor.u32 %v2743_v44, %v2740_v43  ;;  %v3270_v41 = vrot.slane %v6116_v31, 5 }
 0x135   : > { %3418 = vst.msk [vmem:[#allocation2 + $0x1c] sm:$0xf] %vm9192_vm15, %v3329_v49  ;;  %v1149_v2 = vpop.permute.xlu1 %1148  ;;  %v2754_v36 = vor.u32 %v2753_v25, %v7405_v23 }
 0x136   : > { %1236 = vst.msk [vmem:[#allocation2 + $0x24] sm:$0xf] %vm1226_vm8, %v1149_v2  ;;  %v2745_v5 = vrot.slane %v2744_v58, 4 }
 0x137   : > { %v2755_v49 = vrot.slane %v2754_v36, 4 }
 0x138   : > { %2248 = vrot.lane.b32.xlu2 %v2158_v52, %s6638_s10  ;;  %v2822_v52 = vsel %vm6726_vm5, %v2817_v38, %v7420_v40 }
 0x139   : > { %v2760_v27 = vsel %vm6726_vm5, %v2755_v49, %v2759_v50  ;;  %v666_v49 = vshll.u32 %v387_v33, 16 }
 0x13a   : > { %1909 = vrot.lane.b32.xlu0 %v1658_v54, %s6639_s11  ;;  %v811_v59 = vpop.permute.xlu2 %810  ;;  %v575_v54 = vshrl.u32 %v376_v42, 16  ;;  %v3641_v15 = vpop.f32.mrf.mxu0  ;;  %v649_v42 = vrot.slane %v647_v48, 4 }
 0x13b   : > { %897 = vst.msk [vmem:[#allocation2 + $0x28] sm:$0xf] %vm886_vm7, %v811_v59  ;;  %2246 = vrot.lane.b32.xlu1 %v2155_v57, %s6638_s10  ;;  %v6020_v57 = vld [vmem:[%s6703_s29 + $0x64] sm:$0xf]  ;;  %v3248_v59 = vrot.slane %v3246_v51, 4  ;;  %v3642_v50 = vadd.f32 %v7484_v34, %v3641_v15 }
 0x13c   : > { %v1147_v63 = vpop.permute.xlu0 %1146  ;;  %v6516_v1 = vld [vmem:[#allocation2 + $0x18] sm:$0xff]  ;;  %v378_v15 = vld [vmem:[%s6703_s29 + $0x5c] sm:$0x1] }
 0x13d   : > { %1235 = vst.msk [vmem:[#allocation2 + $0x20] sm:$0xf] %vm1226_vm8, %v1147_v63  ;;  %v1902_v6 = vpop.permute.xlu1 %1901  ;;  %6226 = vmatmul.msk.bf16.gmra.mxu0 %vm3579_vm0, %v6516_v1  ;;  %v7445_v63 = vld [vmem:[%s6703_s29 + $0x58] sm:$0xf]  ;;  %v580_v1 = vrot.slane %v578_v55, 5  ;;  %v3250_v14 = vsel %vm6705_vm2, %v3248_v59, %v3249_v60 }
 0x13e   : > { %1429 = vst.msk [vmem:[#allocation2 + $0x20] sm:$0xf] %vm1420_vm9, %v7308_v4  ;;  %v584_v10 = vshll.u32 %v7445_v63, 16 }
 0x13f   : > { %1990 = vst.msk [vmem:[#allocation2 + $0x20] sm:$0xf] %vm1981_vm11, %v1902_v6  ;;  %v2825_v6 = vrot.slane %v2823_v56, 4 }
 0x140   : > { %2440 = vrot.lane.b32.xlu2 %v6019_v29, %s6640_s12  ;;  %v7472_v47 = vrot.slane %v584_v10, 5  ;;  %v7527_v10 = vld [vmem:[%s6703_s29 + $0x58] sm:$0xf] }
 0x141   : > { %v2826_v8 = vor.u32 %v2825_v6, %v7420_v40 }
 0x142   : > { %1923 = vrot.lane.b32.xlu0 %v1740_v11, %s6639_s11  ;;  %v7397_v4 = vpop.permute.xlu2 %1152  ;;  %v6068_v11 = vld [vmem:[%s6703_s29 + $0x8c] sm:$0x1] }
 0x143   : > { %2260 = vrot.lane.b32.xlu1 %v2179_v12, %s6638_s10  ;;  %v7455_v12 = vld [vmem:[%s6703_s29 + $0x88] sm:$0xf]  ;;  %v2829_v46 = vshll.u32 %v6068_v11, 16  ;;  %v2827_v36 = vrot.slane %v2826_v8, 4  ;;  %v1069_v8 = vrot.slane %v7527_v10, 5 }
 0x144   : > { %v1343_v45 = vpop.permute.xlu0 %1342  ;;  %v3267_v25 = vrot.slane %v7455_v12, 5 }
 0x145   : > { %1430 = vst.msk [vmem:[#allocation2 + $0x24] sm:$0xf] %vm1420_vm9, %v1343_v45  ;;  %v2241_v30 = vpop.permute.xlu1 %2240  ;;  %v3247_v45 = vsel %vm6705_vm2, %v6141_v9, %v3246_v51  ;;  %v2831_v37 = vrot.slane %v2829_v46, 5  ;;  %v588_v51 = vshrl.u32 %v7445_v63, 16  ;;  %v7524_v9 = vld [vmem:[%s6703_s29 + $0x7c] sm:$0xf] }
 0x146   : > { %1991 = vst.msk [vmem:[#allocation2 + $0x24] sm:$0xf] %vm1981_vm11, %v7327_v22  ;;  %v3269_v40 = vrot.slane %v3267_v25, 4 }
 0x147   : > { %2328 = vst.msk [vmem:[#allocation2 + $0x24] sm:$0xf] %vm2318_vm12, %v2241_v30  ;;  %v650_v30 = vshll.u32 %v385_v19, 16  ;;  %v590_v61 = vrot.slane %v588_v51, 4  ;;  %v7581_v51 = vld [vmem:[%s6703_s29 + $0x64] sm:$0xf] }
 0x148   : > { %2454 = vrot.lane.b32.xlu2 %v6026_v21, %s6640_s12  ;;  %v2750_v21 = vsel %vm6726_vm5, %v2745_v5, %v7405_v23  ;;  %v3271_v53 = vsel %vm6705_vm2, %v3269_v40, %v3270_v41  ;;  %v949_v5 = vld [vmem:[%s6703_s29 + $0x78] sm:$0xe] }
 0x149   : > { %v652_v43 = vrot.slane %v650_v30, 5  ;;  %v591_v17 = vor.u32 %v590_v61, %v7472_v47  ;;  %v5857_v46 = vrot.slane %v949_v5, 9  ;;  %v5916_v30 = vld [vmem:[%s6703_s29 + $0x60] sm:$0xf] }
 0x14a   : > { %2258 = vrot.lane.b32.xlu0 %v2176_v28, %s6638_s10  ;;  %v7424_v22 = vpop.permute.xlu2 %1905  ;;  %v662_v28 = vrot.slane %v660_v18, 4  ;;  %v594_v18 = vshll.u32 %v378_v15, 16  ;;  %v1670_v40 = vshrl.u32 %v5916_v30, 16  ;;  %v1673_v41 = vshll.u32 %v5916_v30, 16  ;;  %v5877_v5 = vld [vmem:[%s6703_s29 + $0x60] sm:$0xf] }
 0x14b   : > { %2452 = vrot.lane.b32.xlu1 %v6025_v35, %s6640_s12  ;;  %v3643_v35 = vpop.f32.mrf.mxu0  ;;  %v653_v55 = vor.u32 %v652_v43, %v649_v42  ;;  %v302_v42 = vld [vmem:[%s6703_s29 + $0x48] sm:$0xf] }
 0x14c   : > { %v2239_v3 = vpop.permute.xlu0 %2238  ;;  %v596_v31 = vrot.slane %v594_v18, 5  ;;  %335 = vst.msk [vmem:[#allocation2 + $0x30] sm:$0xf] %vm322_vm6, %v302_v42 }
 0x14d   : > { %2327 = vst.msk [vmem:[#allocation2 + $0x20] sm:$0xf] %vm2318_vm12, %v2239_v3  ;;  %v2994_v2 = vpop.permute.xlu1 %2993  ;;  %v663_v3 = vor.u32 %v662_v28, %v7475_v32  ;;  %v654_v62 = vrot.slane %v653_v55, 4  ;;  %v5926_v55 = vld [vmem:[%s6703_s29 + $0x88] sm:$0xf] }
 0x14e   : > { %2521 = vst.msk [vmem:[#allocation2 + $0x20] sm:$0xf] %vm9194_vm13, %v7346_v39  ;;  %v577_v39 = vrot.slane %v575_v54, 4  ;;  %v6114_v54 = vld [vmem:[%s6703_s29 + $0x84] sm:$0xe] }
 0x14f   : > { %3082 = vst.msk [vmem:[#allocation2 + $0x20] sm:$0xf] %vm3073_vm14, %v2994_v2  ;;  %v2832_v2 = vsel %vm6726_vm5, %v2827_v36, %v2831_v37  ;;  %v664_v56 = vrot.slane %v663_v3, 4  ;;  %v6144_v60 = vrot.slane %v6114_v54, 9 }
 0x150   : > { %3013 = vrot.lane.b32.xlu2 %v2822_v52, %s6642_s14  ;;  %v581_v16 = vor.u32 %v580_v1, %v577_v39  ;;  %v6643_v52 = vmov 0  }
 0x151   : > { %3863 = vst.msk [vmem:[#allocation3 + $0x10] sm:$0xf] %vm3857_vm1, %v6643_v52 }
 0x152   : > { %2442 = vrot.lane.b32.xlu0 %v6020_v57, %s6640_s12  ;;  %v7448_v29 = vpop.permute.xlu2 %2244  ;;  %3864 = vst.msk [vmem:[#allocation3 + $0x14] sm:$0x1] %vm3859_vm3, %v6643_v52  ;;  %v668_v57 = vrot.slane %v666_v49, 5 }
 0x153   : > { %3003 = vrot.lane.b32.xlu1 %v2760_v27, %s6642_s14  ;;  %3858 = vst.msk [vmem:[#allocation3] sm:$0xf] %vm3857_vm1, %v6643_v52  ;;  %v3721_v27 = vmax.f32 %v3642_v50, 0.0  ;;  %v940_v50 = vld [vmem:[%s6703_s29 + $0x54] sm:$0xe] }
 0x154   : > { %v2435_v7 = vpop.permute.xlu0 %2434  ;;  %3860 = vst.msk [vmem:[#allocation3 + $0x4] sm:$0x1] %vm3859_vm3, %v6643_v52 }
 0x155   : > { %2522 = vst.msk [vmem:[#allocation2 + $0x24] sm:$0xf] %vm9194_vm13, %v2435_v7  ;;  %v3333_v13 = vpop.permute.xlu1 %3332  ;;  %v669_v7 = vsel %vm6726_vm5, %v664_v56, %v668_v57  ;;  %v5854_v56 = vrot.slane %v940_v50, 9  ;;  %v309_v57 = vld [vmem:[%s6703_s29 + $0x70] sm:$0xf] }
 0x156   : > { %3083 = vst.msk [vmem:[#allocation2 + $0x24] sm:$0xf] %vm3073_vm14, %v7363_v20  ;;  %v582_v20 = vrot.slane %v581_v16, 4  ;;  %v3268_v16 = vsel %vm6705_vm2, %v6144_v60, %v3267_v25  ;;  %v942_v25 = vld [vmem:[%s6703_s29 + $0x5c] sm:$0x1]  ;;  %v1679_v60 = vshll.u32 %v7581_v51, 16 }
 0x157   : > { %3420 = vst.msk [vmem:[#allocation2 + $0x24] sm:$0xf] %vm9192_vm15, %v3333_v13  ;;  %v303_v13 = vld [vmem:[%s6703_s29 + $0x4c] sm:$0xf]  ;;  %v1072_v36 = vrot.slane %v942_v25, 5 }
 0x158   : > { %3340 = vrot.lane.b32.xlu2 %v3250_v14, %s6641_s13  ;;  %v587_v24 = vsel %vm6726_vm5, %v582_v20, %v7472_v47  ;;  %3861 = vst.msk [vmem:[#allocation3 + $0x8] sm:$0xf] %vm3857_vm1, %v6643_v52  ;;  %v3754_v14 = vsel %vm9191_vm4, %v3721_v27, -inf  ;;  %v592_v47 = vrot.slane %v591_v17, 4 }
 0x159   : > { %336 = vst.msk [vmem:[#allocation2 + $0x34] sm:$0xf] %vm322_vm6, %v303_v13 }
 0x15a   : > { %3001 = vrot.lane.b32.xlu0 %v2750_v21, %s6642_s14  ;;  %v7478_v23 = vpop.permute.xlu2 %2997  ;;  %v659_v21 = vsel %vm6726_vm5, %v654_v62, %v7475_v32  ;;  %3862 = vst.msk [vmem:[#allocation3 + $0xc] sm:$0x1] %vm3859_vm3, %v6643_v52  ;;  %v1070_v62 = vsel %vm6705_vm2, %v5854_v56, %v1069_v8 }
 0x15b   : > { %3338 = vrot.lane.b32.xlu1 %v3247_v45, %s6641_s13  ;;  %v1090_v45 = vrot.slane %v7524_v9, 5  ;;  %3865 = vst.msk [vmem:[#allocation3 + $0x18] sm:$0xf] %vm3857_vm1, %v6643_v52 }
 0x15c   : > { %v3331_v38 = vpop.permute.xlu0 %3330  ;;  %3866 = vst.msk [vmem:[#allocation3 + $0x1c] sm:$0x1] %vm3859_vm3, %v6643_v52 }
 0x15d   : > { %3419 = vst.msk [vmem:[#allocation2 + $0x20] sm:$0xf] %vm9192_vm15, %v3331_v38  ;;  %v1151_v44 = vpop.permute.xlu1 %1150  ;;  %v1091_v38 = vsel %vm6705_vm2, %v5857_v46, %v1090_v45 }
 0x15e   : > { %1237 = vst.msk [vmem:[#allocation2 + $0x28] sm:$0xf] %vm1226_vm8, %v1151_v44  ;;  %v597_v44 = vsel %vm6726_vm5, %v592_v47, %v596_v31  ;;  %v1683_v31 = vshrl.u32 %v7581_v51, 16  ;;  %v7667_v51 = vld [vmem:[%s6703_s29 + $0x88] sm:$0xf] }
 0x15f   : > { %3867 = vst.msk [vmem:[#allocation3 + $0x20] sm:$0xf] %vm3857_vm1, %v6643_v52  ;;  %v3971_v50 = vld [vmem:[#allocation3 + $0x8] sm:$0xf] }
 0x160   : > { %818 = vrot.lane.b32.xlu2 %v587_v24, %s6637_s9  ;;  %342 = vst.msk [vmem:[#allocation2 + $0x4c] sm:$0xf] %vm322_vm6, %v309_v57 }
 0x161   : > { %3868 = vst.msk [vmem:[#allocation3 + $0x24] sm:$0x1] %vm3859_vm3, %v6643_v52 }
 0x162   : > { %3015 = vrot.lane.b32.xlu0 %v2832_v2, %s6642_s14  ;;  %v7510_v58 = vpop.permute.xlu2 %3336  ;;  %v3646_v59 = vpop.f32.mrf.mxu0  ;;  %v1672_v2 = vrot.slane %v1670_v40, 4  ;;  %3869 = vst.msk [vmem:[#allocation3 + $0x28] sm:$0xf] %vm3857_vm1, %v6643_v52  ;;  %v1685_v40 = vrot.slane %v1683_v31, 4 }
 0x163   : > { %3352 = vrot.lane.b32.xlu1 %v3271_v53, %s6641_s13  ;;  %v3647_v39 = vadd.f32 %v7484_v34, %v3646_v59  ;;  %v1675_v53 = vrot.slane %v1673_v41, 5  ;;  %v5878_v59 = vld [vmem:[%s6703_s29 + $0x64] sm:$0xf]  ;;  %3870 = vst.msk [vmem:[#allocation3 + $0x2c] sm:$0x1] %vm3859_vm3, %v6643_v52 }
 0x164   : > { %v813_v63 = vpop.permute.xlu0 %812  ;;  %v6517_v1 = vld [vmem:[#allocation2 + $0x20] sm:$0xff]  ;;  %3871 = vst.msk [vmem:[#allocation3 + $0x30] sm:$0xf] %vm3857_vm1, %v6643_v52 }
 0x165   : > { %898 = vst.msk [vmem:[#allocation2 + $0x2c] sm:$0xf] %vm886_vm7, %v813_v63  ;;  %v1347_v6 = vpop.permute.xlu1 %1346  ;;  %v3723_v11 = vmax.f32 %v3647_v39, 0.0  ;;  %6227 = vmatmul.msk.bf16.gmra.mxu0 %vm3579_vm0, %v6517_v1  ;;  %v1676_v61 = vor.u32 %v1675_v53, %v1672_v2  ;;  %v1751_v63 = vshll.u32 %v5926_v55, 16  ;;  %v1755_v39 = vshrl.u32 %v5926_v55, 16 }
 0x166   : > { %1238 = vst.msk [vmem:[#allocation2 + $0x2c] sm:$0xf] %vm1226_vm8, %v7397_v4  ;;  %v3644_v4 = vadd.f32 %v7484_v34, %v3643_v35  ;;  %v1071_v35 = vrot.slane %v1069_v8, 4  ;;  %v5925_v1 = vld [vmem:[%s6703_s29 + $0x84] sm:$0xf] }
 0x167   : > { %1432 = vst.msk [vmem:[#allocation2 + $0x2c] sm:$0xf] %vm1420_vm9, %v1347_v6  ;;  %v3755_v19 = vsel %vm9191_vm4, %v3723_v11, -inf  ;;  %v951_v6 = vld [vmem:[%s6703_s29 + $0x80] sm:$0x1]  ;;  %v1745_v11 = vshll.u32 %v5925_v1, 16 }
 0x168   : > { %832 = vrot.lane.b32.xlu2 %v669_v7, %s6637_s9  ;;  %v3756_v12 = vmax.f32 %v3754_v14, %v3755_v19  ;;  %v3722_v32 = vmax.f32 %v3644_v4, 0.0  ;;  %v1073_v49 = vsel %vm6705_vm2, %v1071_v35, %v1072_v36  ;;  %v1742_v7 = vshrl.u32 %v5925_v1, 16  ;;  %v5927_v4 = vld [vmem:[%s6703_s29 + $0x8c] sm:$0x1]  ;;  %3872 = vst.msk [vmem:[#allocation3 + $0x34] sm:$0x1] %vm3859_vm3, %v6643_v52 }
 0x169   : > { %v1677_v13 = vrot.slane %v1676_v61, 4  ;;  %v7611_v14 = vrot.slane %v1679_v60, 5  ;;  %v1093_v8 = vrot.slane %v951_v6, 5  ;;  %v1747_v25 = vrot.slane %v1745_v11, 5  ;;  %3873 = vst.msk [vmem:[#allocation3 + $0x38] sm:$0xf] %vm3857_vm1, %v6643_v52 }
 0x16a   : > { %3350 = vrot.lane.b32.xlu0 %v3268_v16, %s6641_s13  ;;  %v827_v48 = vpop.permute.xlu2 %826  ;;  %3802 = vst.msk [vmem:[#allocation6] sm:$0xff] %vm9191_vm4, %v3756_v12  ;;  %v3648_v20 = vpop.f32.mrf.mxu0  ;;  %v3757_v24 = vsel %vm9191_vm4, %v3722_v32, -inf  ;;  %v1757_v16 = vrot.slane %v1755_v39, 4  ;;  %v1744_v46 = vrot.slane %v1742_v7, 4  ;;  %v5883_v53 = vld [vmem:[%s6703_s29 + $0x84] sm:$0xf] }
 0x16b   : > { %830 = vrot.lane.b32.xlu1 %v659_v21, %s6637_s9  ;;  %905 = vst.msk [vmem:[#allocation2 + $0x48] sm:$0xf] %vm886_vm7, %v827_v48  ;;  %v3649_v33 = vadd.f32 %v7484_v34, %v3648_v20  ;;  %v1092_v21 = vrot.slane %v1090_v45, 4  ;;  %v1682_v9 = vsel %vm6726_vm5, %v1677_v13, %v7611_v14  ;;  %v1761_v20 = vshll.u32 %v5927_v4, 16  ;;  %v5966_v60 = vld [vmem:[%s6703_s29 + $0x68] sm:$0x1] }
 0x16c   : > { %v1345_v28 = vpop.permute.xlu0 %1344  ;;  %3874 = vst.msk [vmem:[#allocation3 + $0x3c] sm:$0x1] %vm3859_vm3, %v6643_v52  ;;  %v1686_v55 = vor.u32 %v1685_v40, %v7611_v14  ;;  %v2164_v11 = vrot.slane %v5966_v60, 5  ;;  %v6028_v60 = vld [vmem:[%s6703_s29 + $0x94] sm:$0xf] }
 0x16d   : > { %1431 = vst.msk [vmem:[#allocation2 + $0x28] sm:$0xf] %vm1420_vm9, %v1345_v28  ;;  %v2243_v37 = vpop.permute.xlu1 %2242  ;;  %v3724_v43 = vmax.f32 %v3649_v33, 0.0  ;;  %v1094_v32 = vsel %vm6705_vm2, %v1092_v21, %v1093_v8  ;;  %v5884_v28 = vld [vmem:[%s6703_s29 + $0x88] sm:$0xf]  ;;  %v1748_v33 = vor.u32 %v1747_v25, %v1744_v46 }
 0x16e   : > { %1992 = vst.msk [vmem:[#allocation2 + $0x28] sm:$0xf] %vm1981_vm11, %v7424_v22  ;;  %v1687_v39 = vrot.slane %v1686_v55, 4  ;;  %v6070_v46 = vld [vmem:[%s6703_s29 + $0x94] sm:$0xf] }
 0x16f   : > { %2329 = vst.msk [vmem:[#allocation2 + $0x28] sm:$0xf] %vm2318_vm12, %v2243_v37  ;;  %v3758_v3 = vsel %vm9191_vm4, %v3724_v43, -inf  ;;  %v1749_v42 = vrot.slane %v1748_v33, 4  ;;  %v5918_v43 = vld [vmem:[%s6703_s29 + $0x68] sm:$0x1] }
 0x170   : > { %1170 = vrot.lane.b32.xlu2 %v1091_v38, %s6636_s8  ;;  %v3759_v22 = vmax.f32 %v3757_v24, %v3758_v3  ;;  %3875 = vst.msk [vmem:[#allocation3 + $0x40] sm:$0xf] %vm3857_vm1, %v6643_v52  ;;  %v1689_v56 = vshll.u32 %v5918_v43, 16  ;;  %v2843_v31 = vshll.u32 %v6070_v46, 16 }
 0x171   : > { %3876 = vst.msk [vmem:[#allocation3 + $0x44] sm:$0x1] %vm3859_vm3, %v6643_v52 }
 0x172   : > { %820 = vrot.lane.b32.xlu0 %v597_v44, %s6637_s9  ;;  %v7586_v54 = vpop.permute.xlu2 %1156  ;;  %3803 = vst.msk [vmem:[#allocation6 + $0x8] sm:$0xff] %vm9191_vm4, %v3759_v22  ;;  %v5973_v22 = vld [vmem:[%s6703_s29 + $0x84] sm:$0xe]  ;;  %vm7670_vm4 = vmand %vm3857_vm1, %vm3969_vm10  ;;  %vm9193_vm10 = vsmask.f32 256  ;;  %v1691_v1 = vrot.slane %v1689_v56, 5 }
 0x173   : > { %1160 = vrot.lane.b32.xlu1 %v1073_v49, %s6636_s8  ;;  %v7661_v49 = vld [vmem:[%s6703_s29 + $0x64] sm:$0xf]  ;;  %3877 = vst.msk [vmem:[#allocation3 + $0x48] sm:$0xf] %vm3857_vm1, %v6643_v52 }
 0x174   : > { %v1908_v27 = vpop.permute.xlu0 %1907  ;;  %v2161_v57 = vrot.slane %v7661_v49, 5  ;;  %3878 = vst.msk [vmem:[#allocation3 + $0x4c] sm:$0x1] %vm3859_vm3, %v6643_v52 }
 0x175   : > { %1993 = vst.msk [vmem:[#allocation2 + $0x2c] sm:$0xf] %vm1981_vm11, %v1908_v27  ;;  %v2439_v15 = vpop.permute.xlu1 %2438  ;;  %v6001_v27 = vrot.slane %v5973_v22, 9 }
 0x176   : > { %2330 = vst.msk [vmem:[#allocation2 + $0x2c] sm:$0xf] %vm2318_vm12, %v7448_v29  ;;  %v7613_v29 = vrot.slane %v1751_v63, 5  ;;  %v6060_v63 = vld [vmem:[%s6703_s29 + $0x6c] sm:$0xf]  ;;  %v2163_v7 = vrot.slane %v2161_v57, 4 }
 0x177   : > { %2524 = vst.msk [vmem:[#allocation2 + $0x2c] sm:$0xf] %vm9194_vm13, %v2439_v15 }
 0x178   : > { %1354 = vrot.lane.b32.xlu2 %v5878_v59, %s6635_s30  ;;  %v1758_v45 = vor.u32 %v1757_v16, %v7613_v29  ;;  %v2182_v59 = vrot.slane %v7667_v51, 5  ;;  %v2762_v16 = vshrl.u32 %v6060_v63, 16  ;;  %v2165_v4 = vsel %vm6705_vm2, %v2163_v7, %v2164_v11  ;;  %v311_v11 = vld [vmem:[%s6703_s29 + $0x7c] sm:$0xf] }
 0x179   : > { %v3818_v10 = vld [vmem:[#allocation6] ss:$2 sm:$0xff]  ;;  %v3834_v17 = vld [vmem:[#allocation6 + $0x1] ss:$2 sm:$0xff]  ;;  %344 = vst.msk [vmem:[#allocation2 + $0x54] sm:$0xf] %vm322_vm6, %v311_v11 }
 0x17a   : > { %1158 = vrot.lane.b32.xlu0 %v1070_v62, %s6636_s8  ;;  %v7618_v18 = vpop.permute.xlu2 %1348  ;;  %v3849_v19 = vmax.f32 %v3818_v10, %v3834_v17  ;;  %v1759_v36 = vrot.slane %v1758_v45, 4  ;;  %v2765_v10 = vshll.u32 %v6060_v63, 16  ;;  %v1692_v17 = vsel %vm6726_vm5, %v1687_v39, %v1691_v1 }
 0x17b   : > { %1352 = vrot.lane.b32.xlu1 %v5877_v5, %s6635_s30  ;;  %v3977_v5 = vld [vmem:[#allocation3 + $0xc] sm:$0x1]  ;;  %v2764_v21 = vrot.slane %v2762_v16, 4  ;;  %v394_v16 = vld [vmem:[%s6703_s29 + $0x9c] sm:$0xf] }
 0x17c   : > { %v2437_v12 = vpop.permute.xlu0 %2436  ;;  %v3879_v48 = vpack.c.bf16 %v3849_v19, %v3849_v19  ;;  %v5964_v19 = vld [vmem:[%s6703_s29 + $0x60] sm:$0xe]  ;;  %v2767_v8 = vrot.slane %v2765_v10, 5 }
 0x17d   : > { %2523 = vst.msk [vmem:[#allocation2 + $0x28] sm:$0xf] %vm9194_vm13, %v2437_v12  ;;  %v3335_v30 = vpop.permute.xlu1 %3334  ;;  %v5998_v25 = vrot.slane %v5964_v19, 9  ;;  %v6108_v19 = vld [vmem:[%s6703_s29 + $0x6c] sm:$0xe] }
 0x17e   : > { %3084 = vst.msk [vmem:[#allocation2 + $0x28] sm:$0xf] %vm3073_vm14, %v7478_v23  ;;  %v3888_v47 = vshrl.u32 %v3879_v48, 16  ;;  %v1763_v23 = vrot.slane %v1761_v20, 5  ;;  %v3891_v38 = vshll.u32 %v3879_v48, 16  ;;  %v2768_v20 = vor.u32 %v2767_v8, %v2764_v21 }
 0x17f   : > { %3421 = vst.msk [vmem:[#allocation2 + $0x28] sm:$0xf] %vm9192_vm15, %v3335_v30  ;;  %v6022_v30 = vld [vmem:[%s6703_s29 + $0x70] sm:$0xf] }
 0x180   : > { %1913 = vrot.lane.b32.xlu2 %v1682_v9, %s6639_s11  ;;  %v7643_v35 = vrot.slane %v3888_v47, 7  ;;  %v1764_v3 = vsel %vm6726_vm5, %v1759_v36, %v1763_v23  ;;  %v6069_v9 = vld [vmem:[%s6703_s29 + $0x90] sm:$0xf]  ;;  %v6021_v36 = vld [vmem:[%s6703_s29 + $0x6c] sm:$0xf] }
 0x181   : > { %v2834_v33 = vshrl.u32 %v6069_v9, 16  ;;  %v5975_v23 = vld [vmem:[%s6703_s29 + $0x8c] sm:$0x1]  ;;  %v7785_v21 = vld [vmem:[%s6703_s29 + $0x70] sm:$0xf] }
 0x182   : > { %1172 = vrot.lane.b32.xlu0 %v1094_v32, %s6636_s8  ;;  %v7648_v37 = vpop.permute.xlu2 %1362  ;;  %v3893_v44 = vor.u32 %v3891_v38, %v7643_v35  ;;  %v2847_v32 = vshrl.u32 %v6070_v46, 16  ;;  %v2769_v38 = vrot.slane %v2768_v20, 4  ;;  %v719_v46 = vshrl.u32 %v394_v16, 16 }
 0x183   : > { %1366 = vrot.lane.b32.xlu1 %v5884_v28, %s6635_s30  ;;  %v2162_v28 = vsel %vm6705_vm2, %v5998_v25, %v2161_v57  ;;  %v2836_v49 = vrot.slane %v2834_v33, 4  ;;  %v395_v57 = vld [vmem:[%s6703_s29 + $0xa0] sm:$0xf]  ;;  %v722_v25 = vshll.u32 %v394_v16, 16  ;;  %v6142_v20 = vrot.slane %v6108_v19, 9 }
 0x184   : > { %v3000_v41 = vpop.permute.xlu0 %2999  ;;  %v3972_v15 = vsel %vm7670_vm4, %v3893_v44, %v3971_v50  ;;  %v304_v44 = vld [vmem:[%s6703_s29 + $0x54] sm:$0xf]  ;;  %v721_v33 = vrot.slane %v719_v46, 4 }
 0x185   : > { %3085 = vst.msk [vmem:[#allocation2 + $0x2c] sm:$0xf] %vm3073_vm14, %v3000_v41  ;;  %v817_v24 = vpop.permute.xlu1 %816  ;;  %v7742_v41 = vrot.slane %v2843_v31, 5  ;;  %v6118_v31 = vld [vmem:[%s6703_s29 + $0x94] sm:$0xf] }
 0x186   : > { %3422 = vst.msk [vmem:[#allocation2 + $0x2c] sm:$0xf] %vm9192_vm15, %v7510_v58  ;;  %v1754_v58 = vsel %vm6726_vm5, %v1749_v42, %v7613_v29  ;;  %vm7700_vm15 = vmand %vm3859_vm3, %vm9193_vm10  ;;  %v2183_v29 = vsel %vm6705_vm2, %v6001_v27, %v2182_v59  ;;  %v2849_v42 = vrot.slane %v2847_v32, 4  ;;  %vm9205_vm3 = vcmask 130048  }
 0x187   : > { %900 = vst.msk [vmem:[#allocation2 + $0x34] sm:$0xf] %vm886_vm7, %v817_v24  ;;  %v2184_v24 = vrot.slane %v2182_v59, 4  ;;  %vm9206_vm10 = vmmov %vm9205_vm3 }
 0x188   : > { %1240 = vst.msk [vmem:[#allocation2 + $0x34] sm:$0xf] %vm1226_vm8, %v7586_v54  ;;  %1927 = vrot.lane.b32.xlu2 %v1764_v3, %s6639_s11  ;;  %v3894_v54 = vrot.slane %v7643_v35, 4  ;;  %v2837_v35 = vshll.u32 %v6069_v9, 16  ;;  %v2185_v3 = vrot.slane %v5975_v23, 5  ;;  %v2850_v56 = vor.u32 %v2849_v42, %v7742_v41 }
 0x189   : > { %3973 = vst [vmem:[#allocation3 + $0x8] sm:$0xf] %v3972_v15  ;;  %v728_v15 = vshll.u32 %v395_v57, 16  ;;  %v3274_v42 = vrot.slane %v6118_v31, 5 }
 0x18a   : > { %1364 = vrot.lane.b32.xlu0 %v5883_v53, %s6635_s30  ;;  %v7692_v61 = vpop.permute.xlu2 %1921  ;;  %v3978_v52 = vsel %vm7700_vm15, %v3894_v54, %v3977_v5  ;;  %v2839_v50 = vrot.slane %v2837_v35, 5  ;;  %337 = vst.msk [vmem:[#allocation2 + $0x38] sm:$0xf] %vm322_vm6, %v304_v44  ;;  %v2186_v27 = vsel %vm6705_vm2, %v2184_v24, %v2185_v3  ;;  %v732_v54 = vshrl.u32 %v395_v57, 16 }
 0x18b   : > { %1925 = vrot.lane.b32.xlu1 %v1754_v58, %s6639_s11  ;;  %3979 = vst [vmem:[#allocation3 + $0xc] sm:$0x1] %v3978_v52  ;;  %v2851_v63 = vrot.slane %v2850_v56, 4  ;;  %v724_v35 = vrot.slane %v722_v25, 5 }
 0x18c   : > { %v815_v6 = vpop.permute.xlu0 %814  ;;  %v2840_v59 = vor.u32 %v2839_v50, %v2836_v49  ;;  %v3276_v49 = vrot.slane %v3274_v42, 4 }
 0x18d   : > { %899 = vst.msk [vmem:[#allocation2 + $0x30] sm:$0xf] %vm886_vm7, %v815_v6  ;;  %v1155_v13 = vpop.permute.xlu1 %1154  ;;  %v6518_v14 = vld [vmem:[#allocation2 + $0x28] sm:$0xff]  ;;  %v725_v24 = vor.u32 %v724_v35, %v721_v33 }
 0x18e   : > { %1239 = vst.msk [vmem:[#allocation2 + $0x30] sm:$0xf] %vm1226_vm8, %v1155_v13  ;;  %6228 = vmatmul.msk.bf16.gmra.mxu0 %vm3579_vm0, %v6518_v14  ;;  %v2841_v5 = vrot.slane %v2840_v59, 4  ;;  %v6062_v6 = vld [vmem:[%s6703_s29 + $0x74] sm:$0x1]  ;;  %v7773_v14 = vrot.slane %v728_v15, 5 }
 0x18f   : > { %1433 = vst.msk [vmem:[#allocation2 + $0x30] sm:$0xf] %vm1420_vm9, %v7618_v18  ;;  %v6061_v18 = vld [vmem:[%s6703_s29 + $0x70] sm:$0xf]  ;;  %v726_v56 = vrot.slane %v725_v24, 4 }
 0x190   : > { %2262 = vrot.lane.b32.xlu2 %v2183_v29, %s6638_s10  ;;  %v2771_v47 = vshll.u32 %v6061_v18, 16  ;;  %v2775_v51 = vshrl.u32 %v6061_v18, 16  ;;  %v4023_v1 = vld [vmem:[#allocation3 + $0x8] sm:$0xf]  ;;  %v734_v29 = vrot.slane %v732_v54, 4  ;;  %v2781_v18 = vshll.u32 %v6062_v6, 16 }
 0x191   : > { %4031 = vst.msk [vmem:[#allocation4 + $0x8] sm:$0xf] %vm3857_vm1, %v4023_v1 }
 0x192   : > { %1915 = vrot.lane.b32.xlu0 %v1692_v17, %s6639_s11  ;;  %v7724_v12 = vpop.permute.xlu2 %2248  ;;  %v7740_v40 = vrot.slane %v2771_v47, 5  ;;  %v2777_v7 = vrot.slane %v2775_v51, 4  ;;  %v6027_v17 = vld [vmem:[%s6703_s29 + $0x90] sm:$0xf]  ;;  %v3253_v47 = vrot.slane %v7785_v21, 5 }
 0x193   : > { %2252 = vrot.lane.b32.xlu1 %v2165_v4, %s6638_s10  ;;  %v396_v4 = vld [vmem:[%s6703_s29 + $0xa4] sm:$0x1]  ;;  %v5934_v51 = vld [vmem:[%s6703_s29 + $0xa8] sm:$0xf] }
 0x194   : > { %v829_v48 = vpop.permute.xlu0 %828  ;;  %v2774_v55 = vsel %vm6726_vm5, %v2769_v38, %v7740_v40  ;;  %v2778_v8 = vor.u32 %v2777_v7, %v7740_v40  ;;  %v738_v9 = vshll.u32 %v396_v4, 16  ;;  %v1817_v1 = vshll.u32 %v5934_v51, 16  ;;  %v6110_v7 = vld [vmem:[%s6703_s29 + $0x74] sm:$0x1] }
 0x195   : > { %906 = vst.msk [vmem:[#allocation2 + $0x4c] sm:$0xf] %vm886_vm7, %v829_v48  ;;  %v1169_v45 = vpop.permute.xlu1 %1168  ;;  %v2846_v48 = vsel %vm6726_vm5, %v2841_v5, %v7742_v41  ;;  %v3254_v41 = vsel %vm6705_vm2, %v6142_v20, %v3253_v47 }
 0x196   : > { %1246 = vst.msk [vmem:[#allocation2 + $0x4c] sm:$0xf] %vm1226_vm8, %v1169_v45  ;;  %v3651_v45 = vpop.f32.mrf.mxu0  ;;  %v2779_v32 = vrot.slane %v2778_v8, 4  ;;  %v740_v38 = vrot.slane %v738_v9, 5  ;;  %v1819_v19 = vrot.slane %v1817_v1, 5 }
 0x197   : > { %1440 = vst.msk [vmem:[#allocation2 + $0x4c] sm:$0xf] %vm1420_vm9, %v7648_v37  ;;  %v6071_v37 = vld [vmem:[%s6703_s29 + $0x98] sm:$0x1]  ;;  %v3652_v5 = vadd.f32 %v7484_v34, %v3651_v45 }
 0x198   : > { %2446 = vrot.lane.b32.xlu2 %v6022_v30, %s6640_s12  ;;  %v2853_v58 = vshll.u32 %v6071_v37, 16  ;;  %v735_v30 = vor.u32 %v734_v29, %v7773_v14  ;;  %v6119_v37 = vld [vmem:[%s6703_s29 + $0x98] sm:$0x1] }
 0x199   : > { %v3277_v50 = vrot.slane %v6119_v37, 5  ;;  %v3725_v21 = vmax.f32 %v3652_v5, 0.0  ;;  %v379_v5 = vld [vmem:[%s6703_s29 + $0x60] sm:$0xf] }
 0x19a   : > { %2250 = vrot.lane.b32.xlu0 %v2162_v28, %s6638_s10  ;;  %v7745_v43 = vpop.permute.xlu2 %2440  ;;  %v2855_v39 = vrot.slane %v2853_v58, 5  ;;  %v2783_v28 = vrot.slane %v2781_v18, 5  ;;  %v736_v23 = vrot.slane %v735_v30, 4  ;;  %v5889_v30 = vld [vmem:[%s6703_s29 + $0xa8] sm:$0xf] }
 0x19b   : > { %2444 = vrot.lane.b32.xlu1 %v6021_v36, %s6640_s12  ;;  %v3278_v59 = vsel %vm6705_vm2, %v3276_v49, %v3277_v50  ;;  %v3760_v33 = vsel %vm9205_vm3, %v3725_v21, -inf }
 0x19c   : > { %v1167_v22 = vpop.permute.xlu0 %1166  ;;  %v2856_v52 = vsel %vm6726_vm5, %v2851_v63, %v2855_v39  ;;  %v2784_v44 = vsel %vm6726_vm5, %v2779_v32, %v2783_v28  ;;  %v741_v3 = vsel %vm6726_vm5, %v736_v23, %v740_v38  ;;  %v731_v63 = vsel %vm6726_vm5, %v726_v56, %v7773_v14  ;;  %v5936_v14 = vld [vmem:[%s6703_s29 + $0xb0] sm:$0x1]  ;;  %v310_v28 = vld [vmem:[%s6703_s29 + $0x78] sm:$0xf]  ;;  %v958_v23 = vld [vmem:[%s6703_s29 + $0x9c] sm:$0xe] }
 0x19d   : > { %1245 = vst.msk [vmem:[#allocation2 + $0x48] sm:$0xf] %vm1226_vm8, %v1167_v22  ;;  %v1361_v53 = vpop.permute.xlu1 %1360  ;;  %v6117_v22 = vld [vmem:[%s6703_s29 + $0x90] sm:$0xe]  ;;  %v1814_v39 = vshrl.u32 %v5934_v51, 16  ;;  %v1833_v45 = vshll.u32 %v5936_v14, 16 }
 0x19e   : > { %1439 = vst.msk [vmem:[#allocation2 + $0x48] sm:$0xf] %vm1420_vm9, %v1361_v53  ;;  %v6145_v57 = vrot.slane %v6117_v22, 9  ;;  %v5860_v24 = vrot.slane %v958_v23, 9  ;;  %v7872_v22 = vld [vmem:[%s6703_s29 + $0xac] sm:$0xf] }
 0x19f   : > { %2000 = vst.msk [vmem:[#allocation2 + $0x48] sm:$0xf] %vm1981_vm11, %v7692_v61  ;;  %v1816_v4 = vrot.slane %v1814_v39, 4  ;;  %v305_v51 = vld [vmem:[%s6703_s29 + $0x58] sm:$0xf] }
 0x1a0   : > { %3005 = vrot.lane.b32.xlu2 %v2774_v55, %s6642_s14  ;;  %v5935_v55 = vld [vmem:[%s6703_s29 + $0xac] sm:$0xf]  ;;  %v3275_v6 = vsel %vm6705_vm2, %v6145_v57, %v3274_v42  ;;  %343 = vst.msk [vmem:[#allocation2 + $0x50] sm:$0xf] %vm322_vm6, %v310_v28  ;;  %v6079_v42 = vld [vmem:[%s6703_s29 + $0xb8] sm:$0xf] }
 0x1a1   : > { %v1823_v15 = vshll.u32 %v5935_v55, 16  ;;  %v1827_v54 = vshrl.u32 %v5935_v55, 16  ;;  %v1820_v32 = vor.u32 %v1819_v19, %v1816_v4  ;;  %v6078_v55 = vld [vmem:[%s6703_s29 + $0xb4] sm:$0xf]  ;;  %v2919_v57 = vshrl.u32 %v6079_v42, 16 }
 0x1a2   : > { %2264 = vrot.lane.b32.xlu0 %v2186_v27, %s6638_s10  ;;  %v7767_v61 = vpop.permute.xlu2 %2454  ;;  %v2909_v1 = vshll.u32 %v6078_v55, 16  ;;  %338 = vst.msk [vmem:[#allocation2 + $0x3c] sm:$0xf] %vm322_vm6, %v305_v51  ;;  %v6033_v19 = vld [vmem:[%s6703_s29 + $0xb4] sm:$0xf] }
 0x1a3   : > { %2458 = vrot.lane.b32.xlu1 %v6028_v60, %s6640_s12  ;;  %v7824_v60 = vld [vmem:[%s6703_s29 + $0xa0] sm:$0xf]  ;;  %v7839_v29 = vrot.slane %v1823_v15, 5  ;;  %v2203_v15 = vrot.slane %v7872_v22, 5 }
 0x1a4   : > { %v1351_v13 = vpop.permute.xlu0 %1350  ;;  %v1111_v11 = vrot.slane %v7824_v60, 5  ;;  %v5984_v60 = vld [vmem:[%s6703_s29 + $0xb0] sm:$0x1] }
 0x1a5   : > { %1434 = vst.msk [vmem:[#allocation2 + $0x34] sm:$0xf] %vm1420_vm9, %v1351_v13  ;;  %v1912_v10 = vpop.permute.xlu1 %1911  ;;  %v960_v13 = vld [vmem:[%s6703_s29 + $0xa4] sm:$0x1]  ;;  %v2205_v14 = vrot.slane %v2203_v15, 4 }
 0x1a6   : > { %1995 = vst.msk [vmem:[#allocation2 + $0x34] sm:$0xf] %vm1981_vm11, %v1912_v10  ;;  %v1113_v46 = vrot.slane %v1111_v11, 4  ;;  %v1114_v25 = vrot.slane %v960_v13, 5  ;;  %v6080_v13 = vld [vmem:[%s6703_s29 + $0xbc] sm:$0x1] }
 0x1a7   : > { %2332 = vst.msk [vmem:[#allocation2 + $0x34] sm:$0xf] %vm2318_vm12, %v7724_v12 }
 0x1a8   : > { %3019 = vrot.lane.b32.xlu2 %v2856_v52, %s6642_s14  ;;  %v3255_v52 = vrot.slane %v3253_v47, 4 }
 0x1aa   : > { %2456 = vrot.lane.b32.xlu0 %v6027_v17, %s6640_s12  ;;  %v7797_v12 = vpop.permute.xlu2 %3013  ;;  %v3256_v17 = vrot.slane %v6110_v7, 5  ;;  %v2921_v7 = vrot.slane %v2919_v57, 4 }
 0x1ab   : > { %3017 = vrot.lane.b32.xlu1 %v2846_v48, %s6642_s14 }
 0x1ac   : > { %v1910_v36 = vpop.permute.xlu0 %1909  ;;  %v3257_v31 = vsel %vm6705_vm2, %v3255_v52, %v3256_v17  ;;  %v2911_v17 = vrot.slane %v2909_v1, 5  ;;  %v3983_v1 = vld [vmem:[#allocation3 + $0x14] sm:$0x1] }
 0x1ad   : > { %1994 = vst.msk [vmem:[#allocation2 + $0x30] sm:$0xf] %vm1981_vm11, %v1910_v36  ;;  %v2247_v40 = vpop.permute.xlu1 %2246  ;;  %v1115_v36 = vsel %vm6705_vm2, %v1113_v46, %v1114_v25 }
 0x1ae   : > { %2331 = vst.msk [vmem:[#allocation2 + $0x30] sm:$0xf] %vm2318_vm12, %v2247_v40  ;;  %v1835_v40 = vrot.slane %v1833_v45, 5  ;;  %v7916_v45 = vld [vmem:[%s6703_s29 + $0x64] sm:$0xf] }
 0x1af   : > { %2525 = vst.msk [vmem:[#allocation2 + $0x30] sm:$0xf] %vm9194_vm13, %v7745_v43  ;;  %v3653_v43 = vpop.f32.mrf.mxu0 }
 0x1b0   : > { %3342 = vrot.lane.b32.xlu2 %v3254_v41, %s6641_s13  ;;  %v3654_v47 = vadd.f32 %v7484_v34, %v3653_v43 }
 0x1b2   : > { %3007 = vrot.lane.b32.xlu0 %v2784_v44, %s6642_s14  ;;  %v7815_v53 = vpop.permute.xlu2 %3340  ;;  %v3726_v37 = vmax.f32 %v3654_v47, 0.0 }
 0x1b3   : > { %844 = vrot.lane.b32.xlu1 %v741_v3, %s6637_s9  ;;  %v1821_v3 = vrot.slane %v1820_v32, 4 }
 0x1b4   : > { %v1924_v58 = vpop.permute.xlu0 %1923 }
 0x1b5   : > { %2001 = vst.msk [vmem:[#allocation2 + $0x4c] sm:$0xf] %vm1981_vm11, %v1924_v58  ;;  %v2261_v27 = vpop.permute.xlu1 %2260  ;;  %v2915_v58 = vshll.u32 %v6079_v42, 16  ;;  %v1826_v39 = vsel %vm6726_vm5, %v1821_v3, %v7839_v29 }
 0x1b6   : > { %2338 = vst.msk [vmem:[#allocation2 + $0x4c] sm:$0xf] %vm2318_vm12, %v2261_v27 }
 0x1b7   : > { %2532 = vst.msk [vmem:[#allocation2 + $0x4c] sm:$0xf] %vm9194_vm13, %v7767_v61  ;;  %v1829_v61 = vrot.slane %v1827_v54, 4  ;;  %v2906_v54 = vshrl.u32 %v6078_v55, 16 }
 0x1b8   : > { %3356 = vrot.lane.b32.xlu2 %v3278_v59, %s6641_s13 }
 0x1b9   : > { %v1830_v9 = vor.u32 %v1829_v61, %v7839_v29  ;;  %v599_v29 = vshrl.u32 %v379_v5, 16  ;;  %v602_v61 = vshll.u32 %v379_v5, 16  ;;  %v2908_v52 = vrot.slane %v2906_v54, 4  ;;  %v6128_v54 = vld [vmem:[%s6703_s29 + $0xbc] sm:$0x1] }
 0x1ba   : > { %842 = vrot.lane.b32.xlu0 %v731_v63, %s6637_s9  ;;  %v819_v16 = vpop.permute.xlu2 %818  ;;  %v3656_v10 = vpop.f32.mrf.mxu0 }
 0x1bb   : > { %901 = vst.msk [vmem:[#allocation2 + $0x38] sm:$0xf] %vm886_vm7, %v819_v16  ;;  %3354 = vrot.lane.b32.xlu1 %v3275_v6, %s6641_s13  ;;  %v3657_v18 = vadd.f32 %v7484_v34, %v3656_v10  ;;  %v7896_v6 = vrot.slane %v2915_v58, 5  ;;  %v2206_v10 = vrot.slane %v5984_v60, 5  ;;  %v601_v46 = vrot.slane %v599_v29, 4 }
 0x1bc   : > { %v2259_v8 = vpop.permute.xlu0 %2258  ;;  %v604_v25 = vrot.slane %v602_v61, 5  ;;  %v3298_v61 = vrot.slane %v6128_v54, 5 }
 0x1bd   : > { %2337 = vst.msk [vmem:[#allocation2 + $0x48] sm:$0xf] %vm2318_vm12, %v2259_v8  ;;  %v2453_v48 = vpop.permute.xlu1 %2452  ;;  %v3727_v20 = vmax.f32 %v3657_v18, 0.0  ;;  %v2922_v21 = vor.u32 %v2921_v7, %v7896_v6  ;;  %v2925_v8 = vshll.u32 %v6080_v13, 16  ;;  %v5890_v18 = vld [vmem:[%s6703_s29 + $0xac] sm:$0xf] }
 0x1be   : > { %2531 = vst.msk [vmem:[#allocation2 + $0x48] sm:$0xf] %vm9194_vm13, %v2453_v48  ;;  %v2207_v48 = vsel %vm6705_vm2, %v2205_v14, %v2206_v10  ;;  %v605_v23 = vor.u32 %v604_v25, %v601_v46 }
 0x1bf   : > { %3092 = vst.msk [vmem:[#allocation2 + $0x48] sm:$0xf] %vm3073_vm14, %v7797_v12  ;;  %v3761_v35 = vsel %vm9206_vm10, %v3727_v20, -inf  ;;  %v1831_v12 = vrot.slane %v1830_v9, 4  ;;  %vm9207_vm10 = vmmov %vm9205_vm3  ;;  %v2912_v9 = vor.u32 %v2911_v17, %v2908_v52  ;;  %v2923_v20 = vrot.slane %v2922_v21, 4 }
 0x1c0   : > { %1376 = vrot.lane.b32.xlu2 %v5889_v30, %s6635_s30  ;;  %v3762_v38 = vmax.f32 %v3760_v33, %v3761_v35  ;;  %v3763_v59 = vsel %vm9207_vm10, %v3726_v37, -inf  ;;  %v5982_v30 = vld [vmem:[%s6703_s29 + $0xa8] sm:$0xe]  ;;  %v2927_v47 = vrot.slane %v2925_v8, 5  ;;  %v612_v21 = vshrl.u32 %v7916_v45, 16 }
 0x1c1   : > { %v1836_v56 = vsel %vm6726_vm5, %v1831_v12, %v1835_v40  ;;  %v2913_v40 = vrot.slane %v2912_v9, 4  ;;  %v6034_v8 = vld [vmem:[%s6703_s29 + $0xb8] sm:$0xf] }
 0x1c2   : > { %3344 = vrot.lane.b32.xlu0 %v3257_v31, %s6641_s13  ;;  %v833_v41 = vpop.permute.xlu2 %832  ;;  %3804 = vst.msk [vmem:[#allocation6 + $0x10] sm:$0xff] %vm9205_vm3, %v3762_v38  ;;  %v3658_v44 = vpop.f32.mrf.mxu0  ;;  %vm9208_vm3 = vcmask 290048   ;;  %v389_v31 = vld [vmem:[%s6703_s29 + $0x88] sm:$0xf]  ;;  %v608_v38 = vshll.u32 %v7916_v45, 16 }
 0x1c3   : > { %1184 = vrot.lane.b32.xlu1 %v1115_v36, %s6636_s8  ;;  %908 = vst.msk [vmem:[#allocation2 + $0x54] sm:$0xf] %vm886_vm7, %v833_v41  ;;  %v3659_v50 = vadd.f32 %v7484_v34, %v3658_v44  ;;  %v1112_v34 = vsel %vm6705_vm2, %v5860_v24, %v1111_v11  ;;  %v6004_v36 = vrot.slane %v5982_v30, 9  ;;  %v7925_v41 = vld [vmem:[%s6703_s29 + $0xb8] sm:$0xf]  ;;  %v680_v42 = vshll.u32 %v389_v31, 16 }
 0x1c4   : > { %v2443_v49 = vpop.permute.xlu0 %2442  ;;  %v2928_v24 = vsel %vm6726_vm5, %v2923_v20, %v2927_v47  ;;  %v7937_v58 = vrot.slane %v608_v38, 5  ;;  %v2918_v57 = vsel %vm6726_vm5, %v2913_v40, %v7896_v6  ;;  %v3295_v51 = vrot.slane %v7925_v41, 5  ;;  %v7985_v40 = vld [vmem:[%s6703_s29 + $0x88] sm:$0xf] }
 0x1c5   : > { %2526 = vst.msk [vmem:[#allocation2 + $0x34] sm:$0xf] %vm9194_vm13, %v2443_v49  ;;  %v3004_v43 = vpop.permute.xlu1 %3003  ;;  %v3728_v27 = vmax.f32 %v3659_v50, 0.0  ;;  %vm9209_vm13 = vmmov %vm9207_vm10  ;;  %v684_v49 = vshrl.u32 %v389_v31, 16  ;;  %v388_v50 = vld [vmem:[%s6703_s29 + $0x84] sm:$0xf] }
 0x1c6   : > { %3087 = vst.msk [vmem:[#allocation2 + $0x34] sm:$0xf] %vm3073_vm14, %v3004_v43  ;;  %v2204_v43 = vsel %vm6705_vm2, %v6004_v36, %v2203_v15  ;;  %v7945_v15 = vrot.slane %v680_v42, 5  ;;  %v3297_v29 = vrot.slane %v3295_v51, 4  ;;  %v614_v20 = vrot.slane %v612_v21, 4 }
 0x1c7   : > { %3424 = vst.msk [vmem:[#allocation2 + $0x34] sm:$0xf] %vm9208_vm3, %v7815_v53  ;;  %v3764_v63 = vsel %vm9209_vm13, %v3728_v27, -inf  ;;  %vm9210_vm13 = vmmov %vm9207_vm10  ;;  %v671_v27 = vshrl.u32 %v388_v50, 16 }
 0x1c8   : > { %1939 = vrot.lane.b32.xlu2 %v1836_v56, %s6639_s11  ;;  %v3765_v53 = vmax.f32 %v3763_v59, %v3764_v63  ;;  %vm9211_vm10 = vmmov %vm9208_vm3  ;;  %v606_v56 = vrot.slane %v605_v23, 4  ;;  %v674_v59 = vshll.u32 %v388_v50, 16  ;;  %v686_v63 = vrot.slane %v684_v49, 4  ;;  %v944_v23 = vld [vmem:[%s6703_s29 + $0x64] sm:$0xf] }
 0x1c9   : > { %v3299_v46 = vsel %vm6705_vm2, %v3297_v29, %v3298_v61  ;;  %v615_v42 = vor.u32 %v614_v20, %v7937_v58  ;;  %v1076_v49 = vrot.slane %v944_v23, 5  ;;  %v5929_v29 = vld [vmem:[%s6703_s29 + $0x94] sm:$0xf] }
 0x1ca   : > { %1182 = vrot.lane.b32.xlu0 %v1112_v34, %s6636_s8  ;;  %v7899_v11 = vpop.permute.xlu2 %1170  ;;  %3805 = vst.msk [vmem:[#allocation6 + $0x18] sm:$0xff] %vm9210_vm13, %v3765_v53  ;;  %v390_v53 = vld [vmem:[%s6703_s29 + $0x8c] sm:$0x1]  ;;  %v611_v6 = vsel %vm6726_vm5, %v606_v56, %v7937_v58  ;;  %v676_v14 = vrot.slane %v674_v59, 5  ;;  %vm9212_vm13 = vmmov %vm9208_vm3 }
 0x1cb   : > { %1937 = vrot.lane.b32.xlu1 %v1826_v39, %s6639_s11  ;;  %v3980_v39 = vld [vmem:[#allocation3 + $0x10] sm:$0xf]  ;;  %v5919_v58 = vld [vmem:[%s6703_s29 + $0x6c] sm:$0xf]  ;;  %v1078_v59 = vrot.slane %v1076_v49, 4 }
 0x1cc   : > { %v3002_v16 = vpop.permute.xlu0 %3001 }
 0x1cd   : > { %3086 = vst.msk [vmem:[#allocation2 + $0x30] sm:$0xf] %vm3073_vm14, %v3002_v16  ;;  %v3339_v4 = vpop.permute.xlu1 %3338  ;;  %v673_v16 = vrot.slane %v671_v27, 4 }
 0x1ce   : > { %3423 = vst.msk [vmem:[#allocation2 + $0x30] sm:$0xf] %vm9211_vm10, %v3339_v4  ;;  %v687_v4 = vor.u32 %v686_v63, %v7945_v15  ;;  %v1697_v63 = vshll.u32 %v5919_v58, 16  ;;  %vm9213_vm10 = vcmask 224448  }
 0x1cf   : > { %v677_v25 = vor.u32 %v676_v14, %v673_v16  ;;  %v5880_v16 = vld [vmem:[%s6703_s29 + $0x70] sm:$0xf] }
 0x1d0   : > { %2468 = vrot.lane.b32.xlu2 %v6033_v19, %s6640_s12  ;;  %v690_v19 = vshll.u32 %v390_v53, 16  ;;  %v943_v53 = vld [vmem:[%s6703_s29 + $0x60] sm:$0xe] }
 0x1d1   : > { %v3820_v32 = vld [vmem:[#allocation6 + $0x10] ss:$2 sm:$0xff]  ;;  %v3836_v28 = vld [vmem:[#allocation6 + $0x11] ss:$2 sm:$0xff] }
 0x1d2   : > { %1378 = vrot.lane.b32.xlu0 %v5890_v18, %s6635_s30  ;;  %v7920_v33 = vpop.permute.xlu2 %1354  ;;  %v3850_v35 = vmax.f32 %v3820_v32, %v3836_v28  ;;  %v6126_v18 = vld [vmem:[%s6703_s29 + $0xb4] sm:$0xe]  ;;  %v692_v30 = vrot.slane %v690_v19, 5  ;;  %v678_v32 = vrot.slane %v677_v25, 4  ;;  %v952_v28 = vld [vmem:[%s6703_s29 + $0x84] sm:$0xe] }
 0x1d3   : > { %2276 = vrot.lane.b32.xlu1 %v2207_v48, %s6638_s10  ;;  %v688_v48 = vrot.slane %v687_v4, 4  ;;  %v6148_v45 = vrot.slane %v6126_v18, 9  ;;  %v5858_v50 = vrot.slane %v952_v28, 9  ;;  %v1779_v4 = vshrl.u32 %v5929_v29, 16  ;;  %v5928_v19 = vld [vmem:[%s6703_s29 + $0x90] sm:$0xf] }
 0x1d4   : > { %v3016_v12 = vpop.permute.xlu0 %3015  ;;  %v3880_v37 = vpack.c.bf16 %v3850_v35, %v3850_v35  ;;  %v381_v35 = vld [vmem:[%s6703_s29 + $0x68] sm:$0x1]  ;;  %v954_v18 = vld [vmem:[%s6703_s29 + $0x8c] sm:$0x1]  ;;  %v1769_v25 = vshll.u32 %v5928_v19, 16 }
 0x1d5   : > { %3093 = vst.msk [vmem:[#allocation2 + $0x4c] sm:$0xf] %vm3073_vm14, %v3016_v12  ;;  %v3353_v44 = vpop.permute.xlu1 %3352  ;;  %v6519_v3 = vld [vmem:[#allocation2 + $0x30] sm:$0xff]  ;;  %v693_v36 = vsel %vm6726_vm5, %v688_v48, %v692_v30  ;;  %v3296_v12 = vsel %vm6705_vm2, %v6148_v45, %v3295_v51 }
 0x1d6   : > { %3430 = vst.msk [vmem:[#allocation2 + $0x4c] sm:$0xf] %vm9208_vm3, %v3353_v44  ;;  %v3896_v55 = vshrl.u32 %v3880_v37, 16  ;;  %6229 = vmatmul.msk.bf16.gmra.mxu0 %vm3579_vm0, %v6519_v3  ;;  %v3899_v34 = vshll.u32 %v3880_v37, 16  ;;  %v618_v37 = vshll.u32 %v381_v35, 16  ;;  %v683_v3 = vsel %vm6726_vm5, %v678_v32, %v7945_v15  ;;  %vm9214_vm3 = vmmov %vm9213_vm10 }
 0x1d7   : > { %v1694_v15 = vshrl.u32 %v5919_v58, 16  ;;  %v1100_v35 = vrot.slane %v954_v18, 5  ;;  %v1771_v23 = vrot.slane %v1769_v25, 5  ;;  %v5921_v58 = vld [vmem:[%s6703_s29 + $0x74] sm:$0x1] }
 0x1d8   : > { %3031 = vrot.lane.b32.xlu2 %v2928_v24, %s6642_s14  ;;  %v3898_v22 = vrot.slane %v3896_v55, 7  ;;  %v1097_v55 = vrot.slane %v7985_v40, 5  ;;  %v620_v51 = vrot.slane %v618_v37, 5 }
 0x1da   : > { %2274 = vrot.lane.b32.xlu0 %v2204_v43, %s6638_s10  ;;  %v7948_v5 = vpop.permute.xlu2 %1913  ;;  %v3901_v60 = vor.u32 %v3899_v34, %v3898_v22  ;;  %v3902_v7 = vrot.slane %v3898_v22, 4  ;;  %v945_v43 = vld [vmem:[%s6703_s29 + $0x68] sm:$0x1]  ;;  %v1098_v54 = vsel %vm6705_vm2, %v5858_v50, %v1097_v55  ;;  %v1099_v28 = vrot.slane %v1097_v55, 4 }
 0x1db   : > { %3029 = vrot.lane.b32.xlu1 %v2918_v57, %s6642_s14  ;;  %v616_v57 = vrot.slane %v615_v42, 4  ;;  %v1079_v22 = vrot.slane %v945_v43, 5 }
 0x1dc   : > { %v3351_v13 = vpop.permute.xlu0 %3350  ;;  %v3981_v10 = vsel %vm7670_vm4, %v3901_v60, %v3980_v39  ;;  %v3984_v52 = vsel %vm7700_vm15, %v3902_v7, %v3983_v1  ;;  %v5920_v60 = vld [vmem:[%s6703_s29 + $0x70] sm:$0xf]  ;;  %v1696_v7 = vrot.slane %v1694_v15, 4  ;;  %v1101_v37 = vsel %vm6705_vm2, %v1099_v28, %v1100_v35 }
 0x1dd   : > { %3429 = vst.msk [vmem:[#allocation2 + $0x48] sm:$0xf] %vm9212_vm13, %v3351_v13  ;;  %v831_v17 = vpop.permute.xlu1 %830  ;;  %v621_v39 = vsel %vm6726_vm5, %v616_v57, %v620_v51  ;;  %v1080_v1 = vsel %vm6705_vm2, %v1078_v59, %v1079_v22  ;;  %v1703_v14 = vshll.u32 %v5920_v60, 16  ;;  %v1707_v42 = vshrl.u32 %v5920_v60, 16  ;;  %v5976_v59 = vld [vmem:[%s6703_s29 + $0x90] sm:$0xe] }
 0x1de   : > { %3982 = vst [vmem:[#allocation3 + $0x10] sm:$0xf] %v3981_v10  ;;  %v8063_v22 = vld [vmem:[%s6703_s29 + $0x94] sm:$0xf]  ;;  %v1713_v15 = vshll.u32 %v5921_v58, 16  ;;  %v6002_v60 = vrot.slane %v5976_v59, 9 }
 0x1df   : > { %3985 = vst [vmem:[#allocation3 + $0x14] sm:$0x1] %v3984_v52  ;;  %v1705_v45 = vrot.slane %v1703_v14, 5  ;;  %v1709_v55 = vrot.slane %v1707_v42, 4 }
 0x1e0   : > { %907 = vst.msk [vmem:[#allocation2 + $0x50] sm:$0xf] %vm886_vm7, %v831_v17  ;;  %822 = vrot.lane.b32.xlu2 %v611_v6, %s6637_s9  ;;  %v1699_v6 = vrot.slane %v1697_v63, 5  ;;  %v1775_v17 = vshll.u32 %v5929_v29, 16 }
 0x1e1   : > { %1247 = vst.msk [vmem:[#allocation2 + $0x50] sm:$0xf] %vm1226_vm8, %v7899_v11 }
 0x1e2   : > { %2470 = vrot.lane.b32.xlu0 %v6034_v8, %s6640_s12  ;;  %v7971_v9 = vpop.permute.xlu2 %1927  ;;  %v1700_v52 = vor.u32 %v1699_v6, %v1696_v7  ;;  %v5879_v8 = vld [vmem:[%s6703_s29 + $0x6c] sm:$0xf]  ;;  %v1777_v20 = vrot.slane %v1775_v17, 5  ;;  %v2189_v7 = vrot.slane %v8063_v22, 5  ;;  %v5969_v6 = vld [vmem:[%s6703_s29 + $0x74] sm:$0x1] }
 0x1e3   : > { %3368 = vrot.lane.b32.xlu1 %v3299_v46, %s6641_s13  ;;  %v1766_v46 = vshrl.u32 %v5928_v19, 16 }
 0x1e4   : > { %v821_v47 = vpop.permute.xlu0 %820  ;;  %v6522_v31 = vld [vmem:[#allocation2 + $0x48] sm:$0xff]  ;;  %v1701_v30 = vrot.slane %v1700_v52, 4  ;;  %v2171_v52 = vrot.slane %v5969_v6, 5  ;;  %v2190_v18 = vsel %vm6705_vm2, %v6002_v60, %v2189_v7 }
 0x1e5   : > { %902 = vst.msk [vmem:[#allocation2 + $0x3c] sm:$0xf] %vm886_vm7, %v821_v47  ;;  %v1161_v11 = vpop.permute.xlu1 %1160  ;;  %v4814_v38 = vld [vmem:[#allocation3 + $0x10] sm:$0xe]  ;;  %6232 = vmatmul.msk.bf16.vlgmr.msra.gmra.mxu1 %vm3579_vm0, %v6522_v31  ;;  %v1781_v47 = vrot.slane %v1779_v4, 4  ;;  %v3661_v31 = vpop.f32.mrf.mxu0 }
 0x1e6   : > { %1242 = vst.msk [vmem:[#allocation2 + $0x3c] sm:$0xf] %vm1226_vm8, %v1161_v11  ;;  %v4815_v41 = vld [vmem:[#allocation3 + $0x14] sm:$0x1]  ;;  %v6255_v44 = vrot.slane %v4814_v38, 9 }
 0x1e7   : > { %1436 = vst.msk [vmem:[#allocation2 + $0x3c] sm:$0xf] %vm1420_vm9, %v7920_v33  ;;  %v4848_v24 = vrot.slane %v4815_v41, 5  ;;  %v4024_v48 = vld [vmem:[#allocation3 + $0x10] sm:$0xf]  ;;  %v1782_v40 = vor.u32 %v1781_v47, %v1777_v20 }
 0x1e8   : > { %836 = vrot.lane.b32.xlu2 %v693_v36, %s6637_s9  ;;  %4032 = vst.msk [vmem:[#allocation4 + $0x10] sm:$0xf] %vm3857_vm1, %v4024_v48  ;;  %v1768_v36 = vrot.slane %v1766_v46, 4  ;;  %v5967_v46 = vld [vmem:[%s6703_s29 + $0x6c] sm:$0xe] }
 0x1e9   : > { %v4849_v56 = vsel %vm6705_vm2, %v6255_v44, %v4848_v24  ;;  %v5886_v44 = vld [vmem:[%s6703_s29 + $0x94] sm:$0xf] }
 0x1ea   : > { %3366 = vrot.lane.b32.xlu0 %v3296_v12, %s6641_s13  ;;  %v7999_v33 = vpop.permute.xlu2 %2262  ;;  %4886 = vst.msk [vmem:[#allocation4 + $0x4] sm:$0xf] %vm3857_vm1, %v4849_v56  ;;  %v1706_v12 = vsel %vm6726_vm5, %v1701_v30, %v1705_v45  ;;  %v1772_v24 = vor.u32 %v1771_v23, %v1768_v36  ;;  %v316_v30 = vld [vmem:[%s6703_s29 + $0x9c] sm:$0xf]  ;;  %v6073_v23 = vld [vmem:[%s6703_s29 + $0xa0] sm:$0xf] }
 0x1eb   : > { %834 = vrot.lane.b32.xlu1 %v683_v3, %s6637_s9  ;;  %v1783_v3 = vrot.slane %v1782_v40, 4  ;;  %v8104_v36 = vld [vmem:[%s6703_s29 + $0x7c] sm:$0xf]  ;;  %349 = vst.msk [vmem:[#allocation2 + $0x68] sm:$0xf] %vm322_vm6, %v316_v30 }
 0x1ec   : > { %v1159_v27 = vpop.permute.xlu0 %1158  ;;  %v2799_v22 = vshrl.u32 %v8104_v36, 16 }
 0x1ed   : > { %1241 = vst.msk [vmem:[#allocation2 + $0x38] sm:$0xf] %vm1226_vm8, %v1159_v27  ;;  %v1353_v34 = vpop.permute.xlu1 %1352  ;;  %v3663_v43 = vpop.f32.mrf.mxu0  ;;  %v8058_v27 = vld [vmem:[%s6703_s29 + $0x70] sm:$0xf] }
 0x1ee   : > { %1435 = vst.msk [vmem:[#allocation2 + $0x38] sm:$0xf] %vm1420_vm9, %v1353_v34  ;;  %v5885_v34 = vld [vmem:[%s6703_s29 + $0x90] sm:$0xf] }
 0x1ef   : > { %1996 = vst.msk [vmem:[#allocation2 + $0x38] sm:$0xf] %vm1981_vm11, %v7948_v5  ;;  %v5855_v5 = vrot.slane %v943_v53, 9 }
 0x1f0   : > { %1174 = vrot.lane.b32.xlu2 %v1098_v54, %s6636_s8  ;;  %v1710_v54 = vor.u32 %v1709_v55, %v1705_v45  ;;  %v2867_v55 = vshll.u32 %v6073_v23, 16 }
 0x1f1   : > { %v1077_v21 = vsel %vm6705_vm2, %v5855_v5, %v1076_v49 }
 0x1f2   : > { %824 = vrot.lane.b32.xlu0 %v621_v39, %s6637_s9  ;;  %v8018_v13 = vpop.permute.xlu2 %2446  ;;  %v2168_v39 = vrot.slane %v8058_v27, 5  ;;  %v1711_v5 = vrot.slane %v1710_v54, 4  ;;  %v5978_v54 = vld [vmem:[%s6703_s29 + $0x98] sm:$0x1] }
 0x1f3   : > { %1164 = vrot.lane.b32.xlu1 %v1080_v1, %s6636_s8  ;;  %v6624_v1 = vld [vmem:[%s9189_s6] ss:$0 sm:$0xff] }
 0x1f4   : > { %v1173_v61 = vpop.permute.xlu0 %1172  ;;  %v3662_v53 = vadd.f32 %v6624_v1, %v3661_v31  ;;  %v3664_v45 = vadd.f32 %v6624_v1, %v3663_v43  ;;  %v2871_v43 = vshrl.u32 %v6073_v23, 16 }
 0x1f5   : > { %1248 = vst.msk [vmem:[#allocation2 + $0x54] sm:$0xf] %vm1226_vm8, %v1173_v61  ;;  %v1367_v10 = vpop.permute.xlu1 %1366  ;;  %v1715_v61 = vrot.slane %v1713_v15, 5 }
 0x1f6   : > { %1442 = vst.msk [vmem:[#allocation2 + $0x54] sm:$0xf] %vm1420_vm9, %v1367_v10  ;;  %v2170_v10 = vrot.slane %v2168_v39, 4  ;;  %v3729_v19 = vmax.f32 %v3662_v53, 0.0  ;;  %v3730_v40 = vmax.f32 %v3664_v45, 0.0  ;;  %v2873_v27 = vrot.slane %v2871_v43, 4 }
 0x1f7   : > { %2003 = vst.msk [vmem:[#allocation2 + $0x54] sm:$0xf] %vm1981_vm11, %v7971_v9  ;;  %v5930_v9 = vld [vmem:[%s6703_s29 + $0x98] sm:$0x1]  ;;  %v1716_v48 = vsel %vm6726_vm5, %v1711_v5, %v1715_v61  ;;  %v6074_v53 = vld [vmem:[%s6703_s29 + $0xa4] sm:$0x1] }
 0x1f8   : > { %1358 = vrot.lane.b32.xlu2 %v5880_v16, %s6635_s30  ;;  %v1785_v41 = vshll.u32 %v5930_v9, 16  ;;  %v317_v9 = vld [vmem:[%s6703_s29 + $0xa0] sm:$0xf]  ;;  %v2192_v5 = vrot.slane %v5978_v54, 5  ;;  %v2801_v45 = vrot.slane %v2799_v22, 4 }
 0x1f9   : > { %350 = vst.msk [vmem:[#allocation2 + $0x6c] sm:$0xf] %vm322_vm6, %v317_v9 }
 0x1fa   : > { %1162 = vrot.lane.b32.xlu0 %v1077_v21, %s6636_s8  ;;  %v8034_v32 = vpop.permute.xlu2 %3005  ;;  %v1787_v49 = vrot.slane %v1785_v41, 5 }
 0x1fb   : > { %1356 = vrot.lane.b32.xlu1 %v5879_v8, %s6635_s30 }
 0x1fc   : > { %v1365_v11 = vpop.permute.xlu0 %1364  ;;  %v1788_v51 = vsel %vm6726_vm5, %v1783_v3, %v1787_v49  ;;  %v2795_v49 = vshll.u32 %v8104_v36, 16  ;;  %v397_v36 = vld [vmem:[%s6703_s29 + $0xa8] sm:$0xf] }
 0x1fd   : > { %1441 = vst.msk [vmem:[#allocation2 + $0x50] sm:$0xf] %vm1420_vm9, %v1365_v11  ;;  %v1926_v38 = vpop.permute.xlu1 %1925 }
 0x1fe   : > { %2002 = vst.msk [vmem:[#allocation2 + $0x50] sm:$0xf] %vm1981_vm11, %v1926_v38  ;;  %v5999_v38 = vrot.slane %v5967_v46, 9 }
 0x1ff   : > { %2339 = vst.msk [vmem:[#allocation2 + $0x50] sm:$0xf] %vm2318_vm12, %v7999_v33  ;;  %v1773_v33 = vrot.slane %v1772_v24, 4 }
 0x200   : > { %1917 = vrot.lane.b32.xlu2 %v1706_v12, %s6639_s11  ;;  %v6072_v12 = vld [vmem:[%s6703_s29 + $0x9c] sm:$0xf] }
 0x201   : > { %v1778_v63 = vsel %vm6726_vm5, %v1773_v33, %v1777_v20  ;;  %v2172_v20 = vsel %vm6705_vm2, %v2170_v10, %v2171_v52  ;;  %v2861_v33 = vshll.u32 %v6072_v12, 16  ;;  %v2877_v52 = vshll.u32 %v6074_v53, 16 }
 0x202   : > { %1176 = vrot.lane.b32.xlu0 %v1101_v37, %s6636_s8  ;;  %v8050_v50 = vpop.permute.xlu2 %3019  ;;  %v6024_v37 = vld [vmem:[%s6703_s29 + $0x7c] sm:$0xf] }
 0x203   : > { %1370 = vrot.lane.b32.xlu1 %v5886_v44, %s6635_s30  ;;  %v2863_v6 = vrot.slane %v2861_v33, 5 }
 0x204   : > { %v1916_v56 = vpop.permute.xlu0 %1915 }
 0x205   : > { %1997 = vst.msk [vmem:[#allocation2 + $0x3c] sm:$0xf] %vm1981_vm11, %v1916_v56  ;;  %v2253_v57 = vpop.permute.xlu1 %2252  ;;  %v2858_v56 = vshrl.u32 %v6072_v12, 16  ;;  %v399_v12 = vld [vmem:[%s6703_s29 + $0xb0] sm:$0x1] }
 0x206   : > { %2334 = vst.msk [vmem:[#allocation2 + $0x3c] sm:$0xf] %vm2318_vm12, %v2253_v57  ;;  %v2169_v57 = vsel %vm6705_vm2, %v5999_v38, %v2168_v39  ;;  %v762_v33 = vshll.u32 %v399_v12, 16 }
 0x207   : > { %2528 = vst.msk [vmem:[#allocation2 + $0x3c] sm:$0xf] %vm9213_vm10, %v8018_v13  ;;  %v6063_v13 = vld [vmem:[%s6703_s29 + $0x78] sm:$0xf]  ;;  %vm9215_vm10 = vcmask 130048   ;;  %v2860_v60 = vrot.slane %v2858_v56, 4 }
 0x208   : > { %1931 = vrot.lane.b32.xlu2 %v1788_v51, %s6639_s11  ;;  %v2786_v17 = vshrl.u32 %v6063_v13, 16  ;;  %v2789_v4 = vshll.u32 %v6063_v13, 16  ;;  %v6023_v51 = vld [vmem:[%s6703_s29 + $0x78] sm:$0xf]  ;;  %v306_v13 = vld [vmem:[%s6703_s29 + $0x60] sm:$0xf] }
 0x209   : > { %339 = vst.msk [vmem:[#allocation2 + $0x40] sm:$0xf] %vm322_vm6, %v306_v13 }
 0x20a   : > { %1368 = vrot.lane.b32.xlu0 %v5885_v34, %s6635_s30  ;;  %v3343_v29 = vpop.permute.xlu2 %3342  ;;  %v2788_v47 = vrot.slane %v2786_v17, 4  ;;  %v2791_v31 = vrot.slane %v2789_v4, 5  ;;  %v398_v17 = vld [vmem:[%s6703_s29 + $0xac] sm:$0xf] }
 0x20b   : > { %1929 = vrot.lane.b32.xlu1 %v1778_v63, %s6639_s11  ;;  %v3666_v14 = vpop.f32.mrf.mxu0  ;;  %v8127_v63 = vrot.slane %v2795_v49, 5  ;;  %v746_v49 = vshll.u32 %v397_v36, 16 }
 0x20c   : > { %v2251_v16 = vpop.permute.xlu0 %2250  ;;  %v3667_v21 = vadd.f32 %v6624_v1, %v3666_v14  ;;  %v2792_v44 = vor.u32 %v2791_v31, %v2788_v47 }
 0x20d   : > { %2333 = vst.msk [vmem:[#allocation2 + $0x38] sm:$0xf] %vm2318_vm12, %v2251_v16  ;;  %v2445_v8 = vpop.permute.xlu1 %2444  ;;  %v748_v53 = vrot.slane %v746_v49, 5  ;;  %v963_v49 = vld [vmem:[%s6703_s29 + $0xb0] sm:$0x1] }
 0x20e   : > { %2527 = vst.msk [vmem:[#allocation2 + $0x38] sm:$0xf] %vm9214_vm3, %v2445_v8  ;;  %v3731_v25 = vmax.f32 %v3667_v21, 0.0  ;;  %vm9216_vm3 = vmmov %vm9215_vm10  ;;  %v2793_v34 = vrot.slane %v2792_v44, 4  ;;  %v752_v21 = vshll.u32 %v398_v17, 16  ;;  %v756_v8 = vshrl.u32 %v398_v17, 16 }
 0x20f   : > { %3088 = vst.msk [vmem:[#allocation2 + $0x38] sm:$0xf] %vm3073_vm14, %v8034_v32  ;;  %v3766_v32 = vsel %vm9215_vm10, %v3729_v19, -inf  ;;  %vm9218_vm10 = vcmask 224448   ;;  %v3769_v59 = vsel %vm9216_vm3, %v3730_v40, -inf  ;;  %v2802_v44 = vor.u32 %v2801_v45, %v8127_v63 }
 0x210   : > { %3425 = vst.msk [vmem:[#allocation2 + $0x38] sm:$0xf] %vm9212_vm13, %v3343_v29  ;;  %2266 = vrot.lane.b32.xlu2 %v2190_v18, %s6638_s10  ;;  %v3767_v28 = vsel %vm9216_vm3, %v3731_v25, -inf  ;;  %vm9217_vm13 = vmmov %vm9216_vm3  ;;  %v2191_v29 = vrot.slane %v2189_v7, 4  ;;  %v2798_v14 = vsel %vm6726_vm5, %v2793_v34, %v8127_v63  ;;  %v2864_v7 = vor.u32 %v2863_v6, %v2860_v60  ;;  %v6030_v19 = vld [vmem:[%s6703_s29 + $0xa0] sm:$0xf] }
 0x211   : > { %v3768_v35 = vmax.f32 %v3766_v32, %v3767_v28  ;;  %v6547_v18 = vld [vmem:[%s9186_s3 + $0x40] sm:$0xff]  ;;  %v2879_v25 = vrot.slane %v2877_v52, 5 }
 0x212   : > { %1919 = vrot.lane.b32.xlu0 %v1716_v48, %s6639_s11  ;;  %v3357_v11 = vpop.permute.xlu2 %3356  ;;  %v2193_v4 = vsel %vm6705_vm2, %v2191_v29, %v2192_v5  ;;  %v2865_v30 = vrot.slane %v2864_v7, 4  ;;  %5062 = vmatpush.bf16.msra.mxu2 %v6547_v18  ;;  %v6065_v28 = vld [vmem:[%s6703_s29 + $0x80] sm:$0x1]  ;;  %v3989_v63 = vld [vmem:[#allocation3 + $0x1c] sm:$0x1]  ;;  %v764_v5 = vrot.slane %v762_v33, 5 }
 0x213   : > { %2256 = vrot.lane.b32.xlu1 %v2172_v20, %s6638_s10  ;;  %3806 = vst.msk [vmem:[#allocation6 + $0x20] sm:$0xff] %vm9217_vm13, %v3768_v35  ;;  %v3668_v42 = vpop.f32.mrf.mxu0  ;;  %vm9219_vm13 = vcmask 290048   ;;  %v313_v20 = vld [vmem:[%s6703_s29 + $0x88] sm:$0xf]  ;;  %v8163_v35 = vrot.slane %v752_v21, 5 }
 0x214   : > { %v2265_v41 = vpop.permute.xlu0 %2264  ;;  %v3669_v24 = vadd.f32 %v6624_v1, %v3668_v42  ;;  %346 = vst.msk [vmem:[#allocation2 + $0x5c] sm:$0xf] %vm322_vm6, %v313_v20  ;;  %v8173_v42 = vld [vmem:[%s6703_s29 + $0x7c] sm:$0xf]  ;;  %v3986_v34 = vld [vmem:[#allocation3 + $0x18] sm:$0xf] }
 0x215   : > { %2340 = vst.msk [vmem:[#allocation2 + $0x54] sm:$0xf] %vm2318_vm12, %v2265_v41  ;;  %v2459_v3 = vpop.permute.xlu1 %2458  ;;  %v6111_v41 = vld [vmem:[%s6703_s29 + $0x78] sm:$0xe]  ;;  %v6122_v17 = vld [vmem:[%s6703_s29 + $0xa4] sm:$0x1] }
 0x216   : > { %2534 = vst.msk [vmem:[#allocation2 + $0x54] sm:$0xf] %vm9218_vm10, %v2459_v3  ;;  %v3732_v58 = vmax.f32 %v3669_v24, 0.0  ;;  %vm9220_vm10 = vmmov %vm9216_vm3  ;;  %v2805_v24 = vshll.u32 %v6065_v28, 16  ;;  %v743_v3 = vshrl.u32 %v397_v36, 16  ;;  %v3284_v21 = vrot.slane %v6122_v17, 5 }
 0x217   : > { %3095 = vst.msk [vmem:[#allocation2 + $0x54] sm:$0xf] %vm3073_vm14, %v8050_v50  ;;  %v8129_v50 = vrot.slane %v2867_v55, 5  ;;  %v5938_v18 = vld [vmem:[%s6703_s29 + $0xb8] sm:$0xf] }
 0x218   : > { %3432 = vst.msk [vmem:[#allocation2 + $0x54] sm:$0xf] %vm9219_vm13, %v3357_v11  ;;  %2450 = vrot.lane.b32.xlu2 %v6024_v37, %s6640_s12  ;;  %v3770_v15 = vsel %vm9220_vm10, %v3732_v58, -inf  ;;  %vm9221_vm13 = vcmask 224448   ;;  %v758_v11 = vrot.slane %v756_v8, 4  ;;  %v6143_v58 = vrot.slane %v6111_v41, 9 }
 0x219   : > { %v3771_v1 = vmax.f32 %v3769_v59, %v3770_v15  ;;  %v2874_v10 = vor.u32 %v2873_v27, %v8129_v50  ;;  %v6029_v37 = vld [vmem:[%s6703_s29 + $0x9c] sm:$0xf]  ;;  %v2870_v43 = vsel %vm6726_vm5, %v2865_v30, %v8129_v50  ;;  %v6121_v15 = vld [vmem:[%s6703_s29 + $0xa0] sm:$0xf]  ;;  %v2803_v27 = vrot.slane %v2802_v44, 4 }
 0x21a   : > { %2254 = vrot.lane.b32.xlu0 %v2169_v57, %s6638_s10  ;;  %v8132_v39 = vpop.permute.xlu2 %1376  ;;  %v759_v56 = vor.u32 %v758_v11, %v8163_v35  ;;  %v3260_v57 = vrot.slane %v8173_v42, 5  ;;  %v2807_v50 = vrot.slane %v2805_v24, 5  ;;  %vm9222_vm10 = vcmask 290048   ;;  %v6120_v8 = vld [vmem:[%s6703_s29 + $0x9c] sm:$0xe] }
 0x21b   : > { %2448 = vrot.lane.b32.xlu1 %v6023_v51, %s6640_s12  ;;  %3807 = vst.msk [vmem:[#allocation6 + $0x28] sm:$0xff] %vm9216_vm3, %v3771_v1  ;;  %v2875_v46 = vrot.slane %v2874_v10, 4  ;;  %v745_v1 = vrot.slane %v743_v3, 4  ;;  %v6146_v45 = vrot.slane %v6120_v8, 9  ;;  %v8211_v20 = vld [vmem:[%s6703_s29 + $0xac] sm:$0xf]  ;;  %vm9223_vm3 = vmmov %vm9222_vm10 }
 0x21c   : > { %v2457_v61 = vpop.permute.xlu0 %2456  ;;  %v760_v29 = vrot.slane %v759_v56, 4  ;;  %v2808_v22 = vsel %vm6726_vm5, %v2803_v27, %v2807_v50  ;;  %v1851_v28 = vshrl.u32 %v5938_v18, 16  ;;  %v5937_v11 = vld [vmem:[%s6703_s29 + $0xb4] sm:$0xf]  ;;  %v5939_v33 = vld [vmem:[%s6703_s29 + $0xbc] sm:$0x1] }
 0x21d   : > { %2533 = vst.msk [vmem:[#allocation2 + $0x50] sm:$0xf] %vm9221_vm13, %v2457_v61  ;;  %v3018_v16 = vpop.permute.xlu1 %3017  ;;  %v2880_v38 = vsel %vm6726_vm5, %v2875_v46, %v2879_v25  ;;  %v749_v7 = vor.u32 %v748_v53, %v745_v1  ;;  %v1838_v24 = vshrl.u32 %v5937_v11, 16  ;;  %v1841_v3 = vshll.u32 %v5937_v11, 16  ;;  %v6083_v11 = vld [vmem:[%s6703_s29 + $0xc8] sm:$0x1] }
 0x21e   : > { %3094 = vst.msk [vmem:[#allocation2 + $0x50] sm:$0xf] %vm3073_vm14, %v3018_v16  ;;  %v3261_v16 = vsel %vm6705_vm2, %v6143_v58, %v3260_v57  ;;  %v5891_v58 = vld [vmem:[%s6703_s29 + $0xb4] sm:$0xf]  ;;  %v1121_v27 = vrot.slane %v963_v49, 5  ;;  %v1857_v42 = vshll.u32 %v5939_v33, 16 }
 0x21f   : > { %v750_v25 = vrot.slane %v749_v7, 4  ;;  %v1840_v50 = vrot.slane %v1838_v24, 4  ;;  %v1843_v1 = vrot.slane %v1841_v3, 5  ;;  %vm9224_vm13 = vcmask 130048   ;;  %v5892_v33 = vld [vmem:[%s6703_s29 + $0xb8] sm:$0xf] }
 0x220   : > { %3009 = vrot.lane.b32.xlu2 %v2798_v14, %s6642_s14  ;;  %v3281_v14 = vrot.slane %v6121_v15, 5 }
 0x222   : > { %2268 = vrot.lane.b32.xlu0 %v2193_v4, %s6638_s10  ;;  %v8157_v48 = vpop.permute.xlu2 %1939  ;;  %v3822_v47 = vld [vmem:[#allocation6 + $0x20] ss:$2 sm:$0xff]  ;;  %v3838_v31 = vld [vmem:[#allocation6 + $0x21] ss:$2 sm:$0xff]  ;;  %v765_v4 = vsel %vm6726_vm5, %v760_v29, %v764_v5  ;;  %v3282_v41 = vsel %vm6705_vm2, %v6146_v45, %v3281_v14  ;;  %v1844_v5 = vor.u32 %v1843_v1, %v1840_v50  ;;  %v392_v50 = vld [vmem:[%s6703_s29 + $0x94] sm:$0xf] }
 0x223   : > { %2462 = vrot.lane.b32.xlu1 %v6030_v19, %s6640_s12  ;;  %v3851_v9 = vmax.f32 %v3822_v47, %v3838_v31  ;;  %v3283_v19 = vrot.slane %v3281_v14, 4  ;;  %v1847_v47 = vshll.u32 %v5938_v18, 16  ;;  %v961_v29 = vld [vmem:[%s6703_s29 + $0xa8] sm:$0xe]  ;;  %v307_v45 = vld [vmem:[%s6703_s29 + $0x64] sm:$0xf] }
 0x224   : > { %v3008_v32 = vpop.permute.xlu0 %3007  ;;  %v5861_v17 = vrot.slane %v961_v29, 9  ;;  %340 = vst.msk [vmem:[#allocation2 + $0x44] sm:$0xf] %vm322_vm6, %v307_v45  ;;  %v6130_v29 = vld [vmem:[%s6703_s29 + $0xc4] sm:$0xf]  ;;  %v708_v45 = vshrl.u32 %v392_v50, 16 }
 0x225   : > { %3089 = vst.msk [vmem:[#allocation2 + $0x3c] sm:$0xf] %vm3073_vm14, %v3008_v32  ;;  %v845_v23 = vpop.permute.xlu1 %844  ;;  %v3881_v40 = vpack.c.bf16 %v3851_v9, %v3851_v9  ;;  %v3285_v9 = vsel %vm6705_vm2, %v3283_v19, %v3284_v21  ;;  %v8261_v19 = vld [vmem:[%s6703_s29 + $0xb8] sm:$0xf] }
 0x226   : > { %914 = vst.msk [vmem:[#allocation2 + $0x6c] sm:$0xf] %vm886_vm7, %v845_v23  ;;  %v755_v23 = vsel %vm6726_vm5, %v750_v25, %v8163_v35  ;;  %v1853_v35 = vrot.slane %v1851_v28, 4  ;;  %v5987_v28 = vld [vmem:[%s6703_s29 + $0xbc] sm:$0x1] }
 0x227   : > { %v3904_v55 = vshrl.u32 %v3881_v40, 16  ;;  %v3907_v59 = vshll.u32 %v3881_v40, 16 }
 0x228   : > { %3023 = vrot.lane.b32.xlu2 %v2880_v38, %s6642_s14  ;;  %v1118_v38 = vrot.slane %v8211_v20, 5 }
 0x229   : > { %v3906_v51 = vrot.slane %v3904_v55, 7  ;;  %v8228_v55 = vrot.slane %v1847_v47, 5 }
 0x22a   : > { %2460 = vrot.lane.b32.xlu0 %v6029_v37, %s6640_s12  ;;  %v8184_v54 = vpop.permute.xlu2 %2468  ;;  %v6113_v37 = vld [vmem:[%s6703_s29 + $0x80] sm:$0x1]  ;;  %v1119_v47 = vsel %vm6705_vm2, %v5861_v17, %v1118_v38  ;;  %v5931_v17 = vld [vmem:[%s6703_s29 + $0x9c] sm:$0xf] }
 0x22b   : > { %3021 = vrot.lane.b32.xlu1 %v2870_v43, %s6642_s14  ;;  %v3909_v60 = vor.u32 %v3907_v59, %v3906_v51  ;;  %v3910_v6 = vrot.slane %v3906_v51, 4  ;;  %v3262_v51 = vrot.slane %v3260_v57, 4  ;;  %v3263_v59 = vrot.slane %v6113_v37, 5  ;;  %v312_v57 = vld [vmem:[%s6703_s29 + $0x84] sm:$0xf] }
 0x22c   : > { %v843_v13 = vpop.permute.xlu0 %842  ;;  %345 = vst.msk [vmem:[#allocation2 + $0x58] sm:$0xf] %vm322_vm6, %v312_v57  ;;  %v2213_v37 = vrot.slane %v5987_v28, 5  ;;  %v955_v28 = vld [vmem:[%s6703_s29 + $0x90] sm:$0xe] }
 0x22d   : > { %913 = vst.msk [vmem:[#allocation2 + $0x68] sm:$0xf] %vm886_vm7, %v843_v13  ;;  %v3355_v61 = vpop.permute.xlu1 %3354  ;;  %v3987_v10 = vsel %vm7670_vm4, %v3909_v60, %v3986_v34  ;;  %v3990_v52 = vsel %vm7700_vm15, %v3910_v6, %v3989_v63  ;;  %v1120_v34 = vrot.slane %v1118_v38, 4  ;;  %v1854_v60 = vor.u32 %v1853_v35, %v8228_v55  ;;  %v391_v38 = vld [vmem:[%s6703_s29 + $0x90] sm:$0xf] }
 0x22e   : > { %3431 = vst.msk [vmem:[#allocation2 + $0x50] sm:$0xf] %vm9222_vm10, %v3355_v61  ;;  %v3264_v6 = vsel %vm6705_vm2, %v3262_v51, %v3263_v59  ;;  %v695_v35 = vshrl.u32 %v391_v38, 16  ;;  %vm9225_vm10 = vcmask 224448   ;;  %v5985_v51 = vld [vmem:[%s6703_s29 + $0xb4] sm:$0xe] }
 0x22f   : > { %3988 = vst [vmem:[#allocation3 + $0x18] sm:$0xf] %v3987_v10  ;;  %v1122_v13 = vsel %vm6705_vm2, %v1120_v34, %v1121_v27  ;;  %v1855_v61 = vrot.slane %v1854_v60, 4  ;;  %v6531_v10 = vld [vmem:[#allocation4 + $0x4] sm:$0xf]  ;;  %v6005_v1 = vrot.slane %v5985_v51, 9 }
 0x230   : > { %3991 = vst [vmem:[#allocation3 + $0x1c] sm:$0x1] %v3990_v52  ;;  %3346 = vrot.lane.b32.xlu2 %v3261_v16, %s6641_s13  ;;  %v1859_v16 = vrot.slane %v1857_v42, 5 }
 0x232   : > { %3011 = vrot.lane.b32.xlu0 %v2808_v22, %s6642_s14  ;;  %v8207_v46 = vpop.permute.xlu2 %3031  ;;  %v1860_v25 = vsel %vm6726_vm5, %v1855_v61, %v1859_v16  ;;  %v3302_v16 = vrot.slane %v6130_v29, 5  ;;  %v5888_v29 = vld [vmem:[%s6703_s29 + $0xa0] sm:$0xf] }
 0x233   : > { %848 = vrot.lane.b32.xlu1 %v765_v4, %s6637_s9  ;;  %v1845_v4 = vrot.slane %v1844_v5, 4 }
 0x234   : > { %v3345_v30 = vpop.permute.xlu0 %3344 }
 0x235   : > { %3426 = vst.msk [vmem:[#allocation2 + $0x3c] sm:$0xf] %vm9223_vm3, %v3345_v30  ;;  %v1185_v31 = vpop.permute.xlu1 %1184  ;;  %v6523_v32 = vld [vmem:[#allocation2 + $0x50] sm:$0xff]  ;;  %v6081_v30 = vld [vmem:[%s6703_s29 + $0xc0] sm:$0xf]  ;;  %vm9226_vm3 = vmmov %vm9225_vm10 }
 0x236   : > { %1254 = vst.msk [vmem:[#allocation2 + $0x6c] sm:$0xf] %vm1226_vm8, %v1185_v31  ;;  %v4816_v36 = vld [vmem:[#allocation3 + $0x18] sm:$0xe]  ;;  %6233 = vmatmul.msk.bf16.gmra.mxu1 %vm3579_vm0, %v6523_v32  ;;  %v2210_v31 = vrot.slane %v8261_v19, 5  ;;  %v2933_v32 = vshll.u32 %v6081_v30, 16 }
 0x237   : > { %v4817_v12 = vld [vmem:[#allocation3 + $0x1c] sm:$0x1]  ;;  %v6256_v40 = vrot.slane %v4816_v36, 9 }
 0x238   : > { %3360 = vrot.lane.b32.xlu2 %v3285_v9, %s6641_s13  ;;  %v4852_v44 = vrot.slane %v4817_v12, 5  ;;  %v1850_v9 = vsel %vm6726_vm5, %v1845_v4, %v8228_v55  ;;  %v2212_v12 = vrot.slane %v2210_v31, 4  ;;  %v2935_v3 = vrot.slane %v2933_v32, 5 }
 0x239   : > { %v2211_v5 = vsel %vm6705_vm2, %v6005_v1, %v2210_v31 }
 0x23a   : > { %846 = vrot.lane.b32.xlu0 %v755_v23, %s6637_s9  ;;  %v823_v43 = vpop.permute.xlu2 %822  ;;  %v4853_v56 = vsel %vm6705_vm2, %v6256_v40, %v4852_v44  ;;  %v2949_v44 = vshll.u32 %v6083_v11, 16 }
 0x23b   : > { %903 = vst.msk [vmem:[#allocation2 + $0x40] sm:$0xf] %vm886_vm7, %v823_v43  ;;  %3358 = vrot.lane.b32.xlu1 %v3282_v41, %s6641_s13  ;;  %v6035_v41 = vld [vmem:[%s6703_s29 + $0xc0] sm:$0xf]  ;;  %v698_v43 = vshll.u32 %v391_v38, 16 }
 0x23c   : > { %v1183_v15 = vpop.permute.xlu0 %1182  ;;  %v6520_v63 = vld [vmem:[#allocation2 + $0x38] sm:$0xff]  ;;  %4887 = vst.msk [vmem:[#allocation4 + $0xc] sm:$0xf] %vm3857_vm1, %v4853_v56 }
 0x23d   : > { %1253 = vst.msk [vmem:[#allocation2 + $0x68] sm:$0xf] %vm1226_vm8, %v1183_v15  ;;  %v1938_v53 = vpop.permute.xlu1 %1937  ;;  %6230 = vmatmul.msk.bf16.gmra.mxu0 %vm3579_vm0, %v6520_v63  ;;  %v4025_v56 = vld [vmem:[#allocation3 + $0x18] sm:$0xf]  ;;  %v2951_v15 = vrot.slane %v2949_v44, 5  ;;  %v697_v63 = vrot.slane %v695_v35, 4 }
 0x23e   : > { %1447 = vst.msk [vmem:[#allocation2 + $0x68] sm:$0xf] %vm1420_vm9, %v8132_v39  ;;  %v6082_v39 = vld [vmem:[%s6703_s29 + $0xc4] sm:$0xf]  ;;  %v700_v27 = vrot.slane %v698_v43, 5 }
 0x23f   : > { %2008 = vst.msk [vmem:[#allocation2 + $0x68] sm:$0xf] %vm1981_vm11, %v1938_v53  ;;  %v2939_v21 = vshll.u32 %v6082_v39, 16  ;;  %v2943_v8 = vshrl.u32 %v6082_v39, 16  ;;  %v5932_v38 = vld [vmem:[%s6703_s29 + $0xa0] sm:$0xf] }
 0x240   : > { %1380 = vrot.lane.b32.xlu2 %v5891_v58, %s6635_s30  ;;  %v2214_v58 = vsel %vm6705_vm2, %v2212_v12, %v2213_v37  ;;  %4033 = vst.msk [vmem:[#allocation4 + $0x18] sm:$0xf] %vm3857_vm1, %v4025_v56  ;;  %v710_v12 = vrot.slane %v708_v45, 4  ;;  %v5859_v37 = vrot.slane %v955_v28, 9  ;;  %v393_v44 = vld [vmem:[%s6703_s29 + $0x98] sm:$0x1] }
 0x241   : > { %v2941_v36 = vrot.slane %v2939_v21, 5  ;;  %v2945_v20 = vrot.slane %v2943_v8, 4  ;;  %v714_v56 = vshll.u32 %v393_v44, 16  ;;  %v400_v45 = vld [vmem:[%s6703_s29 + $0xb4] sm:$0xf] }
 0x242   : > { %3348 = vrot.lane.b32.xlu0 %v3264_v6, %s6641_s13  ;;  %v837_v14 = vpop.permute.xlu2 %836  ;;  %v701_v6 = vor.u32 %v700_v27, %v697_v63  ;;  %v770_v28 = vshll.u32 %v400_v45, 16 }
 0x243   : > { %910 = vst.msk [vmem:[#allocation2 + $0x5c] sm:$0xf] %vm886_vm7, %v837_v14  ;;  %1188 = vrot.lane.b32.xlu1 %v1122_v13, %s6636_s8  ;;  %v6267_v52 = vld [vmem:[#allocation4 + $0x8] sm:$0xf0]  ;;  %v2946_v55 = vor.u32 %v2945_v20, %v2941_v36  ;;  %v704_v13 = vshll.u32 %v392_v50, 16  ;;  %v716_v27 = vrot.slane %v714_v56, 5 }
 0x244   : > { %v1379_v22 = vpop.permute.xlu0 %1378  ;;  %v6270_v7 = vor.u32 %v6531_v10, %v6267_v52  ;;  %v702_v39 = vrot.slane %v701_v6, 4  ;;  %v6131_v10 = vld [vmem:[%s6703_s29 + $0xc8] sm:$0x1]  ;;  %v1803_v6 = vshrl.u32 %v5932_v38, 16 }
 0x245   : > { %1448 = vst.msk [vmem:[#allocation2 + $0x6c] sm:$0xf] %vm1420_vm9, %v1379_v22  ;;  %v2277_v18 = vpop.permute.xlu1 %2276  ;;  %v2947_v34 = vrot.slane %v2946_v55, 4  ;;  %v706_v14 = vrot.slane %v704_v13, 5  ;;  %v3305_v4 = vrot.slane %v6131_v10, 5  ;;  %v1799_v55 = vshll.u32 %v5932_v38, 16 }
 0x246   : > { %2009 = vst.msk [vmem:[#allocation2 + $0x6c] sm:$0xf] %vm1981_vm11, %v8157_v48  ;;  %6331 = vmatmul.msk.bf16.vlgmr.msra.gmra.mxu2 %vm9224_vm13, %v6270_v7  ;;  %v2930_v48 = vshrl.u32 %v6081_v30, 16  ;;  %vm9227_vm13 = vcmask 290048   ;;  %v3304_v7 = vrot.slane %v3302_v16, 4 }
 0x247   : > { %2346 = vst.msk [vmem:[#allocation2 + $0x6c] sm:$0xf] %vm2318_vm12, %v2277_v18  ;;  %v2952_v57 = vsel %vm6726_vm5, %v2947_v34, %v2951_v15  ;;  %v707_v21 = vsel %vm6726_vm5, %v702_v39, %v706_v14  ;;  %v1790_v18 = vshrl.u32 %v5931_v17, 16  ;;  %v957_v30 = vld [vmem:[%s6703_s29 + $0x98] sm:$0x1]  ;;  %v711_v43 = vor.u32 %v710_v12, %v706_v14 }
 0x248   : > { %1943 = vrot.lane.b32.xlu2 %v1860_v25, %s6639_s11  ;;  %v2932_v24 = vrot.slane %v2930_v48, 4  ;;  %v1793_v25 = vshll.u32 %v5931_v17, 16  ;;  %v3306_v31 = vsel %vm6705_vm2, %v3304_v7, %v3305_v4  ;;  %v1107_v32 = vrot.slane %v957_v30, 5  ;;  %v6075_v15 = vld [vmem:[%s6703_s29 + $0xa8] sm:$0xf] }
 0x249   : > { %v1792_v11 = vrot.slane %v1790_v18, 4  ;;  %v1801_v51 = vrot.slane %v1799_v55, 5  ;;  %v712_v63 = vrot.slane %v711_v43, 4  ;;  %v6076_v39 = vld [vmem:[%s6703_s29 + $0xac] sm:$0xf]  ;;  %v1805_v17 = vrot.slane %v1803_v6, 4 }
 0x24a   : > { %1186 = vrot.lane.b32.xlu0 %v1119_v47, %s6636_s8  ;;  %v8285_v23 = vpop.permute.xlu2 %1174  ;;  %v2936_v59 = vor.u32 %v2935_v3, %v2932_v24  ;;  %v6036_v47 = vld [vmem:[%s6703_s29 + $0xc4] sm:$0xf]  ;;  %v2891_v4 = vshll.u32 %v6076_v39, 16  ;;  %v2895_v43 = vshrl.u32 %v6076_v39, 16  ;;  %v6031_v6 = vld [vmem:[%s6703_s29 + $0xa8] sm:$0xf] }
 0x24b   : > { %1941 = vrot.lane.b32.xlu1 %v1850_v9, %s6639_s11  ;;  %v6129_v9 = vld [vmem:[%s6703_s29 + $0xc0] sm:$0xe]  ;;  %v717_v13 = vsel %vm6726_vm5, %v712_v63, %v716_v27 }
 0x24c   : > { %v2275_v40 = vpop.permute.xlu0 %2274  ;;  %v2937_v60 = vrot.slane %v2936_v59, 4  ;;  %v5980_v59 = vld [vmem:[%s6703_s29 + $0xa0] sm:$0xf] }
 0x24d   : > { %2345 = vst.msk [vmem:[#allocation2 + $0x68] sm:$0xf] %vm2318_vm12, %v2275_v40  ;;  %v3030_v49 = vpop.permute.xlu1 %3029  ;;  %v2196_v50 = vrot.slane %v5980_v59, 5 }
 0x24e   : > { %2539 = vst.msk [vmem:[#allocation2 + $0x68] sm:$0xf] %vm9225_vm10, %v8184_v54  ;;  %v2942_v61 = vsel %vm6726_vm5, %v2937_v60, %v2941_v36  ;;  %vm9228_vm10 = vmmov %vm9227_vm13  ;;  %v1795_v36 = vrot.slane %v1793_v25, 5  ;;  %v5981_v60 = vld [vmem:[%s6703_s29 + $0xa4] sm:$0x1] }
 0x24f   : > { %3100 = vst.msk [vmem:[#allocation2 + $0x68] sm:$0xf] %vm3073_vm14, %v3030_v49 }
 0x250   : > { %2472 = vrot.lane.b32.xlu2 %v6035_v41, %s6640_s12  ;;  %v1796_v49 = vor.u32 %v1795_v36, %v1792_v11  ;;  %v2893_v36 = vrot.slane %v2891_v4, 5 }
 0x252   : > { %1382 = vrot.lane.b32.xlu0 %v5892_v33, %s6635_s30  ;;  %v8301_v54 = vpop.permute.xlu2 %1358 }
 0x253   : > { %2280 = vrot.lane.b32.xlu1 %v2214_v58, %s6638_s10  ;;  %v1797_v58 = vrot.slane %v1796_v49, 4 }
 0x254   : > { %v2471_v53 = vpop.permute.xlu0 %2470 }
 0x255   : > { %2540 = vst.msk [vmem:[#allocation2 + $0x6c] sm:$0xf] %vm9226_vm3, %v2471_v53  ;;  %v3369_v42 = vpop.permute.xlu1 %3368  ;;  %v1802_v53 = vsel %vm6726_vm5, %v1797_v58, %v1801_v51 }
 0x256   : > { %3101 = vst.msk [vmem:[#allocation2 + $0x6c] sm:$0xf] %vm3073_vm14, %v8207_v46  ;;  %v956_v46 = vld [vmem:[%s6703_s29 + $0x94] sm:$0xf] }
 0x257   : > { %3438 = vst.msk [vmem:[#allocation2 + $0x6c] sm:$0xf] %vm9227_vm13, %v3369_v42  ;;  %v1104_v8 = vrot.slane %v956_v46, 5  ;;  %v2882_v42 = vshrl.u32 %v6075_v15, 16  ;;  %vm9229_vm13 = vmmov %vm9226_vm3 }
 0x258   : > { %3035 = vrot.lane.b32.xlu2 %v2952_v57, %s6642_s14  ;;  %v2885_v57 = vshll.u32 %v6075_v15, 16 }
 0x259   : > { %v1106_v48 = vrot.slane %v1104_v8, 4  ;;  %v1105_v33 = vsel %vm6705_vm2, %v5859_v37, %v1104_v8  ;;  %v2884_v14 = vrot.slane %v2882_v42, 4  ;;  %v964_v42 = vld [vmem:[%s6703_s29 + $0xb4] sm:$0xe] }
 0x25a   : > { %2278 = vrot.lane.b32.xlu0 %v2211_v5, %s6638_s10  ;;  %v8319_v52 = vpop.permute.xlu2 %1917  ;;  %v2198_v5 = vrot.slane %v2196_v50, 4  ;;  %v2887_v10 = vrot.slane %v2885_v57, 5  ;;  %v8417_v57 = vld [vmem:[%s6703_s29 + $0xb8] sm:$0xf] }
 0x25b   : > { %3033 = vrot.lane.b32.xlu1 %v2942_v61, %s6642_s14  ;;  %v1108_v3 = vsel %vm6705_vm2, %v1106_v48, %v1107_v32  ;;  %v2199_v61 = vrot.slane %v5981_v60, 5  ;;  %v767_v32 = vshrl.u32 %v400_v45, 16  ;;  %v319_v60 = vld [vmem:[%s6703_s29 + $0xac] sm:$0xf]  ;;  %v1125_v39 = vrot.slane %v8417_v57, 5 }
 0x25c   : > { %v3367_v22 = vpop.permute.xlu0 %3366  ;;  %v2888_v18 = vor.u32 %v2887_v10, %v2884_v14  ;;  %352 = vst.msk [vmem:[#allocation2 + $0x74] sm:$0xf] %vm322_vm6, %v319_v60  ;;  %v6125_v14 = vld [vmem:[%s6703_s29 + $0xb0] sm:$0x1] }
 0x25d   : > { %3437 = vst.msk [vmem:[#allocation2 + $0x68] sm:$0xf] %vm9228_vm10, %v3367_v22  ;;  %v835_v19 = vpop.permute.xlu1 %834  ;;  %v2200_v8 = vsel %vm6705_vm2, %v2198_v5, %v2199_v61  ;;  %v769_v44 = vrot.slane %v767_v32, 4 }
 0x25e   : > { %909 = vst.msk [vmem:[#allocation2 + $0x58] sm:$0xf] %vm886_vm7, %v835_v19  ;;  %v5933_v19 = vld [vmem:[%s6703_s29 + $0xa4] sm:$0x1]  ;;  %v2889_v11 = vrot.slane %v2888_v18, 4 }
 0x25f   : > { %1249 = vst.msk [vmem:[#allocation2 + $0x58] sm:$0xf] %vm1226_vm8, %v8285_v23  ;;  %v6149_v23 = vrot.slane %v6129_v9, 9  ;;  %v1809_v9 = vshll.u32 %v5933_v19, 16 }
 0x260   : > { %838 = vrot.lane.b32.xlu2 %v707_v21, %s6637_s9  ;;  %v2894_v49 = vsel %vm6726_vm5, %v2889_v11, %v2893_v36  ;;  %v5940_v11 = vld [vmem:[%s6703_s29 + $0xc0] sm:$0xf] }
 0x261   : > { %v3303_v35 = vsel %vm6705_vm2, %v6149_v23, %v3302_v16  ;;  %v5979_v16 = vld [vmem:[%s6703_s29 + $0x9c] sm:$0xe] }
 0x262   : > { %2474 = vrot.lane.b32.xlu0 %v6036_v47, %s6640_s12  ;;  %v8338_v20 = vpop.permute.xlu2 %1931  ;;  %v6003_v7 = vrot.slane %v5979_v16, 9  ;;  %v5887_v47 = vld [vmem:[%s6703_s29 + $0x9c] sm:$0xf]  ;;  %v5862_v16 = vrot.slane %v964_v42, 9 }
 0x263   : > { %3372 = vrot.lane.b32.xlu1 %v3306_v31, %s6641_s13  ;;  %v1806_v31 = vor.u32 %v1805_v17, %v1801_v51 }
 0x264   : > { %v825_v40 = vpop.permute.xlu0 %824  ;;  %v6526_v41 = vld [vmem:[#allocation2 + $0x68] sm:$0xff]  ;;  %v2197_v48 = vsel %vm6705_vm2, %v6003_v7, %v2196_v50  ;;  %v3291_v7 = vrot.slane %v6125_v14, 5  ;;  %v1126_v19 = vsel %vm6705_vm2, %v5862_v16, %v1125_v39 }
 0x265   : > { %904 = vst.msk [vmem:[#allocation2 + $0x44] sm:$0xf] %vm886_vm7, %v825_v40  ;;  %v1165_v24 = vpop.permute.xlu1 %1164  ;;  %6236 = vmatmul.msk.bf16.vlgmr.msra.gmra.mxu3 %vm3579_vm0, %v6526_v41  ;;  %v402_v40 = vld [vmem:[%s6703_s29 + $0xbc] sm:$0x1]  ;;  %v1811_v41 = vrot.slane %v1809_v9, 5 }
 0x266   : > { %1244 = vst.msk [vmem:[#allocation2 + $0x44] sm:$0xf] %vm1226_vm8, %v1165_v24  ;;  %v772_v24 = vrot.slane %v770_v28, 5 }
 0x267   : > { %1438 = vst.msk [vmem:[#allocation2 + $0x44] sm:$0xf] %vm1420_vm9, %v8301_v54 }
 0x268   : > { %1180 = vrot.lane.b32.xlu2 %v1108_v3, %s6636_s8  ;;  %v773_v58 = vor.u32 %v772_v24, %v769_v44  ;;  %v1865_v44 = vshll.u32 %v5940_v11, 16  ;;  %v966_v24 = vld [vmem:[%s6703_s29 + $0xbc] sm:$0x1] }
 0x26a   : > { %3370 = vrot.lane.b32.xlu0 %v3303_v35, %s6641_s13  ;;  %v8357_v34 = vpop.permute.xlu2 %2266  ;;  %v786_v35 = vshll.u32 %v402_v40, 16  ;;  %v774_v27 = vrot.slane %v773_v58, 4  ;;  %v8456_v40 = vld [vmem:[%s6703_s29 + $0xc4] sm:$0xf]  ;;  %v1128_v58 = vrot.slane %v966_v24, 5 }
 0x26b   : > { %1178 = vrot.lane.b32.xlu1 %v1105_v33, %s6636_s8  ;;  %v6032_v33 = vld [vmem:[%s6703_s29 + $0xac] sm:$0xf] }
 0x26c   : > { %v1163_v54 = vpop.permute.xlu0 %1162  ;;  %v788_v59 = vrot.slane %v786_v35, 5  ;;  %v2217_v35 = vrot.slane %v8456_v40, 5 }
 0x26d   : > { %1243 = vst.msk [vmem:[#allocation2 + $0x40] sm:$0xf] %vm1226_vm8, %v1163_v54  ;;  %v1357_v1 = vpop.permute.xlu1 %1356  ;;  %v6077_v54 = vld [vmem:[%s6703_s29 + $0xb0] sm:$0x1] }
 0x26e   : > { %1437 = vst.msk [vmem:[#allocation2 + $0x40] sm:$0xf] %vm1420_vm9, %v1357_v1 }
 0x26f   : > { %1998 = vst.msk [vmem:[#allocation2 + $0x40] sm:$0xf] %vm1981_vm11, %v8319_v52  ;;  %v401_v52 = vld [vmem:[%s6703_s29 + $0xb8] sm:$0xf] }
 0x270   : > { %1933 = vrot.lane.b32.xlu2 %v1802_v53, %s6639_s11  ;;  %v776_v25 = vshll.u32 %v401_v52, 16  ;;  %v780_v30 = vshrl.u32 %v401_v52, 16  ;;  %v6124_v53 = vld [vmem:[%s6703_s29 + $0xac] sm:$0xf] }
 0x271   : > { %v3288_v61 = vrot.slane %v6124_v53, 5 }
 0x272   : > { %840 = vrot.lane.b32.xlu0 %v717_v13, %s6637_s9  ;;  %v8375_v46 = vpop.permute.xlu2 %2450  ;;  %v778_v38 = vrot.slane %v776_v25, 5  ;;  %v782_v23 = vrot.slane %v780_v30, 4  ;;  %v6123_v30 = vld [vmem:[%s6703_s29 + $0xa8] sm:$0xe] }
 0x273   : > { %1374 = vrot.lane.b32.xlu1 %v5888_v29, %s6635_s30  ;;  %v2901_v29 = vshll.u32 %v6077_v54, 16  ;;  %v6147_v9 = vrot.slane %v6123_v30, 9 }
 0x274   : > { %v1177_v22 = vpop.permute.xlu0 %1176  ;;  %v783_v55 = vor.u32 %v782_v23, %v778_v38  ;;  %v779_v5 = vsel %vm6726_vm5, %v774_v27, %v778_v38  ;;  %v5894_v38 = vld [vmem:[%s6703_s29 + $0xc4] sm:$0xf]  ;;  %v5942_v23 = vld [vmem:[%s6703_s29 + $0xc8] sm:$0x1] }
 0x275   : > { %1250 = vst.msk [vmem:[#allocation2 + $0x5c] sm:$0xf] %vm1226_vm8, %v1177_v22  ;;  %v1371_v21 = vpop.permute.xlu1 %1370  ;;  %v2903_v52 = vrot.slane %v2901_v29, 5  ;;  %v3290_v22 = vrot.slane %v3288_v61, 4 }
 0x276   : > { %1444 = vst.msk [vmem:[#allocation2 + $0x5c] sm:$0xf] %vm1420_vm9, %v1371_v21  ;;  %v784_v51 = vrot.slane %v783_v55, 4  ;;  %v5941_v21 = vld [vmem:[%s6703_s29 + $0xc4] sm:$0xf] }
 0x277   : > { %2005 = vst.msk [vmem:[#allocation2 + $0x5c] sm:$0xf] %vm1981_vm11, %v8338_v20  ;;  %v1807_v20 = vrot.slane %v1806_v31, 4  ;;  %v3292_v25 = vsel %vm6705_vm2, %v3290_v22, %v3291_v7  ;;  %v1871_v45 = vshll.u32 %v5941_v21, 16  ;;  %v4038_v22 = vld [vmem:[#allocation3] sm:$0xf] }
 0x278   : > { %2272 = vrot.lane.b32.xlu2 %v2200_v8, %s6638_s10  ;;  %v789_v1 = vsel %vm6726_vm5, %v784_v51, %v788_v59  ;;  %v318_v8 = vld [vmem:[%s6703_s29 + $0xa8] sm:$0xf]  ;;  %v1867_v59 = vrot.slane %v1865_v44, 5  ;;  %v6132_v7 = vld [vmem:[%s6703_s29 + $0xcc] sm:$0xe] }
 0x279   : > { %v1812_v56 = vsel %vm6726_vm5, %v1807_v20, %v1811_v41  ;;  %351 = vst.msk [vmem:[#allocation2 + $0x70] sm:$0xf] %vm322_vm6, %v318_v8  ;;  %v8447_v32 = vrot.slane %v1871_v45, 5  ;;  %v3289_v20 = vsel %vm6705_vm2, %v6147_v9, %v3288_v61  ;;  %v5893_v41 = vld [vmem:[%s6703_s29 + $0xc0] sm:$0xf]  ;;  %v3671_v9 = vpop.f32.mrf.mxu0 }
 0x27a   : > { %1372 = vrot.lane.b32.xlu0 %v5887_v47, %s6635_s30  ;;  %v3010_v12 = vpop.permute.xlu2 %3009  ;;  %v1875_v47 = vshrl.u32 %v5941_v21, 16  ;;  %v6037_v21 = vld [vmem:[%s6703_s29 + $0xcc] sm:$0xf] }
 0x27b   : > { %2270 = vrot.lane.b32.xlu1 %v2197_v48, %s6638_s10 }
 0x27c   : > { %v1369_v37 = vpop.permute.xlu0 %1368  ;;  %v1877_v28 = vrot.slane %v1875_v47, 4  ;;  %v4055_v47 = vshrl.u32 %v4038_v22, 16 }
 0x27d   : > { %1443 = vst.msk [vmem:[#allocation2 + $0x58] sm:$0xf] %vm1420_vm9, %v1369_v37  ;;  %v1930_v3 = vpop.permute.xlu1 %1929  ;;  %v1862_v37 = vshrl.u32 %v5940_v11, 16 }
 0x27e   : > { %2004 = vst.msk [vmem:[#allocation2 + $0x58] sm:$0xf] %vm1981_vm11, %v1930_v3  ;;  %v1878_v3 = vor.u32 %v1877_v28, %v8447_v32  ;;  %v4057_v44 = vrot.slane %v4055_v47, 4 }
 0x27f   : > { %2341 = vst.msk [vmem:[#allocation2 + $0x58] sm:$0xf] %vm2318_vm12, %v8357_v34  ;;  %v2897_v34 = vrot.slane %v2895_v43, 4  ;;  %v1864_v51 = vrot.slane %v1862_v37, 4 }
 0x280   : > { %3025 = vrot.lane.b32.xlu2 %v2894_v49, %s6642_s14  ;;  %v1881_v49 = vshll.u32 %v5942_v23, 16 }
 0x281   : > { %v2898_v13 = vor.u32 %v2897_v34, %v2893_v36  ;;  %v1879_v34 = vrot.slane %v1878_v3, 4  ;;  %v1868_v53 = vor.u32 %v1867_v59, %v1864_v51 }
 0x282   : > { %1935 = vrot.lane.b32.xlu0 %v1812_v56, %s6639_s11  ;;  %v8405_v15 = vpop.permute.xlu2 %3023  ;;  %v314_v56 = vld [vmem:[%s6703_s29 + $0x90] sm:$0xf] }
 0x283   : > { %2466 = vrot.lane.b32.xlu1 %v6032_v33, %s6640_s12  ;;  %v1127_v33 = vrot.slane %v1125_v39, 4  ;;  %347 = vst.msk [vmem:[#allocation2 + $0x60] sm:$0xf] %vm322_vm6, %v314_v56  ;;  %v1869_v29 = vrot.slane %v1868_v53, 4  ;;  %v6038_v39 = vld [vmem:[%s6703_s29 + $0xd0] sm:$0xf] }
 0x284   : > { %v1920_v63 = vpop.permute.xlu0 %1919 }
 0x285   : > { %1999 = vst.msk [vmem:[#allocation2 + $0x44] sm:$0xf] %vm1981_vm11, %v1920_v63  ;;  %v2257_v50 = vpop.permute.xlu1 %2256  ;;  %v1883_v63 = vrot.slane %v1881_v49, 5 }
 0x286   : > { %2336 = vst.msk [vmem:[#allocation2 + $0x44] sm:$0xf] %vm2318_vm12, %v2257_v50  ;;  %v6085_v50 = vld [vmem:[%s6703_s29 + $0xd0] sm:$0xf] }
 0x287   : > { %2530 = vst.msk [vmem:[#allocation2 + $0x44] sm:$0xf] %vm9226_vm3, %v8375_v46  ;;  %v2899_v46 = vrot.slane %v2898_v13, 4  ;;  %v1884_v60 = vsel %vm6726_vm5, %v1879_v34, %v1883_v63  ;;  %v2963_v42 = vshll.u32 %v6085_v50, 16  ;;  %v2967_v57 = vshrl.u32 %v6085_v50, 16 }
 0x288   : > { %852 = vrot.lane.b32.xlu2 %v789_v1, %s6637_s9  ;;  %v1129_v1 = vsel %vm6705_vm2, %v1127_v33, %v1128_v58 }
 0x289   : > { %v2904_v18 = vsel %vm6726_vm5, %v2899_v46, %v2903_v52  ;;  %v8489_v14 = vrot.slane %v2963_v42, 5  ;;  %v6084_v46 = vld [vmem:[%s6703_s29 + $0xcc] sm:$0xf]  ;;  %v4347_v42 = vld [vmem:[#allocation3 + $0x10] sm:$0xf] }
 0x28a   : > { %2464 = vrot.lane.b32.xlu0 %v6031_v6, %s6640_s12  ;;  %v3347_v10 = vpop.permute.xlu2 %3346  ;;  %v4040_v6 = vld [vmem:[#allocation3 + $0x8] sm:$0xf]  ;;  %v2954_v8 = vshrl.u32 %v6084_v46, 16 }
 0x28b   : > { %850 = vrot.lane.b32.xlu1 %v779_v5, %s6637_s9  ;;  %v4069_v5 = vshrl.u32 %v4040_v6, 16  ;;  %v4072_v61 = vshll.u32 %v4040_v6, 16  ;;  %s6644_s9 = smov 48  }
 0x28c   : > { %v2255_v17 = vpop.permute.xlu0 %2254 }
 0x28d   : > { %2335 = vst.msk [vmem:[#allocation2 + $0x40] sm:$0xf] %vm2318_vm12, %v2255_v17  ;;  %v2449_v4 = vpop.permute.xlu1 %2448  ;;  %v6086_v17 = vld [vmem:[%s6703_s29 + $0xd4] sm:$0x1] }
 0x28e   : > { %2529 = vst.msk [vmem:[#allocation2 + $0x40] sm:$0xf] %vm9229_vm13, %v2449_v4  ;;  %vm9230_vm13 = vmmov %vm9228_vm10  ;;  %v8497_v4 = vld [vmem:[%s6703_s29 + $0xd0] sm:$0xf]  ;;  %v2973_v45 = vshll.u32 %v6086_v17, 16 }
 0x28f   : > { %3090 = vst.msk [vmem:[#allocation2 + $0x40] sm:$0xf] %vm3073_vm14, %v3010_v12  ;;  %v5988_v12 = vld [vmem:[%s6703_s29 + $0xc0] sm:$0xe]  ;;  %v3309_v28 = vrot.slane %v8497_v4, 5 }
 0x290   : > { %3427 = vst.msk [vmem:[#allocation2 + $0x40] sm:$0xf] %vm9228_vm10, %v3347_v10  ;;  %1190 = vrot.lane.b32.xlu2 %v1126_v19, %s6636_s8  ;;  %v6006_v55 = vrot.slane %v5988_v12, 9  ;;  %vm9231_vm10 = vmmov %vm9226_vm3  ;;  %v2969_v10 = vrot.slane %v2967_v57, 4  ;;  %v1874_v19 = vsel %vm6726_vm5, %v1869_v29, %v8447_v32  ;;  %v4071_v32 = vrot.slane %v4069_v5, 4 }
 0x291   : > { %v2956_v12 = vrot.slane %v2954_v8, 4  ;;  %v2975_v37 = vrot.slane %v2973_v45, 5  ;;  %v4345_v5 = vld [vmem:[#allocation3 + $0x8] sm:$0xf]  ;;  %v4348_v4 = vld [vmem:[#allocation3 + $0x14] sm:$0x1] }
 0x292   : > { %3027 = vrot.lane.b32.xlu0 %v2904_v18, %s6642_s14  ;;  %v3361_v31 = vpop.permute.xlu2 %3360  ;;  %v2218_v54 = vsel %vm6705_vm2, %v6006_v55, %v2217_v35  ;;  %v2957_v18 = vshll.u32 %v6084_v46, 16  ;;  %v2970_v30 = vor.u32 %v2969_v10, %v8489_v14  ;;  %v4039_v55 = vld [vmem:[#allocation3 + $0x4] sm:$0x1]  ;;  %v4379_v10 = vshll.u32 %v4347_v42, 16  ;;  %v8537_v46 = vld [vmem:[%s9189_s6] ss:$0 sm:$0xff] }
 0x293   : > { %3364 = vrot.lane.b32.xlu1 %v3292_v25, %s6641_s13  ;;  %v5990_v25 = vld [vmem:[%s6703_s29 + $0xc8] sm:$0x1]  ;;  %v4365_v8 = vshll.u32 %v4345_v5, 16 }
 0x294   : > { %v2269_v48 = vpop.permute.xlu0 %2268  ;;  %v2220_v23 = vrot.slane %v5990_v25, 5  ;;  %v2959_v40 = vrot.slane %v2957_v18, 5  ;;  %v3311_v25 = vrot.slane %v3309_v28, 4  ;;  %v4381_v47 = vrot.slane %v4379_v10, 5 }
 0x295   : > { %2342 = vst.msk [vmem:[#allocation2 + $0x5c] sm:$0xf] %vm2318_vm12, %v2269_v48  ;;  %v2463_v36 = vpop.permute.xlu1 %2462  ;;  %v6150_v48 = vrot.slane %v6132_v7, 9  ;;  %v4362_v7 = vshrl.u32 %v4345_v5, 16 }
 0x296   : > { %2536 = vst.msk [vmem:[#allocation2 + $0x5c] sm:$0xf] %vm9226_vm3, %v2463_v36  ;;  %v4074_v36 = vrot.slane %v4072_v61, 5  ;;  %vm9232_vm3 = vmmov %vm9230_vm13  ;;  %v2960_v58 = vor.u32 %v2959_v40, %v2956_v12 }
 0x297   : > { %3097 = vst.msk [vmem:[#allocation2 + $0x5c] sm:$0xf] %vm3073_vm14, %v8405_v15  ;;  %v3310_v49 = vsel %vm6705_vm2, %v6150_v48, %v3309_v28  ;;  %v4364_v12 = vrot.slane %v4362_v7, 4  ;;  %v4367_v28 = vrot.slane %v4365_v8, 5  ;;  %v4508_v8 = vld [vmem:[#allocation3 + $0x10] sm:$0xe] }
 0x298   : > { %3434 = vst.msk [vmem:[#allocation2 + $0x5c] sm:$0xf] %vm9230_vm13, %v3361_v31  ;;  %1386 = vrot.lane.b32.xlu2 %v5894_v38, %s6635_s30  ;;  %v4058_v31 = vshll.u32 %v4038_v22, 16  ;;  %v2219_v38 = vrot.slane %v2217_v35, 4  ;;  %v4041_v35 = vld [vmem:[#allocation3 + $0xc] sm:$0x1]  ;;  %v4075_v33 = vor.u32 %v4074_v36, %v4071_v32  ;;  %vm9233_vm13 = vmmov %vm9232_vm3 }
 0x299   : > { %v4078_v34 = vshll.u32 %v4041_v35, 16  ;;  %v2961_v50 = vrot.slane %v2960_v58, 4  ;;  %v6134_v22 = vld [vmem:[%s6703_s29 + $0xd4] sm:$0x1]  ;;  %v4385_v35 = vshll.u32 %v4348_v4, 16 }
 0x29a   : > { %3362 = vrot.lane.b32.xlu0 %v3289_v20, %s6641_s13  ;;  %v8469_v43 = vpop.permute.xlu2 %1380  ;;  %v4060_v24 = vrot.slane %v4058_v31, 5  ;;  %v2221_v56 = vsel %vm6705_vm2, %v2219_v38, %v2220_v23  ;;  %v4044_v4 = vld [vmem:[#allocation3 + $0x18] sm:$0xf] }
 0x29b   : > { %1384 = vrot.lane.b32.xlu1 %v5893_v41, %s6635_s30  ;;  %v2971_v41 = vrot.slane %v2970_v30, 4  ;;  %v4080_v29 = vrot.slane %v4078_v34, 5  ;;  %v3312_v30 = vrot.slane %v6134_v22, 5 }
 0x29c   : > { %v2461_v15 = vpop.permute.xlu0 %2460  ;;  %v4061_v59 = vor.u32 %v4060_v24, %v4057_v44 }
 0x29d   : > { %2535 = vst.msk [vmem:[#allocation2 + $0x58] sm:$0xf] %vm9231_vm10, %v2461_v15  ;;  %v3022_v27 = vpop.permute.xlu1 %3021  ;;  %v2976_v51 = vsel %vm6726_vm5, %v2971_v41, %v2975_v37  ;;  %v4064_v15 = vshll.u32 %v4039_v55, 16  ;;  %v3313_v41 = vsel %vm6705_vm2, %v3311_v25, %v3312_v30  ;;  %vm9234_vm10 = vcmask 130048  }
 0x29e   : > { %3096 = vst.msk [vmem:[#allocation2 + $0x58] sm:$0xf] %vm3073_vm14, %v3022_v27  ;;  %v3673_v27 = vpop.f32.mrf.mxu0  ;;  %v4062_v53 = vrot.slane %v4061_v59, 4  ;;  %v321_v59 = vld [vmem:[%s6703_s29 + $0xb8] sm:$0xf] }
 0x29f   : > { %v3674_v24 = vadd.f32 %v8537_v46, %v3673_v27  ;;  %354 = vst.msk [vmem:[#allocation2 + $0x7c] sm:$0xf] %vm322_vm6, %v321_v59 }
 0x2a0   : > { %2282 = vrot.lane.b32.xlu2 %v2218_v54, %s6638_s10  ;;  %v4076_v54 = vrot.slane %v4075_v33, 4 }
 0x2a2   : > { %1192 = vrot.lane.b32.xlu0 %v1129_v1, %s6636_s8  ;;  %v8485_v13 = vpop.permute.xlu2 %1943  ;;  %v4081_v61 = vsel %vm6726_vm5, %v4076_v54, %v4080_v29  ;;  %v315_v29 = vld [vmem:[%s6703_s29 + $0x94] sm:$0xf] }
 0x2a3   : > { %1947 = vrot.lane.b32.xlu1 %v1884_v60, %s6639_s11  ;;  %v4066_v60 = vrot.slane %v4064_v15, 5  ;;  %348 = vst.msk [vmem:[#allocation2 + $0x64] sm:$0xf] %vm322_vm6, %v315_v29  ;;  %v4203_v29 = vld [vmem:[#allocation3 + $0x10] sm:$0xe] }
 0x2a4   : > { %v3012_v16 = vpop.permute.xlu0 %3011 }
 0x2a5   : > { %3091 = vst.msk [vmem:[#allocation2 + $0x44] sm:$0xf] %vm3073_vm14, %v3012_v16  ;;  %v849_v52 = vpop.permute.xlu1 %848  ;;  %v2966_v16 = vsel %vm6726_vm5, %v2961_v50, %v8489_v14  ;;  %v4067_v17 = vsel %vm6726_vm5, %v4062_v53, %v4066_v60  ;;  %v4201_v14 = vld [vmem:[#allocation3 + $0x8] sm:$0xe]  ;;  %v3734_v50 = vmax.f32 %v3674_v24, 0.0 }
 0x2a6   : > { %916 = vst.msk [vmem:[#allocation2 + $0x74] sm:$0xf] %vm886_vm7, %v849_v52  ;;  %v3672_v52 = vadd.f32 %v8537_v46, %v3671_v9  ;;  %v6240_v38 = vrot.slane %v4201_v14, 9 }
 0x2a8   : > { %2478 = vrot.lane.b32.xlu2 %v6038_v39, %s6640_s12  ;;  %v4376_v39 = vshrl.u32 %v4347_v42, 16  ;;  %v3733_v31 = vmax.f32 %v3672_v52, 0.0  ;;  %v4655_v42 = vld [vmem:[#allocation3 + $0x18] sm:$0xf] }
 0x2a9   : > { %v4684_v10 = vshrl.u32 %v4655_v42, 16  ;;  %v4687_v52 = vshll.u32 %v4655_v42, 16 }
 0x2aa   : > { %1945 = vrot.lane.b32.xlu0 %v1874_v19, %s6639_s11  ;;  %v8508_v11 = vpop.permute.xlu2 %2472  ;;  %v4378_v45 = vrot.slane %v4376_v39, 4  ;;  %v3772_v44 = vsel %vm9234_vm10, %v3733_v31, -inf }
 0x2ab   : > { %2476 = vrot.lane.b32.xlu1 %v6037_v21, %s6640_s12  ;;  %v4202_v21 = vld [vmem:[#allocation3 + $0xc] sm:$0x1]  ;;  %s6646_s12 = smov 96  }
 0x2ac   : > { %v847_v20 = vpop.permute.xlu0 %846  ;;  %v4237_v23 = vrot.slane %v4202_v21, 5  ;;  %v4382_v37 = vor.u32 %v4381_v47, %v4378_v45  ;;  %v4686_v45 = vrot.slane %v4684_v10, 4  ;;  %v4689_v47 = vrot.slane %v4687_v52, 5 }
 0x2ad   : > { %915 = vst.msk [vmem:[#allocation2 + $0x70] sm:$0xf] %vm886_vm7, %v847_v20  ;;  %v3359_v3 = vpop.permute.xlu1 %3358  ;;  %v4296_v20 = vld [vmem:[#allocation3 + $0x8] sm:$0xf] }
 0x2ae   : > { %3433 = vst.msk [vmem:[#allocation2 + $0x58] sm:$0xf] %vm9232_vm3, %v3359_v3  ;;  %vm9235_vm3 = vmmov %vm9234_vm10  ;;  %v4238_v58 = vsel %vm6705_vm2, %v6240_v38, %v4237_v23  ;;  %v4383_v34 = vrot.slane %v4382_v37, 4 }
 0x2af   : > { %vm9237_vm10 = vmmov %vm9235_vm3 }
 0x2b0   : > { %3374 = vrot.lane.b32.xlu2 %v3310_v49, %s6641_s13  ;;  %v4200_v49 = vld [vmem:[#allocation3 + $0x4] sm:$0x1]  ;;  %v3775_v22 = vsel %vm9237_vm10, %v3734_v50, -inf  ;;  %vm9239_vm10 = vcmask 224448  }
 0x2b1   : > { %v4233_v54 = vrot.slane %v4200_v49, 5 }
 0x2b2   : > { %2284 = vrot.lane.b32.xlu0 %v2221_v56, %s6638_s10  ;;  %v8523_v63 = vpop.permute.xlu2 %3035  ;;  %v4346_v56 = vld [vmem:[#allocation3 + $0xc] sm:$0x1]  ;;  %s6645_s10 = smov 64  }
 0x2b3   : > { %3039 = vrot.lane.b32.xlu1 %v2976_v51, %s6642_s14  ;;  %v4368_v51 = vor.u32 %v4367_v28, %v4364_v12  ;;  %v4371_v60 = vshll.u32 %v4346_v56, 16  ;;  %v4604_v12 = vld [vmem:[#allocation3 + $0x10] sm:$0xf]  ;;  %v4506_v28 = vld [vmem:[#allocation3 + $0x8] sm:$0xe] }
 0x2b4   : > { %v3349_v1 = vpop.permute.xlu0 %3348  ;;  %v6247_v59 = vrot.slane %v4506_v28, 9 }
 0x2b5   : > { %3428 = vst.msk [vmem:[#allocation2 + $0x44] sm:$0xf] %vm9233_vm13, %v3349_v1  ;;  %v1189_v57 = vpop.permute.xlu1 %1188  ;;  %v6524_v6 = vld [vmem:[#allocation2 + $0x58] sm:$0xff]  ;;  %vm9236_vm13 = vmmov %vm9235_vm3 }
 0x2b6   : > { %1256 = vst.msk [vmem:[#allocation2 + $0x74] sm:$0xf] %vm1226_vm8, %v1189_v57  ;;  %6234 = vmatmul.msk.bf16.gmra.mxu1 %vm3579_vm0, %v6524_v6  ;;  %v4387_v6 = vrot.slane %v4385_v35, 5  ;;  %v4100_v35 = vshll.u32 %v4044_v4, 16 }
 0x2b8   : > { %4168 = vrot.lane.b32.xlu2 %v4081_v61, %s6639_s11  ;;  %v4369_v61 = vrot.slane %v4368_v51, 4  ;;  %v4102_v42 = vrot.slane %v4100_v35, 5 }
 0x2ba   : > { %3037 = vrot.lane.b32.xlu0 %v2966_v16, %s6642_s14  ;;  %v839_v19 = vpop.permute.xlu2 %838  ;;  %v3676_v18 = vpop.f32.mrf.mxu0  ;;  %v4388_v16 = vsel %vm6726_vm5, %v4383_v34, %v4387_v6  ;;  %s6647_s14 = smov 80  }
 0x2bb   : > { %911 = vst.msk [vmem:[#allocation2 + $0x60] sm:$0xf] %vm886_vm7, %v839_v19  ;;  %4166 = vrot.lane.b32.xlu1 %v4067_v17, %s6639_s11  ;;  %v3677_v48 = vadd.f32 %v8537_v46, %v3676_v18  ;;  %v4653_v17 = vld [vmem:[#allocation3 + $0x10] sm:$0xf]  ;;  %v4509_v18 = vld [vmem:[#allocation3 + $0x14] sm:$0x1] }
 0x2bc   : > { %v1187_v9 = vpop.permute.xlu0 %1186  ;;  %v6521_v32 = vld [vmem:[#allocation2 + $0x40] sm:$0xff]  ;;  %v4670_v25 = vshrl.u32 %v4653_v17, 16  ;;  %v4673_v30 = vshll.u32 %v4653_v17, 16  ;;  %v4045_v17 = vld [vmem:[#allocation3 + $0x1c] sm:$0x1] }
 0x2bd   : > { %1255 = vst.msk [vmem:[#allocation2 + $0x70] sm:$0xf] %vm1226_vm8, %v1187_v9  ;;  %v1942_v36 = vpop.permute.xlu1 %1941  ;;  %v3735_v40 = vmax.f32 %v3677_v48, 0.0  ;;  %6231 = vmatmul.msk.bf16.gmra.mxu0 %vm3579_vm0, %v6521_v32  ;;  %v6248_v48 = vrot.slane %v4508_v8, 9  ;;  %v4544_v32 = vrot.slane %v4509_v18, 5  ;;  %v6241_v18 = vrot.slane %v4203_v29, 9 }
 0x2be   : > { %1449 = vst.msk [vmem:[#allocation2 + $0x70] sm:$0xf] %vm1420_vm9, %v8469_v43  ;;  %v4199_v43 = vld [vmem:[#allocation3] sm:$0xe]  ;;  %v4672_v38 = vrot.slane %v4670_v25, 4  ;;  %v4675_v23 = vrot.slane %v4673_v30, 5 }
 0x2bf   : > { %2010 = vst.msk [vmem:[#allocation2 + $0x70] sm:$0xf] %vm1981_vm11, %v1942_v36  ;;  %v3773_v3 = vsel %vm9235_vm3, %v3735_v40, -inf  ;;  %v6239_v27 = vrot.slane %v4199_v43, 9  ;;  %v4656_v36 = vld [vmem:[#allocation3 + $0x1c] sm:$0x1]  ;;  %v4690_v40 = vor.u32 %v4689_v47, %v4686_v45  ;;  %v4545_v43 = vsel %vm6705_vm2, %v6248_v48, %v4544_v32 }
 0x2c0   : > { %4312 = vrot.lane.b32.xlu2 %v4296_v20, %s6644_s9  ;;  %v3774_v55 = vmax.f32 %v3772_v44, %v3773_v3  ;;  %v4507_v20 = vld [vmem:[#allocation3 + $0xc] sm:$0x1]  ;;  %v4693_v37 = vshll.u32 %v4656_v36, 16  ;;  %v4654_v44 = vld [vmem:[#allocation3 + $0x14] sm:$0x1]  ;;  %v4676_v49 = vor.u32 %v4675_v23, %v4672_v38  ;;  %v4106_v47 = vshll.u32 %v4045_v17, 16 }
 0x2c1   : > { %v4234_v39 = vsel %vm6705_vm2, %v6239_v27, %v4233_v54  ;;  %v4679_v34 = vshll.u32 %v4654_v44, 16  ;;  %v4043_v36 = vld [vmem:[#allocation3 + $0x14] sm:$0x1] }
 0x2c2   : > { %3376 = vrot.lane.b32.xlu0 %v3313_v41, %s6641_s13  ;;  %v8562_v33 = vpop.permute.xlu2 %1180  ;;  %3808 = vst.msk [vmem:[#allocation6 + $0x30] sm:$0xff] %vm9236_vm13, %v3774_v55  ;;  %v3678_v15 = vpop.f32.mrf.mxu0  ;;  %vm9238_vm13 = vmmov %vm9235_vm3  ;;  %v4297_v41 = vld [vmem:[#allocation3 + $0x10] sm:$0xf]  ;;  %v4097_v55 = vshrl.u32 %v4044_v4, 16  ;;  %v4695_v50 = vrot.slane %v4693_v37, 5  ;;  %v4108_v4 = vrot.slane %v4106_v47, 5 }
 0x2c3   : > { %4265 = vrot.lane.b32.xlu1 %v4238_v58, %s6641_s13  ;;  %v3679_v53 = vadd.f32 %v8537_v46, %v3678_v15  ;;  %v4691_v58 = vrot.slane %v4690_v40, 4  ;;  %v4540_v15 = vrot.slane %v4507_v20, 5  ;;  %v4605_v20 = vld [vmem:[#allocation3 + $0x18] sm:$0xf] }
 0x2c4   : > { %v1383_v1 = vpop.permute.xlu0 %1382 }
 0x2c5   : > { %1450 = vst.msk [vmem:[#allocation2 + $0x74] sm:$0xf] %vm1420_vm9, %v1383_v1  ;;  %v2281_v57 = vpop.permute.xlu1 %2280  ;;  %v3736_v5 = vmax.f32 %v3679_v53, 0.0  ;;  %v4042_v1 = vld [vmem:[#allocation3 + $0x10] sm:$0xf]  ;;  %v4677_v53 = vrot.slane %v4676_v49, 4  ;;  %v4696_v6 = vsel %vm6726_vm5, %v4691_v58, %v4695_v50 }
 0x2c6   : > { %2011 = vst.msk [vmem:[#allocation2 + $0x74] sm:$0xf] %vm1981_vm11, %v8485_v13  ;;  %v4373_v13 = vrot.slane %v4371_v60, 5  ;;  %v4099_v60 = vrot.slane %v4097_v55, 4 }
 0x2c7   : > { %2348 = vst.msk [vmem:[#allocation2 + $0x74] sm:$0xf] %vm2318_vm12, %v2281_v57  ;;  %v3776_v7 = vsel %vm9235_vm3, %v3736_v5, -inf  ;;  %vm9240_vm3 = vmmov %vm9239_vm10  ;;  %v4681_v5 = vrot.slane %v4679_v34, 5  ;;  %v4510_v34 = vld [vmem:[#allocation3 + $0x18] sm:$0xe] }
 0x2c8   : > { %4475 = vrot.lane.b32.xlu2 %v4388_v16, %s6645_s10  ;;  %v3777_v19 = vmax.f32 %v3775_v22, %v3776_v7  ;;  %v4374_v21 = vsel %vm6726_vm5, %v4369_v61, %v4373_v13  ;;  %v4204_v61 = vld [vmem:[#allocation3 + $0x14] sm:$0x1]  ;;  %v4083_v16 = vshrl.u32 %v4042_v1, 16  ;;  %v4103_v13 = vor.u32 %v4102_v42, %v4099_v60  ;;  %v4298_v42 = vld [vmem:[#allocation3 + $0x18] sm:$0xf] }
 0x2c9   : > { %v4682_v7 = vsel %vm6726_vm5, %v4677_v53, %v4681_v5  ;;  %v4241_v25 = vrot.slane %v4204_v61, 5  ;;  %v6249_v29 = vrot.slane %v4510_v34, 9 }
 0x2ca   : > { %4263 = vrot.lane.b32.xlu0 %v4234_v39, %s6641_s13  ;;  %v8585_v14 = vpop.permute.xlu2 %1933  ;;  %3809 = vst.msk [vmem:[#allocation6 + $0x38] sm:$0xff] %vm9238_vm13, %v3777_v19  ;;  %vm9241_vm13 = vcmask 290048   ;;  %v4086_v39 = vshll.u32 %v4042_v1, 16  ;;  %v3992_v19 = vld [vmem:[#allocation3 + $0x20] sm:$0xf]  ;;  %v4104_v23 = vrot.slane %v4103_v13, 4 }
 0x2cb   : > { %4473 = vrot.lane.b32.xlu1 %v4374_v21, %s6645_s10  ;;  %v3995_v21 = vld [vmem:[#allocation3 + $0x24] sm:$0x1]  ;;  %v4242_v40 = vsel %vm6705_vm2, %v6241_v18, %v4241_v25  ;;  %v4350_v18 = vld [vmem:[#allocation3 + $0x1c] sm:$0x1] }
 0x2cc   : > { %v2279_v31 = vpop.permute.xlu0 %2278  ;;  %v4109_v44 = vsel %vm6726_vm5, %v4104_v23, %v4108_v4 }
 0x2cd   : > { %2347 = vst.msk [vmem:[#allocation2 + $0x70] sm:$0xf] %vm2318_vm12, %v2279_v31  ;;  %v3034_v9 = vpop.permute.xlu1 %3033  ;;  %v4085_v31 = vrot.slane %v4083_v16, 4 }
 0x2ce   : > { %2541 = vst.msk [vmem:[#allocation2 + $0x70] sm:$0xf] %vm9239_vm10, %v8508_v11  ;;  %vm9242_vm10 = vmmov %vm9241_vm13 }
 0x2cf   : > { %3102 = vst.msk [vmem:[#allocation2 + $0x70] sm:$0xf] %vm3073_vm14, %v3034_v9  ;;  %v4088_v9 = vrot.slane %v4086_v39, 5 }
 0x2d0   : > { %4620 = vrot.lane.b32.xlu2 %v4604_v12, %s6646_s12  ;;  %v320_v12 = vld [vmem:[%s6703_s29 + $0xb4] sm:$0xf] }
 0x2d1   : > { %v3824_v24 = vld [vmem:[#allocation6 + $0x30] ss:$2 sm:$0xff]  ;;  %v3840_v3 = vld [vmem:[#allocation6 + $0x31] ss:$2 sm:$0xff]  ;;  %v4089_v28 = vor.u32 %v4088_v9, %v4085_v31  ;;  %353 = vst.msk [vmem:[#allocation2 + $0x78] sm:$0xf] %vm322_vm6, %v320_v12  ;;  %vm9243_vm6 = vmmov %vm9240_vm3 }
 0x2d2   : > { %4314 = vrot.lane.b32.xlu0 %v4297_v41, %s6644_s9  ;;  %v8597_v11 = vpop.permute.xlu2 %2272  ;;  %v3852_v56 = vmax.f32 %v3824_v24, %v3840_v3  ;;  %v4092_v41 = vshll.u32 %v4043_v36, 16 }
 0x2d3   : > { %4572 = vrot.lane.b32.xlu1 %v4545_v43, %s6647_s14  ;;  %v4090_v43 = vrot.slane %v4089_v28, 4 }
 0x2d4   : > { %v2475_v51 = vpop.permute.xlu0 %2474  ;;  %v3882_v27 = vpack.c.bf16 %v3852_v56, %v3852_v56  ;;  %v4094_v55 = vrot.slane %v4092_v41, 5  ;;  %v4349_v56 = vld [vmem:[#allocation3 + $0x18] sm:$0xf] }
 0x2d5   : > { %2542 = vst.msk [vmem:[#allocation2 + $0x74] sm:$0xf] %vm9240_vm3, %v2475_v51  ;;  %v3373_v54 = vpop.permute.xlu1 %3372  ;;  %v4393_v53 = vshll.u32 %v4349_v56, 16 }
 0x2d6   : > { %3103 = vst.msk [vmem:[#allocation2 + $0x74] sm:$0xf] %vm3073_vm14, %v8523_v63  ;;  %v3912_v57 = vshrl.u32 %v3882_v27, 16  ;;  %v3915_v52 = vshll.u32 %v3882_v27, 16  ;;  %v4541_v63 = vsel %vm6705_vm2, %v6247_v59, %v4540_v15  ;;  %v4095_v15 = vsel %vm6726_vm5, %v4090_v43, %v4094_v55  ;;  %v4511_v27 = vld [vmem:[#allocation3 + $0x1c] sm:$0x1] }
 0x2d7   : > { %3440 = vst.msk [vmem:[#allocation2 + $0x74] sm:$0xf] %vm9241_vm13, %v3373_v54  ;;  %v4548_v5 = vrot.slane %v4511_v27, 5  ;;  %vm9244_vm13 = vmmov %vm9242_vm10 }
 0x2d8   : > { %4783 = vrot.lane.b32.xlu2 %v4696_v6, %s6648_s15  ;;  %v3914_v10 = vrot.slane %v3912_v57, 7  ;;  %v4205_v57 = vld [vmem:[#allocation3 + $0x18] sm:$0xe]  ;;  %v4206_v6 = vld [vmem:[#allocation3 + $0x1c] sm:$0x1] }
 0x2da   : > { %4570 = vrot.lane.b32.xlu0 %v4541_v63, %s6647_s14  ;;  %v8612_v22 = vpop.permute.xlu2 %3025  ;;  %v3918_v8 = vrot.slane %v3914_v10, 4  ;;  %v3917_v30 = vor.u32 %v3915_v52, %v3914_v10  ;;  %v6242_v52 = vrot.slane %v4205_v57, 9  ;;  %v4245_v63 = vrot.slane %v4206_v6, 5  ;;  %v3686_v57 = vpop.f32.mrf.mxu1 }
 0x2db   : > { %4781 = vrot.lane.b32.xlu1 %v4682_v7, %s6648_s15  ;;  %v4395_v7 = vrot.slane %v4393_v53, 5 }
 0x2dc   : > { %v3371_v45 = vpop.permute.xlu0 %3370  ;;  %v3993_v32 = vsel %vm7670_vm4, %v3917_v30, %v3992_v19  ;;  %v3996_v38 = vsel %vm7700_vm15, %v3918_v8, %v3995_v21  ;;  %v4549_v19 = vsel %vm6705_vm2, %v6249_v29, %v4548_v5 }
 0x2dd   : > { %3439 = vst.msk [vmem:[#allocation2 + $0x70] sm:$0xf] %vm9242_vm10, %v3371_v45  ;;  %v1179_v48 = vpop.permute.xlu1 %1178  ;;  %v4246_v45 = vsel %vm6705_vm2, %v6242_v52, %v4245_v63 }
 0x2de   : > { %1251 = vst.msk [vmem:[#allocation2 + $0x60] sm:$0xf] %vm1226_vm8, %v1179_v48 }
 0x2df   : > { %3994 = vst [vmem:[#allocation3 + $0x20] sm:$0xf] %v3993_v32  ;;  %v4399_v32 = vshll.u32 %v4350_v18, 16 }
 0x2e0   : > { %4267 = vrot.lane.b32.xlu2 %v4242_v40, %s6641_s13  ;;  %3997 = vst [vmem:[#allocation3 + $0x24] sm:$0x1] %v3996_v38 }
 0x2e1   : > { %v4401_v4 = vrot.slane %v4399_v32, 5 }
 0x2e2   : > { %4622 = vrot.lane.b32.xlu0 %v4605_v20, %s6646_s12  ;;  %v853_v37 = vpop.permute.xlu2 %852 }
 0x2e3   : > { %918 = vst.msk [vmem:[#allocation2 + $0x7c] sm:$0xf] %vm886_vm7, %v853_v37  ;;  %4172 = vrot.lane.b32.xlu1 %v4109_v44, %s6639_s11 }
 0x2e4   : > { %v841_v24 = vpop.permute.xlu0 %840  ;;  %v6527_v3 = vld [vmem:[#allocation2 + $0x70] sm:$0xff] }
 0x2e5   : > { %912 = vst.msk [vmem:[#allocation2 + $0x64] sm:$0xf] %vm886_vm7, %v841_v24  ;;  %v1375_v49 = vpop.permute.xlu1 %1374  ;;  %6237 = vmatmul.msk.bf16.gmra.mxu3 %vm3579_vm0, %v6527_v3 }
 0x2e6   : > { %1252 = vst.msk [vmem:[#allocation2 + $0x64] sm:$0xf] %vm1226_vm8, %v8562_v33  ;;  %v4351_v35 = vld [vmem:[#allocation3 + $0x20] sm:$0xf]  ;;  %v4390_v33 = vshrl.u32 %v4349_v56, 16 }
 0x2e7   : > { %1446 = vst.msk [vmem:[#allocation2 + $0x64] sm:$0xf] %vm1420_vm9, %v1375_v49  ;;  %v4299_v58 = vld [vmem:[#allocation3 + $0x20] sm:$0xf]  ;;  %v4404_v51 = vshrl.u32 %v4351_v35, 16  ;;  %v4407_v59 = vshll.u32 %v4351_v35, 16 }
 0x2e8   : > { %4318 = vrot.lane.b32.xlu2 %v4299_v58, %s6644_s9  ;;  %v4352_v54 = vld [vmem:[#allocation3 + $0x24] sm:$0x1]  ;;  %v4392_v17 = vrot.slane %v4390_v33, 4  ;;  %v4818_v21 = vld [vmem:[#allocation3 + $0x20] sm:$0xe] }
 0x2e9   : > { %v4406_v50 = vrot.slane %v4404_v51, 4  ;;  %v4409_v1 = vrot.slane %v4407_v59, 5  ;;  %v4413_v39 = vshll.u32 %v4352_v54, 16  ;;  %v4819_v25 = vld [vmem:[#allocation3 + $0x24] sm:$0x1]  ;;  %v6257_v30 = vrot.slane %v4818_v21, 9 }
 0x2ea   : > { %4170 = vrot.lane.b32.xlu0 %v4095_v15, %s6639_s11  ;;  %v8642_v60 = vpop.permute.xlu2 %1190  ;;  %v4396_v47 = vor.u32 %v4395_v7, %v4392_v17  ;;  %v4856_v31 = vrot.slane %v4819_v25, 5  ;;  %v4026_v48 = vld [vmem:[#allocation3 + $0x20] sm:$0xf]  ;;  %v4513_v3 = vld [vmem:[#allocation3 + $0x24] sm:$0x1] }
 0x2eb   : > { %4316 = vrot.lane.b32.xlu1 %v4298_v42, %s6644_s9  ;;  %v4410_v61 = vor.u32 %v4409_v1, %v4406_v50  ;;  %v4415_v8 = vrot.slane %v4413_v39, 5  ;;  %4034 = vst.msk [vmem:[#allocation4 + $0x20] sm:$0xf] %vm3857_vm1, %v4026_v48  ;;  %v4657_v40 = vld [vmem:[#allocation3 + $0x20] sm:$0xf]  ;;  %v4552_v55 = vrot.slane %v4513_v3, 5 }
 0x2ec   : > { %v1373_v16 = vpop.permute.xlu0 %1372  ;;  %v4857_v36 = vsel %vm6705_vm2, %v6257_v30, %v4856_v31  ;;  %v4397_v12 = vrot.slane %v4396_v47, 4  ;;  %v4698_v20 = vshrl.u32 %v4657_v40, 16  ;;  %v4701_v41 = vshll.u32 %v4657_v40, 16  ;;  %v4606_v44 = vld [vmem:[#allocation3 + $0x20] sm:$0xf]  ;;  %v6546_v30 = vld [vmem:[%s9186_s3 + $0x38] sm:$0xff] }
 0x2ed   : > { %1445 = vst.msk [vmem:[#allocation2 + $0x60] sm:$0xf] %vm1420_vm9, %v1373_v16  ;;  %v2271_v10 = vpop.permute.xlu1 %2270  ;;  %v4411_v13 = vrot.slane %v4410_v61, 4  ;;  %v4512_v24 = vld [vmem:[#allocation3 + $0x20] sm:$0xe]  ;;  %v3688_v16 = vpop.f32.mrf.mxu1  ;;  %5026 = vmatpush.bf16.msrb.mxu1 %v6546_v30  ;;  %v6545_v40 = vld [vmem:[%s9186_s3 + $0x30] sm:$0xff] }
 0x2ee   : > { %2006 = vst.msk [vmem:[#allocation2 + $0x60] sm:$0xf] %vm1981_vm11, %v8585_v14  ;;  %v4402_v28 = vsel %vm6726_vm5, %v4397_v12, %v4401_v4  ;;  %v6250_v49 = vrot.slane %v4512_v24, 9  ;;  %v4700_v35 = vrot.slane %v4698_v20, 4  ;;  %v4703_v56 = vrot.slane %v4701_v41, 5 }
 0x2ef   : > { %2343 = vst.msk [vmem:[#allocation2 + $0x60] sm:$0xf] %vm2318_vm12, %v2271_v10  ;;  %v4416_v9 = vsel %vm6726_vm5, %v4411_v13, %v4415_v8  ;;  %v4658_v58 = vld [vmem:[#allocation3 + $0x24] sm:$0x1]  ;;  %v4022_v42 = vld [vmem:[#allocation3] sm:$0xf] }
 0x2f0   : > { %4574 = vrot.lane.b32.xlu2 %v4549_v19, %s6647_s14  ;;  %4888 = vst.msk [vmem:[#allocation4 + $0x14] sm:$0xf] %vm3857_vm1, %v4857_v36  ;;  %v4553_v51 = vsel %vm6705_vm2, %v6250_v49, %v4552_v55  ;;  %v4704_v59 = vor.u32 %v4703_v56, %v4700_v35  ;;  %v4707_v34 = vshll.u32 %v4658_v58, 16  ;;  %v3689_v35 = vadd.f32 %v8537_v46, %v3688_v16  ;;  %v4007_v30 = vld [vmem:[#allocation3 + $0x34] sm:$0x1] }
 0x2f1   : > { %4030 = vst.msk [vmem:[#allocation4] sm:$0xf] %vm3857_vm1, %v4022_v42  ;;  %5027 = vmatpush.bf16.msrb.mxu1 %v6545_v40  ;;  %v3998_v40 = vld [vmem:[#allocation3 + $0x28] sm:$0xf] }
 0x2f2   : > { %4269 = vrot.lane.b32.xlu0 %v4246_v45, %s6641_s13  ;;  %v8655_v14 = vpop.permute.xlu2 %1386  ;;  %v4705_v50 = vrot.slane %v4704_v59, 4 }
 0x2f3   : > { %4479 = vrot.lane.b32.xlu1 %v4416_v9, %s6645_s10  ;;  %v3687_v9 = vadd.f32 %v8537_v46, %v3686_v57 }
 0x2f4   : > { %v1936_v38 = vpop.permute.xlu0 %1935 }
 0x2f5   : > { %2007 = vst.msk [vmem:[#allocation2 + $0x64] sm:$0xf] %vm1981_vm11, %v1936_v38  ;;  %v2467_v23 = vpop.permute.xlu1 %2466  ;;  %v3691_v52 = vpop.f32.mrf.mxu1  ;;  %v3739_v4 = vmax.f32 %v3687_v9, 0.0 }
 0x2f6   : > { %2344 = vst.msk [vmem:[#allocation2 + $0x64] sm:$0xf] %vm2318_vm12, %v8597_v11  ;;  %v3692_v21 = vadd.f32 %v8537_v46, %v3691_v52 }
 0x2f7   : > { %2538 = vst.msk [vmem:[#allocation2 + $0x64] sm:$0xf] %vm9243_vm6, %v2467_v23  ;;  %vm9246_vm6 = vmmov %vm9240_vm3 }
 0x2f8   : > { %v3741_v45 = vmax.f32 %v3692_v21, 0.0 }
 0x2fa   : > { %4477 = vrot.lane.b32.xlu0 %v4402_v28, %s6645_s10  ;;  %v2283_v37 = vpop.permute.xlu2 %2282 }
 0x2fb   : > { %4624 = vrot.lane.b32.xlu1 %v4606_v44, %s6646_s12 }
 0x2fc   : > { %v2465_v43 = vpop.permute.xlu0 %2464 }
 0x2fd   : > { %2537 = vst.msk [vmem:[#allocation2 + $0x60] sm:$0xf] %vm9240_vm3, %v2465_v43  ;;  %v851_v11 = vpop.permute.xlu1 %850  ;;  %v3693_v7 = vpop.f32.mrf.mxu1  ;;  %v6544_v43 = vld [vmem:[%s9186_s3 + $0x28] sm:$0xff] }
 0x2fe   : > { %3098 = vst.msk [vmem:[#allocation2 + $0x60] sm:$0xf] %vm3073_vm14, %v8612_v22  ;;  %v4709_v22 = vrot.slane %v4707_v34, 5  ;;  %v3694_v32 = vadd.f32 %v8537_v46, %v3693_v7  ;;  %5028 = vmatpush.bf16.msrb.mxu1 %v6544_v43  ;;  %v6539_v7 = vld [vmem:[%s9186_s3] sm:$0xff] }
 0x2ff   : > { %917 = vst.msk [vmem:[#allocation2 + $0x78] sm:$0xf] %vm886_vm7, %v851_v11  ;;  %vm9245_vm7 = vmmov %vm9242_vm10  ;;  %vm4190_vm10 = vcmask 257152  }
 0x300   : > { %1257 = vst.msk [vmem:[#allocation2 + $0x78] sm:$0xf] %vm1226_vm8, %v8642_v60  ;;  %v4710_v1 = vsel %vm6726_vm5, %v4705_v50, %v4709_v22  ;;  %v3742_v44 = vmax.f32 %v3694_v32, 0.0 }
 0x302   : > { %4576 = vrot.lane.b32.xlu0 %v4553_v51, %s6647_s14  ;;  %v2479_v15 = vpop.permute.xlu2 %2478 }
 0x304   : > { %v3028_v27 = vpop.permute.xlu0 %3027 }
 0x305   : > { %3099 = vst.msk [vmem:[#allocation2 + $0x64] sm:$0xf] %vm3073_vm14, %v3028_v27  ;;  %v3365_v54 = vpop.permute.xlu1 %3364 }
 0x306   : > { %3436 = vst.msk [vmem:[#allocation2 + $0x64] sm:$0xf] %vm9244_vm13, %v3365_v54  ;;  %vm4336_vm13 = vcmask 519552   ;;  %v3740_v54 = vmax.f32 %v3689_v35, 0.0 }
 0x30a   : > { %4785 = vrot.lane.b32.xlu0 %v4710_v1, %s6648_s15  ;;  %v3375_v33 = vpop.permute.xlu2 %3374 }
 0x30c   : > { %v3363_v53 = vpop.permute.xlu0 %3362 }
 0x30d   : > { %3435 = vst.msk [vmem:[#allocation2 + $0x60] sm:$0xf] %vm9245_vm7, %v3363_v53  ;;  %v1385_v60 = vpop.permute.xlu1 %1384  ;;  %v6542_v53 = vld [vmem:[%s9186_s3 + $0x18] sm:$0xff] }
 0x30e   : > { %1451 = vst.msk [vmem:[#allocation2 + $0x78] sm:$0xf] %vm1420_vm9, %v1385_v60 }
 0x312   : > { %v4169_v6 = vpop.permute.xlu2 %4168 }
 0x313   : > { %4192 = vst.msk [vmem:[#allocation4 + $0x8] sm:$0xf] %vm4190_vm10, %v4169_v6  ;;  %v6541_v6 = vld [vmem:[%s9186_s3 + $0x10] sm:$0xff] }
 0x314   : > { %v1193_v29 = vpop.permute.xlu0 %1192  ;;  %v6525_v5 = vld [vmem:[#allocation2 + $0x60] sm:$0xff] }
 0x315   : > { %1258 = vst.msk [vmem:[#allocation2 + $0x7c] sm:$0xf] %vm1226_vm8, %v1193_v29  ;;  %v1948_v61 = vpop.permute.xlu1 %1947  ;;  %6235 = vmatmul.msk.bf16.gmra.mxu1 %vm3579_vm0, %v6525_v5  ;;  %vm9247_vm8 = vmmov %vm9240_vm3 }
 0x316   : > { %1452 = vst.msk [vmem:[#allocation2 + $0x7c] sm:$0xf] %vm1420_vm9, %v8655_v14  ;;  %vm9248_vm9 = vmmov %vm9245_vm7 }
 0x317   : > { %2013 = vst.msk [vmem:[#allocation2 + $0x7c] sm:$0xf] %vm1981_vm11, %v1948_v61 }
 0x31a   : > { %v4313_v8 = vpop.permute.xlu2 %4312 }
 0x31c   : > { %v1946_v39 = vpop.permute.xlu0 %1945 }
 0x31d   : > { %2012 = vst.msk [vmem:[#allocation2 + $0x78] sm:$0xf] %vm1981_vm11, %v1946_v39  ;;  %v2477_v10 = vpop.permute.xlu1 %2476  ;;  %vm4287_vm11 = vcmask 388352  }
 0x31e   : > { %2349 = vst.msk [vmem:[#allocation2 + $0x78] sm:$0xf] %vm2318_vm12, %v2283_v37 }
 0x31f   : > { %2543 = vst.msk [vmem:[#allocation2 + $0x78] sm:$0xf] %vm9246_vm6, %v2477_v10  ;;  %vm9196_vm6 = vcmask 650752   ;;  %v6540_v10 = vld [vmem:[%s9186_s3 + $0x8] sm:$0xff] }
 0x322   : > { %v4476_v23 = vpop.permute.xlu2 %4475 }
 0x324   : > { %v2285_v63 = vpop.permute.xlu0 %2284 }
 0x325   : > { %2350 = vst.msk [vmem:[#allocation2 + $0x7c] sm:$0xf] %vm2318_vm12, %v2285_v63  ;;  %v3040_v17 = vpop.permute.xlu1 %3039  ;;  %vm9249_vm12 = vmmov %vm9245_vm7 }
 0x326   : > { %2544 = vst.msk [vmem:[#allocation2 + $0x7c] sm:$0xf] %vm9247_vm8, %v2479_v15  ;;  %v6543_v15 = vld [vmem:[%s9186_s3 + $0x20] sm:$0xff] }
 0x327   : > { %3105 = vst.msk [vmem:[#allocation2 + $0x7c] sm:$0xf] %vm3073_vm14, %v3040_v17  ;;  %5029 = vmatpush.bf16.msrb.mxu1 %v6543_v15 }
 0x32a   : > { %v4621_v1 = vpop.permute.xlu2 %4620 }
 0x32b   : > { %5030 = vmatpush.bf16.msrb.mxu1 %v6542_v53 }
 0x32c   : > { %v3038_v13 = vpop.permute.xlu0 %3037 }
 0x32d   : > { %3104 = vst.msk [vmem:[#allocation2 + $0x78] sm:$0xf] %vm3073_vm14, %v3038_v13  ;;  %v4167_v19 = vpop.permute.xlu1 %4166  ;;  %vm9250_vm14 = vcmask 130048  }
 0x32e   : > { %3441 = vst.msk [vmem:[#allocation2 + $0x78] sm:$0xf] %vm9248_vm9, %v3375_v33  ;;  %v3784_v48 = vsel %vm9250_vm14, %v3741_v45, -inf  ;;  %vm9251_vm3 = vmmov %vm9250_vm14 }
 0x32f   : > { %4191 = vst.msk [vmem:[#allocation4] sm:$0xf] %vm4190_vm10, %v4167_v19  ;;  %vm9252_vm7 = vmmov %vm9251_vm3  ;;  %5031 = vmatpush.bf16.msrb.mxu1 %v6541_v6 }
 0x330   : > { %vm9253_vm8 = vmmov %vm9251_vm3 }
 0x331   : > { %v3779_v55 = vsel %vm9253_vm8, %v3739_v4, -inf  ;;  %vm9254_vm9 = vmmov %vm9251_vm3 }
 0x332   : > { %vm9256_vm14 = vmmov %vm9251_vm3  ;;  %v4784_v63 = vpop.permute.xlu2 %4783 }
 0x333   : > { %v3696_v25 = vpop.f32.mrf.mxu1  ;;  %5032 = vmatpush.bf16.msrb.mxu1 %v6540_v10 }
 0x334   : > { %v3377_v18 = vpop.permute.xlu0 %3376  ;;  %v3697_v47 = vadd.f32 %v8537_v46, %v3696_v25  ;;  %v4004_v25 = vld [vmem:[#allocation3 + $0x30] sm:$0xf] }
 0x335   : > { %3442 = vst.msk [vmem:[#allocation2 + $0x7c] sm:$0xf] %vm9249_vm12, %v3377_v18  ;;  %v4266_v31 = vpop.permute.xlu1 %4265  ;;  %vm9255_vm12 = vmmov %vm9251_vm3 }
 0x336   : > { %4289 = vst.msk [vmem:[#allocation4 + $0x8] sm:$0xf] %vm4287_vm11, %v4266_v31  ;;  %v3743_v14 = vmax.f32 %v3697_v47, 0.0  ;;  %v3787_v58 = vsel %vm9255_vm12, %v3742_v44, -inf }
 0x337   : > { %5033 = vmatpush.bf16.msrb.mxu1 %v6539_v7 }
 0x338   : > { %v3785_v36 = vsel %vm9251_vm3, %v3743_v14, -inf }
 0x339   : > { %v3786_v38 = vmax.f32 %v3784_v48, %v3785_v36 }
 0x33a   : > { %v3681_v12 = vpop.f32.mrf.mxu0 }
 0x33b   : > { %3812 = vst.msk [vmem:[#allocation6 + $0x50] sm:$0xff] %vm9252_vm7, %v3786_v38  ;;  %v3682_v20 = vadd.f32 %v8537_v46, %v3681_v12  ;;  %v3698_v41 = vpop.f32.mrf.mxu1  ;;  %vm9195_vm7 = vcmask 781952   ;;  %v4268_v38 = vpop.permute.xlu2 %4267 }
 0x33c   : > { %v4264_v28 = vpop.permute.xlu0 %4263  ;;  %v6528_v37 = vld [vmem:[#allocation2 + $0x78] sm:$0xff]  ;;  %v3699_v24 = vadd.f32 %v8537_v46, %v3698_v41  ;;  %v4001_v41 = vld [vmem:[#allocation3 + $0x2c] sm:$0x1] }
 0x33d   : > { %4288 = vst.msk [vmem:[#allocation4] sm:$0xf] %vm4287_vm11, %v4264_v28  ;;  %v4474_v3 = vpop.permute.xlu1 %4473  ;;  %v3737_v11 = vmax.f32 %v3682_v20, 0.0  ;;  %6238 = vmatmul.msk.bf16.gmra.mxu3 %vm3579_vm0, %v6528_v37  ;;  %vm9257_vm0 = vmmov %vm9251_vm3  ;;  %v4046_v20 = vld [vmem:[#allocation3 + $0x20] sm:$0xf] }
 0x33e   : > { %4337 = vst.msk [vmem:[#allocation4] sm:$0xf] %vm4336_vm13, %v4313_v8  ;;  %v3744_v49 = vmax.f32 %v3699_v24, 0.0  ;;  %vm9258_vm3 = vmmov %vm9257_vm0 }
 0x33f   : > { %4498 = vst.msk [vmem:[#allocation4] sm:$0xf] %vm9196_vm6, %v4474_v3  ;;  %v3778_v56 = vsel %vm9254_vm9, %v3737_v11, -inf  ;;  %vm9259_vm8 = vmmov %vm9257_vm0 }
 0x340   : > { %v3780_v51 = vmax.f32 %v3778_v56, %v3779_v55  ;;  %v3788_v59 = vsel %vm9256_vm14, %v3744_v49, -inf  ;;  %v3782_v42 = vsel %vm9259_vm8, %v3740_v54, -inf  ;;  %vm9260_vm9 = vmmov %vm9257_vm0  ;;  %vm4644_vm14 = vcmask 913152  }
 0x341   : > { %v3789_v34 = vmax.f32 %v3787_v58, %v3788_v59  ;;  %vm9261_vm12 = vmmov %vm9257_vm0  ;;  %v4111_v49 = vshrl.u32 %v4046_v20, 16  ;;  %v4114_v55 = vshll.u32 %v4046_v20, 16  ;;  %v4047_v59 = vld [vmem:[#allocation3 + $0x24] sm:$0x1] }
 0x342   : > { %3810 = vst.msk [vmem:[#allocation6 + $0x40] sm:$0xff] %vm9257_vm0, %v3780_v51  ;;  %v3683_v27 = vpop.f32.mrf.mxu0  ;;  %vm4805_vm0 = vcmask 1044352   ;;  %v4120_v54 = vshll.u32 %v4047_v59, 16  ;;  %vm9262_vm8 = vmmov %vm9258_vm3 }
 0x343   : > { %3813 = vst.msk [vmem:[#allocation6 + $0x58] sm:$0xff] %vm9258_vm3, %v3789_v34  ;;  %v3684_v50 = vadd.f32 %v8537_v46, %v3683_v27  ;;  %v4113_v56 = vrot.slane %v4111_v49, 4  ;;  %v4116_v58 = vrot.slane %v4114_v55, 5  ;;  %v4319_v51 = vpop.permute.xlu2 %4318 }
 0x344   : > { %v4315_v22 = vpop.permute.xlu0 %4314 }
 0x345   : > { %4338 = vst.msk [vmem:[#allocation4 + $0x8] sm:$0xf] %vm4336_vm13, %v4315_v22  ;;  %v4573_v33 = vpop.permute.xlu1 %4572  ;;  %v3738_v60 = vmax.f32 %v3684_v50, 0.0  ;;  %v4117_v27 = vor.u32 %v4116_v58, %v4113_v56 }
 0x346   : > { %4499 = vst.msk [vmem:[#allocation4 + $0x8] sm:$0xf] %vm9196_vm6, %v4476_v23 }
 0x347   : > { %4596 = vst.msk [vmem:[#allocation4 + $0x8] sm:$0xf] %vm9195_vm7, %v4573_v33  ;;  %v3781_v46 = vsel %vm9260_vm9, %v3738_v60, -inf  ;;  %vm9263_vm9 = vmmov %vm9258_vm3 }
 0x348   : > { %v3783_v57 = vmax.f32 %v3781_v46, %v3782_v42 }
 0x34a   : > { %v3828_v29 = vld [vmem:[#allocation6 + $0x50] ss:$2 sm:$0xff]  ;;  %v3844_v5 = vld [vmem:[#allocation6 + $0x51] ss:$2 sm:$0xff]  ;;  %3811 = vst.msk [vmem:[#allocation6 + $0x48] sm:$0xff] %vm9261_vm12, %v3783_v57  ;;  %vm9264_vm12 = vmmov %vm9258_vm3 }
 0x34b   : > { %v3854_v61 = vmax.f32 %v3828_v29, %v3844_v5  ;;  %v4118_v29 = vrot.slane %v4117_v27, 4 }
 0x34c   : > { %v4571_v16 = vpop.permute.xlu0 %4570 }
 0x34d   : > { %4595 = vst.msk [vmem:[#allocation4] sm:$0xf] %vm9195_vm7, %v4571_v16  ;;  %v4782_v39 = vpop.permute.xlu1 %4781  ;;  %v3884_v52 = vpack.c.bf16 %v3854_v61, %v3854_v61 }
 0x34e   : > { %4645 = vst.msk [vmem:[#allocation4] sm:$0xf] %vm4644_vm14, %v4621_v1 }
 0x34f   : > { %4806 = vst.msk [vmem:[#allocation4] sm:$0xf] %vm4805_vm0, %v4782_v39  ;;  %v3928_v17 = vshrl.u32 %v3884_v52, 16  ;;  %v3931_v19 = vshll.u32 %v3884_v52, 16 }
 0x351   : > { %v3930_v13 = vrot.slane %v3928_v17, 7  ;;  %v3826_v21 = vld [vmem:[#allocation6 + $0x40] ss:$2 sm:$0xff]  ;;  %v3842_v8 = vld [vmem:[#allocation6 + $0x41] ss:$2 sm:$0xff] }
 0x352   : > { %v3853_v18 = vmax.f32 %v3826_v21, %v3842_v8  ;;  %v4575_v8 = vpop.permute.xlu2 %4574 }
 0x353   : > { %v3933_v45 = vor.u32 %v3931_v19, %v3930_v13  ;;  %v3934_v47 = vrot.slane %v3930_v13, 4 }
 0x354   : > { %v4623_v31 = vpop.permute.xlu0 %4622  ;;  %v3883_v14 = vpack.c.bf16 %v3853_v18, %v3853_v18 }
 0x355   : > { %4646 = vst.msk [vmem:[#allocation4 + $0x8] sm:$0xf] %vm4644_vm14, %v4623_v31  ;;  %v4173_v9 = vpop.permute.xlu1 %4172  ;;  %v4005_v48 = vsel %vm7670_vm4, %v3933_v45, %v4004_v25  ;;  %v4008_v32 = vsel %vm7700_vm15, %v3934_v47, %v4007_v30  ;;  %v4122_v25 = vrot.slane %v4120_v54, 5 }
 0x356   : > { %4807 = vst.msk [vmem:[#allocation4 + $0x8] sm:$0xf] %vm4805_vm0, %v4784_v63  ;;  %v3920_v36 = vshrl.u32 %v3883_v14, 16  ;;  %v3923_v12 = vshll.u32 %v3883_v14, 16  ;;  %v6265_v24 = vld [vmem:[#allocation4] sm:$0xf] }
 0x357   : > { %4194 = vst.msk [vmem:[#allocation4 + $0x18] sm:$0xf] %vm4190_vm10, %v4173_v9 }
 0x358   : > { %4006 = vst [vmem:[#allocation3 + $0x30] sm:$0xf] %v4005_v48  ;;  %v3922_v23 = vrot.slane %v3920_v36, 7  ;;  %v4123_v48 = vsel %vm6726_vm5, %v4118_v29, %v4122_v25 }
 0x359   : > { %4009 = vst [vmem:[#allocation3 + $0x34] sm:$0x1] %v4008_v32 }
 0x35a   : > { %v3926_v4 = vrot.slane %v3922_v23, 4  ;;  %v3925_v28 = vor.u32 %v3923_v12, %v3922_v23 }
 0x35c   : > { %v4171_v37 = vpop.permute.xlu0 %4170  ;;  %v3999_v43 = vsel %vm7670_vm4, %v3925_v28, %v3998_v40  ;;  %v4002_v35 = vsel %vm7700_vm15, %v3926_v4, %v4001_v41  ;;  %v4207_v41 = vld [vmem:[#allocation3 + $0x20] sm:$0xe] }
 0x35d   : > { %4193 = vst.msk [vmem:[#allocation4 + $0x10] sm:$0xf] %vm4190_vm10, %v4171_v37  ;;  %v4317_v44 = vpop.permute.xlu1 %4316  ;;  %v6532_v3 = vld [vmem:[#allocation4 + $0x4] sm:$0xf0]  ;;  %v4208_v37 = vld [vmem:[#allocation3 + $0x24] sm:$0x1] }
 0x35e   : > { %4290 = vst.msk [vmem:[#allocation4 + $0x10] sm:$0xf] %vm4287_vm11, %v4268_v38  ;;  %v6266_v11 = vor.u32 %v6532_v3, %v6265_v24  ;;  %v4249_v59 = vrot.slane %v4208_v37, 5  ;;  %v8827_v37 = vld [vmem:[%s9189_s6] ss:$0 sm:$0xff] }
 0x35f   : > { %4339 = vst.msk [vmem:[#allocation4 + $0x10] sm:$0xf] %vm4336_vm13, %v4317_v44  ;;  %v4355_v6 = vld [vmem:[#allocation3 + $0x30] sm:$0xf] }
 0x360   : > { %5034 = vmatmul.bf16.vlgmr.msrb.gmra.mxu1 %v6266_v11  ;;  %4000 = vst [vmem:[#allocation3 + $0x28] sm:$0xf] %v3999_v43  ;;  %v4432_v45 = vshrl.u32 %v4355_v6, 16  ;;  %v4435_v9 = vshll.u32 %v4355_v6, 16  ;;  %v4822_v11 = vld [vmem:[#allocation3 + $0x30] sm:$0xe] }
 0x361   : > { %4003 = vst [vmem:[#allocation3 + $0x2c] sm:$0x1] %v4002_v35  ;;  %v4823_v56 = vld [vmem:[#allocation3 + $0x34] sm:$0x1]  ;;  %v6259_v58 = vrot.slane %v4822_v11, 9 }
 0x362   : > { %v4434_v55 = vrot.slane %v4432_v45, 4  ;;  %v4437_v35 = vrot.slane %v4435_v9, 5 }
 0x364   : > { %v4270_v15 = vpop.permute.xlu0 %4269 }
 0x365   : > { %4291 = vst.msk [vmem:[#allocation4 + $0x18] sm:$0xf] %vm4287_vm11, %v4270_v15  ;;  %v4480_v34 = vpop.permute.xlu1 %4479  ;;  %v4864_v15 = vrot.slane %v4823_v56, 5 }
 0x366   : > { %4340 = vst.msk [vmem:[#allocation4 + $0x18] sm:$0xf] %vm4336_vm13, %v4319_v51  ;;  %v6243_v51 = vrot.slane %v4207_v41, 9 }
 0x367   : > { %4501 = vst.msk [vmem:[#allocation4 + $0x18] sm:$0xf] %vm9196_vm6, %v4480_v34  ;;  %v4607_v50 = vld [vmem:[#allocation3 + $0x28] sm:$0xf]  ;;  %v6533_v34 = vld [vmem:[#allocation4 + $0x14] sm:$0xf] }
 0x368   : > { %v4048_v22 = vld [vmem:[#allocation3 + $0x28] sm:$0xf]  ;;  %4626 = vrot.lane.b32.xlu2 %v4607_v50, %s6646_s12  ;;  %v4049_v1 = vld [vmem:[#allocation3 + $0x2c] sm:$0x1]  ;;  %v4250_v6 = vsel %vm6705_vm2, %v6243_v51, %v4249_v59 }
 0x369   : > { %v4125_v33 = vshrl.u32 %v4048_v22, 16  ;;  %v4128_v53 = vshll.u32 %v4048_v22, 16  ;;  %v4659_v60 = vld [vmem:[#allocation3 + $0x28] sm:$0xf]  ;;  %v4660_v42 = vld [vmem:[#allocation3 + $0x2c] sm:$0x1] }
 0x36a   : > { %v4712_v46 = vshrl.u32 %v4659_v60, 16  ;;  %v4715_v57 = vshll.u32 %v4659_v60, 16  ;;  %v4134_v16 = vshll.u32 %v4049_v1, 16  ;;  %v4820_v39 = vld [vmem:[#allocation3 + $0x28] sm:$0xe]  ;;  %v4721_v63 = vshll.u32 %v4660_v42, 16 }
 0x36b   : > { %v4127_v5 = vrot.slane %v4125_v33, 4  ;;  %v4130_v61 = vrot.slane %v4128_v53, 5  ;;  %v4821_v17 = vld [vmem:[#allocation3 + $0x2c] sm:$0x1]  ;;  %v6258_v7 = vrot.slane %v4820_v39, 9  ;;  %v4865_v33 = vsel %vm6705_vm2, %v6259_v58, %v4864_v15 }
 0x36c   : > { %v4714_v10 = vrot.slane %v4712_v46, 4  ;;  %v4717_v52 = vrot.slane %v4715_v57, 5  ;;  %v4478_v13 = vpop.permute.xlu0 %4477  ;;  %v4860_v21 = vrot.slane %v4821_v17, 5  ;;  %v4136_v31 = vrot.slane %v4134_v16, 5  ;;  %v4209_v38 = vld [vmem:[#allocation3 + $0x28] sm:$0xe] }
 0x36d   : > { %v4131_v19 = vor.u32 %v4130_v61, %v4127_v5  ;;  %4500 = vst.msk [vmem:[#allocation4 + $0x10] sm:$0xf] %vm9196_vm6, %v4478_v13  ;;  %v4625_v18 = vpop.permute.xlu1 %4624  ;;  %v4723_v36 = vrot.slane %v4721_v63, 5  ;;  %v4210_v12 = vld [vmem:[#allocation3 + $0x2c] sm:$0x1]  ;;  %v6244_v44 = vrot.slane %v4209_v38, 9  ;;  %v4438_v46 = vor.u32 %v4437_v35, %v4434_v55  ;;  %vm9266_vm6 = vmmov %vm9258_vm3 }
 0x36e   : > { %v4718_v30 = vor.u32 %v4717_v52, %v4714_v10  ;;  %4597 = vst.msk [vmem:[#allocation4 + $0x10] sm:$0xf] %vm9195_vm7, %v4575_v8  ;;  %v4861_v14 = vsel %vm6705_vm2, %v6258_v7, %v4860_v21  ;;  %v4353_v40 = vld [vmem:[#allocation3 + $0x28] sm:$0xf]  ;;  %v4253_v24 = vrot.slane %v4210_v12, 5 }
 0x36f   : > { %v4132_v47 = vrot.slane %v4131_v19, 4  ;;  %4647 = vst.msk [vmem:[#allocation4 + $0x10] sm:$0xf] %vm4644_vm14, %v4625_v18  ;;  %v4418_v28 = vshrl.u32 %v4353_v40, 16  ;;  %v4421_v20 = vshll.u32 %v4353_v40, 16  ;;  %v4439_v39 = vrot.slane %v4438_v46, 4 }
 0x370   : > { %v4719_v32 = vrot.slane %v4718_v30, 4  ;;  %4174 = vrot.lane.b32.xlu2 %v4123_v48, %s6639_s11  ;;  %4889 = vst.msk [vmem:[#allocation4 + $0x1c] sm:$0xf] %vm3857_vm1, %v4861_v14  ;;  %v4354_v27 = vld [vmem:[#allocation3 + $0x2c] sm:$0x1]  ;;  %v4254_v50 = vsel %vm6705_vm2, %v6244_v44, %v4253_v24 }
 0x371   : > { %v4137_v23 = vsel %vm6726_vm5, %v4132_v47, %v4136_v31  ;;  %v4420_v3 = vrot.slane %v4418_v28, 4  ;;  %v4423_v43 = vrot.slane %v4421_v20, 5  ;;  %v4356_v1 = vld [vmem:[#allocation3 + $0x34] sm:$0x1]  ;;  %v4027_v53 = vld [vmem:[#allocation3 + $0x28] sm:$0xf] }
 0x372   : > { %4176 = vrot.lane.b32.xlu0 %v4137_v23, %s6639_s11  ;;  %v4724_v4 = vsel %vm6726_vm5, %v4719_v32, %v4723_v36  ;;  %v4300_v42 = vld [vmem:[#allocation3 + $0x28] sm:$0xf]  ;;  %4890 = vst.msk [vmem:[#allocation4 + $0x24] sm:$0xf] %vm3857_vm1, %v4865_v33  ;;  %v4028_v57 = vld [vmem:[#allocation3 + $0x30] sm:$0xf] }
 0x373   : > { %4787 = vrot.lane.b32.xlu1 %v4724_v4, %s6648_s15  ;;  %v4424_v22 = vor.u32 %v4423_v43, %v4420_v3  ;;  %v4427_v29 = vshll.u32 %v4354_v27, 16  ;;  %4035 = vst.msk [vmem:[#allocation4 + $0x28] sm:$0xf] %vm3857_vm1, %v4027_v53  ;;  %v4441_v5 = vshll.u32 %v4356_v1, 16  ;;  %v4661_v10 = vld [vmem:[#allocation3 + $0x30] sm:$0xf]  ;;  %v3706_v4 = vpop.f32.mrf.mxu3 }
 0x374   : > { %v4577_v49 = vpop.permute.xlu0 %4576  ;;  %4036 = vst.msk [vmem:[#allocation4 + $0x30] sm:$0xf] %vm3857_vm1, %v4028_v57  ;;  %v4726_v7 = vshrl.u32 %v4661_v10, 16  ;;  %v4729_v13 = vshll.u32 %v4661_v10, 16  ;;  %v4516_v21 = vld [vmem:[#allocation3 + $0x30] sm:$0xe]  ;;  %v3707_v44 = vadd.f32 %v8827_v37, %v3706_v4 }
 0x375   : > { %4598 = vst.msk [vmem:[#allocation4 + $0x18] sm:$0xf] %vm9195_vm7, %v4577_v49  ;;  %v4425_v61 = vrot.slane %v4424_v22, 4  ;;  %v4429_v52 = vrot.slane %v4427_v29, 5  ;;  %v4443_v63 = vrot.slane %v4441_v5, 5  ;;  %v6252_v45 = vrot.slane %v4516_v21, 9  ;;  %vm9265_vm7 = vmmov %vm9258_vm3 }
 0x376   : > { %v4517_v8 = vld [vmem:[#allocation3 + $0x34] sm:$0x1]  ;;  %v4301_v18 = vld [vmem:[#allocation3 + $0x30] sm:$0xf]  ;;  %v4514_v25 = vld [vmem:[#allocation3 + $0x28] sm:$0xe] }
 0x377   : > { %v6275_v54 = vld [vmem:[#allocation4 + $0x18] sm:$0xf0]  ;;  %v4430_v17 = vsel %vm6726_vm5, %v4425_v61, %v4429_v52  ;;  %v4444_v19 = vsel %vm6726_vm5, %v4439_v39, %v4443_v63  ;;  %v4560_v47 = vrot.slane %v4517_v8, 5  ;;  %v4728_v31 = vrot.slane %v4726_v7, 4  ;;  %v4662_v32 = vld [vmem:[#allocation3 + $0x34] sm:$0x1] }
 0x378   : > { %v6278_v60 = vor.u32 %v6533_v34, %v6275_v54  ;;  %4273 = vrot.lane.b32.xlu2 %v4254_v50, %s6641_s13  ;;  %v4515_v30 = vld [vmem:[#allocation3 + $0x2c] sm:$0x1]  ;;  %v4731_v14 = vrot.slane %v4729_v13, 5  ;;  %v6251_v9 = vrot.slane %v4514_v25, 9  ;;  %v4608_v23 = vld [vmem:[#allocation3 + $0x30] sm:$0xf] }
 0x379   : > { %v4556_v48 = vrot.slane %v4515_v30, 5  ;;  %v4561_v36 = vsel %vm6705_vm2, %v6252_v45, %v4560_v47  ;;  %v4735_v40 = vshll.u32 %v4662_v32, 16  ;;  %v3747_v3 = vmax.f32 %v3707_v44, 0.0  ;;  %v4050_v46 = vld [vmem:[#allocation3 + $0x30] sm:$0xf] }
 0x37a   : > { %4320 = vrot.lane.b32.xlu0 %v4300_v42, %s6644_s9  ;;  %6332 = vmatmul.msk.bf16.gmra.mxu2 %vm9258_vm3, %v6278_v60  ;;  %v4732_v38 = vor.u32 %v4731_v14, %v4728_v31  ;;  %v4010_v29 = vld [vmem:[#allocation3 + $0x38] sm:$0xf]  ;;  %v4013_v5 = vld [vmem:[#allocation3 + $0x3c] sm:$0x1]  ;;  %v4139_v39 = vshrl.u32 %v4050_v46, 16  ;;  %v4142_v10 = vshll.u32 %v4050_v46, 16 }
 0x37b   : > { %4271 = vrot.lane.b32.xlu1 %v4250_v6, %s6641_s13  ;;  %v4557_v12 = vsel %vm6705_vm2, %v6251_v9, %v4556_v48  ;;  %v4737_v20 = vrot.slane %v4735_v40, 5  ;;  %v3708_v11 = vpop.f32.mrf.mxu3  ;;  %v3791_v55 = vsel %vm9262_vm8, %v3747_v3, -inf  ;;  %vm9269_vm8 = vmmov %vm9258_vm3 }
 0x37c   : > { %v4786_v16 = vpop.permute.xlu0 %4785  ;;  %v4733_v28 = vrot.slane %v4732_v38, 4  ;;  %v3709_v35 = vadd.f32 %v8827_v37, %v3708_v11  ;;  %v4144_v7 = vrot.slane %v4142_v10, 5 }
 0x37d   : > { %4808 = vst.msk [vmem:[#allocation4 + $0x10] sm:$0xf] %vm4805_vm0, %v4786_v16 }
 0x37e   : > { %v4738_v41 = vsel %vm6726_vm5, %v4733_v28, %v4737_v20  ;;  %v3748_v59 = vmax.f32 %v3709_v35, 0.0 }
 0x380   : > { %4481 = vrot.lane.b32.xlu2 %v4430_v17, %s6645_s10  ;;  %v3794_v27 = vsel %vm9258_vm3, %v3748_v59, -inf  ;;  %v4141_v17 = vrot.slane %v4139_v39, 4 }
 0x382   : > { %4483 = vrot.lane.b32.xlu0 %v4444_v19, %s6645_s10  ;;  %v4051_v19 = vld [vmem:[#allocation3 + $0x34] sm:$0x1]  ;;  %v4145_v21 = vor.u32 %v4144_v7, %v4141_v17 }
 0x383   : > { %4322 = vrot.lane.b32.xlu1 %v4301_v18, %s6644_s9  ;;  %v3711_v60 = vpop.f32.mrf.mxu3  ;;  %v4148_v8 = vshll.u32 %v4051_v19, 16 }
 0x384   : > { %v3712_v45 = vadd.f32 %v8827_v37, %v3711_v60  ;;  %v4146_v48 = vrot.slane %v4145_v21, 4 }
 0x388   : > { %4580 = vrot.lane.b32.xlu2 %v4561_v36, %s6647_s14 }
 0x38a   : > { %4628 = vrot.lane.b32.xlu0 %v4608_v23, %s6646_s12 }
 0x38b   : > { %4578 = vrot.lane.b32.xlu1 %v4557_v12, %s6647_s14  ;;  %v3713_v13 = vpop.f32.mrf.mxu3 }
 0x390   : > { %4789 = vrot.lane.b32.xlu2 %v4738_v41, %s6648_s15  ;;  %v4150_v41 = vrot.slane %v4148_v8, 5 }
 0x392   : > { %v3701_v24 = vpop.f32.mrf.mxu1 }
 0x393   : > { %v3702_v43 = vadd.f32 %v8827_v37, %v3701_v24 }
 0x395   : > { %v3745_v49 = vmax.f32 %v3702_v43, 0.0  ;;  %v3749_v43 = vmax.f32 %v3712_v45, 0.0 }
 0x397   : > { %v3790_v56 = vsel %vm9263_vm9, %v3745_v49, -inf  ;;  %vm9270_vm9 = vmmov %vm9258_vm3 }
 0x398   : > { %v3792_v58 = vmax.f32 %v3790_v56, %v3791_v55  ;;  %v4151_v56 = vsel %vm6726_vm5, %v4146_v48, %v4150_v41 }
 0x39a   : > { %3814 = vst.msk [vmem:[#allocation6 + $0x60] sm:$0xff] %vm9264_vm12, %v3792_v58  ;;  %v3703_v51 = vpop.f32.mrf.mxu1  ;;  %vm9271_vm12 = vmmov %vm9258_vm3 }
 0x39b   : > { %v3704_v15 = vadd.f32 %v8827_v37, %v3703_v51 }
 0x39d   : > { %v3746_v34 = vmax.f32 %v3704_v15, 0.0 }
 0x39f   : > { %v3793_v54 = vsel %vm9265_vm7, %v3746_v34, -inf  ;;  %vm9268_vm7 = vmmov %vm9258_vm3 }
 0x3a0   : > { %v3795_v50 = vmax.f32 %v3793_v54, %v3794_v27 }
 0x3a2   : > { %3815 = vst.msk [vmem:[#allocation6 + $0x68] sm:$0xff] %vm9266_vm6, %v3795_v50  ;;  %vm9267_vm6 = vmmov %vm9258_vm3 }
 0x3a9   : > { %v3830_v22 = vld [vmem:[#allocation6 + $0x60] ss:$2 sm:$0xff]  ;;  %v3846_v1 = vld [vmem:[#allocation6 + $0x61] ss:$2 sm:$0xff] }
 0x3aa   : > { %v3855_v33 = vmax.f32 %v3830_v22, %v3846_v1 }
 0x3ac   : > { %v3885_v53 = vpack.c.bf16 %v3855_v33, %v3855_v33  ;;  %v3796_v33 = vsel %vm9267_vm6, %v3749_v43, -inf  ;;  %vm9272_vm6 = vmmov %vm9258_vm3 }
 0x3ae   : > { %v3936_v42 = vshrl.u32 %v3885_v53, 16  ;;  %v3939_v6 = vshll.u32 %v3885_v53, 16  ;;  %v3714_v53 = vadd.f32 %v8827_v37, %v3713_v13 }
 0x3b0   : > { %v3938_v57 = vrot.slane %v3936_v42, 7  ;;  %v3750_v7 = vmax.f32 %v3714_v53, 0.0 }
 0x3b2   : > { %v3942_v61 = vrot.slane %v3938_v57, 4  ;;  %v3941_v16 = vor.u32 %v3939_v6, %v3938_v57 }
 0x3b4   : > { %v4011_v52 = vsel %vm7670_vm4, %v3941_v16, %v4010_v29  ;;  %v4014_v63 = vsel %vm7700_vm15, %v3942_v61, %v4013_v5  ;;  %v4211_v5 = vld [vmem:[#allocation3 + $0x30] sm:$0xe]  ;;  %v4212_v61 = vld [vmem:[#allocation3 + $0x34] sm:$0x1] }
 0x3b5   : > { %4012 = vst [vmem:[#allocation3 + $0x38] sm:$0xf] %v4011_v52  ;;  %v6245_v21 = vrot.slane %v4211_v5, 9  ;;  %v4257_v8 = vrot.slane %v4212_v61, 5 }
 0x3b6   : > { %4015 = vst [vmem:[#allocation3 + $0x3c] sm:$0x1] %v4014_v63 }
 0x3bc   : > { %v4609_v18 = vld [vmem:[#allocation3 + $0x38] sm:$0xf] }
 0x3bd   : > { %v4663_v25 = vld [vmem:[#allocation3 + $0x38] sm:$0xf]  ;;  %4630 = vrot.lane.b32.xlu1 %v4609_v18, %s6646_s12  ;;  %v4664_v47 = vld [vmem:[#allocation3 + $0x3c] sm:$0x1]  ;;  %v6535_v18 = vld [vmem:[#allocation4 + $0x24] sm:$0xf] }
 0x3be   : > { %v4052_v30 = vld [vmem:[#allocation3 + $0x38] sm:$0xf]  ;;  %v4740_v31 = vshrl.u32 %v4663_v25, 16  ;;  %v4743_v14 = vshll.u32 %v4663_v25, 16  ;;  %v4053_v9 = vld [vmem:[#allocation3 + $0x3c] sm:$0x1] }
 0x3bf   : > { %v4153_v32 = vshrl.u32 %v4052_v30, 16  ;;  %v4156_v36 = vshll.u32 %v4052_v30, 16  ;;  %v4824_v38 = vld [vmem:[#allocation3 + $0x38] sm:$0xe]  ;;  %v4749_v40 = vshll.u32 %v4664_v47, 16  ;;  %v4162_v3 = vshll.u32 %v4053_v9, 16 }
 0x3c0   : > { %v4742_v23 = vrot.slane %v4740_v31, 4  ;;  %v4745_v12 = vrot.slane %v4743_v14, 5  ;;  %v4825_v4 = vld [vmem:[#allocation3 + $0x3c] sm:$0x1]  ;;  %v6260_v28 = vrot.slane %v4824_v38, 9  ;;  %v3716_v20 = vpop.f32.mrf.mxu3  ;;  %v3799_v9 = vsel %vm9270_vm9, %v3750_v7, -inf }
 0x3c1   : > { %v4155_v44 = vrot.slane %v4153_v32, 4  ;;  %v4158_v24 = vrot.slane %v4156_v36, 5  ;;  %v3717_v49 = vadd.f32 %v8827_v37, %v3716_v20  ;;  %v4868_v35 = vrot.slane %v4825_v4, 5  ;;  %v4357_v51 = vld [vmem:[#allocation3 + $0x38] sm:$0xf] }
 0x3c2   : > { %v4627_v11 = vpop.permute.xlu2 %4626  ;;  %v4746_v55 = vor.u32 %v4745_v12, %v4742_v23  ;;  %v4751_v34 = vrot.slane %v4749_v40, 5  ;;  %v4164_v50 = vrot.slane %v4162_v3, 5  ;;  %v4446_v22 = vshrl.u32 %v4357_v51, 16  ;;  %v4213_v46 = vld [vmem:[#allocation3 + $0x38] sm:$0xe] }
 0x3c3   : > { %4648 = vst.msk [vmem:[#allocation4 + $0x18] sm:$0xf] %vm4644_vm14, %v4627_v11  ;;  %v4159_v58 = vor.u32 %v4158_v24, %v4155_v44  ;;  %v3751_v59 = vmax.f32 %v3717_v49, 0.0  ;;  %v4869_v27 = vsel %vm6705_vm2, %v6260_v28, %v4868_v35  ;;  %v4449_v1 = vshll.u32 %v4357_v51, 16  ;;  %v4214_v57 = vld [vmem:[#allocation3 + $0x3c] sm:$0x1]  ;;  %v5064_v24 = vpop.f32.mrf.mxu2 }
 0x3c4   : > { %v4747_v15 = vrot.slane %v4746_v55, 4  ;;  %4891 = vst.msk [vmem:[#allocation4 + $0x2c] sm:$0xf] %vm3857_vm1, %v4869_v27  ;;  %v4029_v16 = vld [vmem:[#allocation3 + $0x38] sm:$0xf]  ;;  %v6246_v10 = vrot.slane %v4213_v46, 9 }
 0x3c5   : > { %v4160_v54 = vrot.slane %v4159_v58, 4  ;;  %v3797_v60 = vsel %vm9268_vm7, %v3751_v59, -inf  ;;  %4178 = vrot.lane.b32.xlu1 %v4151_v56, %s6639_s11  ;;  %4037 = vst.msk [vmem:[#allocation4 + $0x38] sm:$0xf] %vm3857_vm1, %v4029_v16  ;;  %v4261_v52 = vrot.slane %v4214_v57, 5  ;;  %v4448_v63 = vrot.slane %v4446_v22, 4 }
 0x3c6   : > { %v4752_v42 = vsel %vm6726_vm5, %v4747_v15, %v4751_v34  ;;  %v3798_v6 = vmax.f32 %v3796_v33, %v3797_v60  ;;  %v4451_v17 = vrot.slane %v4449_v1, 5  ;;  %v4358_v45 = vld [vmem:[#allocation3 + $0x3c] sm:$0x1]  ;;  %v4302_v36 = vld [vmem:[#allocation3 + $0x38] sm:$0xf]  ;;  %vm5092_vm7 = vcmask 261120  }
 0x3c7   : > { %4791 = vrot.lane.b32.xlu0 %v4752_v42, %s6648_s15  ;;  %v4165_v29 = vsel %vm6726_vm5, %v4160_v54, %v4164_v50  ;;  %v4262_v31 = vsel %vm6705_vm2, %v6246_v10, %v4261_v52  ;;  %v4455_v38 = vshll.u32 %v4358_v45, 16  ;;  %v8884_v44 = vld [vmem:[%s9189_s6 + $0x1] ss:$0 sm:$0xff]  ;;  %v4828_v11 = vld [vmem:[#allocation3 + $0x48] sm:$0xe]  ;;  %vm9275_vm9 = vcmask 781952  }
 0x3c8   : > { %4180 = vrot.lane.b32.xlu2 %v4165_v29, %s6639_s11  ;;  %3816 = vst.msk [vmem:[#allocation6 + $0x70] sm:$0xff] %vm9269_vm8, %v3798_v6  ;;  %v3718_v39 = vpop.f32.mrf.mxu3  ;;  %v4452_v14 = vor.u32 %v4451_v17, %v4448_v63  ;;  %v4829_v49 = vld [vmem:[#allocation3 + $0x4c] sm:$0x1]  ;;  %v6262_v55 = vrot.slane %v4828_v11, 9  ;;  %v4016_v54 = vld [vmem:[#allocation3 + $0x40] sm:$0xf] }
 0x3c9   : > { %v3719_v19 = vadd.f32 %v8827_v37, %v3718_v39  ;;  %v4258_v37 = vsel %vm6705_vm2, %v6245_v21, %v4257_v8  ;;  %v4457_v12 = vrot.slane %v4455_v38, 5  ;;  %v4876_v35 = vrot.slane %v4829_v49, 5  ;;  %v4019_v50 = vld [vmem:[#allocation3 + $0x44] sm:$0x1]  ;;  %v4518_v2 = vld [vmem:[#allocation3 + $0x38] sm:$0xe] }
 0x3ca   : > { %v4175_v13 = vpop.permute.xlu2 %4174  ;;  %v4453_v23 = vrot.slane %v4452_v14, 4  ;;  %v4519_v16 = vld [vmem:[#allocation3 + $0x3c] sm:$0x1]  ;;  %v6273_v63 = vld [vmem:[#allocation4 + $0x10] sm:$0xf]  ;;  %vm5132_vm8 = vcmask 253952  }
 0x3cb   : > { %4195 = vst.msk [vmem:[#allocation4 + $0x20] sm:$0xf] %vm4190_vm10, %v4175_v13  ;;  %v3752_v25 = vmax.f32 %v3719_v19, 0.0  ;;  %v6283_v30 = vld [vmem:[#allocation4 + $0x28] sm:$0xf0]  ;;  %v4877_v15 = vsel %vm6705_vm2, %v6262_v55, %v4876_v35  ;;  %v5066_v57 = vpop.f32.mrf.mxu2  ;;  %v6253_v13 = vrot.slane %v4518_v2, 9 }
 0x3cc   : > { %v6286_v47 = vor.u32 %v6535_v18, %v6283_v30  ;;  %v4458_v40 = vsel %vm6726_vm5, %v4453_v23, %v4457_v12  ;;  %4893 = vst.msk [vmem:[#allocation4 + $0x3c] sm:$0xf] %vm3857_vm1, %v4877_v15  ;;  %v4564_v19 = vrot.slane %v4519_v16, 5  ;;  %v4611_v2 = vld [vmem:[#allocation3 + $0x48] sm:$0xf] }
 0x3cd   : > { %v3800_v48 = vsel %vm9271_vm12, %v3752_v25, -inf  ;;  %4277 = vrot.lane.b32.xlu1 %v4262_v31, %s6641_s13  ;;  %v4668_v16 = vld [vmem:[#allocation3 + $0x4c] sm:$0x1] }
 0x3ce   : > { %v3801_v32 = vmax.f32 %v3799_v9, %v3800_v48  ;;  %6333 = vmatmul.msk.bf16.gmra.mxu2 %vm9258_vm3, %v6286_v47  ;;  %v4667_v9 = vld [vmem:[#allocation3 + $0x48] sm:$0xf]  ;;  %v4565_v15 = vsel %vm6705_vm2, %v6253_v13, %v4564_v19  ;;  %vm5139_vm3 = vcmask 1040384  }
 0x3cf   : > { %4275 = vrot.lane.b32.xlu0 %v4258_v37, %s6641_s13 }
 0x3d0   : > { %4324 = vrot.lane.b32.xlu2 %v4302_v36, %s6644_s9  ;;  %3817 = vst.msk [vmem:[#allocation6 + $0x78] sm:$0xff] %vm9272_vm6, %v3801_v32 }
 0x3d2   : > { %v4274_v51 = vpop.permute.xlu2 %4273 }
 0x3d5   : > { %4485 = vrot.lane.b32.xlu1 %v4458_v40, %s6645_s10 }
 0x3d7   : > { %v3832_v4 = vld [vmem:[#allocation6 + $0x70] ss:$2 sm:$0xff]  ;;  %v3848_v28 = vld [vmem:[#allocation6 + $0x71] ss:$2 sm:$0xff] }
 0x3d8   : > { %v3856_v20 = vmax.f32 %v3832_v4, %v3848_v28 }
 0x3da   : > { %v3886_v41 = vpack.c.bf16 %v3856_v20, %v3856_v20  ;;  %v4482_v5 = vpop.permute.xlu2 %4481 }
 0x3dc   : > { %v3944_v3 = vshrl.u32 %v3886_v41, 16  ;;  %v3947_v58 = vshll.u32 %v3886_v41, 16 }
 0x3dd   : > { %v5035_v43 = vpop.f32.mrf.mxu1 }
 0x3de   : > { %v3946_v56 = vrot.slane %v3944_v3, 7  ;;  %v5036_v59 = vadd.f32 %v8884_v44, %v5035_v43 }
 0x3e0   : > { %v3950_v34 = vrot.slane %v3946_v56, 4  ;;  %v3949_v27 = vor.u32 %v3947_v58, %v3946_v56  ;;  %v5065_v1 = vadd.f32 %v5064_v24, %v5036_v59  ;;  %v4771_v59 = vshll.u32 %v4667_v9, 16 }
 0x3e2   : > { %v4017_v53 = vsel %vm7670_vm4, %v3949_v27, %v4016_v54  ;;  %v4020_v42 = vsel %vm7700_vm15, %v3950_v34, %v4019_v50  ;;  %v5084_v6 = vmax.f32 %v5065_v1, 0.0  ;;  %vm9273_vm15 = vcmask 650752   ;;  %v4581_v3 = vpop.permute.xlu2 %4580 }
 0x3e3   : > { %4018 = vst [vmem:[#allocation3 + $0x40] sm:$0xf] %v4017_v53  ;;  %vm9274_vm4 = vmmov %vm9273_vm15 }
 0x3e4   : > { %v4177_v22 = vpop.permute.xlu0 %4176  ;;  %4021 = vst [vmem:[#allocation3 + $0x44] sm:$0x1] %v4020_v42  ;;  %v5093_v10 = vsel %vm5092_vm7, %v5084_v6, -inf }
 0x3e5   : > { %4196 = vst.msk [vmem:[#allocation4 + $0x28] sm:$0xf] %vm4190_vm10, %v4177_v22  ;;  %v4788_v33 = vpop.permute.xlu1 %4787  ;;  %v5037_v60 = vpop.f32.mrf.mxu1 }
 0x3e6   : > { %4293 = vst.msk [vmem:[#allocation4 + $0x28] sm:$0xf] %vm4287_vm11, %v4274_v51  ;;  %v5038_v46 = vadd.f32 %v8884_v44, %v5037_v60  ;;  %v4768_v51 = vshrl.u32 %v4667_v9, 16 }
 0x3e7   : > { %4809 = vst.msk [vmem:[#allocation4 + $0x18] sm:$0xf] %vm4805_vm0, %v4788_v33 }
 0x3e8   : > { %v5067_v29 = vadd.f32 %v5066_v57, %v5038_v46  ;;  %v5134_v57 = vld [vmem:[#allocation5] sm:$0x1] }
 0x3ea   : > { %v5085_v61 = vmax.f32 %v5067_v29, 0.0  ;;  %v4303_v21 = vld [vmem:[#allocation3 + $0x40] sm:$0xf]  ;;  %v4770_v29 = vrot.slane %v4768_v51, 4 }
 0x3eb   : > { %v4520_v18 = vld [vmem:[#allocation3 + $0x40] sm:$0xe]  ;;  %4326 = vrot.lane.b32.xlu0 %v4303_v21, %s6644_s9  ;;  %v4521_v25 = vld [vmem:[#allocation3 + $0x44] sm:$0x1] }
 0x3ec   : > { %v4321_v39 = vpop.permute.xlu0 %4320  ;;  %v5094_v62 = vsel %vm5092_vm7, %v5085_v61, -inf  ;;  %v6254_v30 = vrot.slane %v4520_v18, 9  ;;  %v4359_v45 = vld [vmem:[#allocation3 + $0x40] sm:$0xf]  ;;  %v4568_v47 = vrot.slane %v4521_v25, 5 }
 0x3ed   : > { %v4272_v52 = vpop.permute.xlu1 %4271  ;;  %v5095_v17 = vmax.f32 %v5093_v10, %v5094_v62  ;;  %v4360_v31 = vld [vmem:[#allocation3 + $0x44] sm:$0x1]  ;;  %v4460_v14 = vshrl.u32 %v4359_v45, 16  ;;  %v4463_v48 = vshll.u32 %v4359_v45, 16  ;;  %v4665_v32 = vld [vmem:[#allocation3 + $0x40] sm:$0xf]  ;;  %v4790_v62 = vpop.permute.xlu2 %4789 }
 0x3ee   : > { %4292 = vst.msk [vmem:[#allocation4 + $0x20] sm:$0xf] %vm4287_vm11, %v4272_v52  ;;  %v6534_v7 = vld [vmem:[#allocation4 + $0x14] sm:$0xf0]  ;;  %v4469_v37 = vshll.u32 %v4360_v31, 16  ;;  %v4569_v38 = vsel %vm6705_vm2, %v6254_v30, %v4568_v47  ;;  %v4754_v12 = vshrl.u32 %v4665_v32, 16 }
 0x3ef   : > { %4341 = vst.msk [vmem:[#allocation4 + $0x20] sm:$0xf] %vm4336_vm13, %v4321_v39  ;;  %v6274_v8 = vor.u32 %v6534_v7, %v6273_v63  ;;  %v4666_v36 = vld [vmem:[#allocation3 + $0x44] sm:$0x1]  ;;  %v4462_v23 = vrot.slane %v4460_v14, 4  ;;  %v4757_v40 = vshll.u32 %v4665_v32, 16  ;;  %4584 = vrot.lane.b32.xlu1 %v4569_v38, %s6647_s14 }
 0x3f0   : > { %5105 = vst.msk [vmem:[#allocation7] sm:$0xff] %vm5092_vm7, %v5095_v17  ;;  %v4826_v4 = vld [vmem:[#allocation3 + $0x40] sm:$0xe]  ;;  %v4465_v20 = vrot.slane %v4463_v48, 5  ;;  %v4827_v41 = vld [vmem:[#allocation3 + $0x44] sm:$0x1] }
 0x3f1   : > { %4502 = vst.msk [vmem:[#allocation4 + $0x20] sm:$0xf] %vm9273_vm15, %v4482_v5  ;;  %5039 = vmatmul.bf16.gmra.mxu1 %v6274_v8  ;;  %v6261_v24 = vrot.slane %v4826_v4, 9  ;;  %v4756_v11 = vrot.slane %v4754_v12, 4  ;;  %v4759_v49 = vrot.slane %v4757_v40, 5  ;;  %v4763_v55 = vshll.u32 %v4666_v36, 16 }
 0x3f2   : > { %v4872_v35 = vrot.slane %v4827_v41, 5  ;;  %v4466_v56 = vor.u32 %v4465_v20, %v4462_v23  ;;  %v4471_v58 = vrot.slane %v4469_v37, 5  ;;  %v4773_v5 = vrot.slane %v4771_v59, 5  ;;  %v6291_v39 = vld [vmem:[#allocation4 + $0x38] sm:$0xf0]  ;;  %v6565_v51 = vld [vmem:[%s9187_s4 + $0x88] sm:$0xff] }
 0x3f3   : > { %v4760_v34 = vor.u32 %v4759_v49, %v4756_v11  ;;  %4582 = vrot.lane.b32.xlu0 %v4565_v15, %s6647_s14  ;;  %v4765_v33 = vrot.slane %v4763_v55, 5  ;;  %v4777_v7 = vshll.u32 %v4668_v16, 16  ;;  %v4610_v19 = vld [vmem:[#allocation3 + $0x40] sm:$0xf] }
 0x3f4   : > { %v4484_v28 = vpop.permute.xlu0 %4483  ;;  %v4873_v27 = vsel %vm6705_vm2, %v6261_v24, %v4872_v35  ;;  %v4467_v50 = vrot.slane %v4466_v56, 4  ;;  %vm9276_vm2 = vsmask.f32 256  ;;  %v4774_v17 = vor.u32 %v4773_v5, %v4770_v29  ;;  %v5182_v29 = vld [vmem:[#allocation5 + $0x1] sm:$0x1] }
 0x3f5   : > { %v4323_v43 = vpop.permute.xlu1 %4322  ;;  %v4761_v1 = vrot.slane %v4760_v34, 4  ;;  %4892 = vst.msk [vmem:[#allocation4 + $0x34] sm:$0xf] %vm3857_vm1, %v4873_v27  ;;  %vm8923_vm12 = vmand %vm5132_vm8, %vm9276_vm2  ;;  %v4779_v18 = vrot.slane %v4777_v7, 5 }
 0x3f6   : > { %4342 = vst.msk [vmem:[#allocation4 + $0x28] sm:$0xf] %vm4336_vm13, %v4323_v43  ;;  %v4472_v60 = vsel %vm6726_vm5, %v4467_v50, %v4471_v58  ;;  %vm9279_vm1 = vmmov %vm9275_vm9  ;;  %v4775_v8 = vrot.slane %v4774_v17, 4 }
 0x3f7   : > { %4503 = vst.msk [vmem:[#allocation4 + $0x28] sm:$0xf] %vm9274_vm4, %v4484_v28  ;;  %v5109_v54 = vld [vmem:[#allocation7] ss:$2 sm:$0xf]  ;;  %4487 = vrot.lane.b32.xlu2 %v4472_v60, %s6645_s10  ;;  %v4766_v0 = vsel %vm6726_vm5, %v4761_v1, %v4765_v33  ;;  %vm9282_vm15 = vmmov %vm9279_vm1 }
 0x3f8   : > { %4600 = vst.msk [vmem:[#allocation4 + $0x28] sm:$0xf] %vm9275_vm9, %v4581_v3  ;;  %v5117_v22 = vld [vmem:[#allocation7 + $0x1] ss:$2 sm:$0xf]  ;;  %4793 = vrot.lane.b32.xlu1 %v4766_v0, %s6648_s15  ;;  %v4780_v45 = vsel %vm6726_vm5, %v4775_v8, %v4779_v18  ;;  %vm9280_vm5 = vmmov %vm9274_vm4 }
 0x3f9   : > { %v5124_v53 = vmax.f32 %v5109_v54, %v5117_v22 }
 0x3fb   : > { %v5128_v42 = vpack.c.bf16 %v5124_v53, %v5124_v53  ;;  %4634 = vrot.lane.b32.xlu0 %v4611_v2, %s6646_s12 }
 0x3fc   : > { %v4629_v6 = vpop.permute.xlu0 %4628  ;;  %v6537_v63 = vld [vmem:[#allocation4 + $0x34] sm:$0xf] }
 0x3fd   : > { %v4579_v61 = vpop.permute.xlu1 %4578  ;;  %5155 = vst [vmem:[#allocation1] sm:$0xff] %v5128_v42  ;;  %v5135_v10 = vsel %vm8923_vm12, %v5128_v42, %v5134_v57  ;;  %v5138_v52 = vrot.slane %v5128_v42, 3  ;;  %v6294_v13 = vor.u32 %v6537_v63, %v6291_v39  ;;  %v5069_v41 = vpop.f32.mrf.mxu2 }
 0x3fe   : > { %4599 = vst.msk [vmem:[#allocation4 + $0x20] sm:$0xf] %vm9279_vm1, %v4579_v61 }
 0x3ff   : > { %4649 = vst.msk [vmem:[#allocation4 + $0x20] sm:$0xf] %vm4644_vm14, %v4629_v6  ;;  %6334 = vmatmul.msk.bf16.gmra.mxu2 %vm9272_vm6, %v6294_v13  ;;  %4632 = vrot.lane.b32.xlu2 %v4610_v19, %s6646_s12  ;;  %v5142_v21 = vsel %vm5139_vm3, %v5128_v42, %v5138_v52 }
 0x400   : > { %4810 = vst.msk [vmem:[#allocation4 + $0x20] sm:$0xf] %vm4805_vm0, %v4790_v62  ;;  %v5143_v30 = vshrl.u32 %v5142_v21, 16 }
 0x401   : > { %5136 = vst [vmem:[#allocation5] sm:$0x1] %v5135_v10 }
 0x403   : > { %5147 = vrot.lane.b32.xlu0 %v5143_v30, %s6641_s13 }
 0x404   : > { %v8937_v25 = vld [vmem:[#allocation1 + $0x1] ss:$4 sm:$0xff] }
 0x405   : > { %5167 = vst [vmem:[#allocation1] sm:$0xff] %v5128_v42  ;;  %v5071_v58 = vpop.f32.mrf.mxu2 }
 0x407   : > { %4795 = vrot.lane.b32.xlu2 %v4780_v45, %s6648_s15  ;;  %v6281_v26 = vld [vmem:[#allocation4 + $0x20] sm:$0xf] }
 0x408   : > { %v5152_v27 = vld [vmem:[#allocation5] sm:$0x1] }
 0x40c   : > { %v5169_v61 = vld [vmem:[#allocation1 + $0x1] ss:$4 sm:$0xff] }
 0x422   : > { %v4181_v47 = vpop.permute.xlu2 %4180 }
 0x423   : > { %4198 = vst.msk [vmem:[#allocation4 + $0x38] sm:$0xf] %vm4190_vm10, %v4181_v47 }
 0x42a   : > { %v4325_v36 = vpop.permute.xlu2 %4324 }
 0x42f   : > { %v4631_v31 = vpop.permute.xlu1 %4630 }
 0x430   : > { %4650 = vst.msk [vmem:[#allocation4 + $0x28] sm:$0xf] %vm4644_vm14, %v4631_v31 }
 0x437   : > { %v4179_v14 = vpop.permute.xlu1 %4178 }
 0x438   : > { %4197 = vst.msk [vmem:[#allocation4 + $0x30] sm:$0xf] %vm4190_vm10, %v4179_v14  ;;  %vm9281_vm10 = vmmov %vm9274_vm4 }
 0x439   : > { %v4792_v9 = vpop.permute.xlu0 %4791  ;;  %vm9283_vm4 = vmmov %vm9279_vm1 }
 0x43a   : > { %4811 = vst.msk [vmem:[#allocation4 + $0x28] sm:$0xf] %vm4805_vm0, %v4792_v9 }
 0x43f   : > { %v4278_v48 = vpop.permute.xlu1 %4277 }
 0x440   : > { %4295 = vst.msk [vmem:[#allocation4 + $0x38] sm:$0xf] %vm4287_vm11, %v4278_v48  ;;  %v5223_v48 = vld [vmem:[#allocation5 + $0x2] sm:$0x1] }
 0x441   : > { %v4276_v37 = vpop.permute.xlu0 %4275  ;;  %v6536_v32 = vld [vmem:[#allocation4 + $0x24] sm:$0xf0] }
 0x442   : > { %4294 = vst.msk [vmem:[#allocation4 + $0x30] sm:$0xf] %vm4287_vm11, %v4276_v37  ;;  %v6282_v38 = vor.u32 %v6536_v32, %v6281_v26  ;;  %vm5150_vm11 = vcmask 516352  }
 0x443   : > { %4343 = vst.msk [vmem:[#allocation4 + $0x30] sm:$0xf] %vm4336_vm13, %v4325_v36 }
 0x444   : > { %5044 = vmatmul.bf16.gmra.mxu1 %v6282_v38 }
 0x447   : > { %v4486_v23 = vpop.permute.xlu1 %4485 }
 0x448   : > { %4504 = vst.msk [vmem:[#allocation4 + $0x30] sm:$0xf] %vm9280_vm5, %v4486_v23 }
 0x451   : > { %v4488_v12 = vpop.permute.xlu2 %4487  ;;  %v5074_v52 = vpop.f32.mrf.mxu2 }
 0x459   : > { %v4633_v28 = vpop.permute.xlu2 %4632  ;;  %v5076_v21 = vpop.f32.mrf.mxu2 }
 0x45d   : > { %v4327_v40 = vpop.permute.xlu0 %4326 }
 0x45e   : > { %4344 = vst.msk [vmem:[#allocation4 + $0x38] sm:$0xf] %vm4336_vm13, %v4327_v40  ;;  %vm9284_vm13 = vmmov %vm9276_vm2  ;;  %v5170_v40 = vshrl.u32 %v5169_v61, 16 }
 0x45f   : > { %4505 = vst.msk [vmem:[#allocation4 + $0x38] sm:$0xf] %vm9281_vm10, %v4488_v12  ;;  %vm8962_vm8 = vmand %vm5150_vm11, %vm9284_vm13 }
 0x461   : > { %v4585_v4 = vpop.permute.xlu1 %4584  ;;  %v4796_v11 = vpop.permute.xlu2 %4795 }
 0x462   : > { %4602 = vst.msk [vmem:[#allocation4 + $0x38] sm:$0xf] %vm9282_vm15, %v4585_v4 }
 0x465   : > { %v4583_v20 = vpop.permute.xlu0 %4582 }
 0x466   : > { %4601 = vst.msk [vmem:[#allocation4 + $0x30] sm:$0xf] %vm9283_vm4, %v4583_v20 }
 0x467   : > { %4651 = vst.msk [vmem:[#allocation4 + $0x30] sm:$0xf] %vm4644_vm14, %v4633_v28 }
 0x46a   : > { %v4794_v24 = vpop.permute.xlu1 %4793 }
 0x46b   : > { %4812 = vst.msk [vmem:[#allocation4 + $0x30] sm:$0xf] %vm4805_vm0, %v4794_v24 }
 0x46d   : > { %v4635_v49 = vpop.permute.xlu0 %4634 }
 0x46e   : > { %v5040_v3 = vpop.f32.mrf.mxu1  ;;  %4652 = vst.msk [vmem:[#allocation4 + $0x38] sm:$0xf] %vm4644_vm14, %v4635_v49  ;;  %vm5162_vm14 = vcmask 778752  }
 0x46f   : > { %v5041_v43 = vadd.f32 %v8884_v44, %v5040_v3  ;;  %4813 = vst.msk [vmem:[#allocation4 + $0x38] sm:$0xf] %vm4805_vm0, %v4796_v11  ;;  %vm9287_vm0 = vmmov %vm9276_vm2  ;;  %vm5177_vm2 = vcmask 1041152  }
 0x470   : > { %vm8993_vm9 = vmand %vm5162_vm14, %vm9287_vm0 }
 0x471   : > { %v5070_v55 = vadd.f32 %v5069_v41, %v5041_v43 }
 0x472   : > { %v6289_v22 = vld [vmem:[#allocation4 + $0x30] sm:$0xf] }
 0x473   : > { %v5086_v59 = vmax.f32 %v5070_v55, 0.0 }
 0x475   : > { %v5148_v34 = vpop.permute.xlu0 %5147  ;;  %v5096_v53 = vsel %vm5092_vm7, %v5086_v59, -inf }
 0x476   : > { %v5042_v35 = vpop.f32.mrf.mxu1  ;;  %v5153_v50 = vsel %vm8962_vm8, %v5148_v34, %v5152_v27  ;;  %v6538_v1 = vld [vmem:[#allocation4 + $0x34] sm:$0xf0] }
 0x477   : > { %v5043_v56 = vadd.f32 %v8884_v44, %v5042_v35  ;;  %5154 = vst [vmem:[#allocation5] sm:$0x1] %v5153_v50  ;;  %v6290_v33 = vor.u32 %v6538_v1, %v6289_v22 }
 0x479   : > { %v5072_v15 = vadd.f32 %v5071_v58, %v5043_v56  ;;  %5049 = vmatmul.bf16.gmra.mxu1 %v6290_v33 }
 0x47b   : > { %v5087_v54 = vmax.f32 %v5072_v15, 0.0 }
 0x47d   : > { %v5097_v60 = vsel %vm5092_vm7, %v5087_v54, -inf }
 0x47e   : > { %v5098_v0 = vmax.f32 %v5096_v53, %v5097_v60  ;;  %v5164_v50 = vld [vmem:[#allocation5] sm:$0x1]  ;;  %v5264_v53 = vld [vmem:[#allocation5 + $0x3] sm:$0x1] }
 0x480   : > { %5106 = vst.msk [vmem:[#allocation7 + $0x8] sm:$0xff] %vm5092_vm7, %v5098_v0 }
 0x482   : > { %v5079_v4 = vpop.f32.mrf.mxu2 }
 0x487   : > { %v5111_v42 = vld [vmem:[#allocation7 + $0x8] ss:$2 sm:$0xf]  ;;  %v5119_v57 = vld [vmem:[#allocation7 + $0x9] ss:$2 sm:$0xf] }
 0x488   : > { %v5125_v6 = vmax.f32 %v5111_v42, %v5119_v57 }
 0x48a   : > { %v5129_v5 = vpack.c.bf16 %v5125_v6, %v5125_v6  ;;  %v5081_v55 = vpop.f32.mrf.mxu2 }
 0x48c   : > { %v5186_v2 = vrot.slane %v5129_v5, 3  ;;  %5200 = vst [vmem:[#allocation1] sm:$0xff] %v5129_v5  ;;  %v5183_v16 = vsel %vm8923_vm12, %v5129_v5, %v5182_v29 }
 0x48d   : > { %5184 = vst [vmem:[#allocation5 + $0x1] sm:$0x1] %v5183_v16 }
 0x48e   : > { %v5189_v39 = vsel %vm5139_vm3, %v5129_v5, %v5186_v2 }
 0x48f   : > { %v5190_v10 = vshrl.u32 %v5189_v39, 16  ;;  %v6555_v39 = vld [vmem:[%s9187_s4 + $0x38] sm:$0xff] }
 0x490   : > { %5573 = vmatpush.bf16.msrb.mxu3 %v6555_v39 }
 0x491   : > { %5194 = vrot.lane.b32.xlu1 %v5190_v10, %s6641_s13 }
 0x493   : > { %v5202_v62 = vld [vmem:[#allocation1 + $0x1] ss:$4 sm:$0xff] }
 0x494   : > { %5210 = vst [vmem:[#allocation1] sm:$0xff] %v5129_v5  ;;  %v5197_v3 = vld [vmem:[#allocation5 + $0x1] sm:$0x1] }
 0x499   : > { %5159 = vrot.lane.b32.xlu1 %v8937_v25, %s6645_s10 }
 0x49b   : > { %v5212_v26 = vld [vmem:[#allocation1 + $0x1] ss:$4 sm:$0xff] }
 0x49c   : > { %v5213_v46 = vshrl.u32 %v5212_v26, 16  ;;  %v6577_v26 = vld [vmem:[%s9187_s4 + $0xe8] sm:$0xff] }
 0x4c1   : > { %v5045_v63 = vpop.f32.mrf.mxu1 }
 0x4c2   : > { %v5046_v17 = vadd.f32 %v8884_v44, %v5045_v63 }
 0x4c4   : > { %v5075_v7 = vadd.f32 %v5074_v52, %v5046_v17 }
 0x4c6   : > { %v5088_v8 = vmax.f32 %v5075_v7, 0.0 }
 0x4c8   : > { %v5099_v45 = vsel %vm5092_vm7, %v5088_v8, -inf }
 0x4c9   : > { %v5047_v13 = vpop.f32.mrf.mxu1 }
 0x4ca   : > { %v5048_v19 = vadd.f32 %v8884_v44, %v5047_v13 }
 0x4cc   : > { %v5077_v18 = vadd.f32 %v5076_v21, %v5048_v19 }
 0x4ce   : > { %v5089_v30 = vmax.f32 %v5077_v18, 0.0  ;;  %v6571_v18 = vld [vmem:[%s9187_s4 + $0xb8] sm:$0xff] }
 0x4cf   : > { %5599 = vmatpush.bf16.msrb.mxu2 %v6571_v18  ;;  %v5370_v18 = vld [vmem:[%s9189_s6 + $0x2] sm:$0x1] }
 0x4d0   : > { %v5100_v47 = vsel %vm5092_vm7, %v5089_v30, -inf  ;;  %v6554_v30 = vld [vmem:[%s9187_s4 + $0x30] sm:$0xff] }
 0x4d1   : > { %v5101_v31 = vmax.f32 %v5099_v45, %v5100_v47  ;;  %v6579_v45 = vld [vmem:[%s9187_s4 + $0xf8] sm:$0xff]  ;;  %5574 = vmatpush.bf16.msrb.mxu3 %v6554_v30  ;;  %v6570_v47 = vld [vmem:[%s9187_s4 + $0xb0] sm:$0xff] }
 0x4d2   : > { %5612 = vmatpush.bf16.msra.mxu1 %v6579_v45 }
 0x4d3   : > { %5107 = vst.msk [vmem:[#allocation7 + $0x10] sm:$0xff] %vm5092_vm7, %v5101_v31  ;;  %v6553_v31 = vld [vmem:[%s9187_s4 + $0x28] sm:$0xff]  ;;  %5600 = vmatpush.bf16.msrb.mxu2 %v6570_v47 }
 0x4d5   : > { %5575 = vmatpush.bf16.msrb.mxu3 %v6553_v31 }
 0x4da   : > { %v5113_v25 = vld [vmem:[#allocation7 + $0x10] ss:$2 sm:$0xf]  ;;  %v5121_v14 = vld [vmem:[#allocation7 + $0x11] ss:$2 sm:$0xf] }
 0x4db   : > { %v5126_v9 = vmax.f32 %v5113_v25, %v5121_v14  ;;  %v6552_v25 = vld [vmem:[%s9187_s4 + $0x20] sm:$0xff]  ;;  %v6569_v14 = vld [vmem:[%s9187_s4 + $0xa8] sm:$0xff] }
 0x4dc   : > { %5576 = vmatpush.bf16.msrb.mxu3 %v6552_v25  ;;  %5601 = vmatpush.bf16.msrb.mxu2 %v6569_v14 }
 0x4dd   : > { %v5130_v37 = vpack.c.bf16 %v5126_v9, %v5126_v9  ;;  %v6578_v9 = vld [vmem:[%s9187_s4 + $0xf0] sm:$0xff] }
 0x4de   : > { %5613 = vmatpush.bf16.msra.mxu1 %v6578_v9 }
 0x4df   : > { %v5227_v32 = vrot.slane %v5130_v37, 3  ;;  %5241 = vst [vmem:[#allocation1] sm:$0xff] %v5130_v37  ;;  %v5224_v36 = vsel %vm8923_vm12, %v5130_v37, %v5223_v48  ;;  %v6551_v48 = vld [vmem:[%s9187_s4 + $0x18] sm:$0xff] }
 0x4e0   : > { %5225 = vst [vmem:[#allocation5 + $0x2] sm:$0x1] %v5224_v36  ;;  %5577 = vmatpush.bf16.msrb.mxu3 %v6551_v48  ;;  %v6576_v36 = vld [vmem:[%s9187_s4 + $0xe0] sm:$0xff] }
 0x4e1   : > { %v5230_v38 = vsel %vm5139_vm3, %v5130_v37, %v5227_v32  ;;  %v6550_v32 = vld [vmem:[%s9187_s4 + $0x10] sm:$0xff] }
 0x4e2   : > { %v5231_v23 = vshrl.u32 %v5230_v38, 16  ;;  %5614 = vmatpush.bf16.msra.mxu1 %v6577_v26  ;;  %v6567_v38 = vld [vmem:[%s9187_s4 + $0x98] sm:$0xff]  ;;  %v6585_v26 = vld [vmem:[%s9188_s5 + $0x28] sm:$0xff] }
 0x4e4   : > { %5235 = vrot.lane.b32.xlu2 %v5231_v23, %s6641_s13  ;;  %5578 = vmatpush.bf16.msrb.mxu3 %v6550_v32  ;;  %v6549_v23 = vld [vmem:[%s9187_s4 + $0x8] sm:$0xff] }
 0x4e6   : > { %v5243_v12 = vld [vmem:[#allocation1 + $0x1] ss:$4 sm:$0xff]  ;;  %5615 = vmatpush.bf16.msra.mxu1 %v6576_v36 }
 0x4e7   : > { %5251 = vst [vmem:[#allocation1] sm:$0xff] %v5130_v37  ;;  %v6568_v37 = vld [vmem:[%s9187_s4 + $0xa0] sm:$0xff] }
 0x4e8   : > { %5602 = vmatpush.bf16.msrb.mxu2 %v6568_v37  ;;  %5579 = vmatpush.bf16.msrb.mxu3 %v6549_v23  ;;  %v6586_v37 = vld [vmem:[%s9188_s5 + $0x30] sm:$0xff]  ;;  %v6583_v23 = vld [vmem:[%s9188_s5 + $0x18] sm:$0xff] }
 0x4ec   : > { %5204 = vrot.lane.b32.xlu2 %v5202_v62, %s6645_s10  ;;  %v5238_v62 = vld [vmem:[#allocation5 + $0x2] sm:$0x1]  ;;  %5603 = vmatpush.bf16.msrb.mxu2 %v6567_v38  ;;  %v6584_v38 = vld [vmem:[%s9188_s5 + $0x20] sm:$0xff] }
 0x4ee   : > { %v5253_v0 = vld [vmem:[#allocation1 + $0x1] ss:$4 sm:$0xff] }
 0x4ef   : > { %v5254_v61 = vshrl.u32 %v5253_v0, 16 }
 0x4f4   : > { %5174 = vrot.lane.b32.xlu2 %v5170_v40, %s6646_s12  ;;  %v6566_v40 = vld [vmem:[%s9187_s4 + $0x90] sm:$0xff] }
 0x4f5   : > { %5604 = vmatpush.bf16.msrb.mxu2 %v6566_v40  ;;  %v6587_v40 = vld [vmem:[%s9188_s5 + $0x38] sm:$0xff] }
 0x4f6   : > { %v5050_v28 = vpop.f32.mrf.mxu1 }
 0x4f7   : > { %v5051_v20 = vadd.f32 %v8884_v44, %v5050_v28 }
 0x4f9   : > { %v5080_v41 = vadd.f32 %v5079_v4, %v5051_v20  ;;  %5605 = vmatpush.bf16.msrb.mxu2 %v6565_v51 }
 0x4fb   : > { %v5090_v35 = vmax.f32 %v5080_v41, 0.0  ;;  %v6548_v41 = vld [vmem:[%s9187_s4] sm:$0xff] }
 0x4fc   : > { %5580 = vmatpush.bf16.msrb.mxu3 %v6548_v41 }
 0x4fd   : > { %v5102_v15 = vsel %vm5092_vm7, %v5090_v35, -inf }
 0x4fe   : > { %v5052_v43 = vpop.f32.mrf.mxu1 }
 0x4ff   : > { %v5053_v49 = vadd.f32 %v8884_v44, %v5052_v43 }
 0x501   : > { %v5082_v56 = vadd.f32 %v5081_v55, %v5053_v49  ;;  %v6573_v49 = vld [vmem:[%s9187_s4 + $0xc8] sm:$0xff] }
 0x503   : > { %v5195_v24 = vpop.permute.xlu1 %5194  ;;  %v5091_v58 = vmax.f32 %v5082_v56, 0.0  ;;  %v6564_v56 = vld [vmem:[%s9187_s4 + $0x80] sm:$0xff] }
 0x504   : > { %v5198_v11 = vsel %vm8962_vm8, %v5195_v24, %v5197_v3  ;;  %v6563_v24 = vld [vmem:[%s9187_s4 + $0x78] sm:$0xff]  ;;  %v6574_v3 = vld [vmem:[%s9187_s4 + $0xd0] sm:$0xff]  ;;  %5606 = vmatpush.bf16.msrb.mxu2 %v6564_v56 }
 0x505   : > { %5199 = vst [vmem:[#allocation5 + $0x1] sm:$0x1] %v5198_v11  ;;  %v5103_v34 = vsel %vm5092_vm7, %v5091_v58, -inf  ;;  %5586 = vmatpush.bf16.msra.mxu3 %v6563_v24  ;;  %v6562_v11 = vld [vmem:[%s9187_s4 + $0x70] sm:$0xff] }
 0x506   : > { %v5104_v27 = vmax.f32 %v5102_v15, %v5103_v34 }
 0x508   : > { %5108 = vst.msk [vmem:[#allocation7 + $0x18] sm:$0xff] %vm5092_vm7, %v5104_v27  ;;  %v6561_v27 = vld [vmem:[%s9187_s4 + $0x68] sm:$0xff] }
 0x509   : > { %5587 = vmatpush.bf16.msra.mxu3 %v6562_v11 }
 0x50b   : > { %v5160_v54 = vpop.permute.xlu1 %5159 }
 0x50c   : > { %v5165_v44 = vsel %vm8993_vm9, %v5160_v54, %v5164_v50  ;;  %v5207_v63 = vld [vmem:[#allocation5 + $0x1] sm:$0x1]  ;;  %v6572_v54 = vld [vmem:[%s9187_s4 + $0xc0] sm:$0xff] }
 0x50d   : > { %5166 = vst [vmem:[#allocation5] sm:$0x1] %v5165_v44  ;;  %5588 = vmatpush.bf16.msra.mxu3 %v6561_v27  ;;  %v6560_v50 = vld [vmem:[%s9187_s4 + $0x60] sm:$0xff] }
 0x50f   : > { %v5115_v22 = vld [vmem:[#allocation7 + $0x18] ss:$2 sm:$0xf]  ;;  %v5123_v1 = vld [vmem:[#allocation7 + $0x19] ss:$2 sm:$0xf] }
 0x510   : > { %v5127_v33 = vmax.f32 %v5115_v22, %v5123_v1 }
 0x511   : > { %5589 = vmatpush.bf16.msra.mxu3 %v6560_v50 }
 0x512   : > { %v5131_v60 = vpack.c.bf16 %v5127_v33, %v5127_v33 }
 0x514   : > { %v5268_v42 = vrot.slane %v5131_v60, 3  ;;  %5282 = vst [vmem:[#allocation1] sm:$0xff] %v5131_v60  ;;  %v5265_v57 = vsel %vm8923_vm12, %v5131_v60, %v5264_v53  ;;  %vm9290_vm12 = vmmov %vm9287_vm0  ;;  %v5179_v21 = vld [vmem:[#allocation5] sm:$0x1] }
 0x515   : > { %5266 = vst [vmem:[#allocation5 + $0x3] sm:$0x1] %v5265_v57  ;;  %vm9019_vm1 = vmand %vm5177_vm2, %vm9290_vm12  ;;  %v6559_v57 = vld [vmem:[%s9187_s4 + $0x58] sm:$0xff] }
 0x516   : > { %v5271_v6 = vsel %vm5139_vm3, %v5131_v60, %v5268_v42  ;;  %5590 = vmatpush.bf16.msra.mxu3 %v6559_v57  ;;  %vm9293_vm3 = vmmov %vm9272_vm6  ;;  %vm5725_vm6 = vcmask 523264  }
 0x517   : > { %v5272_v29 = vshrl.u32 %v5271_v6, 16  ;;  %v6558_v6 = vld [vmem:[%s9187_s4 + $0x50] sm:$0xff] }
 0x519   : > { %5276 = vrot.lane.b32.xlu0 %v5272_v29, %s6641_s13 }
 0x51a   : > { %5591 = vmatpush.bf16.msra.mxu3 %v6558_v6 }
 0x51b   : > { %v5284_v5 = vld [vmem:[#allocation1 + $0x1] ss:$4 sm:$0xff] }
 0x51c   : > { %5286 = vrot.lane.b32.xlu1 %v5284_v5, %s6645_s10  ;;  %5292 = vst [vmem:[#allocation1] sm:$0xff] %v5131_v60  ;;  %v5279_v4 = vld [vmem:[#allocation5 + $0x3] sm:$0x1]  ;;  %v6557_v5 = vld [vmem:[%s9187_s4 + $0x48] sm:$0xff] }
 0x51e   : > { %5592 = vmatpush.bf16.msra.mxu3 %v6557_v5 }
 0x521   : > { %5245 = vrot.lane.b32.xlu0 %v5243_v12, %s6645_s10  ;;  %v6575_v12 = vld [vmem:[%s9187_s4 + $0xd8] sm:$0xff] }
 0x522   : > { %5616 = vmatpush.bf16.msra.mxu1 %v6575_v12  ;;  %v6588_v12 = vld [vmem:[%s9188_s5 + $0x40] sm:$0xff] }
 0x523   : > { %v5294_v2 = vld [vmem:[#allocation1 + $0x1] ss:$4 sm:$0xff] }
 0x524   : > { %5258 = vrot.lane.b32.xlu1 %v5254_v61, %s6646_s12  ;;  %v5295_v16 = vshrl.u32 %v5294_v2, 16  ;;  %v6556_v61 = vld [vmem:[%s9187_s4 + $0x40] sm:$0xff] }
 0x525   : > { %5593 = vmatpush.bf16.msra.mxu3 %v6556_v61 }
 0x526   : > { %5299 = vrot.lane.b32.xlu2 %v5295_v16, %s6646_s12  ;;  %5617 = vmatpush.bf16.msra.mxu1 %v6574_v3 }
 0x529   : > { %5217 = vrot.lane.b32.xlu0 %v5213_v46, %s6646_s12 }
 0x52a   : > { %5618 = vmatpush.bf16.msra.mxu1 %v6573_v49 }
 0x52e   : > { %5619 = vmatpush.bf16.msra.mxu1 %v6572_v54 }
 0x53e   : > { %v5236_v10 = vpop.permute.xlu2 %5235 }
 0x53f   : > { %v5239_v52 = vsel %vm8962_vm8, %v5236_v10, %v5238_v62  ;;  %v6582_v10 = vld [vmem:[%s9188_s5 + $0x10] sm:$0xff]  ;;  %v6581_v62 = vld [vmem:[%s9188_s5 + $0x8] sm:$0xff] }
 0x540   : > { %5240 = vst [vmem:[#allocation5 + $0x2] sm:$0x1] %v5239_v52  ;;  %5689 = vmatpush.bf16.msra.mxu2 %v6581_v62  ;;  %v5627_v52 = vld [vmem:[%s285_s21] sm:$0x1] }
 0x546   : > { %v5205_v17 = vpop.permute.xlu2 %5204 }
 0x547   : > { %v5208_v7 = vsel %vm8993_vm9, %v5205_v17, %v5207_v63  ;;  %v5248_v55 = vld [vmem:[#allocation5 + $0x2] sm:$0x1]  ;;  %v6580_v63 = vld [vmem:[%s9188_s5] sm:$0xff] }
 0x548   : > { %5209 = vst [vmem:[#allocation5 + $0x1] sm:$0x1] %v5208_v7  ;;  %5690 = vmatpush.bf16.msra.mxu2 %v6580_v63 }
 0x54e   : > { %v5175_v19 = vpop.permute.xlu2 %5174 }
 0x54f   : > { %v5180_v8 = vsel %vm9019_vm1, %v5175_v19, %v5179_v21  ;;  %v5220_v59 = vld [vmem:[#allocation5 + $0x1] sm:$0x1] }
 0x550   : > { %5181 = vst [vmem:[#allocation5] sm:$0x1] %v5180_v8 }
 0x580   : > { %v5300_v53 = vpop.permute.xlu2 %5299 }
 0x58b   : > { %v5277_v28 = vpop.permute.xlu0 %5276 }
 0x58c   : > { %v5280_v20 = vsel %vm8962_vm8, %v5277_v28, %v5279_v4  ;;  %v5696_v28 = vld [vmem:[%s9189_s6 + $0x3] sm:$0x1] }
 0x58d   : > { %5281 = vst [vmem:[#allocation5 + $0x3] sm:$0x1] %v5280_v20 }
 0x58e   : > { %v5287_v43 = vpop.permute.xlu1 %5286 }
 0x593   : > { %v5246_v35 = vpop.permute.xlu0 %5245 }
 0x594   : > { %v5289_v58 = vld [vmem:[#allocation5 + $0x3] sm:$0x1]  ;;  %v5249_v15 = vsel %vm8993_vm9, %v5246_v35, %v5248_v55 }
 0x595   : > { %v5290_v34 = vsel %vm8993_vm9, %v5287_v43, %v5289_v58  ;;  %5250 = vst [vmem:[#allocation5 + $0x2] sm:$0x1] %v5249_v15  ;;  %v5700_v43 = vld [vmem:[%s9189_s6 + $0x4] sm:$0x1]  ;;  %v5744_v58 = vld [vmem:[%s9189_s6 + $0x5] sm:$0x1] }
 0x596   : > { %5291 = vst [vmem:[#allocation5 + $0x3] sm:$0x1] %v5290_v34  ;;  %v5259_v22 = vpop.permute.xlu1 %5258 }
 0x59b   : > { %v5218_v44 = vpop.permute.xlu0 %5217 }
 0x59c   : > { %v5261_v1 = vld [vmem:[#allocation5 + $0x2] sm:$0x1]  ;;  %v5221_v33 = vsel %vm9019_vm1, %v5218_v44, %v5220_v59 }
 0x59d   : > { %v5302_v60 = vld [vmem:[#allocation5 + $0x3] sm:$0x1]  ;;  %v5262_v0 = vsel %vm9019_vm1, %v5259_v22, %v5261_v1  ;;  %5222 = vst [vmem:[#allocation5 + $0x1] sm:$0x1] %v5221_v33 }
 0x59e   : > { %v5303_v42 = vsel %vm9019_vm1, %v5300_v53, %v5302_v60  ;;  %5263 = vst [vmem:[#allocation5 + $0x2] sm:$0x1] %v5262_v0 }
 0x59f   : > { %5304 = vst [vmem:[#allocation5 + $0x3] sm:$0x1] %v5303_v42 }
 0x5a6   : > { %v5305_v29 = vld [vmem:[#allocation5] sm:$0xf] }
 0x5a7   : > { %5372 = vst [vmem:[#allocation1] ss:$9 sm:$0xff] %v5305_v29 }
 0x5ae   : > { %v5373_v2 = vld [vmem:[#allocation1] sm:$0xff]  ;;  %v5375_v16 = vld [vmem:[#allocation1 + $0x12] sm:$0xff]  ;;  %v5374_v39 = vld [vmem:[#allocation1 + $0x9] sm:$0xff] }
 0x5af   : > { %v5376_v46 = vld [vmem:[#allocation1 + $0x1b] sm:$0xff]  ;;  %5581 = vmatmul.bf16.vlgmr.msrb.gmra.mxu3 %v5373_v2  ;;  %5607 = vmatmul.bf16.vlgmr.msrb.gmra.mxu2 %v5375_v16 }
 0x5b0   : > { %5620 = vmatmul.bf16.vlgmr.msra.gmra.mxu1 %v5376_v46  ;;  %5662 = vmatpush.bf16.msrb.mxu3 %v6582_v10 }
 0x5b1   : > { %5766 = vmatpush.bf16.msrb.mxu2 %v6588_v12 }
 0x5b5   : > { %5767 = vmatpush.bf16.msrb.mxu2 %v6587_v40 }
 0x5bf   : > { %5594 = vmatmul.bf16.vlgmr.msra.gmra.mxu3 %v5374_v39 }
 0x5c0   : > { %5733 = vmatpush.bf16.msra.mxu3 %v6586_v37 }
 0x5c4   : > { %5734 = vmatpush.bf16.msra.mxu3 %v6585_v26 }
 0x5c8   : > { %5735 = vmatpush.bf16.msra.mxu3 %v6584_v38 }
 0x5cc   : > { %5736 = vmatpush.bf16.msra.mxu3 %v6583_v23 }
 0x5cf   : > { %6475 = vmatmul.msk.bf16.vlgmr.msrb.gmra.mxu3 %vm9293_vm3, %v5627_v52 }
 0x62d   : > { %v5621_v17 = vpop.f32.mrf.mxu1 }
 0x632   : > { %v5582_v7 = vpop.f32.mrf.mxu3  ;;  %v5608_v13 = vpop.f32.mrf.mxu2 }
 0x633   : > { %v5583_v30 = vadd.f32 %v5582_v7, %v5370_v18 }
 0x635   : > { %v5623_v19 = vpop.f32.mrf.mxu1 }
 0x63a   : > { %v5584_v21 = vpop.f32.mrf.mxu3  ;;  %v5610_v8 = vpop.f32.mrf.mxu2 }
 0x642   : > { %v5595_v45 = vpop.f32.mrf.mxu3 }
 0x643   : > { %v5596_v47 = vadd.f32 %v5595_v45, %v5583_v30 }
 0x645   : > { %v5609_v31 = vadd.f32 %v5608_v13, %v5596_v47 }
 0x647   : > { %v5622_v25 = vadd.f32 %v5621_v17, %v5609_v31 }
 0x649   : > { %v5625_v14 = vmax.f32 %v5622_v25, 0.0 }
 0x64a   : > { %v5597_v9 = vpop.f32.mrf.mxu3 }
 0x64b   : > { %v5626_v48 = vpack.c.bf16 %v5625_v14, %v5625_v14 }
 0x64d   : > { %6484 = vmatmul.msk.bf16.vlgmr.msra.gmra.mxu2 %vm5092_vm7, %v5626_v48 }
 0x652   : > { %v5664_v32 = vpop.f32.mrf.mxu3 }
 0x65a   : > { %v5666_v36 = vpop.f32.mrf.mxu3 }
 0x6d0   : > { %v5692_v4 = vpop.f32.mrf.mxu2 }
 0x6d1   : > { %v5693_v20 = vadd.f32 %v5692_v4, %v5664_v32 }
 0x6d3   : > { %v5697_v41 = vadd.f32 %v5696_v28, %v5693_v20 }
 0x6d5   : > { %v5698_v24 = vmax.f32 %v5697_v41, 0.0 }
 0x6d7   : > { %v5699_v3 = vpack.c.bf16 %v5698_v24, %v5698_v24 }
 0x6d8   : > { %v5694_v51 = vpop.f32.mrf.mxu2 }
 0x6d9   : > { %6501 = vmatmul.msk.bf16.vlgmr.msra.gmra.mxu3 %vm5725_vm6, %v5699_v3 }
 0x75c   : > { %v5738_v11 = vpop.f32.mrf.mxu3 }
 0x75d   : > { %v5739_v49 = vadd.f32 %v5738_v11, %v5700_v43 }
 0x75f   : > { %v5742_v55 = vmax.f32 %v5739_v49, 0.0 }
 0x761   : > { %v5743_v35 = vpack.c.bf16 %v5742_v55, %v5742_v55 }
 0x763   : > { %6510 = vmatmul.msk.bf16.vlgmr.msrb.gmra.mxu2 %vm5092_vm7, %v5743_v35  ;;  %vm5783_vm7 = vcmask 0  }
 0x764   : > { %v5740_v56 = vpop.f32.mrf.mxu3 }
 0x7e6   : > { %v5769_v15 = vpop.f32.mrf.mxu2 }
 0x7e7   : > { %v5770_v34 = vadd.f32 %v5769_v15, %v5744_v58 }
 0x7e9   : > { %v5774_v27 = vand.u32 2147483647, %v5770_v34  ;;  %v5773_v33 = vmax.f32 %v5770_v34, 0.0 }
 0x7eb   : > { %v5775_v54 = vsub.f32 0.0, %v5774_v27 }
 0x7ed   : > { %v5776_v50 = vmul.f32 1.442695, %v5775_v54 }
 0x7ee   : > { %v5771_v59 = vpop.f32.mrf.mxu2 }
 0x7ef   : > { %6620 = vpow2.f32 %v5776_v50 }
 0x7f5   : > { %v6621_v44 = vpop.eup %6620 }
 0x7f6   : > { %v5778_v22 = vadd.f32 1.0, %v6621_v44 }
 0x7f8   : > { %6622 = vlog2.f32 %v5778_v22 }
 0x7fe   : > { %v6623_v1 = vpop.eup %6622 }
 0x7ff   : > { %v5780_v53 = vmul.f32 0.6931472, %v6623_v1 }
 0x801   : > { %v5781_v60 = vadd.f32 %v5780_v53, %v5773_v33 }
 0x803   : > { %v5782_v0 = vadd.f32 1e-06, %v5781_v60 }
 0x805   : > { %5784 = vst.msk [vmem:[%s288_s27] sm:$0x1] %vm5783_vm7, %v5782_v0 }
 0x806 PF: > { %s17_s24 = sadd.s32 1, %s6633_s24  }
 0x807   : > { %p14_p4 = scmp.ge.s32.totalorder %s17_s24, 4  }
 0x809   :  { %16 = sbr.rel (!%p14_p4) target bundleno = 1 (0x1), region = 115 }

</bundles_post_ra>
